<compile_context>
chip_gen: v7x
topology: tpu7x:2x2x1
jax: 0.10.0
libtpu: 0.0.40
codegen_flags: <defaults>
</compile_context>

<pallas_src>
import functools

import jax
import jax.numpy as jnp
from jax.experimental import pallas as pl
from jax.experimental.pallas import tpu as pltpu


# ----------------------------- fused conv + norm + act kernel -----------------------------

def _conv_norm_act_kernel(p_ref, w_ref, b_ref, g_ref, h_ref, o_ref, *, norm, act, eps):
    # p_ref : (1, K, L)  bf16 im2col patches of one sample (lane = spatial positions)
    # w_ref : (Cout, K)  bf16 weights (stationary across the batch grid)
    # b_ref : (Cout, 1)  f32 bias
    # g_ref / h_ref : affine params; (1, Cout, 1) for 'adain' (per-sample) and 'ln'
    #                 (shared), dummy (1, 1, 1) otherwise.
    p = p_ref[0]                                              # (K, L)
    w = w_ref[...]                                            # (Cout, K)
    y = jnp.dot(w, p, preferred_element_type=jnp.float32)     # (Cout, L) f32 accumulate
    y = y + b_ref[...]                                        # bias broadcast over lanes

    if norm == 'in':
        # torch InstanceNorm2d: per-channel spatial stats, biased var, eps inside rsqrt
        mean = jnp.mean(y, axis=1, keepdims=True)
        yc = y - mean
        var = jnp.mean(yc * yc, axis=1, keepdims=True)
        y = yc * jax.lax.rsqrt(var + eps)
    elif norm == 'adain':
        # SpatialNorm2d: per-position channel stats, unbiased std, eps added to std,
        # then per-(sample, channel) affine (F.interpolate(nearest) == spatial broadcast).
        c = y.shape[0]
        mean = jnp.mean(y, axis=0, keepdims=True)
        yc = y - mean
        var = jnp.sum(yc * yc, axis=0, keepdims=True) / (c - 1)
        y = yc / (jnp.sqrt(var) + eps)
        y = g_ref[0] * y + h_ref[0]                           # (Cout,1) broadcast over lanes
    elif norm == 'ln':
        # custom LayerNorm: per-sample stats over C*H*W, unbiased std, eps added to std,
        # then per-channel affine.
        n = y.shape[0] * y.shape[1]
        mean = jnp.mean(jnp.mean(y, axis=1, keepdims=True), axis=0, keepdims=True)
        yc = y - mean
        ss = jnp.sum(jnp.sum(yc * yc, axis=1, keepdims=True), axis=0, keepdims=True)
        y = yc / (jnp.sqrt(ss / (n - 1)) + eps)
        y = g_ref[0] * y + h_ref[0]

    if act == 'relu':
        y = jnp.maximum(y, 0.0)
    elif act == 'tanh':
        y = jnp.tanh(y)
    o_ref[0] = y


# ----------------------------- conv glue (im2col, lane = spatial) -----------------------------

def _im2col(x, k, stride, pad):
    """Zero-pad im2col in NCHW with lane = spatial: returns (B, Cin*k*k, Ho*Wo) bf16."""
    B, C, H, W = x.shape
    xb = x.astype(jnp.bfloat16)                               # halve im2col / DMA bytes
    if pad:
        xb = jnp.pad(xb, ((0, 0), (0, 0), (pad, pad), (pad, pad)))
    Ho = (H + 2 * pad - k) // stride + 1
    Wo = (W + 2 * pad - k) // stride + 1
    # TODO(synk): the 7x7/5x5 wrapper-side gather still writes k^2x the activation bytes
    # through HBM; an in-kernel k^2-shifted accumulation would remove it, but the strided
    # reshaped VMEM reads it needs are not cleanly expressible, and at these sizes (<1 MB
    # in bf16) the traffic is negligible next to launch overhead.
    cols = []
    for i in range(k):
        for j in range(k):
            cols.append(xb[:, :, i:i + stride * Ho:stride, j:j + stride * Wo:stride])
    patches = jnp.stack(cols, axis=2)                         # (B, C, k*k, Ho, Wo)
    patches = patches.reshape(B, C * k * k, Ho * Wo)          # K order = (ci, kh, kw)
    return patches, Ho, Wo


def conv_block(x, w, b, stride, pad, norm='none', act='relu', g=None, h=None, eps=1e-5):
    """Conv2dBlock: zero-pad -> conv -> {none,in,adain,ln} -> {relu,tanh,none}, one pallas_call.

    x: (B, Cin, H, W) f32; w: (Cout, Cin, k, k); b: (Cout,).
    'adain': g/h are (B, Cout) weight/bias.  'ln': g/h are (Cout,) gamma/beta.
    """
    B, Cin, H, W = x.shape
    Cout = w.shape[0]
    k = w.shape[2]
    patches, Ho, Wo = _im2col(x, k, stride, pad)
    K, L = Cin * k * k, Ho * Wo
    wf = w.reshape(Cout, K).astype(jnp.bfloat16)
    bf = b.reshape(Cout, 1).astype(jnp.float32)

    if norm == 'adain':
        gq = g.reshape(B, Cout, 1).astype(jnp.float32)
        hq = h.reshape(B, Cout, 1).astype(jnp.float32)
        aff_spec = pl.BlockSpec((1, Cout, 1), lambda i: (i, 0, 0))
    elif norm == 'ln':
        gq = g.reshape(1, Cout, 1).astype(jnp.float32)
        hq = h.reshape(1, Cout, 1).astype(jnp.float32)
        aff_spec = pl.BlockSpec((1, Cout, 1), lambda i: (0, 0, 0))
    else:
        gq = jnp.zeros((1, 1, 1), jnp.float32)
        hq = gq
        aff_spec = pl.BlockSpec((1, 1, 1), lambda i: (0, 0, 0))

    out = pl.pallas_call(
        functools.partial(_conv_norm_act_kernel, norm=norm, act=act, eps=eps),
        out_shape=jax.ShapeDtypeStruct((B, Cout, L), jnp.float32),
        grid=(B,),
        in_specs=[
            pl.BlockSpec((1, K, L), lambda i: (i, 0, 0)),     # per-sample patch matrix
            pl.BlockSpec((Cout, K), lambda i: (0, 0)),        # stationary weights
            pl.BlockSpec((Cout, 1), lambda i: (0, 0)),        # bias
            aff_spec, aff_spec,
        ],
        out_specs=pl.BlockSpec((1, Cout, L), lambda i: (i, 0, 0)),
        compiler_params=pltpu.CompilerParams(dimension_semantics=("parallel",)),
    )(patches, wf, bf, gq, hq)
    return out.reshape(B, Cout, Ho, Wo)


def upsample2x(x):
    # nn.Upsample(scale_factor=2), default nearest
    return jnp.repeat(jnp.repeat(x, 2, axis=2), 2, axis=3)


# ----------------------------- parameters -----------------------------

INPUT_DIM = 3
DIM = 8
STYLE_DIM = 8
N_DOWNSAMPLE = 2
N_RES = 2
MLP_DIM = 32
DEC_DIM = DIM * (2 ** N_DOWNSAMPLE)          # 32 = content encoder output dim
NUM_ADAIN = 2 * N_RES * 2 * DEC_DIM          # 4 SpatialNorm2d * 2*32 = 256


def _init_conv(key, cout, cin, k):
    kw, kb = jax.random.split(key)
    w = jax.random.normal(kw, (cout, cin, k, k), jnp.float32) / jnp.sqrt(cin * k * k)
    b = jax.random.normal(kb, (cout,), jnp.float32) * 0.01
    return w, b


def init_params(key):
    keys = iter(jax.random.split(key, 64))
    p = {'style': {}, 'content': {}, 'dec': {}, 'mlp': {}}

    # StyleEncoder(4, 3, 8, 8, norm='none')
    s_dims = [(DIM, INPUT_DIM, 7), (2 * DIM, DIM, 4), (4 * DIM, 2 * DIM, 4),
              (4 * DIM, 4 * DIM, 4), (4 * DIM, 4 * DIM, 4), (STYLE_DIM, 4 * DIM, 1)]
    for i, (co, ci, k) in enumerate(s_dims):
        p['style'][f'c{i}_w'], p['style'][f'c{i}_b'] = _init_conv(next(keys), co, ci, k)

    # ContentEncoder(2, 2, 3, 8, norm='in')
    c_dims = [(DIM, INPUT_DIM, 7), (2 * DIM, DIM, 4), (4 * DIM, 2 * DIM, 4)]
    for i, (co, ci, k) in enumerate(c_dims):
        p['content'][f'c{i}_w'], p['content'][f'c{i}_b'] = _init_conv(next(keys), co, ci, k)
    for r in range(N_RES):
        p['content'][f'r{r}a_w'], p['content'][f'r{r}a_b'] = _init_conv(next(keys), DEC_DIM, DEC_DIM, 3)
        p['content'][f'r{r}b_w'], p['content'][f'r{r}b_b'] = _init_conv(next(keys), DEC_DIM, DEC_DIM, 3)

    # Decoder(2, 2, 32, 3, res_norm='adain')
    for r in range(N_RES):
        p['dec'][f'r{r}a_w'], p['dec'][f'r{r}a_b'] = _init_conv(next(keys), DEC_DIM, DEC_DIM, 3)
        p['dec'][f'r{r}b_w'], p['dec'][f'r{r}b_b'] = _init_conv(next(keys), DEC_DIM, DEC_DIM, 3)
    d = DEC_DIM
    for u in range(N_DOWNSAMPLE):
        p['dec'][f'u{u}_w'], p['dec'][f'u{u}_b'] = _init_conv(next(keys), d // 2, d, 5)
        p['dec'][f'u{u}_g'] = jax.random.uniform(next(keys), (d // 2,), jnp.float32)   # LayerNorm gamma
        p['dec'][f'u{u}_beta'] = jnp.zeros((d // 2,), jnp.float32)                     # LayerNorm beta
        d //= 2
    p['dec']['out_w'], p['dec']['out_b'] = _init_conv(next(keys), INPUT_DIM, d, 7)

    # MLPConv(style_dim, NUM_ADAIN, mlp_dim, 3)
    m_dims = [(MLP_DIM, STYLE_DIM, 1), (MLP_DIM, MLP_DIM, 1), (NUM_ADAIN, MLP_DIM, 1)]
    for i, (co, ci, k) in enumerate(m_dims):
        p['mlp'][f'm{i}_w'], p['mlp'][f'm{i}_b'] = _init_conv(next(keys), co, ci, k)

    # s_std / s_mu / noise_strength exist in __init__ but are unused in forward().
    return p


# ----------------------------- forward pass -----------------------------

def adain_gen_forward(params, images):
    B = images.shape[0]
    ps, pc, pd, pm = params['style'], params['content'], params['dec'], params['mlp']

    # ---------------- encode ----------------
    # StyleEncoder (norm='none'; relu fused into the conv kernel)
    s = images
    s = conv_block(s, ps['c0_w'], ps['c0_b'], 1, 3, 'none', 'relu')
    s = conv_block(s, ps['c1_w'], ps['c1_b'], 2, 1, 'none', 'relu')
    s = conv_block(s, ps['c2_w'], ps['c2_b'], 2, 1, 'none', 'relu')
    s = conv_block(s, ps['c3_w'], ps['c3_b'], 2, 1, 'none', 'relu')
    s = conv_block(s, ps['c4_w'], ps['c4_b'], 2, 1, 'none', 'relu')
    # final 1x1 conv (no act) and adaptive_avg_pool2d(.,1) commute -> pool then tiny XLA dot
    s_mean = jnp.mean(s.reshape(B, 4 * DIM, -1), axis=2)                       # (B, 32)
    style = s_mean @ ps['c5_w'].reshape(STYLE_DIM, 4 * DIM).T + ps['c5_b']     # (B, 8)

    # ContentEncoder (conv + InstanceNorm + relu fused in one kernel each)
    c = images
    c = conv_block(c, pc['c0_w'], pc['c0_b'], 1, 3, 'in', 'relu')
    c = conv_block(c, pc['c1_w'], pc['c1_b'], 2, 1, 'in', 'relu')
    c = conv_block(c, pc['c2_w'], pc['c2_b'], 2, 1, 'in', 'relu')
    for r in range(N_RES):
        res = c
        hcc = conv_block(c, pc[f'r{r}a_w'], pc[f'r{r}a_b'], 1, 1, 'in', 'relu')
        hcc = conv_block(hcc, pc[f'r{r}b_w'], pc[f'r{r}b_b'], 1, 1, 'in', 'none')
        c = hcc + res
    content = c

    # ---------------- decode ----------------
    # MLPConv on the (B, style_dim) vector: plain XLA (1x1 convs on 1x1 spatial)
    a = jnp.maximum(style @ pm['m0_w'].reshape(MLP_DIM, STYLE_DIM).T + pm['m0_b'], 0.0)
    a = jnp.maximum(a @ pm['m1_w'].reshape(MLP_DIM, MLP_DIM).T + pm['m1_b'], 0.0)
    adain_params = a @ pm['m2_w'].reshape(NUM_ADAIN, MLP_DIM).T + pm['m2_b']   # (B, 256)

    # assign_adain_params: per SpatialNorm2d, bias = first nf chunk, weight = second nf chunk
    nf = DEC_DIM
    ap = adain_params
    adain_wb = []
    for _ in range(2 * N_RES):
        ab = ap[:, :nf]           # -> m.bias
        aw = ap[:, nf:2 * nf]     # -> m.weight
        adain_wb.append((aw, ab))
        ap = ap[:, 2 * nf:]

    # Decoder
    x = content
    idx = 0
    for r in range(N_RES):
        res = x
        aw, ab = adain_wb[idx]; idx += 1
        hdd = conv_block(x, pd[f'r{r}a_w'], pd[f'r{r}a_b'], 1, 1, 'adain', 'relu', aw, ab)
        aw, ab = adain_wb[idx]; idx += 1
        hdd = conv_block(hdd, pd[f'r{r}b_w'], pd[f'r{r}b_b'], 1, 1, 'adain', 'none', aw, ab)
        x = hdd + res
    for u in range(N_DOWNSAMPLE):
        x = upsample2x(x)
        x = conv_block(x, pd[f'u{u}_w'], pd[f'u{u}_b'], 1, 2, 'ln', 'relu',
                       pd[f'u{u}_g'], pd[f'u{u}_beta'])
    x = conv_block(x, pd['out_w'], pd['out_b'], 1, 3, 'none', 'tanh')
    return x


# ----------------------------- main -----------------------------

if __name__ == "__main__":
    key = jax.random.PRNGKey(0)
    k_params, k_img = jax.random.split(key)
    params = init_params(k_params)
    images = jax.random.normal(k_img, (2, INPUT_DIM, 32, 32), jnp.float32)

    fwd = jax.jit(adain_gen_forward)
    out = fwd(params, images)
    out = jax.block_until_ready(out)

    assert out.shape == (2, INPUT_DIM, 32, 32), out.shape
    assert jnp.all(jnp.isfinite(out))
    print("KERNEL_OK")
</pallas_src>

<mosaic_0001>
module attributes {stable_mosaic.version = 11 : i64} {
  func.func @_conv_norm_act_kernel(%arg0: i32, %arg1: memref<1x147x1024xbf16, #tpu.memory_space<vmem>>, %arg2: memref<8x147xbf16, #tpu.memory_space<vmem>>, %arg3: memref<8x1xf32, #tpu.memory_space<vmem>>, %arg4: memref<1x1x1xf32, #tpu.memory_space<vmem>>, %arg5: memref<1x1x1xf32, #tpu.memory_space<vmem>>, %arg6: memref<1x8x1024xf32, #tpu.memory_space<vmem>>) attributes {dimension_semantics = [#tpu.dimension_semantics<parallel>], iteration_bounds = array<i64: 2>, scalar_prefetch = 0 : i64, scratch_operands = 0 : i64, tpu.core_type = #tpu.core_type<tc>, window_params = [{transform_indices = @transform_0, window_bounds = array<i64: 1, 147, 1024>}, {pipeline_mode = #tpu.pipeline_mode<synchronous>, transform_indices = @transform_1, window_bounds = array<i64: 8, 147>}, {pipeline_mode = #tpu.pipeline_mode<synchronous>, transform_indices = @transform_2, window_bounds = array<i64: 8, 1>}, {pipeline_mode = #tpu.pipeline_mode<synchronous>, transform_indices = @transform_3, window_bounds = array<i64: 1, 1, 1>}, {pipeline_mode = #tpu.pipeline_mode<synchronous>, transform_indices = @transform_4, window_bounds = array<i64: 1, 1, 1>}, {transform_indices = @transform_5, window_bounds = array<i64: 1, 8, 1024>}]} {
    %c0 = arith.constant 0 : index
    %c0_0 = arith.constant 0 : index
    %c0_1 = arith.constant 0 : index
    %0 = vector.load %arg1[%c0, %c0_0, %c0_1] : memref<1x147x1024xbf16, #tpu.memory_space<vmem>>, vector<1x147x1024xbf16>
    %1 = vector.shape_cast %0 : vector<1x147x1024xbf16> to vector<147x1024xbf16>
    %c0_2 = arith.constant 0 : index
    %c0_3 = arith.constant 0 : index
    %2 = vector.load %arg2[%c0_2, %c0_3] : memref<8x147xbf16, #tpu.memory_space<vmem>>, vector<8x147xbf16>
    %cst = arith.constant dense<0.000000e+00> : vector<8x1024xf32>
    %3 = tpu.matmul %2, %1, %cst {dimension_numbers = #tpu.dot_dimension_numbers<[1], [0], [0], [1], [0, 0, 1, 1], [], []>} : vector<8x147xbf16>, vector<147x1024xbf16>, vector<8x1024xf32> -> vector<8x1024xf32>
    %c0_4 = arith.constant 0 : index
    %c0_5 = arith.constant 0 : index
    %4 = vector.load %arg3[%c0_4, %c0_5] : memref<8x1xf32, #tpu.memory_space<vmem>>, vector<8x1xf32>
    %5 = vector.broadcast %4 : vector<8x1xf32> to vector<8x1024xf32>
    %6 = arith.addf %3, %5 : vector<8x1024xf32>
    %cst_6 = arith.constant 0.000000e+00 : f32
    %7 = vector.broadcast %cst_6 : f32 to vector<8x1024xf32>
    %8 = arith.maximumf %6, %7 : vector<8x1024xf32>
    %c0_7 = arith.constant 0 : index
    %c0_8 = arith.constant 0 : index
    %c0_9 = arith.constant 0 : index
    %9 = vector.load %arg6[%c0_7, %c0_8, %c0_9] : memref<1x8x1024xf32, #tpu.memory_space<vmem>>, vector<1x8x1024xf32>
    %10 = vector.shape_cast %9 : vector<1x8x1024xf32> to vector<8x1024xf32>
    %11 = vector.shape_cast %8 : vector<8x1024xf32> to vector<1x8x1024xf32>
    tpu.vector_store %arg6[%c0_7, %c0_8, %c0_9], %11 {strides = array<i32>} : memref<1x8x1024xf32, #tpu.memory_space<vmem>>, vector<1x8x1024xf32>,
    return
  }
  func.func @transform_0(%arg0: i32) -> (i32, i32, i32) {
    %c0_i32 = arith.constant 0 : i32
    %c0_i32_0 = arith.constant 0 : i32
    %c0_i32_1 = arith.constant 0 : i32
    return %arg0, %c0_i32, %c0_i32_0 : i32, i32, i32
  }
  func.func @transform_1(%arg0: i32) -> (i32, i32) {
    %c0_i32 = arith.constant 0 : i32
    %c0_i32_0 = arith.constant 0 : i32
    %c0_i32_1 = arith.constant 0 : i32
    return %c0_i32, %c0_i32_0 : i32, i32
  }
  func.func @transform_2(%arg0: i32) -> (i32, i32) {
    %c0_i32 = arith.constant 0 : i32
    %c0_i32_0 = arith.constant 0 : i32
    %c0_i32_1 = arith.constant 0 : i32
    return %c0_i32, %c0_i32_0 : i32, i32
  }
  func.func @transform_3(%arg0: i32) -> (i32, i32, i32) {
    %c0_i32 = arith.constant 0 : i32
    %c0_i32_0 = arith.constant 0 : i32
    %c0_i32_1 = arith.constant 0 : i32
    %c0_i32_2 = arith.constant 0 : i32
    return %c0_i32, %c0_i32_0, %c0_i32_1 : i32, i32, i32
  }
  func.func @transform_4(%arg0: i32) -> (i32, i32, i32) {
    %c0_i32 = arith.constant 0 : i32
    %c0_i32_0 = arith.constant 0 : i32
    %c0_i32_1 = arith.constant 0 : i32
    %c0_i32_2 = arith.constant 0 : i32
    return %c0_i32, %c0_i32_0, %c0_i32_1 : i32, i32, i32
  }
  func.func @transform_5(%arg0: i32) -> (i32, i32, i32) {
    %c0_i32 = arith.constant 0 : i32
    %c0_i32_0 = arith.constant 0 : i32
    %c0_i32_1 = arith.constant 0 : i32
    return %arg0, %c0_i32, %c0_i32_0 : i32, i32, i32
  }
}

module attributes {stable_mosaic.version = 11 : i64} {
  func.func @_conv_norm_act_kernel(%arg0: i32, %arg1: memref<1x128x256xbf16, #tpu.memory_space<vmem>>, %arg2: memref<16x128xbf16, #tpu.memory_space<vmem>>, %arg3: memref<16x1xf32, #tpu.memory_space<vmem>>, %arg4: memref<1x1x1xf32, #tpu.memory_space<vmem>>, %arg5: memref<1x1x1xf32, #tpu.memory_space<vmem>>, %arg6: memref<1x16x256xf32, #tpu.memory_space<vmem>>) attributes {dimension_semantics = [#tpu.dimension_semantics<parallel>], iteration_bounds = array<i64: 2>, scalar_prefetch = 0 : i64, scratch_operands = 0 : i64, tpu.core_type = #tpu.core_type<tc>, window_params = [{transform_indices = @transform_0, window_bounds = array<i64: 1, 128, 256>}, {pipeline_mode = #tpu.pipeline_mode<synchronous>, transform_indices = @transform_1, window_bounds = array<i64: 16, 128>}, {pipeline_mode = #tpu.pipeline_mode<synchronous>, transform_indices = @transform_2, window_bounds = array<i64: 16, 1>}, {pipeline_mode = #tpu.pipeline_mode<synchronous>, transform_indices = @transform_3, window_bounds = array<i64: 1, 1, 1>}, {pipeline_mode = #tpu.pipeline_mode<synchronous>, transform_indices = @transform_4, window_bounds = array<i64: 1, 1, 1>}, {transform_indices = @transform_5, window_bounds = array<i64: 1, 16, 256>}]} {
    %c0 = arith.constant 0 : index
    %c0_0 = arith.constant 0 : index
    %c0_1 = arith.constant 0 : index
    %0 = vector.load %arg1[%c0, %c0_0, %c0_1] : memref<1x128x256xbf16, #tpu.memory_space<vmem>>, vector<1x128x256xbf16>
    %1 = vector.shape_cast %0 : vector<1x128x256xbf16> to vector<128x256xbf16>
    %c0_2 = arith.constant 0 : index
    %c0_3 = arith.constant 0 : index
    %2 = vector.load %arg2[%c0_2, %c0_3] : memref<16x128xbf16, #tpu.memory_space<vmem>>, vector<16x128xbf16>
    %cst = arith.constant dense<0.000000e+00> : vector<16x256xf32>
    %3 = tpu.matmul %2, %1, %cst {dimension_numbers = #tpu.dot_dimension_numbers<[1], [0], [0], [1], [0, 0, 1, 1], [], []>} : vector<16x128xbf16>, vector<128x256xbf16>, vector<16x256xf32> -> vector<16x256xf32>
    %c0_4 = arith.constant 0 : index
    %c0_5 = arith.constant 0 : index
    %4 = vector.load %arg3[%c0_4, %c0_5] : memref<16x1xf32, #tpu.memory_space<vmem>>, vector<16x1xf32>
    %5 = vector.broadcast %4 : vector<16x1xf32> to vector<16x256xf32>
    %6 = arith.addf %3, %5 : vector<16x256xf32>
    %cst_6 = arith.constant 0.000000e+00 : f32
    %7 = vector.broadcast %cst_6 : f32 to vector<16x256xf32>
    %8 = arith.maximumf %6, %7 : vector<16x256xf32>
    %c0_7 = arith.constant 0 : index
    %c0_8 = arith.constant 0 : index
    %c0_9 = arith.constant 0 : index
    %9 = vector.load %arg6[%c0_7, %c0_8, %c0_9] : memref<1x16x256xf32, #tpu.memory_space<vmem>>, vector<1x16x256xf32>
    %10 = vector.shape_cast %9 : vector<1x16x256xf32> to vector<16x256xf32>
    %11 = vector.shape_cast %8 : vector<16x256xf32> to vector<1x16x256xf32>
    tpu.vector_store %arg6[%c0_7, %c0_8, %c0_9], %11 {strides = array<i32>} : memref<1x16x256xf32, #tpu.memory_space<vmem>>, vector<1x16x256xf32>,
    return
  }
  func.func @transform_0(%arg0: i32) -> (i32, i32, i32) {
    %c0_i32 = arith.constant 0 : i32
    %c0_i32_0 = arith.constant 0 : i32
    %c0_i32_1 = arith.constant 0 : i32
    return %arg0, %c0_i32, %c0_i32_0 : i32, i32, i32
  }
  func.func @transform_1(%arg0: i32) -> (i32, i32) {
    %c0_i32 = arith.constant 0 : i32
    %c0_i32_0 = arith.constant 0 : i32
    %c0_i32_1 = arith.constant 0 : i32
    return %c0_i32, %c0_i32_0 : i32, i32
  }
  func.func @transform_2(%arg0: i32) -> (i32, i32) {
    %c0_i32 = arith.constant 0 : i32
    %c0_i32_0 = arith.constant 0 : i32
    %c0_i32_1 = arith.constant 0 : i32
    return %c0_i32, %c0_i32_0 : i32, i32
  }
  func.func @transform_3(%arg0: i32) -> (i32, i32, i32) {
    %c0_i32 = arith.constant 0 : i32
    %c0_i32_0 = arith.constant 0 : i32
    %c0_i32_1 = arith.constant 0 : i32
    %c0_i32_2 = arith.constant 0 : i32
    return %c0_i32, %c0_i32_0, %c0_i32_1 : i32, i32, i32
  }
  func.func @transform_4(%arg0: i32) -> (i32, i32, i32) {
    %c0_i32 = arith.constant 0 : i32
    %c0_i32_0 = arith.constant 0 : i32
    %c0_i32_1 = arith.constant 0 : i32
    %c0_i32_2 = arith.constant 0 : i32
    return %c0_i32, %c0_i32_0, %c0_i32_1 : i32, i32, i32
  }
  func.func @transform_5(%arg0: i32) -> (i32, i32, i32) {
    %c0_i32 = arith.constant 0 : i32
    %c0_i32_0 = arith.constant 0 : i32
    %c0_i32_1 = arith.constant 0 : i32
    return %arg0, %c0_i32, %c0_i32_0 : i32, i32, i32
  }
}

module attributes {stable_mosaic.version = 11 : i64} {
  func.func @_conv_norm_act_kernel(%arg0: i32, %arg1: memref<1x256x64xbf16, #tpu.memory_space<vmem>>, %arg2: memref<32x256xbf16, #tpu.memory_space<vmem>>, %arg3: memref<32x1xf32, #tpu.memory_space<vmem>>, %arg4: memref<1x1x1xf32, #tpu.memory_space<vmem>>, %arg5: memref<1x1x1xf32, #tpu.memory_space<vmem>>, %arg6: memref<1x32x64xf32, #tpu.memory_space<vmem>>) attributes {dimension_semantics = [#tpu.dimension_semantics<parallel>], iteration_bounds = array<i64: 2>, scalar_prefetch = 0 : i64, scratch_operands = 0 : i64, tpu.core_type = #tpu.core_type<tc>, window_params = [{transform_indices = @transform_0, window_bounds = array<i64: 1, 256, 64>}, {pipeline_mode = #tpu.pipeline_mode<synchronous>, transform_indices = @transform_1, window_bounds = array<i64: 32, 256>}, {pipeline_mode = #tpu.pipeline_mode<synchronous>, transform_indices = @transform_2, window_bounds = array<i64: 32, 1>}, {pipeline_mode = #tpu.pipeline_mode<synchronous>, transform_indices = @transform_3, window_bounds = array<i64: 1, 1, 1>}, {pipeline_mode = #tpu.pipeline_mode<synchronous>, transform_indices = @transform_4, window_bounds = array<i64: 1, 1, 1>}, {transform_indices = @transform_5, window_bounds = array<i64: 1, 32, 64>}]} {
    %c0 = arith.constant 0 : index
    %c0_0 = arith.constant 0 : index
    %c0_1 = arith.constant 0 : index
    %0 = vector.load %arg1[%c0, %c0_0, %c0_1] : memref<1x256x64xbf16, #tpu.memory_space<vmem>>, vector<1x256x64xbf16>
    %1 = vector.shape_cast %0 : vector<1x256x64xbf16> to vector<256x64xbf16>
    %c0_2 = arith.constant 0 : index
    %c0_3 = arith.constant 0 : index
    %2 = vector.load %arg2[%c0_2, %c0_3] : memref<32x256xbf16, #tpu.memory_space<vmem>>, vector<32x256xbf16>
    %cst = arith.constant dense<0.000000e+00> : vector<32x64xf32>
    %3 = tpu.matmul %2, %1, %cst {dimension_numbers = #tpu.dot_dimension_numbers<[1], [0], [0], [1], [0, 0, 1, 1], [], []>} : vector<32x256xbf16>, vector<256x64xbf16>, vector<32x64xf32> -> vector<32x64xf32>
    %c0_4 = arith.constant 0 : index
    %c0_5 = arith.constant 0 : index
    %4 = vector.load %arg3[%c0_4, %c0_5] : memref<32x1xf32, #tpu.memory_space<vmem>>, vector<32x1xf32>
    %5 = vector.broadcast %4 : vector<32x1xf32> to vector<32x64xf32>
    %6 = arith.addf %3, %5 : vector<32x64xf32>
    %cst_6 = arith.constant 0.000000e+00 : f32
    %7 = vector.broadcast %cst_6 : f32 to vector<32x64xf32>
    %8 = arith.maximumf %6, %7 : vector<32x64xf32>
    %c0_7 = arith.constant 0 : index
    %c0_8 = arith.constant 0 : index
    %c0_9 = arith.constant 0 : index
    %9 = vector.load %arg6[%c0_7, %c0_8, %c0_9] : memref<1x32x64xf32, #tpu.memory_space<vmem>>, vector<1x32x64xf32>
    %10 = vector.shape_cast %9 : vector<1x32x64xf32> to vector<32x64xf32>
    %11 = vector.shape_cast %8 : vector<32x64xf32> to vector<1x32x64xf32>
    tpu.vector_store %arg6[%c0_7, %c0_8, %c0_9], %11 {strides = array<i32>} : memref<1x32x64xf32, #tpu.memory_space<vmem>>, vector<1x32x64xf32>,
    return
  }
  func.func @transform_0(%arg0: i32) -> (i32, i32, i32) {
    %c0_i32 = arith.constant 0 : i32
    %c0_i32_0 = arith.constant 0 : i32
    %c0_i32_1 = arith.constant 0 : i32
    return %arg0, %c0_i32, %c0_i32_0 : i32, i32, i32
  }
  func.func @transform_1(%arg0: i32) -> (i32, i32) {
    %c0_i32 = arith.constant 0 : i32
    %c0_i32_0 = arith.constant 0 : i32
    %c0_i32_1 = arith.constant 0 : i32
    return %c0_i32, %c0_i32_0 : i32, i32
  }
  func.func @transform_2(%arg0: i32) -> (i32, i32) {
    %c0_i32 = arith.constant 0 : i32
    %c0_i32_0 = arith.constant 0 : i32
    %c0_i32_1 = arith.constant 0 : i32
    return %c0_i32, %c0_i32_0 : i32, i32
  }
  func.func @transform_3(%arg0: i32) -> (i32, i32, i32) {
    %c0_i32 = arith.constant 0 : i32
    %c0_i32_0 = arith.constant 0 : i32
    %c0_i32_1 = arith.constant 0 : i32
    %c0_i32_2 = arith.constant 0 : i32
    return %c0_i32, %c0_i32_0, %c0_i32_1 : i32, i32, i32
  }
  func.func @transform_4(%arg0: i32) -> (i32, i32, i32) {
    %c0_i32 = arith.constant 0 : i32
    %c0_i32_0 = arith.constant 0 : i32
    %c0_i32_1 = arith.constant 0 : i32
    %c0_i32_2 = arith.constant 0 : i32
    return %c0_i32, %c0_i32_0, %c0_i32_1 : i32, i32, i32
  }
  func.func @transform_5(%arg0: i32) -> (i32, i32, i32) {
    %c0_i32 = arith.constant 0 : i32
    %c0_i32_0 = arith.constant 0 : i32
    %c0_i32_1 = arith.constant 0 : i32
    return %arg0, %c0_i32, %c0_i32_0 : i32, i32, i32
  }
}

module attributes {stable_mosaic.version = 11 : i64} {
  func.func @_conv_norm_act_kernel(%arg0: i32, %arg1: memref<1x512x16xbf16, #tpu.memory_space<vmem>>, %arg2: memref<32x512xbf16, #tpu.memory_space<vmem>>, %arg3: memref<32x1xf32, #tpu.memory_space<vmem>>, %arg4: memref<1x1x1xf32, #tpu.memory_space<vmem>>, %arg5: memref<1x1x1xf32, #tpu.memory_space<vmem>>, %arg6: memref<1x32x16xf32, #tpu.memory_space<vmem>>) attributes {dimension_semantics = [#tpu.dimension_semantics<parallel>], iteration_bounds = array<i64: 2>, scalar_prefetch = 0 : i64, scratch_operands = 0 : i64, tpu.core_type = #tpu.core_type<tc>, window_params = [{transform_indices = @transform_0, window_bounds = array<i64: 1, 512, 16>}, {pipeline_mode = #tpu.pipeline_mode<synchronous>, transform_indices = @transform_1, window_bounds = array<i64: 32, 512>}, {pipeline_mode = #tpu.pipeline_mode<synchronous>, transform_indices = @transform_2, window_bounds = array<i64: 32, 1>}, {pipeline_mode = #tpu.pipeline_mode<synchronous>, transform_indices = @transform_3, window_bounds = array<i64: 1, 1, 1>}, {pipeline_mode = #tpu.pipeline_mode<synchronous>, transform_indices = @transform_4, window_bounds = array<i64: 1, 1, 1>}, {transform_indices = @transform_5, window_bounds = array<i64: 1, 32, 16>}]} {
    %c0 = arith.constant 0 : index
    %c0_0 = arith.constant 0 : index
    %c0_1 = arith.constant 0 : index
    %0 = vector.load %arg1[%c0, %c0_0, %c0_1] : memref<1x512x16xbf16, #tpu.memory_space<vmem>>, vector<1x512x16xbf16>
    %1 = vector.shape_cast %0 : vector<1x512x16xbf16> to vector<512x16xbf16>
    %c0_2 = arith.constant 0 : index
    %c0_3 = arith.constant 0 : index
    %2 = vector.load %arg2[%c0_2, %c0_3] : memref<32x512xbf16, #tpu.memory_space<vmem>>, vector<32x512xbf16>
    %cst = arith.constant dense<0.000000e+00> : vector<32x16xf32>
    %3 = tpu.matmul %2, %1, %cst {dimension_numbers = #tpu.dot_dimension_numbers<[1], [0], [0], [1], [0, 0, 1, 1], [], []>} : vector<32x512xbf16>, vector<512x16xbf16>, vector<32x16xf32> -> vector<32x16xf32>
    %c0_4 = arith.constant 0 : index
    %c0_5 = arith.constant 0 : index
    %4 = vector.load %arg3[%c0_4, %c0_5] : memref<32x1xf32, #tpu.memory_space<vmem>>, vector<32x1xf32>
    %5 = vector.broadcast %4 : vector<32x1xf32> to vector<32x16xf32>
    %6 = arith.addf %3, %5 : vector<32x16xf32>
    %cst_6 = arith.constant 0.000000e+00 : f32
    %7 = vector.broadcast %cst_6 : f32 to vector<32x16xf32>
    %8 = arith.maximumf %6, %7 : vector<32x16xf32>
    %c0_7 = arith.constant 0 : index
    %c0_8 = arith.constant 0 : index
    %c0_9 = arith.constant 0 : index
    %9 = vector.load %arg6[%c0_7, %c0_8, %c0_9] : memref<1x32x16xf32, #tpu.memory_space<vmem>>, vector<1x32x16xf32>
    %10 = vector.shape_cast %9 : vector<1x32x16xf32> to vector<32x16xf32>
    %11 = vector.shape_cast %8 : vector<32x16xf32> to vector<1x32x16xf32>
    tpu.vector_store %arg6[%c0_7, %c0_8, %c0_9], %11 {strides = array<i32>} : memref<1x32x16xf32, #tpu.memory_space<vmem>>, vector<1x32x16xf32>,
    return
  }
  func.func @transform_0(%arg0: i32) -> (i32, i32, i32) {
    %c0_i32 = arith.constant 0 : i32
    %c0_i32_0 = arith.constant 0 : i32
    %c0_i32_1 = arith.constant 0 : i32
    return %arg0, %c0_i32, %c0_i32_0 : i32, i32, i32
  }
  func.func @transform_1(%arg0: i32) -> (i32, i32) {
    %c0_i32 = arith.constant 0 : i32
    %c0_i32_0 = arith.constant 0 : i32
    %c0_i32_1 = arith.constant 0 : i32
    return %c0_i32, %c0_i32_0 : i32, i32
  }
  func.func @transform_2(%arg0: i32) -> (i32, i32) {
    %c0_i32 = arith.constant 0 : i32
    %c0_i32_0 = arith.constant 0 : i32
    %c0_i32_1 = arith.constant 0 : i32
    return %c0_i32, %c0_i32_0 : i32, i32
  }
  func.func @transform_3(%arg0: i32) -> (i32, i32, i32) {
    %c0_i32 = arith.constant 0 : i32
    %c0_i32_0 = arith.constant 0 : i32
    %c0_i32_1 = arith.constant 0 : i32
    %c0_i32_2 = arith.constant 0 : i32
    return %c0_i32, %c0_i32_0, %c0_i32_1 : i32, i32, i32
  }
  func.func @transform_4(%arg0: i32) -> (i32, i32, i32) {
    %c0_i32 = arith.constant 0 : i32
    %c0_i32_0 = arith.constant 0 : i32
    %c0_i32_1 = arith.constant 0 : i32
    %c0_i32_2 = arith.constant 0 : i32
    return %c0_i32, %c0_i32_0, %c0_i32_1 : i32, i32, i32
  }
  func.func @transform_5(%arg0: i32) -> (i32, i32, i32) {
    %c0_i32 = arith.constant 0 : i32
    %c0_i32_0 = arith.constant 0 : i32
    %c0_i32_1 = arith.constant 0 : i32
    return %arg0, %c0_i32, %c0_i32_0 : i32, i32, i32
  }
}

module attributes {stable_mosaic.version = 11 : i64} {
  func.func @_conv_norm_act_kernel(%arg0: i32, %arg1: memref<1x512x4xbf16, #tpu.memory_space<vmem>>, %arg2: memref<32x512xbf16, #tpu.memory_space<vmem>>, %arg3: memref<32x1xf32, #tpu.memory_space<vmem>>, %arg4: memref<1x1x1xf32, #tpu.memory_space<vmem>>, %arg5: memref<1x1x1xf32, #tpu.memory_space<vmem>>, %arg6: memref<1x32x4xf32, #tpu.memory_space<vmem>>) attributes {dimension_semantics = [#tpu.dimension_semantics<parallel>], iteration_bounds = array<i64: 2>, scalar_prefetch = 0 : i64, scratch_operands = 0 : i64, tpu.core_type = #tpu.core_type<tc>, window_params = [{transform_indices = @transform_0, window_bounds = array<i64: 1, 512, 4>}, {pipeline_mode = #tpu.pipeline_mode<synchronous>, transform_indices = @transform_1, window_bounds = array<i64: 32, 512>}, {pipeline_mode = #tpu.pipeline_mode<synchronous>, transform_indices = @transform_2, window_bounds = array<i64: 32, 1>}, {pipeline_mode = #tpu.pipeline_mode<synchronous>, transform_indices = @transform_3, window_bounds = array<i64: 1, 1, 1>}, {pipeline_mode = #tpu.pipeline_mode<synchronous>, transform_indices = @transform_4, window_bounds = array<i64: 1, 1, 1>}, {transform_indices = @transform_5, window_bounds = array<i64: 1, 32, 4>}]} {
    %c0 = arith.constant 0 : index
    %c0_0 = arith.constant 0 : index
    %c0_1 = arith.constant 0 : index
    %0 = vector.load %arg1[%c0, %c0_0, %c0_1] : memref<1x512x4xbf16, #tpu.memory_space<vmem>>, vector<1x512x4xbf16>
    %1 = vector.shape_cast %0 : vector<1x512x4xbf16> to vector<512x4xbf16>
    %c0_2 = arith.constant 0 : index
    %c0_3 = arith.constant 0 : index
    %2 = vector.load %arg2[%c0_2, %c0_3] : memref<32x512xbf16, #tpu.memory_space<vmem>>, vector<32x512xbf16>
    %cst = arith.constant dense<0.000000e+00> : vector<32x4xf32>
    %3 = tpu.matmul %2, %1, %cst {dimension_numbers = #tpu.dot_dimension_numbers<[1], [0], [0], [1], [0, 0, 1, 1], [], []>} : vector<32x512xbf16>, vector<512x4xbf16>, vector<32x4xf32> -> vector<32x4xf32>
    %c0_4 = arith.constant 0 : index
    %c0_5 = arith.constant 0 : index
    %4 = vector.load %arg3[%c0_4, %c0_5] : memref<32x1xf32, #tpu.memory_space<vmem>>, vector<32x1xf32>
    %5 = vector.broadcast %4 : vector<32x1xf32> to vector<32x4xf32>
    %6 = arith.addf %3, %5 : vector<32x4xf32>
    %cst_6 = arith.constant 0.000000e+00 : f32
    %7 = vector.broadcast %cst_6 : f32 to vector<32x4xf32>
    %8 = arith.maximumf %6, %7 : vector<32x4xf32>
    %c0_7 = arith.constant 0 : index
    %c0_8 = arith.constant 0 : index
    %c0_9 = arith.constant 0 : index
    %9 = vector.load %arg6[%c0_7, %c0_8, %c0_9] : memref<1x32x4xf32, #tpu.memory_space<vmem>>, vector<1x32x4xf32>
    %10 = vector.shape_cast %9 : vector<1x32x4xf32> to vector<32x4xf32>
    %11 = vector.shape_cast %8 : vector<32x4xf32> to vector<1x32x4xf32>
    tpu.vector_store %arg6[%c0_7, %c0_8, %c0_9], %11 {strides = array<i32>} : memref<1x32x4xf32, #tpu.memory_space<vmem>>, vector<1x32x4xf32>,
    return
  }
  func.func @transform_0(%arg0: i32) -> (i32, i32, i32) {
    %c0_i32 = arith.constant 0 : i32
    %c0_i32_0 = arith.constant 0 : i32
    %c0_i32_1 = arith.constant 0 : i32
    return %arg0, %c0_i32, %c0_i32_0 : i32, i32, i32
  }
  func.func @transform_1(%arg0: i32) -> (i32, i32) {
    %c0_i32 = arith.constant 0 : i32
    %c0_i32_0 = arith.constant 0 : i32
    %c0_i32_1 = arith.constant 0 : i32
    return %c0_i32, %c0_i32_0 : i32, i32
  }
  func.func @transform_2(%arg0: i32) -> (i32, i32) {
    %c0_i32 = arith.constant 0 : i32
    %c0_i32_0 = arith.constant 0 : i32
    %c0_i32_1 = arith.constant 0 : i32
    return %c0_i32, %c0_i32_0 : i32, i32
  }
  func.func @transform_3(%arg0: i32) -> (i32, i32, i32) {
    %c0_i32 = arith.constant 0 : i32
    %c0_i32_0 = arith.constant 0 : i32
    %c0_i32_1 = arith.constant 0 : i32
    %c0_i32_2 = arith.constant 0 : i32
    return %c0_i32, %c0_i32_0, %c0_i32_1 : i32, i32, i32
  }
  func.func @transform_4(%arg0: i32) -> (i32, i32, i32) {
    %c0_i32 = arith.constant 0 : i32
    %c0_i32_0 = arith.constant 0 : i32
    %c0_i32_1 = arith.constant 0 : i32
    %c0_i32_2 = arith.constant 0 : i32
    return %c0_i32, %c0_i32_0, %c0_i32_1 : i32, i32, i32
  }
  func.func @transform_5(%arg0: i32) -> (i32, i32, i32) {
    %c0_i32 = arith.constant 0 : i32
    %c0_i32_0 = arith.constant 0 : i32
    %c0_i32_1 = arith.constant 0 : i32
    return %arg0, %c0_i32, %c0_i32_0 : i32, i32, i32
  }
}

module attributes {stable_mosaic.version = 11 : i64} {
  func.func @_conv_norm_act_kernel(%arg0: i32, %arg1: memref<1x147x1024xbf16, #tpu.memory_space<vmem>>, %arg2: memref<8x147xbf16, #tpu.memory_space<vmem>>, %arg3: memref<8x1xf32, #tpu.memory_space<vmem>>, %arg4: memref<1x1x1xf32, #tpu.memory_space<vmem>>, %arg5: memref<1x1x1xf32, #tpu.memory_space<vmem>>, %arg6: memref<1x8x1024xf32, #tpu.memory_space<vmem>>) attributes {dimension_semantics = [#tpu.dimension_semantics<parallel>], iteration_bounds = array<i64: 2>, scalar_prefetch = 0 : i64, scratch_operands = 0 : i64, tpu.core_type = #tpu.core_type<tc>, window_params = [{transform_indices = @transform_0, window_bounds = array<i64: 1, 147, 1024>}, {pipeline_mode = #tpu.pipeline_mode<synchronous>, transform_indices = @transform_1, window_bounds = array<i64: 8, 147>}, {pipeline_mode = #tpu.pipeline_mode<synchronous>, transform_indices = @transform_2, window_bounds = array<i64: 8, 1>}, {pipeline_mode = #tpu.pipeline_mode<synchronous>, transform_indices = @transform_3, window_bounds = array<i64: 1, 1, 1>}, {pipeline_mode = #tpu.pipeline_mode<synchronous>, transform_indices = @transform_4, window_bounds = array<i64: 1, 1, 1>}, {transform_indices = @transform_5, window_bounds = array<i64: 1, 8, 1024>}]} {
    %c0 = arith.constant 0 : index
    %c0_0 = arith.constant 0 : index
    %c0_1 = arith.constant 0 : index
    %0 = vector.load %arg1[%c0, %c0_0, %c0_1] : memref<1x147x1024xbf16, #tpu.memory_space<vmem>>, vector<1x147x1024xbf16>
    %1 = vector.shape_cast %0 : vector<1x147x1024xbf16> to vector<147x1024xbf16>
    %c0_2 = arith.constant 0 : index
    %c0_3 = arith.constant 0 : index
    %2 = vector.load %arg2[%c0_2, %c0_3] : memref<8x147xbf16, #tpu.memory_space<vmem>>, vector<8x147xbf16>
    %cst = arith.constant dense<0.000000e+00> : vector<8x1024xf32>
    %3 = tpu.matmul %2, %1, %cst {dimension_numbers = #tpu.dot_dimension_numbers<[1], [0], [0], [1], [0, 0, 1, 1], [], []>} : vector<8x147xbf16>, vector<147x1024xbf16>, vector<8x1024xf32> -> vector<8x1024xf32>
    %c0_4 = arith.constant 0 : index
    %c0_5 = arith.constant 0 : index
    %4 = vector.load %arg3[%c0_4, %c0_5] : memref<8x1xf32, #tpu.memory_space<vmem>>, vector<8x1xf32>
    %5 = vector.broadcast %4 : vector<8x1xf32> to vector<8x1024xf32>
    %6 = arith.addf %3, %5 : vector<8x1024xf32>
    %cst_6 = arith.constant dense<0.000000e+00> : vector<8xf32>
    %7 = vector.multi_reduction <add>, %6, %cst_6 [1] : vector<8x1024xf32> to vector<8xf32>
    %8 = vector.shape_cast %7 : vector<8xf32> to vector<8x1xf32>
    %cst_7 = arith.constant 1.024000e+03 : f32
    %9 = vector.broadcast %cst_7 : f32 to vector<8x1xf32>
    %10 = arith.divf %8, %9 : vector<8x1xf32>
    %11 = vector.broadcast %10 : vector<8x1xf32> to vector<8x1024xf32>
    %12 = arith.subf %6, %11 : vector<8x1024xf32>
    %13 = arith.mulf %12, %12 : vector<8x1024xf32>
    %cst_8 = arith.constant dense<0.000000e+00> : vector<8xf32>
    %14 = vector.multi_reduction <add>, %13, %cst_8 [1] : vector<8x1024xf32> to vector<8xf32>
    %15 = vector.shape_cast %14 : vector<8xf32> to vector<8x1xf32>
    %cst_9 = arith.constant 1.024000e+03 : f32
    %16 = vector.broadcast %cst_9 : f32 to vector<8x1xf32>
    %17 = arith.divf %15, %16 : vector<8x1xf32>
    %cst_10 = arith.constant 9.99999974E-6 : f32
    %18 = vector.broadcast %cst_10 : f32 to vector<8x1xf32>
    %19 = arith.addf %17, %18 : vector<8x1xf32>
    %20 = math.rsqrt %19 : vector<8x1xf32>
    %21 = vector.broadcast %20 : vector<8x1xf32> to vector<8x1024xf32>
    %22 = arith.mulf %12, %21 : vector<8x1024xf32>
    %cst_11 = arith.constant 0.000000e+00 : f32
    %23 = vector.broadcast %cst_11 : f32 to vector<8x1024xf32>
    %24 = arith.maximumf %22, %23 : vector<8x1024xf32>
    %c0_12 = arith.constant 0 : index
    %c0_13 = arith.constant 0 : index
    %c0_14 = arith.constant 0 : index
    %25 = vector.load %arg6[%c0_12, %c0_13, %c0_14] : memref<1x8x1024xf32, #tpu.memory_space<vmem>>, vector<1x8x1024xf32>
    %26 = vector.shape_cast %25 : vector<1x8x1024xf32> to vector<8x1024xf32>
    %27 = vector.shape_cast %24 : vector<8x1024xf32> to vector<1x8x1024xf32>
    tpu.vector_store %arg6[%c0_12, %c0_13, %c0_14], %27 {strides = array<i32>} : memref<1x8x1024xf32, #tpu.memory_space<vmem>>, vector<1x8x1024xf32>,
    return
  }
  func.func @transform_0(%arg0: i32) -> (i32, i32, i32) {
    %c0_i32 = arith.constant 0 : i32
    %c0_i32_0 = arith.constant 0 : i32
    %c0_i32_1 = arith.constant 0 : i32
    return %arg0, %c0_i32, %c0_i32_0 : i32, i32, i32
  }
  func.func @transform_1(%arg0: i32) -> (i32, i32) {
    %c0_i32 = arith.constant 0 : i32
    %c0_i32_0 = arith.constant 0 : i32
    %c0_i32_1 = arith.constant 0 : i32
    return %c0_i32, %c0_i32_0 : i32, i32
  }
  func.func @transform_2(%arg0: i32) -> (i32, i32) {
    %c0_i32 = arith.constant 0 : i32
    %c0_i32_0 = arith.constant 0 : i32
    %c0_i32_1 = arith.constant 0 : i32
    return %c0_i32, %c0_i32_0 : i32, i32
  }
  func.func @transform_3(%arg0: i32) -> (i32, i32, i32) {
    %c0_i32 = arith.constant 0 : i32
    %c0_i32_0 = arith.constant 0 : i32
    %c0_i32_1 = arith.constant 0 : i32
    %c0_i32_2 = arith.constant 0 : i32
    return %c0_i32, %c0_i32_0, %c0_i32_1 : i32, i32, i32
  }
  func.func @transform_4(%arg0: i32) -> (i32, i32, i32) {
    %c0_i32 = arith.constant 0 : i32
    %c0_i32_0 = arith.constant 0 : i32
    %c0_i32_1 = arith.constant 0 : i32
    %c0_i32_2 = arith.constant 0 : i32
    return %c0_i32, %c0_i32_0, %c0_i32_1 : i32, i32, i32
  }
  func.func @transform_5(%arg0: i32) -> (i32, i32, i32) {
    %c0_i32 = arith.constant 0 : i32
    %c0_i32_0 = arith.constant 0 : i32
    %c0_i32_1 = arith.constant 0 : i32
    return %arg0, %c0_i32, %c0_i32_0 : i32, i32, i32
  }
}

module attributes {stable_mosaic.version = 11 : i64} {
  func.func @_conv_norm_act_kernel(%arg0: i32, %arg1: memref<1x256x64xbf16, #tpu.memory_space<vmem>>, %arg2: memref<32x256xbf16, #tpu.memory_space<vmem>>, %arg3: memref<32x1xf32, #tpu.memory_space<vmem>>, %arg4: memref<1x1x1xf32, #tpu.memory_space<vmem>>, %arg5: memref<1x1x1xf32, #tpu.memory_space<vmem>>, %arg6: memref<1x32x64xf32, #tpu.memory_space<vmem>>) attributes {dimension_semantics = [#tpu.dimension_semantics<parallel>], iteration_bounds = array<i64: 2>, scalar_prefetch = 0 : i64, scratch_operands = 0 : i64, tpu.core_type = #tpu.core_type<tc>, window_params = [{transform_indices = @transform_0, window_bounds = array<i64: 1, 256, 64>}, {pipeline_mode = #tpu.pipeline_mode<synchronous>, transform_indices = @transform_1, window_bounds = array<i64: 32, 256>}, {pipeline_mode = #tpu.pipeline_mode<synchronous>, transform_indices = @transform_2, window_bounds = array<i64: 32, 1>}, {pipeline_mode = #tpu.pipeline_mode<synchronous>, transform_indices = @transform_3, window_bounds = array<i64: 1, 1, 1>}, {pipeline_mode = #tpu.pipeline_mode<synchronous>, transform_indices = @transform_4, window_bounds = array<i64: 1, 1, 1>}, {transform_indices = @transform_5, window_bounds = array<i64: 1, 32, 64>}]} {
    %c0 = arith.constant 0 : index
    %c0_0 = arith.constant 0 : index
    %c0_1 = arith.constant 0 : index
    %0 = vector.load %arg1[%c0, %c0_0, %c0_1] : memref<1x256x64xbf16, #tpu.memory_space<vmem>>, vector<1x256x64xbf16>
    %1 = vector.shape_cast %0 : vector<1x256x64xbf16> to vector<256x64xbf16>
    %c0_2 = arith.constant 0 : index
    %c0_3 = arith.constant 0 : index
    %2 = vector.load %arg2[%c0_2, %c0_3] : memref<32x256xbf16, #tpu.memory_space<vmem>>, vector<32x256xbf16>
    %cst = arith.constant dense<0.000000e+00> : vector<32x64xf32>
    %3 = tpu.matmul %2, %1, %cst {dimension_numbers = #tpu.dot_dimension_numbers<[1], [0], [0], [1], [0, 0, 1, 1], [], []>} : vector<32x256xbf16>, vector<256x64xbf16>, vector<32x64xf32> -> vector<32x64xf32>
    %c0_4 = arith.constant 0 : index
    %c0_5 = arith.constant 0 : index
    %4 = vector.load %arg3[%c0_4, %c0_5] : memref<32x1xf32, #tpu.memory_space<vmem>>, vector<32x1xf32>
    %5 = vector.broadcast %4 : vector<32x1xf32> to vector<32x64xf32>
    %6 = arith.addf %3, %5 : vector<32x64xf32>
    %cst_6 = arith.constant dense<0.000000e+00> : vector<32xf32>
    %7 = vector.multi_reduction <add>, %6, %cst_6 [1] : vector<32x64xf32> to vector<32xf32>
    %8 = vector.shape_cast %7 : vector<32xf32> to vector<32x1xf32>
    %cst_7 = arith.constant 6.400000e+01 : f32
    %9 = vector.broadcast %cst_7 : f32 to vector<32x1xf32>
    %10 = arith.divf %8, %9 : vector<32x1xf32>
    %11 = vector.broadcast %10 : vector<32x1xf32> to vector<32x64xf32>
    %12 = arith.subf %6, %11 : vector<32x64xf32>
    %13 = arith.mulf %12, %12 : vector<32x64xf32>
    %cst_8 = arith.constant dense<0.000000e+00> : vector<32xf32>
    %14 = vector.multi_reduction <add>, %13, %cst_8 [1] : vector<32x64xf32> to vector<32xf32>
    %15 = vector.shape_cast %14 : vector<32xf32> to vector<32x1xf32>
    %cst_9 = arith.constant 6.400000e+01 : f32
    %16 = vector.broadcast %cst_9 : f32 to vector<32x1xf32>
    %17 = arith.divf %15, %16 : vector<32x1xf32>
    %cst_10 = arith.constant 9.99999974E-6 : f32
    %18 = vector.broadcast %cst_10 : f32 to vector<32x1xf32>
    %19 = arith.addf %17, %18 : vector<32x1xf32>
    %20 = math.rsqrt %19 : vector<32x1xf32>
    %21 = vector.broadcast %20 : vector<32x1xf32> to vector<32x64xf32>
    %22 = arith.mulf %12, %21 : vector<32x64xf32>
    %cst_11 = arith.constant 0.000000e+00 : f32
    %23 = vector.broadcast %cst_11 : f32 to vector<32x64xf32>
    %24 = arith.maximumf %22, %23 : vector<32x64xf32>
    %c0_12 = arith.constant 0 : index
    %c0_13 = arith.constant 0 : index
    %c0_14 = arith.constant 0 : index
    %25 = vector.load %arg6[%c0_12, %c0_13, %c0_14] : memref<1x32x64xf32, #tpu.memory_space<vmem>>, vector<1x32x64xf32>
    %26 = vector.shape_cast %25 : vector<1x32x64xf32> to vector<32x64xf32>
    %27 = vector.shape_cast %24 : vector<32x64xf32> to vector<1x32x64xf32>
    tpu.vector_store %arg6[%c0_12, %c0_13, %c0_14], %27 {strides = array<i32>} : memref<1x32x64xf32, #tpu.memory_space<vmem>>, vector<1x32x64xf32>,
    return
  }
  func.func @transform_0(%arg0: i32) -> (i32, i32, i32) {
    %c0_i32 = arith.constant 0 : i32
    %c0_i32_0 = arith.constant 0 : i32
    %c0_i32_1 = arith.constant 0 : i32
    return %arg0, %c0_i32, %c0_i32_0 : i32, i32, i32
  }
  func.func @transform_1(%arg0: i32) -> (i32, i32) {
    %c0_i32 = arith.constant 0 : i32
    %c0_i32_0 = arith.constant 0 : i32
    %c0_i32_1 = arith.constant 0 : i32
    return %c0_i32, %c0_i32_0 : i32, i32
  }
  func.func @transform_2(%arg0: i32) -> (i32, i32) {
    %c0_i32 = arith.constant 0 : i32
    %c0_i32_0 = arith.constant 0 : i32
    %c0_i32_1 = arith.constant 0 : i32
    return %c0_i32, %c0_i32_0 : i32, i32
  }
  func.func @transform_3(%arg0: i32) -> (i32, i32, i32) {
    %c0_i32 = arith.constant 0 : i32
    %c0_i32_0 = arith.constant 0 : i32
    %c0_i32_1 = arith.constant 0 : i32
    %c0_i32_2 = arith.constant 0 : i32
    return %c0_i32, %c0_i32_0, %c0_i32_1 : i32, i32, i32
  }
  func.func @transform_4(%arg0: i32) -> (i32, i32, i32) {
    %c0_i32 = arith.constant 0 : i32
    %c0_i32_0 = arith.constant 0 : i32
    %c0_i32_1 = arith.constant 0 : i32
    %c0_i32_2 = arith.constant 0 : i32
    return %c0_i32, %c0_i32_0, %c0_i32_1 : i32, i32, i32
  }
  func.func @transform_5(%arg0: i32) -> (i32, i32, i32) {
    %c0_i32 = arith.constant 0 : i32
    %c0_i32_0 = arith.constant 0 : i32
    %c0_i32_1 = arith.constant 0 : i32
    return %arg0, %c0_i32, %c0_i32_0 : i32, i32, i32
  }
}

module attributes {stable_mosaic.version = 11 : i64} {
  func.func @_conv_norm_act_kernel(%arg0: i32, %arg1: memref<1x128x256xbf16, #tpu.memory_space<vmem>>, %arg2: memref<16x128xbf16, #tpu.memory_space<vmem>>, %arg3: memref<16x1xf32, #tpu.memory_space<vmem>>, %arg4: memref<1x1x1xf32, #tpu.memory_space<vmem>>, %arg5: memref<1x1x1xf32, #tpu.memory_space<vmem>>, %arg6: memref<1x16x256xf32, #tpu.memory_space<vmem>>) attributes {dimension_semantics = [#tpu.dimension_semantics<parallel>], iteration_bounds = array<i64: 2>, scalar_prefetch = 0 : i64, scratch_operands = 0 : i64, tpu.core_type = #tpu.core_type<tc>, window_params = [{transform_indices = @transform_0, window_bounds = array<i64: 1, 128, 256>}, {pipeline_mode = #tpu.pipeline_mode<synchronous>, transform_indices = @transform_1, window_bounds = array<i64: 16, 128>}, {pipeline_mode = #tpu.pipeline_mode<synchronous>, transform_indices = @transform_2, window_bounds = array<i64: 16, 1>}, {pipeline_mode = #tpu.pipeline_mode<synchronous>, transform_indices = @transform_3, window_bounds = array<i64: 1, 1, 1>}, {pipeline_mode = #tpu.pipeline_mode<synchronous>, transform_indices = @transform_4, window_bounds = array<i64: 1, 1, 1>}, {transform_indices = @transform_5, window_bounds = array<i64: 1, 16, 256>}]} {
    %c0 = arith.constant 0 : index
    %c0_0 = arith.constant 0 : index
    %c0_1 = arith.constant 0 : index
    %0 = vector.load %arg1[%c0, %c0_0, %c0_1] : memref<1x128x256xbf16, #tpu.memory_space<vmem>>, vector<1x128x256xbf16>
    %1 = vector.shape_cast %0 : vector<1x128x256xbf16> to vector<128x256xbf16>
    %c0_2 = arith.constant 0 : index
    %c0_3 = arith.constant 0 : index
    %2 = vector.load %arg2[%c0_2, %c0_3] : memref<16x128xbf16, #tpu.memory_space<vmem>>, vector<16x128xbf16>
    %cst = arith.constant dense<0.000000e+00> : vector<16x256xf32>
    %3 = tpu.matmul %2, %1, %cst {dimension_numbers = #tpu.dot_dimension_numbers<[1], [0], [0], [1], [0, 0, 1, 1], [], []>} : vector<16x128xbf16>, vector<128x256xbf16>, vector<16x256xf32> -> vector<16x256xf32>
    %c0_4 = arith.constant 0 : index
    %c0_5 = arith.constant 0 : index
    %4 = vector.load %arg3[%c0_4, %c0_5] : memref<16x1xf32, #tpu.memory_space<vmem>>, vector<16x1xf32>
    %5 = vector.broadcast %4 : vector<16x1xf32> to vector<16x256xf32>
    %6 = arith.addf %3, %5 : vector<16x256xf32>
    %cst_6 = arith.constant dense<0.000000e+00> : vector<16xf32>
    %7 = vector.multi_reduction <add>, %6, %cst_6 [1] : vector<16x256xf32> to vector<16xf32>
    %8 = vector.shape_cast %7 : vector<16xf32> to vector<16x1xf32>
    %cst_7 = arith.constant 2.560000e+02 : f32
    %9 = vector.broadcast %cst_7 : f32 to vector<16x1xf32>
    %10 = arith.divf %8, %9 : vector<16x1xf32>
    %11 = vector.broadcast %10 : vector<16x1xf32> to vector<16x256xf32>
    %12 = arith.subf %6, %11 : vector<16x256xf32>
    %13 = arith.mulf %12, %12 : vector<16x256xf32>
    %cst_8 = arith.constant dense<0.000000e+00> : vector<16xf32>
    %14 = vector.multi_reduction <add>, %13, %cst_8 [1] : vector<16x256xf32> to vector<16xf32>
    %15 = vector.shape_cast %14 : vector<16xf32> to vector<16x1xf32>
    %cst_9 = arith.constant 2.560000e+02 : f32
    %16 = vector.broadcast %cst_9 : f32 to vector<16x1xf32>
    %17 = arith.divf %15, %16 : vector<16x1xf32>
    %cst_10 = arith.constant 9.99999974E-6 : f32
    %18 = vector.broadcast %cst_10 : f32 to vector<16x1xf32>
    %19 = arith.addf %17, %18 : vector<16x1xf32>
    %20 = math.rsqrt %19 : vector<16x1xf32>
    %21 = vector.broadcast %20 : vector<16x1xf32> to vector<16x256xf32>
    %22 = arith.mulf %12, %21 : vector<16x256xf32>
    %cst_11 = arith.constant 0.000000e+00 : f32
    %23 = vector.broadcast %cst_11 : f32 to vector<16x256xf32>
    %24 = arith.maximumf %22, %23 : vector<16x256xf32>
    %c0_12 = arith.constant 0 : index
    %c0_13 = arith.constant 0 : index
    %c0_14 = arith.constant 0 : index
    %25 = vector.load %arg6[%c0_12, %c0_13, %c0_14] : memref<1x16x256xf32, #tpu.memory_space<vmem>>, vector<1x16x256xf32>
    %26 = vector.shape_cast %25 : vector<1x16x256xf32> to vector<16x256xf32>
    %27 = vector.shape_cast %24 : vector<16x256xf32> to vector<1x16x256xf32>
    tpu.vector_store %arg6[%c0_12, %c0_13, %c0_14], %27 {strides = array<i32>} : memref<1x16x256xf32, #tpu.memory_space<vmem>>, vector<1x16x256xf32>,
    return
  }
  func.func @transform_0(%arg0: i32) -> (i32, i32, i32) {
    %c0_i32 = arith.constant 0 : i32
    %c0_i32_0 = arith.constant 0 : i32
    %c0_i32_1 = arith.constant 0 : i32
    return %arg0, %c0_i32, %c0_i32_0 : i32, i32, i32
  }
  func.func @transform_1(%arg0: i32) -> (i32, i32) {
    %c0_i32 = arith.constant 0 : i32
    %c0_i32_0 = arith.constant 0 : i32
    %c0_i32_1 = arith.constant 0 : i32
    return %c0_i32, %c0_i32_0 : i32, i32
  }
  func.func @transform_2(%arg0: i32) -> (i32, i32) {
    %c0_i32 = arith.constant 0 : i32
    %c0_i32_0 = arith.constant 0 : i32
    %c0_i32_1 = arith.constant 0 : i32
    return %c0_i32, %c0_i32_0 : i32, i32
  }
  func.func @transform_3(%arg0: i32) -> (i32, i32, i32) {
    %c0_i32 = arith.constant 0 : i32
    %c0_i32_0 = arith.constant 0 : i32
    %c0_i32_1 = arith.constant 0 : i32
    %c0_i32_2 = arith.constant 0 : i32
    return %c0_i32, %c0_i32_0, %c0_i32_1 : i32, i32, i32
  }
  func.func @transform_4(%arg0: i32) -> (i32, i32, i32) {
    %c0_i32 = arith.constant 0 : i32
    %c0_i32_0 = arith.constant 0 : i32
    %c0_i32_1 = arith.constant 0 : i32
    %c0_i32_2 = arith.constant 0 : i32
    return %c0_i32, %c0_i32_0, %c0_i32_1 : i32, i32, i32
  }
  func.func @transform_5(%arg0: i32) -> (i32, i32, i32) {
    %c0_i32 = arith.constant 0 : i32
    %c0_i32_0 = arith.constant 0 : i32
    %c0_i32_1 = arith.constant 0 : i32
    return %arg0, %c0_i32, %c0_i32_0 : i32, i32, i32
  }
}

module attributes {stable_mosaic.version = 11 : i64} {
  func.func @_conv_norm_act_kernel(%arg0: i32, %arg1: memref<1x288x64xbf16, #tpu.memory_space<vmem>>, %arg2: memref<32x288xbf16, #tpu.memory_space<vmem>>, %arg3: memref<32x1xf32, #tpu.memory_space<vmem>>, %arg4: memref<1x1x1xf32, #tpu.memory_space<vmem>>, %arg5: memref<1x1x1xf32, #tpu.memory_space<vmem>>, %arg6: memref<1x32x64xf32, #tpu.memory_space<vmem>>) attributes {dimension_semantics = [#tpu.dimension_semantics<parallel>], iteration_bounds = array<i64: 2>, scalar_prefetch = 0 : i64, scratch_operands = 0 : i64, tpu.core_type = #tpu.core_type<tc>, window_params = [{transform_indices = @transform_0, window_bounds = array<i64: 1, 288, 64>}, {pipeline_mode = #tpu.pipeline_mode<synchronous>, transform_indices = @transform_1, window_bounds = array<i64: 32, 288>}, {pipeline_mode = #tpu.pipeline_mode<synchronous>, transform_indices = @transform_2, window_bounds = array<i64: 32, 1>}, {pipeline_mode = #tpu.pipeline_mode<synchronous>, transform_indices = @transform_3, window_bounds = array<i64: 1, 1, 1>}, {pipeline_mode = #tpu.pipeline_mode<synchronous>, transform_indices = @transform_4, window_bounds = array<i64: 1, 1, 1>}, {transform_indices = @transform_5, window_bounds = array<i64: 1, 32, 64>}]} {
    %c0 = arith.constant 0 : index
    %c0_0 = arith.constant 0 : index
    %c0_1 = arith.constant 0 : index
    %0 = vector.load %arg1[%c0, %c0_0, %c0_1] : memref<1x288x64xbf16, #tpu.memory_space<vmem>>, vector<1x288x64xbf16>
    %1 = vector.shape_cast %0 : vector<1x288x64xbf16> to vector<288x64xbf16>
    %c0_2 = arith.constant 0 : index
    %c0_3 = arith.constant 0 : index
    %2 = vector.load %arg2[%c0_2, %c0_3] : memref<32x288xbf16, #tpu.memory_space<vmem>>, vector<32x288xbf16>
    %cst = arith.constant dense<0.000000e+00> : vector<32x64xf32>
    %3 = tpu.matmul %2, %1, %cst {dimension_numbers = #tpu.dot_dimension_numbers<[1], [0], [0], [1], [0, 0, 1, 1], [], []>} : vector<32x288xbf16>, vector<288x64xbf16>, vector<32x64xf32> -> vector<32x64xf32>
    %c0_4 = arith.constant 0 : index
    %c0_5 = arith.constant 0 : index
    %4 = vector.load %arg3[%c0_4, %c0_5] : memref<32x1xf32, #tpu.memory_space<vmem>>, vector<32x1xf32>
    %5 = vector.broadcast %4 : vector<32x1xf32> to vector<32x64xf32>
    %6 = arith.addf %3, %5 : vector<32x64xf32>
    %cst_6 = arith.constant dense<0.000000e+00> : vector<32xf32>
    %7 = vector.multi_reduction <add>, %6, %cst_6 [1] : vector<32x64xf32> to vector<32xf32>
    %8 = vector.shape_cast %7 : vector<32xf32> to vector<32x1xf32>
    %cst_7 = arith.constant 6.400000e+01 : f32
    %9 = vector.broadcast %cst_7 : f32 to vector<32x1xf32>
    %10 = arith.divf %8, %9 : vector<32x1xf32>
    %11 = vector.broadcast %10 : vector<32x1xf32> to vector<32x64xf32>
    %12 = arith.subf %6, %11 : vector<32x64xf32>
    %13 = arith.mulf %12, %12 : vector<32x64xf32>
    %cst_8 = arith.constant dense<0.000000e+00> : vector<32xf32>
    %14 = vector.multi_reduction <add>, %13, %cst_8 [1] : vector<32x64xf32> to vector<32xf32>
    %15 = vector.shape_cast %14 : vector<32xf32> to vector<32x1xf32>
    %cst_9 = arith.constant 6.400000e+01 : f32
    %16 = vector.broadcast %cst_9 : f32 to vector<32x1xf32>
    %17 = arith.divf %15, %16 : vector<32x1xf32>
    %cst_10 = arith.constant 9.99999974E-6 : f32
    %18 = vector.broadcast %cst_10 : f32 to vector<32x1xf32>
    %19 = arith.addf %17, %18 : vector<32x1xf32>
    %20 = math.rsqrt %19 : vector<32x1xf32>
    %21 = vector.broadcast %20 : vector<32x1xf32> to vector<32x64xf32>
    %22 = arith.mulf %12, %21 : vector<32x64xf32>
    %cst_11 = arith.constant 0.000000e+00 : f32
    %23 = vector.broadcast %cst_11 : f32 to vector<32x64xf32>
    %24 = arith.maximumf %22, %23 : vector<32x64xf32>
    %c0_12 = arith.constant 0 : index
    %c0_13 = arith.constant 0 : index
    %c0_14 = arith.constant 0 : index
    %25 = vector.load %arg6[%c0_12, %c0_13, %c0_14] : memref<1x32x64xf32, #tpu.memory_space<vmem>>, vector<1x32x64xf32>
    %26 = vector.shape_cast %25 : vector<1x32x64xf32> to vector<32x64xf32>
    %27 = vector.shape_cast %24 : vector<32x64xf32> to vector<1x32x64xf32>
    tpu.vector_store %arg6[%c0_12, %c0_13, %c0_14], %27 {strides = array<i32>} : memref<1x32x64xf32, #tpu.memory_space<vmem>>, vector<1x32x64xf32>,
    return
  }
  func.func @transform_0(%arg0: i32) -> (i32, i32, i32) {
    %c0_i32 = arith.constant 0 : i32
    %c0_i32_0 = arith.constant 0 : i32
    %c0_i32_1 = arith.constant 0 : i32
    return %arg0, %c0_i32, %c0_i32_0 : i32, i32, i32
  }
  func.func @transform_1(%arg0: i32) -> (i32, i32) {
    %c0_i32 = arith.constant 0 : i32
    %c0_i32_0 = arith.constant 0 : i32
    %c0_i32_1 = arith.constant 0 : i32
    return %c0_i32, %c0_i32_0 : i32, i32
  }
  func.func @transform_2(%arg0: i32) -> (i32, i32) {
    %c0_i32 = arith.constant 0 : i32
    %c0_i32_0 = arith.constant 0 : i32
    %c0_i32_1 = arith.constant 0 : i32
    return %c0_i32, %c0_i32_0 : i32, i32
  }
  func.func @transform_3(%arg0: i32) -> (i32, i32, i32) {
    %c0_i32 = arith.constant 0 : i32
    %c0_i32_0 = arith.constant 0 : i32
    %c0_i32_1 = arith.constant 0 : i32
    %c0_i32_2 = arith.constant 0 : i32
    return %c0_i32, %c0_i32_0, %c0_i32_1 : i32, i32, i32
  }
  func.func @transform_4(%arg0: i32) -> (i32, i32, i32) {
    %c0_i32 = arith.constant 0 : i32
    %c0_i32_0 = arith.constant 0 : i32
    %c0_i32_1 = arith.constant 0 : i32
    %c0_i32_2 = arith.constant 0 : i32
    return %c0_i32, %c0_i32_0, %c0_i32_1 : i32, i32, i32
  }
  func.func @transform_5(%arg0: i32) -> (i32, i32, i32) {
    %c0_i32 = arith.constant 0 : i32
    %c0_i32_0 = arith.constant 0 : i32
    %c0_i32_1 = arith.constant 0 : i32
    return %arg0, %c0_i32, %c0_i32_0 : i32, i32, i32
  }
}

module attributes {stable_mosaic.version = 11 : i64} {
  func.func @_conv_norm_act_kernel(%arg0: i32, %arg1: memref<1x288x64xbf16, #tpu.memory_space<vmem>>, %arg2: memref<32x288xbf16, #tpu.memory_space<vmem>>, %arg3: memref<32x1xf32, #tpu.memory_space<vmem>>, %arg4: memref<1x1x1xf32, #tpu.memory_space<vmem>>, %arg5: memref<1x1x1xf32, #tpu.memory_space<vmem>>, %arg6: memref<1x32x64xf32, #tpu.memory_space<vmem>>) attributes {dimension_semantics = [#tpu.dimension_semantics<parallel>], iteration_bounds = array<i64: 2>, scalar_prefetch = 0 : i64, scratch_operands = 0 : i64, tpu.core_type = #tpu.core_type<tc>, window_params = [{transform_indices = @transform_0, window_bounds = array<i64: 1, 288, 64>}, {pipeline_mode = #tpu.pipeline_mode<synchronous>, transform_indices = @transform_1, window_bounds = array<i64: 32, 288>}, {pipeline_mode = #tpu.pipeline_mode<synchronous>, transform_indices = @transform_2, window_bounds = array<i64: 32, 1>}, {pipeline_mode = #tpu.pipeline_mode<synchronous>, transform_indices = @transform_3, window_bounds = array<i64: 1, 1, 1>}, {pipeline_mode = #tpu.pipeline_mode<synchronous>, transform_indices = @transform_4, window_bounds = array<i64: 1, 1, 1>}, {transform_indices = @transform_5, window_bounds = array<i64: 1, 32, 64>}]} {
    %c0 = arith.constant 0 : index
    %c0_0 = arith.constant 0 : index
    %c0_1 = arith.constant 0 : index
    %0 = vector.load %arg1[%c0, %c0_0, %c0_1] : memref<1x288x64xbf16, #tpu.memory_space<vmem>>, vector<1x288x64xbf16>
    %1 = vector.shape_cast %0 : vector<1x288x64xbf16> to vector<288x64xbf16>
    %c0_2 = arith.constant 0 : index
    %c0_3 = arith.constant 0 : index
    %2 = vector.load %arg2[%c0_2, %c0_3] : memref<32x288xbf16, #tpu.memory_space<vmem>>, vector<32x288xbf16>
    %cst = arith.constant dense<0.000000e+00> : vector<32x64xf32>
    %3 = tpu.matmul %2, %1, %cst {dimension_numbers = #tpu.dot_dimension_numbers<[1], [0], [0], [1], [0, 0, 1, 1], [], []>} : vector<32x288xbf16>, vector<288x64xbf16>, vector<32x64xf32> -> vector<32x64xf32>
    %c0_4 = arith.constant 0 : index
    %c0_5 = arith.constant 0 : index
    %4 = vector.load %arg3[%c0_4, %c0_5] : memref<32x1xf32, #tpu.memory_space<vmem>>, vector<32x1xf32>
    %5 = vector.broadcast %4 : vector<32x1xf32> to vector<32x64xf32>
    %6 = arith.addf %3, %5 : vector<32x64xf32>
    %cst_6 = arith.constant dense<0.000000e+00> : vector<32xf32>
    %7 = vector.multi_reduction <add>, %6, %cst_6 [1] : vector<32x64xf32> to vector<32xf32>
    %8 = vector.shape_cast %7 : vector<32xf32> to vector<32x1xf32>
    %cst_7 = arith.constant 6.400000e+01 : f32
    %9 = vector.broadcast %cst_7 : f32 to vector<32x1xf32>
    %10 = arith.divf %8, %9 : vector<32x1xf32>
    %11 = vector.broadcast %10 : vector<32x1xf32> to vector<32x64xf32>
    %12 = arith.subf %6, %11 : vector<32x64xf32>
    %13 = arith.mulf %12, %12 : vector<32x64xf32>
    %cst_8 = arith.constant dense<0.000000e+00> : vector<32xf32>
    %14 = vector.multi_reduction <add>, %13, %cst_8 [1] : vector<32x64xf32> to vector<32xf32>
    %15 = vector.shape_cast %14 : vector<32xf32> to vector<32x1xf32>
    %cst_9 = arith.constant 6.400000e+01 : f32
    %16 = vector.broadcast %cst_9 : f32 to vector<32x1xf32>
    %17 = arith.divf %15, %16 : vector<32x1xf32>
    %cst_10 = arith.constant 9.99999974E-6 : f32
    %18 = vector.broadcast %cst_10 : f32 to vector<32x1xf32>
    %19 = arith.addf %17, %18 : vector<32x1xf32>
    %20 = math.rsqrt %19 : vector<32x1xf32>
    %21 = vector.broadcast %20 : vector<32x1xf32> to vector<32x64xf32>
    %22 = arith.mulf %12, %21 : vector<32x64xf32>
    %c0_11 = arith.constant 0 : index
    %c0_12 = arith.constant 0 : index
    %c0_13 = arith.constant 0 : index
    %23 = vector.load %arg6[%c0_11, %c0_12, %c0_13] : memref<1x32x64xf32, #tpu.memory_space<vmem>>, vector<1x32x64xf32>
    %24 = vector.shape_cast %23 : vector<1x32x64xf32> to vector<32x64xf32>
    %25 = vector.shape_cast %22 : vector<32x64xf32> to vector<1x32x64xf32>
    tpu.vector_store %arg6[%c0_11, %c0_12, %c0_13], %25 {strides = array<i32>} : memref<1x32x64xf32, #tpu.memory_space<vmem>>, vector<1x32x64xf32>,
    return
  }
  func.func @transform_0(%arg0: i32) -> (i32, i32, i32) {
    %c0_i32 = arith.constant 0 : i32
    %c0_i32_0 = arith.constant 0 : i32
    %c0_i32_1 = arith.constant 0 : i32
    return %arg0, %c0_i32, %c0_i32_0 : i32, i32, i32
  }
  func.func @transform_1(%arg0: i32) -> (i32, i32) {
    %c0_i32 = arith.constant 0 : i32
    %c0_i32_0 = arith.constant 0 : i32
    %c0_i32_1 = arith.constant 0 : i32
    return %c0_i32, %c0_i32_0 : i32, i32
  }
  func.func @transform_2(%arg0: i32) -> (i32, i32) {
    %c0_i32 = arith.constant 0 : i32
    %c0_i32_0 = arith.constant 0 : i32
    %c0_i32_1 = arith.constant 0 : i32
    return %c0_i32, %c0_i32_0 : i32, i32
  }
  func.func @transform_3(%arg0: i32) -> (i32, i32, i32) {
    %c0_i32 = arith.constant 0 : i32
    %c0_i32_0 = arith.constant 0 : i32
    %c0_i32_1 = arith.constant 0 : i32
    %c0_i32_2 = arith.constant 0 : i32
    return %c0_i32, %c0_i32_0, %c0_i32_1 : i32, i32, i32
  }
  func.func @transform_4(%arg0: i32) -> (i32, i32, i32) {
    %c0_i32 = arith.constant 0 : i32
    %c0_i32_0 = arith.constant 0 : i32
    %c0_i32_1 = arith.constant 0 : i32
    %c0_i32_2 = arith.constant 0 : i32
    return %c0_i32, %c0_i32_0, %c0_i32_1 : i32, i32, i32
  }
  func.func @transform_5(%arg0: i32) -> (i32, i32, i32) {
    %c0_i32 = arith.constant 0 : i32
    %c0_i32_0 = arith.constant 0 : i32
    %c0_i32_1 = arith.constant 0 : i32
    return %arg0, %c0_i32, %c0_i32_0 : i32, i32, i32
  }
}

module attributes {stable_mosaic.version = 11 : i64} {
  func.func @_conv_norm_act_kernel(%arg0: i32, %arg1: memref<1x288x64xbf16, #tpu.memory_space<vmem>>, %arg2: memref<32x288xbf16, #tpu.memory_space<vmem>>, %arg3: memref<32x1xf32, #tpu.memory_space<vmem>>, %arg4: memref<1x32x1xf32, #tpu.memory_space<vmem>>, %arg5: memref<1x32x1xf32, #tpu.memory_space<vmem>>, %arg6: memref<1x32x64xf32, #tpu.memory_space<vmem>>) attributes {dimension_semantics = [#tpu.dimension_semantics<parallel>], iteration_bounds = array<i64: 2>, scalar_prefetch = 0 : i64, scratch_operands = 0 : i64, tpu.core_type = #tpu.core_type<tc>, window_params = [{transform_indices = @transform_0, window_bounds = array<i64: 1, 288, 64>}, {pipeline_mode = #tpu.pipeline_mode<synchronous>, transform_indices = @transform_1, window_bounds = array<i64: 32, 288>}, {pipeline_mode = #tpu.pipeline_mode<synchronous>, transform_indices = @transform_2, window_bounds = array<i64: 32, 1>}, {transform_indices = @transform_3, window_bounds = array<i64: 1, 32, 1>}, {transform_indices = @transform_4, window_bounds = array<i64: 1, 32, 1>}, {transform_indices = @transform_5, window_bounds = array<i64: 1, 32, 64>}]} {
    %c0 = arith.constant 0 : index
    %c0_0 = arith.constant 0 : index
    %c0_1 = arith.constant 0 : index
    %0 = vector.load %arg1[%c0, %c0_0, %c0_1] : memref<1x288x64xbf16, #tpu.memory_space<vmem>>, vector<1x288x64xbf16>
    %1 = vector.shape_cast %0 : vector<1x288x64xbf16> to vector<288x64xbf16>
    %c0_2 = arith.constant 0 : index
    %c0_3 = arith.constant 0 : index
    %2 = vector.load %arg2[%c0_2, %c0_3] : memref<32x288xbf16, #tpu.memory_space<vmem>>, vector<32x288xbf16>
    %cst = arith.constant dense<0.000000e+00> : vector<32x64xf32>
    %3 = tpu.matmul %2, %1, %cst {dimension_numbers = #tpu.dot_dimension_numbers<[1], [0], [0], [1], [0, 0, 1, 1], [], []>} : vector<32x288xbf16>, vector<288x64xbf16>, vector<32x64xf32> -> vector<32x64xf32>
    %c0_4 = arith.constant 0 : index
    %c0_5 = arith.constant 0 : index
    %4 = vector.load %arg3[%c0_4, %c0_5] : memref<32x1xf32, #tpu.memory_space<vmem>>, vector<32x1xf32>
    %5 = vector.broadcast %4 : vector<32x1xf32> to vector<32x64xf32>
    %6 = arith.addf %3, %5 : vector<32x64xf32>
    %cst_6 = arith.constant dense<0.000000e+00> : vector<64xf32>
    %7 = vector.multi_reduction <add>, %6, %cst_6 [0] : vector<32x64xf32> to vector<64xf32>
    %8 = vector.shape_cast %7 : vector<64xf32> to vector<1x64xf32>
    %cst_7 = arith.constant 3.200000e+01 : f32
    %9 = vector.broadcast %cst_7 : f32 to vector<1x64xf32>
    %10 = arith.divf %8, %9 : vector<1x64xf32>
    %11 = vector.broadcast %10 : vector<1x64xf32> to vector<32x64xf32>
    %12 = arith.subf %6, %11 : vector<32x64xf32>
    %13 = arith.mulf %12, %12 : vector<32x64xf32>
    %cst_8 = arith.constant dense<0.000000e+00> : vector<64xf32>
    %14 = vector.multi_reduction <add>, %13, %cst_8 [0] : vector<32x64xf32> to vector<64xf32>
    %15 = vector.shape_cast %14 : vector<64xf32> to vector<1x64xf32>
    %cst_9 = arith.constant 3.100000e+01 : f32
    %16 = vector.broadcast %cst_9 : f32 to vector<1x64xf32>
    %17 = arith.divf %15, %16 : vector<1x64xf32>
    %18 = math.sqrt %17 : vector<1x64xf32>
    %cst_10 = arith.constant 9.99999974E-6 : f32
    %19 = vector.broadcast %cst_10 : f32 to vector<1x64xf32>
    %20 = arith.addf %18, %19 : vector<1x64xf32>
    %21 = vector.broadcast %20 : vector<1x64xf32> to vector<32x64xf32>
    %22 = arith.divf %12, %21 : vector<32x64xf32>
    %c0_11 = arith.constant 0 : index
    %c0_12 = arith.constant 0 : index
    %c0_13 = arith.constant 0 : index
    %23 = vector.load %arg4[%c0_11, %c0_12, %c0_13] : memref<1x32x1xf32, #tpu.memory_space<vmem>>, vector<1x32x1xf32>
    %24 = vector.shape_cast %23 : vector<1x32x1xf32> to vector<32x1xf32>
    %25 = vector.broadcast %24 : vector<32x1xf32> to vector<32x64xf32>
    %26 = arith.mulf %25, %22 : vector<32x64xf32>
    %c0_14 = arith.constant 0 : index
    %c0_15 = arith.constant 0 : index
    %c0_16 = arith.constant 0 : index
    %27 = vector.load %arg5[%c0_14, %c0_15, %c0_16] : memref<1x32x1xf32, #tpu.memory_space<vmem>>, vector<1x32x1xf32>
    %28 = vector.shape_cast %27 : vector<1x32x1xf32> to vector<32x1xf32>
    %29 = vector.broadcast %28 : vector<32x1xf32> to vector<32x64xf32>
    %30 = arith.addf %26, %29 : vector<32x64xf32>
    %cst_17 = arith.constant 0.000000e+00 : f32
    %31 = vector.broadcast %cst_17 : f32 to vector<32x64xf32>
    %32 = arith.maximumf %30, %31 : vector<32x64xf32>
    %c0_18 = arith.constant 0 : index
    %c0_19 = arith.constant 0 : index
    %c0_20 = arith.constant 0 : index
    %33 = vector.load %arg6[%c0_18, %c0_19, %c0_20] : memref<1x32x64xf32, #tpu.memory_space<vmem>>, vector<1x32x64xf32>
    %34 = vector.shape_cast %33 : vector<1x32x64xf32> to vector<32x64xf32>
    %35 = vector.shape_cast %32 : vector<32x64xf32> to vector<1x32x64xf32>
    tpu.vector_store %arg6[%c0_18, %c0_19, %c0_20], %35 {strides = array<i32>} : memref<1x32x64xf32, #tpu.memory_space<vmem>>, vector<1x32x64xf32>,
    return
  }
  func.func @transform_0(%arg0: i32) -> (i32, i32, i32) {
    %c0_i32 = arith.constant 0 : i32
    %c0_i32_0 = arith.constant 0 : i32
    %c0_i32_1 = arith.constant 0 : i32
    return %arg0, %c0_i32, %c0_i32_0 : i32, i32, i32
  }
  func.func @transform_1(%arg0: i32) -> (i32, i32) {
    %c0_i32 = arith.constant 0 : i32
    %c0_i32_0 = arith.constant 0 : i32
    %c0_i32_1 = arith.constant 0 : i32
    return %c0_i32, %c0_i32_0 : i32, i32
  }
  func.func @transform_2(%arg0: i32) -> (i32, i32) {
    %c0_i32 = arith.constant 0 : i32
    %c0_i32_0 = arith.constant 0 : i32
    %c0_i32_1 = arith.constant 0 : i32
    return %c0_i32, %c0_i32_0 : i32, i32
  }
  func.func @transform_3(%arg0: i32) -> (i32, i32, i32) {
    %c0_i32 = arith.constant 0 : i32
    %c0_i32_0 = arith.constant 0 : i32
    %c0_i32_1 = arith.constant 0 : i32
    return %arg0, %c0_i32, %c0_i32_0 : i32, i32, i32
  }
  func.func @transform_4(%arg0: i32) -> (i32, i32, i32) {
    %c0_i32 = arith.constant 0 : i32
    %c0_i32_0 = arith.constant 0 : i32
    %c0_i32_1 = arith.constant 0 : i32
    return %arg0, %c0_i32, %c0_i32_0 : i32, i32, i32
  }
  func.func @transform_5(%arg0: i32) -> (i32, i32, i32) {
    %c0_i32 = arith.constant 0 : i32
    %c0_i32_0 = arith.constant 0 : i32
    %c0_i32_1 = arith.constant 0 : i32
    return %arg0, %c0_i32, %c0_i32_0 : i32, i32, i32
  }
}

module attributes {stable_mosaic.version = 11 : i64} {
  func.func @_conv_norm_act_kernel(%arg0: i32, %arg1: memref<1x288x64xbf16, #tpu.memory_space<vmem>>, %arg2: memref<32x288xbf16, #tpu.memory_space<vmem>>, %arg3: memref<32x1xf32, #tpu.memory_space<vmem>>, %arg4: memref<1x32x1xf32, #tpu.memory_space<vmem>>, %arg5: memref<1x32x1xf32, #tpu.memory_space<vmem>>, %arg6: memref<1x32x64xf32, #tpu.memory_space<vmem>>) attributes {dimension_semantics = [#tpu.dimension_semantics<parallel>], iteration_bounds = array<i64: 2>, scalar_prefetch = 0 : i64, scratch_operands = 0 : i64, tpu.core_type = #tpu.core_type<tc>, window_params = [{transform_indices = @transform_0, window_bounds = array<i64: 1, 288, 64>}, {pipeline_mode = #tpu.pipeline_mode<synchronous>, transform_indices = @transform_1, window_bounds = array<i64: 32, 288>}, {pipeline_mode = #tpu.pipeline_mode<synchronous>, transform_indices = @transform_2, window_bounds = array<i64: 32, 1>}, {transform_indices = @transform_3, window_bounds = array<i64: 1, 32, 1>}, {transform_indices = @transform_4, window_bounds = array<i64: 1, 32, 1>}, {transform_indices = @transform_5, window_bounds = array<i64: 1, 32, 64>}]} {
    %c0 = arith.constant 0 : index
    %c0_0 = arith.constant 0 : index
    %c0_1 = arith.constant 0 : index
    %0 = vector.load %arg1[%c0, %c0_0, %c0_1] : memref<1x288x64xbf16, #tpu.memory_space<vmem>>, vector<1x288x64xbf16>
    %1 = vector.shape_cast %0 : vector<1x288x64xbf16> to vector<288x64xbf16>
    %c0_2 = arith.constant 0 : index
    %c0_3 = arith.constant 0 : index
    %2 = vector.load %arg2[%c0_2, %c0_3] : memref<32x288xbf16, #tpu.memory_space<vmem>>, vector<32x288xbf16>
    %cst = arith.constant dense<0.000000e+00> : vector<32x64xf32>
    %3 = tpu.matmul %2, %1, %cst {dimension_numbers = #tpu.dot_dimension_numbers<[1], [0], [0], [1], [0, 0, 1, 1], [], []>} : vector<32x288xbf16>, vector<288x64xbf16>, vector<32x64xf32> -> vector<32x64xf32>
    %c0_4 = arith.constant 0 : index
    %c0_5 = arith.constant 0 : index
    %4 = vector.load %arg3[%c0_4, %c0_5] : memref<32x1xf32, #tpu.memory_space<vmem>>, vector<32x1xf32>
    %5 = vector.broadcast %4 : vector<32x1xf32> to vector<32x64xf32>
    %6 = arith.addf %3, %5 : vector<32x64xf32>
    %cst_6 = arith.constant dense<0.000000e+00> : vector<64xf32>
    %7 = vector.multi_reduction <add>, %6, %cst_6 [0] : vector<32x64xf32> to vector<64xf32>
    %8 = vector.shape_cast %7 : vector<64xf32> to vector<1x64xf32>
    %cst_7 = arith.constant 3.200000e+01 : f32
    %9 = vector.broadcast %cst_7 : f32 to vector<1x64xf32>
    %10 = arith.divf %8, %9 : vector<1x64xf32>
    %11 = vector.broadcast %10 : vector<1x64xf32> to vector<32x64xf32>
    %12 = arith.subf %6, %11 : vector<32x64xf32>
    %13 = arith.mulf %12, %12 : vector<32x64xf32>
    %cst_8 = arith.constant dense<0.000000e+00> : vector<64xf32>
    %14 = vector.multi_reduction <add>, %13, %cst_8 [0] : vector<32x64xf32> to vector<64xf32>
    %15 = vector.shape_cast %14 : vector<64xf32> to vector<1x64xf32>
    %cst_9 = arith.constant 3.100000e+01 : f32
    %16 = vector.broadcast %cst_9 : f32 to vector<1x64xf32>
    %17 = arith.divf %15, %16 : vector<1x64xf32>
    %18 = math.sqrt %17 : vector<1x64xf32>
    %cst_10 = arith.constant 9.99999974E-6 : f32
    %19 = vector.broadcast %cst_10 : f32 to vector<1x64xf32>
    %20 = arith.addf %18, %19 : vector<1x64xf32>
    %21 = vector.broadcast %20 : vector<1x64xf32> to vector<32x64xf32>
    %22 = arith.divf %12, %21 : vector<32x64xf32>
    %c0_11 = arith.constant 0 : index
    %c0_12 = arith.constant 0 : index
    %c0_13 = arith.constant 0 : index
    %23 = vector.load %arg4[%c0_11, %c0_12, %c0_13] : memref<1x32x1xf32, #tpu.memory_space<vmem>>, vector<1x32x1xf32>
    %24 = vector.shape_cast %23 : vector<1x32x1xf32> to vector<32x1xf32>
    %25 = vector.broadcast %24 : vector<32x1xf32> to vector<32x64xf32>
    %26 = arith.mulf %25, %22 : vector<32x64xf32>
    %c0_14 = arith.constant 0 : index
    %c0_15 = arith.constant 0 : index
    %c0_16 = arith.constant 0 : index
    %27 = vector.load %arg5[%c0_14, %c0_15, %c0_16] : memref<1x32x1xf32, #tpu.memory_space<vmem>>, vector<1x32x1xf32>
    %28 = vector.shape_cast %27 : vector<1x32x1xf32> to vector<32x1xf32>
    %29 = vector.broadcast %28 : vector<32x1xf32> to vector<32x64xf32>
    %30 = arith.addf %26, %29 : vector<32x64xf32>
    %c0_17 = arith.constant 0 : index
    %c0_18 = arith.constant 0 : index
    %c0_19 = arith.constant 0 : index
    %31 = vector.load %arg6[%c0_17, %c0_18, %c0_19] : memref<1x32x64xf32, #tpu.memory_space<vmem>>, vector<1x32x64xf32>
    %32 = vector.shape_cast %31 : vector<1x32x64xf32> to vector<32x64xf32>
    %33 = vector.shape_cast %30 : vector<32x64xf32> to vector<1x32x64xf32>
    tpu.vector_store %arg6[%c0_17, %c0_18, %c0_19], %33 {strides = array<i32>} : memref<1x32x64xf32, #tpu.memory_space<vmem>>, vector<1x32x64xf32>,
    return
  }
  func.func @transform_0(%arg0: i32) -> (i32, i32, i32) {
    %c0_i32 = arith.constant 0 : i32
    %c0_i32_0 = arith.constant 0 : i32
    %c0_i32_1 = arith.constant 0 : i32
    return %arg0, %c0_i32, %c0_i32_0 : i32, i32, i32
  }
  func.func @transform_1(%arg0: i32) -> (i32, i32) {
    %c0_i32 = arith.constant 0 : i32
    %c0_i32_0 = arith.constant 0 : i32
    %c0_i32_1 = arith.constant 0 : i32
    return %c0_i32, %c0_i32_0 : i32, i32
  }
  func.func @transform_2(%arg0: i32) -> (i32, i32) {
    %c0_i32 = arith.constant 0 : i32
    %c0_i32_0 = arith.constant 0 : i32
    %c0_i32_1 = arith.constant 0 : i32
    return %c0_i32, %c0_i32_0 : i32, i32
  }
  func.func @transform_3(%arg0: i32) -> (i32, i32, i32) {
    %c0_i32 = arith.constant 0 : i32
    %c0_i32_0 = arith.constant 0 : i32
    %c0_i32_1 = arith.constant 0 : i32
    return %arg0, %c0_i32, %c0_i32_0 : i32, i32, i32
  }
  func.func @transform_4(%arg0: i32) -> (i32, i32, i32) {
    %c0_i32 = arith.constant 0 : i32
    %c0_i32_0 = arith.constant 0 : i32
    %c0_i32_1 = arith.constant 0 : i32
    return %arg0, %c0_i32, %c0_i32_0 : i32, i32, i32
  }
  func.func @transform_5(%arg0: i32) -> (i32, i32, i32) {
    %c0_i32 = arith.constant 0 : i32
    %c0_i32_0 = arith.constant 0 : i32
    %c0_i32_1 = arith.constant 0 : i32
    return %arg0, %c0_i32, %c0_i32_0 : i32, i32, i32
  }
}

module attributes {stable_mosaic.version = 11 : i64} {
  func.func @_conv_norm_act_kernel(%arg0: i32, %arg1: memref<1x800x256xbf16, #tpu.memory_space<vmem>>, %arg2: memref<16x800xbf16, #tpu.memory_space<vmem>>, %arg3: memref<16x1xf32, #tpu.memory_space<vmem>>, %arg4: memref<1x16x1xf32, #tpu.memory_space<vmem>>, %arg5: memref<1x16x1xf32, #tpu.memory_space<vmem>>, %arg6: memref<1x16x256xf32, #tpu.memory_space<vmem>>) attributes {dimension_semantics = [#tpu.dimension_semantics<parallel>], iteration_bounds = array<i64: 2>, scalar_prefetch = 0 : i64, scratch_operands = 0 : i64, tpu.core_type = #tpu.core_type<tc>, window_params = [{transform_indices = @transform_0, window_bounds = array<i64: 1, 800, 256>}, {pipeline_mode = #tpu.pipeline_mode<synchronous>, transform_indices = @transform_1, window_bounds = array<i64: 16, 800>}, {pipeline_mode = #tpu.pipeline_mode<synchronous>, transform_indices = @transform_2, window_bounds = array<i64: 16, 1>}, {pipeline_mode = #tpu.pipeline_mode<synchronous>, transform_indices = @transform_3, window_bounds = array<i64: 1, 16, 1>}, {pipeline_mode = #tpu.pipeline_mode<synchronous>, transform_indices = @transform_4, window_bounds = array<i64: 1, 16, 1>}, {transform_indices = @transform_5, window_bounds = array<i64: 1, 16, 256>}]} {
    %c0 = arith.constant 0 : index
    %c0_0 = arith.constant 0 : index
    %c0_1 = arith.constant 0 : index
    %0 = vector.load %arg1[%c0, %c0_0, %c0_1] : memref<1x800x256xbf16, #tpu.memory_space<vmem>>, vector<1x800x256xbf16>
    %1 = vector.shape_cast %0 : vector<1x800x256xbf16> to vector<800x256xbf16>
    %c0_2 = arith.constant 0 : index
    %c0_3 = arith.constant 0 : index
    %2 = vector.load %arg2[%c0_2, %c0_3] : memref<16x800xbf16, #tpu.memory_space<vmem>>, vector<16x800xbf16>
    %cst = arith.constant dense<0.000000e+00> : vector<16x256xf32>
    %3 = tpu.matmul %2, %1, %cst {dimension_numbers = #tpu.dot_dimension_numbers<[1], [0], [0], [1], [0, 0, 1, 1], [], []>} : vector<16x800xbf16>, vector<800x256xbf16>, vector<16x256xf32> -> vector<16x256xf32>
    %c0_4 = arith.constant 0 : index
    %c0_5 = arith.constant 0 : index
    %4 = vector.load %arg3[%c0_4, %c0_5] : memref<16x1xf32, #tpu.memory_space<vmem>>, vector<16x1xf32>
    %5 = vector.broadcast %4 : vector<16x1xf32> to vector<16x256xf32>
    %6 = arith.addf %3, %5 : vector<16x256xf32>
    %cst_6 = arith.constant dense<0.000000e+00> : vector<16xf32>
    %7 = vector.multi_reduction <add>, %6, %cst_6 [1] : vector<16x256xf32> to vector<16xf32>
    %8 = vector.shape_cast %7 : vector<16xf32> to vector<16x1xf32>
    %cst_7 = arith.constant 2.560000e+02 : f32
    %9 = vector.broadcast %cst_7 : f32 to vector<16x1xf32>
    %10 = arith.divf %8, %9 : vector<16x1xf32>
    %cst_8 = arith.constant dense<0.000000e+00> : vector<1xf32>
    %11 = vector.multi_reduction <add>, %10, %cst_8 [0] : vector<16x1xf32> to vector<1xf32>
    %12 = vector.shape_cast %11 : vector<1xf32> to vector<1x1xf32>
    %cst_9 = arith.constant 1.600000e+01 : f32
    %13 = vector.broadcast %cst_9 : f32 to vector<1x1xf32>
    %14 = arith.divf %12, %13 : vector<1x1xf32>
    %15 = vector.broadcast %14 : vector<1x1xf32> to vector<16x256xf32>
    %16 = arith.subf %6, %15 : vector<16x256xf32>
    %17 = arith.mulf %16, %16 : vector<16x256xf32>
    %cst_10 = arith.constant dense<0.000000e+00> : vector<16xf32>
    %18 = vector.multi_reduction <add>, %17, %cst_10 [1] : vector<16x256xf32> to vector<16xf32>
    %19 = vector.shape_cast %18 : vector<16xf32> to vector<16x1xf32>
    %cst_11 = arith.constant dense<0.000000e+00> : vector<1xf32>
    %20 = vector.multi_reduction <add>, %19, %cst_11 [0] : vector<16x1xf32> to vector<1xf32>
    %21 = vector.shape_cast %20 : vector<1xf32> to vector<1x1xf32>
    %cst_12 = arith.constant 4.095000e+03 : f32
    %22 = vector.broadcast %cst_12 : f32 to vector<1x1xf32>
    %23 = arith.divf %21, %22 : vector<1x1xf32>
    %24 = math.sqrt %23 : vector<1x1xf32>
    %cst_13 = arith.constant 9.99999974E-6 : f32
    %25 = vector.broadcast %cst_13 : f32 to vector<1x1xf32>
    %26 = arith.addf %24, %25 : vector<1x1xf32>
    %27 = vector.broadcast %26 : vector<1x1xf32> to vector<16x256xf32>
    %28 = arith.divf %16, %27 : vector<16x256xf32>
    %c0_14 = arith.constant 0 : index
    %c0_15 = arith.constant 0 : index
    %c0_16 = arith.constant 0 : index
    %29 = vector.load %arg4[%c0_14, %c0_15, %c0_16] : memref<1x16x1xf32, #tpu.memory_space<vmem>>, vector<1x16x1xf32>
    %30 = vector.shape_cast %29 : vector<1x16x1xf32> to vector<16x1xf32>
    %31 = vector.broadcast %30 : vector<16x1xf32> to vector<16x256xf32>
    %32 = arith.mulf %31, %28 : vector<16x256xf32>
    %c0_17 = arith.constant 0 : index
    %c0_18 = arith.constant 0 : index
    %c0_19 = arith.constant 0 : index
    %33 = vector.load %arg5[%c0_17, %c0_18, %c0_19] : memref<1x16x1xf32, #tpu.memory_space<vmem>>, vector<1x16x1xf32>
    %34 = vector.shape_cast %33 : vector<1x16x1xf32> to vector<16x1xf32>
    %35 = vector.broadcast %34 : vector<16x1xf32> to vector<16x256xf32>
    %36 = arith.addf %32, %35 : vector<16x256xf32>
    %cst_20 = arith.constant 0.000000e+00 : f32
    %37 = vector.broadcast %cst_20 : f32 to vector<16x256xf32>
    %38 = arith.maximumf %36, %37 : vector<16x256xf32>
    %c0_21 = arith.constant 0 : index
    %c0_22 = arith.constant 0 : index
    %c0_23 = arith.constant 0 : index
    %39 = vector.load %arg6[%c0_21, %c0_22, %c0_23] : memref<1x16x256xf32, #tpu.memory_space<vmem>>, vector<1x16x256xf32>
    %40 = vector.shape_cast %39 : vector<1x16x256xf32> to vector<16x256xf32>
    %41 = vector.shape_cast %38 : vector<16x256xf32> to vector<1x16x256xf32>
    tpu.vector_store %arg6[%c0_21, %c0_22, %c0_23], %41 {strides = array<i32>} : memref<1x16x256xf32, #tpu.memory_space<vmem>>, vector<1x16x256xf32>,
    return
  }
  func.func @transform_0(%arg0: i32) -> (i32, i32, i32) {
    %c0_i32 = arith.constant 0 : i32
    %c0_i32_0 = arith.constant 0 : i32
    %c0_i32_1 = arith.constant 0 : i32
    return %arg0, %c0_i32, %c0_i32_0 : i32, i32, i32
  }
  func.func @transform_1(%arg0: i32) -> (i32, i32) {
    %c0_i32 = arith.constant 0 : i32
    %c0_i32_0 = arith.constant 0 : i32
    %c0_i32_1 = arith.constant 0 : i32
    return %c0_i32, %c0_i32_0 : i32, i32
  }
  func.func @transform_2(%arg0: i32) -> (i32, i32) {
    %c0_i32 = arith.constant 0 : i32
    %c0_i32_0 = arith.constant 0 : i32
    %c0_i32_1 = arith.constant 0 : i32
    return %c0_i32, %c0_i32_0 : i32, i32
  }
  func.func @transform_3(%arg0: i32) -> (i32, i32, i32) {
    %c0_i32 = arith.constant 0 : i32
    %c0_i32_0 = arith.constant 0 : i32
    %c0_i32_1 = arith.constant 0 : i32
    %c0_i32_2 = arith.constant 0 : i32
    return %c0_i32, %c0_i32_0, %c0_i32_1 : i32, i32, i32
  }
  func.func @transform_4(%arg0: i32) -> (i32, i32, i32) {
    %c0_i32 = arith.constant 0 : i32
    %c0_i32_0 = arith.constant 0 : i32
    %c0_i32_1 = arith.constant 0 : i32
    %c0_i32_2 = arith.constant 0 : i32
    return %c0_i32, %c0_i32_0, %c0_i32_1 : i32, i32, i32
  }
  func.func @transform_5(%arg0: i32) -> (i32, i32, i32) {
    %c0_i32 = arith.constant 0 : i32
    %c0_i32_0 = arith.constant 0 : i32
    %c0_i32_1 = arith.constant 0 : i32
    return %arg0, %c0_i32, %c0_i32_0 : i32, i32, i32
  }
}

module attributes {stable_mosaic.version = 11 : i64} {
  func.func @_conv_norm_act_kernel(%arg0: i32, %arg1: memref<1x400x1024xbf16, #tpu.memory_space<vmem>>, %arg2: memref<8x400xbf16, #tpu.memory_space<vmem>>, %arg3: memref<8x1xf32, #tpu.memory_space<vmem>>, %arg4: memref<1x8x1xf32, #tpu.memory_space<vmem>>, %arg5: memref<1x8x1xf32, #tpu.memory_space<vmem>>, %arg6: memref<1x8x1024xf32, #tpu.memory_space<vmem>>) attributes {dimension_semantics = [#tpu.dimension_semantics<parallel>], iteration_bounds = array<i64: 2>, scalar_prefetch = 0 : i64, scratch_operands = 0 : i64, tpu.core_type = #tpu.core_type<tc>, window_params = [{transform_indices = @transform_0, window_bounds = array<i64: 1, 400, 1024>}, {pipeline_mode = #tpu.pipeline_mode<synchronous>, transform_indices = @transform_1, window_bounds = array<i64: 8, 400>}, {pipeline_mode = #tpu.pipeline_mode<synchronous>, transform_indices = @transform_2, window_bounds = array<i64: 8, 1>}, {pipeline_mode = #tpu.pipeline_mode<synchronous>, transform_indices = @transform_3, window_bounds = array<i64: 1, 8, 1>}, {pipeline_mode = #tpu.pipeline_mode<synchronous>, transform_indices = @transform_4, window_bounds = array<i64: 1, 8, 1>}, {transform_indices = @transform_5, window_bounds = array<i64: 1, 8, 1024>}]} {
    %c0 = arith.constant 0 : index
    %c0_0 = arith.constant 0 : index
    %c0_1 = arith.constant 0 : index
    %0 = vector.load %arg1[%c0, %c0_0, %c0_1] : memref<1x400x1024xbf16, #tpu.memory_space<vmem>>, vector<1x400x1024xbf16>
    %1 = vector.shape_cast %0 : vector<1x400x1024xbf16> to vector<400x1024xbf16>
    %c0_2 = arith.constant 0 : index
    %c0_3 = arith.constant 0 : index
    %2 = vector.load %arg2[%c0_2, %c0_3] : memref<8x400xbf16, #tpu.memory_space<vmem>>, vector<8x400xbf16>
    %cst = arith.constant dense<0.000000e+00> : vector<8x1024xf32>
    %3 = tpu.matmul %2, %1, %cst {dimension_numbers = #tpu.dot_dimension_numbers<[1], [0], [0], [1], [0, 0, 1, 1], [], []>} : vector<8x400xbf16>, vector<400x1024xbf16>, vector<8x1024xf32> -> vector<8x1024xf32>
    %c0_4 = arith.constant 0 : index
    %c0_5 = arith.constant 0 : index
    %4 = vector.load %arg3[%c0_4, %c0_5] : memref<8x1xf32, #tpu.memory_space<vmem>>, vector<8x1xf32>
    %5 = vector.broadcast %4 : vector<8x1xf32> to vector<8x1024xf32>
    %6 = arith.addf %3, %5 : vector<8x1024xf32>
    %cst_6 = arith.constant dense<0.000000e+00> : vector<8xf32>
    %7 = vector.multi_reduction <add>, %6, %cst_6 [1] : vector<8x1024xf32> to vector<8xf32>
    %8 = vector.shape_cast %7 : vector<8xf32> to vector<8x1xf32>
    %cst_7 = arith.constant 1.024000e+03 : f32
    %9 = vector.broadcast %cst_7 : f32 to vector<8x1xf32>
    %10 = arith.divf %8, %9 : vector<8x1xf32>
    %cst_8 = arith.constant dense<0.000000e+00> : vector<1xf32>
    %11 = vector.multi_reduction <add>, %10, %cst_8 [0] : vector<8x1xf32> to vector<1xf32>
    %12 = vector.shape_cast %11 : vector<1xf32> to vector<1x1xf32>
    %cst_9 = arith.constant 8.000000e+00 : f32
    %13 = vector.broadcast %cst_9 : f32 to vector<1x1xf32>
    %14 = arith.divf %12, %13 : vector<1x1xf32>
    %15 = vector.broadcast %14 : vector<1x1xf32> to vector<8x1024xf32>
    %16 = arith.subf %6, %15 : vector<8x1024xf32>
    %17 = arith.mulf %16, %16 : vector<8x1024xf32>
    %cst_10 = arith.constant dense<0.000000e+00> : vector<8xf32>
    %18 = vector.multi_reduction <add>, %17, %cst_10 [1] : vector<8x1024xf32> to vector<8xf32>
    %19 = vector.shape_cast %18 : vector<8xf32> to vector<8x1xf32>
    %cst_11 = arith.constant dense<0.000000e+00> : vector<1xf32>
    %20 = vector.multi_reduction <add>, %19, %cst_11 [0] : vector<8x1xf32> to vector<1xf32>
    %21 = vector.shape_cast %20 : vector<1xf32> to vector<1x1xf32>
    %cst_12 = arith.constant 8.191000e+03 : f32
    %22 = vector.broadcast %cst_12 : f32 to vector<1x1xf32>
    %23 = arith.divf %21, %22 : vector<1x1xf32>
    %24 = math.sqrt %23 : vector<1x1xf32>
    %cst_13 = arith.constant 9.99999974E-6 : f32
    %25 = vector.broadcast %cst_13 : f32 to vector<1x1xf32>
    %26 = arith.addf %24, %25 : vector<1x1xf32>
    %27 = vector.broadcast %26 : vector<1x1xf32> to vector<8x1024xf32>
    %28 = arith.divf %16, %27 : vector<8x1024xf32>
    %c0_14 = arith.constant 0 : index
    %c0_15 = arith.constant 0 : index
    %c0_16 = arith.constant 0 : index
    %29 = vector.load %arg4[%c0_14, %c0_15, %c0_16] : memref<1x8x1xf32, #tpu.memory_space<vmem>>, vector<1x8x1xf32>
    %30 = vector.shape_cast %29 : vector<1x8x1xf32> to vector<8x1xf32>
    %31 = vector.broadcast %30 : vector<8x1xf32> to vector<8x1024xf32>
    %32 = arith.mulf %31, %28 : vector<8x1024xf32>
    %c0_17 = arith.constant 0 : index
    %c0_18 = arith.constant 0 : index
    %c0_19 = arith.constant 0 : index
    %33 = vector.load %arg5[%c0_17, %c0_18, %c0_19] : memref<1x8x1xf32, #tpu.memory_space<vmem>>, vector<1x8x1xf32>
    %34 = vector.shape_cast %33 : vector<1x8x1xf32> to vector<8x1xf32>
    %35 = vector.broadcast %34 : vector<8x1xf32> to vector<8x1024xf32>
    %36 = arith.addf %32, %35 : vector<8x1024xf32>
    %cst_20 = arith.constant 0.000000e+00 : f32
    %37 = vector.broadcast %cst_20 : f32 to vector<8x1024xf32>
    %38 = arith.maximumf %36, %37 : vector<8x1024xf32>
    %c0_21 = arith.constant 0 : index
    %c0_22 = arith.constant 0 : index
    %c0_23 = arith.constant 0 : index
    %39 = vector.load %arg6[%c0_21, %c0_22, %c0_23] : memref<1x8x1024xf32, #tpu.memory_space<vmem>>, vector<1x8x1024xf32>
    %40 = vector.shape_cast %39 : vector<1x8x1024xf32> to vector<8x1024xf32>
    %41 = vector.shape_cast %38 : vector<8x1024xf32> to vector<1x8x1024xf32>
    tpu.vector_store %arg6[%c0_21, %c0_22, %c0_23], %41 {strides = array<i32>} : memref<1x8x1024xf32, #tpu.memory_space<vmem>>, vector<1x8x1024xf32>,
    return
  }
  func.func @transform_0(%arg0: i32) -> (i32, i32, i32) {
    %c0_i32 = arith.constant 0 : i32
    %c0_i32_0 = arith.constant 0 : i32
    %c0_i32_1 = arith.constant 0 : i32
    return %arg0, %c0_i32, %c0_i32_0 : i32, i32, i32
  }
  func.func @transform_1(%arg0: i32) -> (i32, i32) {
    %c0_i32 = arith.constant 0 : i32
    %c0_i32_0 = arith.constant 0 : i32
    %c0_i32_1 = arith.constant 0 : i32
    return %c0_i32, %c0_i32_0 : i32, i32
  }
  func.func @transform_2(%arg0: i32) -> (i32, i32) {
    %c0_i32 = arith.constant 0 : i32
    %c0_i32_0 = arith.constant 0 : i32
    %c0_i32_1 = arith.constant 0 : i32
    return %c0_i32, %c0_i32_0 : i32, i32
  }
  func.func @transform_3(%arg0: i32) -> (i32, i32, i32) {
    %c0_i32 = arith.constant 0 : i32
    %c0_i32_0 = arith.constant 0 : i32
    %c0_i32_1 = arith.constant 0 : i32
    %c0_i32_2 = arith.constant 0 : i32
    return %c0_i32, %c0_i32_0, %c0_i32_1 : i32, i32, i32
  }
  func.func @transform_4(%arg0: i32) -> (i32, i32, i32) {
    %c0_i32 = arith.constant 0 : i32
    %c0_i32_0 = arith.constant 0 : i32
    %c0_i32_1 = arith.constant 0 : i32
    %c0_i32_2 = arith.constant 0 : i32
    return %c0_i32, %c0_i32_0, %c0_i32_1 : i32, i32, i32
  }
  func.func @transform_5(%arg0: i32) -> (i32, i32, i32) {
    %c0_i32 = arith.constant 0 : i32
    %c0_i32_0 = arith.constant 0 : i32
    %c0_i32_1 = arith.constant 0 : i32
    return %arg0, %c0_i32, %c0_i32_0 : i32, i32, i32
  }
}

module attributes {stable_mosaic.version = 11 : i64} {
  func.func @_conv_norm_act_kernel(%arg0: i32, %arg1: memref<1x392x1024xbf16, #tpu.memory_space<vmem>>, %arg2: memref<3x392xbf16, #tpu.memory_space<vmem>>, %arg3: memref<3x1xf32, #tpu.memory_space<vmem>>, %arg4: memref<1x1x1xf32, #tpu.memory_space<vmem>>, %arg5: memref<1x1x1xf32, #tpu.memory_space<vmem>>, %arg6: memref<1x3x1024xf32, #tpu.memory_space<vmem>>) attributes {dimension_semantics = [#tpu.dimension_semantics<parallel>], iteration_bounds = array<i64: 2>, scalar_prefetch = 0 : i64, scratch_operands = 0 : i64, tpu.core_type = #tpu.core_type<tc>, window_params = [{transform_indices = @transform_0, window_bounds = array<i64: 1, 392, 1024>}, {pipeline_mode = #tpu.pipeline_mode<synchronous>, transform_indices = @transform_1, window_bounds = array<i64: 3, 392>}, {pipeline_mode = #tpu.pipeline_mode<synchronous>, transform_indices = @transform_2, window_bounds = array<i64: 3, 1>}, {pipeline_mode = #tpu.pipeline_mode<synchronous>, transform_indices = @transform_3, window_bounds = array<i64: 1, 1, 1>}, {pipeline_mode = #tpu.pipeline_mode<synchronous>, transform_indices = @transform_4, window_bounds = array<i64: 1, 1, 1>}, {transform_indices = @transform_5, window_bounds = array<i64: 1, 3, 1024>}]} {
    %c0 = arith.constant 0 : index
    %c0_0 = arith.constant 0 : index
    %c0_1 = arith.constant 0 : index
    %0 = vector.load %arg1[%c0, %c0_0, %c0_1] : memref<1x392x1024xbf16, #tpu.memory_space<vmem>>, vector<1x392x1024xbf16>
    %1 = vector.shape_cast %0 : vector<1x392x1024xbf16> to vector<392x1024xbf16>
    %c0_2 = arith.constant 0 : index
    %c0_3 = arith.constant 0 : index
    %2 = vector.load %arg2[%c0_2, %c0_3] : memref<3x392xbf16, #tpu.memory_space<vmem>>, vector<3x392xbf16>
    %cst = arith.constant dense<0.000000e+00> : vector<3x1024xf32>
    %3 = tpu.matmul %2, %1, %cst {dimension_numbers = #tpu.dot_dimension_numbers<[1], [0], [0], [1], [0, 0, 1, 1], [], []>} : vector<3x392xbf16>, vector<392x1024xbf16>, vector<3x1024xf32> -> vector<3x1024xf32>
    %c0_4 = arith.constant 0 : index
    %c0_5 = arith.constant 0 : index
    %4 = vector.load %arg3[%c0_4, %c0_5] : memref<3x1xf32, #tpu.memory_space<vmem>>, vector<3x1xf32>
    %5 = vector.broadcast %4 : vector<3x1xf32> to vector<3x1024xf32>
    %6 = arith.addf %3, %5 : vector<3x1024xf32>
    %7 = math.tanh %6 : vector<3x1024xf32>
    %c0_6 = arith.constant 0 : index
    %c0_7 = arith.constant 0 : index
    %c0_8 = arith.constant 0 : index
    %8 = vector.load %arg6[%c0_6, %c0_7, %c0_8] : memref<1x3x1024xf32, #tpu.memory_space<vmem>>, vector<1x3x1024xf32>
    %9 = vector.shape_cast %8 : vector<1x3x1024xf32> to vector<3x1024xf32>
    %10 = vector.shape_cast %7 : vector<3x1024xf32> to vector<1x3x1024xf32>
    tpu.vector_store %arg6[%c0_6, %c0_7, %c0_8], %10 {strides = array<i32>} : memref<1x3x1024xf32, #tpu.memory_space<vmem>>, vector<1x3x1024xf32>,
    return
  }
  func.func @transform_0(%arg0: i32) -> (i32, i32, i32) {
    %c0_i32 = arith.constant 0 : i32
    %c0_i32_0 = arith.constant 0 : i32
    %c0_i32_1 = arith.constant 0 : i32
    return %arg0, %c0_i32, %c0_i32_0 : i32, i32, i32
  }
  func.func @transform_1(%arg0: i32) -> (i32, i32) {
    %c0_i32 = arith.constant 0 : i32
    %c0_i32_0 = arith.constant 0 : i32
    %c0_i32_1 = arith.constant 0 : i32
    return %c0_i32, %c0_i32_0 : i32, i32
  }
  func.func @transform_2(%arg0: i32) -> (i32, i32) {
    %c0_i32 = arith.constant 0 : i32
    %c0_i32_0 = arith.constant 0 : i32
    %c0_i32_1 = arith.constant 0 : i32
    return %c0_i32, %c0_i32_0 : i32, i32
  }
  func.func @transform_3(%arg0: i32) -> (i32, i32, i32) {
    %c0_i32 = arith.constant 0 : i32
    %c0_i32_0 = arith.constant 0 : i32
    %c0_i32_1 = arith.constant 0 : i32
    %c0_i32_2 = arith.constant 0 : i32
    return %c0_i32, %c0_i32_0, %c0_i32_1 : i32, i32, i32
  }
  func.func @transform_4(%arg0: i32) -> (i32, i32, i32) {
    %c0_i32 = arith.constant 0 : i32
    %c0_i32_0 = arith.constant 0 : i32
    %c0_i32_1 = arith.constant 0 : i32
    %c0_i32_2 = arith.constant 0 : i32
    return %c0_i32, %c0_i32_0, %c0_i32_1 : i32, i32, i32
  }
  func.func @transform_5(%arg0: i32) -> (i32, i32, i32) {
    %c0_i32 = arith.constant 0 : i32
    %c0_i32_0 = arith.constant 0 : i32
    %c0_i32_1 = arith.constant 0 : i32
    return %arg0, %c0_i32, %c0_i32_0 : i32, i32, i32
  }
}

</mosaic_0001>

<bundles_post_ra>
// kernel: adain_gen_forward.19
= control target key start
LH: loop header
LB: loop body
LE: loop exit
PB: predicated region body
PF: predicated region fallthrough
CT: control target
= control target key end

     0   :  { %s1125_s18 = smov 0   ;;  %s1272_s0 = inlined_call_operand.vmem [shape: bf16[2,147,1024], index: 0, kind: input, shape index: {}]   ;;  %s1273_s1 = inlined_call_operand.vmem [shape: bf16[8,147], index: 1, kind: input, shape index: {}]   ;;  %s1274_s2 = inlined_call_operand.vmem [shape: f32[8,1], index: 2, kind: input, shape index: {}]   ;;  %s1275_s3 = inlined_call_operand.<no memory space> [shape: f32[1,1,1], index: 3, kind: input, shape index: {}, may-alias: {3,4}]   ;;  %s1276_s5 = inlined_call_operand.vmem [shape: f32[2,8,1024], index: 5, kind: output, shape index: {}]   ;;  %s1277_s4 = inlined_call_operand.<no memory space> [shape: f32[1,1,1], index: 4, kind: input, shape index: {}, may-alias: {3,4}]  }
   0x1 LB: > { %s966_s19 = sadd.s32 4294967295, %s1091_s18   ;;  %p970_p0 = scmp.ge.s32.totalorder %s1091_s18, 1  ;;  %s1091_s18 = sphi %s1125_s18, %s19_s18  }
   0x2   : > { %p191_p1 = scmp.lt.s32.totalorder %s1091_s18, 3 }
   0x4   : > { %p192_p2 = pnand %p970_p0, %p191_p1 }
   0x5   : > { %p219_p3 = scmp.lt.s32.totalorder (!%p192_p2), %s966_s19, 1  ;;  %v1136_v0 = vld [vmem:[%s1273_s1] sm:$0xff] (!%p192_p2)  ;;  %vm699_vm0 = vcmask (!%p192_p2), 154624   ;;  %v1093_v3 = vmov (!%p192_p2), 0   ;;  %vm703_vm1 = vcmask (!%p192_p2), 1040384   ;;  %vm704_vm2 = vcmask (!%p192_p2), 1041408  }
   0x6   : > { %195 = sbr.rel (%p192_p2) target bundleno = 319 (0x13f), region = 40  ;;  %v1140_v1 = vcombine.high (!%p192_p2), %v1136_v0, %v1136_v0  ;;  %v307_v2 = vld [vmem:[%s1274_s2] sm:$0xff] (!%p192_p2)  ;;  %1074 = vset.pattern.permute.xlu0 (!%p192_p2), %v1093_v3 }
   0x7   : > { %310 = vperm.xlu0 (!%p192_p2), %1074, %v307_v2  }
   0x8   : > { %1056 = vmatprep.mubr.msk.bf16.mxu0 (!%p192_p2), %vm699_vm0, %v1140_v1  ;;  %1057 = vmatprep.mubr.msk.bf16.mxu1 (!%p192_p2), %vm699_vm0, %v1140_v1 }
   0xd   : > { %s1279_s19 = smov (!%p219_p3, %s966_s19), 1 }
   0xe   : > { %s1063_s22 = smul.u32 608, %s1279_s19  ;;  %s1062_s26 = sshll.u32 %s1279_s19, 6 }
   0xf   : > { %s1259_s29 = scalar_lea.vmem %s1276_s5, %s1062_s26 }
  0x10   : > { %s1155_s25 = scalar_lea.vmem %s1272_s0, %s1063_s22 }
  0x11   : > { %v230_v4 = vld [vmem:[%s1155_s25] sm:$0xff]  ;;  %v231_v6 = vld [vmem:[%s1155_s25 + $0x8] sm:$0xff] }
  0x12   : > { %v234_v5 = vld [vmem:[%s1155_s25 + $0x20] sm:$0xff]  ;;  %v235_v8 = vld [vmem:[%s1155_s25 + $0x28] sm:$0xff] }
  0x13   : > { %v977_v7 = vcombine.high %v230_v4, %v234_v5  ;;  %v976_v9 = vcombine.low %v230_v4, %v234_v5  ;;  %v238_v10 = vld [vmem:[%s1155_s25 + $0x40] sm:$0xff]  ;;  %v979_v12 = vcombine.high %v231_v6, %v235_v8  ;;  %v978_v13 = vcombine.low %v231_v6, %v235_v8  ;;  %v239_v15 = vld [vmem:[%s1155_s25 + $0x48] sm:$0xff] }
  0x14   : > { %v242_v11 = vld [vmem:[%s1155_s25 + $0x60] sm:$0xff]  ;;  %v243_v16 = vld [vmem:[%s1155_s25 + $0x68] sm:$0xff] }
  0x15   : > { %v985_v14 = vcombine.high %v238_v10, %v242_v11  ;;  %v246_v17 = vld [vmem:[%s1155_s25 + $0x80] sm:$0xff]  ;;  %731 = vmatprep.subr.bf16.mxu0 %v977_v7  ;;  %v987_v18 = vcombine.high %v239_v15, %v243_v16  ;;  %v247_v20 = vld [vmem:[%s1155_s25 + $0x88] sm:$0xff]  ;;  %772 = vmatprep.subr.bf16.mxu1 %v979_v12  ;;  %v984_v22 = vcombine.low %v238_v10, %v242_v11 }
  0x16   : > { %v250_v19 = vld [vmem:[%s1155_s25 + $0xa0] sm:$0xff]  ;;  %v251_v21 = vld [vmem:[%s1155_s25 + $0xa8] sm:$0xff]  ;;  %732 = vmatpush1.bf16.msra.mxu0 %v976_v9  ;;  %773 = vmatpush1.bf16.msra.mxu1 %v978_v13  ;;  %v986_v23 = vcombine.low %v239_v15, %v243_v16  ;;  %v1094_v9 = vmov 65535  }
  0x17   : > { %733 = vmatprep.subr.bf16.mxu0 %v985_v14  ;;  %v993_v24 = vcombine.high %v246_v17, %v250_v19  ;;  %774 = vmatprep.subr.bf16.mxu1 %v987_v18  ;;  %v995_v25 = vcombine.high %v247_v20, %v251_v21  ;;  %v254_v26 = vld [vmem:[%s1155_s25 + $0xc0] sm:$0xff]  ;;  %v255_v28 = vld [vmem:[%s1155_s25 + $0xc8] sm:$0xff]  ;;  %v992_v30 = vcombine.low %v246_v17, %v250_v19  ;;  %v705_v10 = vsel %vm703_vm1, 4294967295, %v1094_v9 }
  0x18   : > { %v258_v27 = vld [vmem:[%s1155_s25 + $0xe0] sm:$0xff]  ;;  %v259_v29 = vld [vmem:[%s1155_s25 + $0xe8] sm:$0xff]  ;;  %v994_v31 = vcombine.low %v247_v20, %v251_v21  ;;  %v1195_v17 = vsel %vm704_vm2, %v705_v10, 0  ;;  %v280_v10 = vld [vmem:[%s1155_s25 + $0x190] sm:$0xff] }
  0x19   : > { %v1001_v32 = vcombine.high %v254_v26, %v258_v27  ;;  %v1003_v33 = vcombine.high %v255_v28, %v259_v29  ;;  %v262_v34 = vld [vmem:[%s1155_s25 + $0x100] sm:$0xff]  ;;  %v263_v36 = vld [vmem:[%s1155_s25 + $0x108] sm:$0xff]  ;;  %v1000_v38 = vcombine.low %v254_v26, %v258_v27  ;;  %v1002_v39 = vcombine.low %v255_v28, %v259_v29  ;;  %v236_v26 = vld [vmem:[%s1155_s25 + $0x30] sm:$0xff] }
  0x1a   : > { %734 = vmatpush1.bf16.msra.mxu0 %v984_v22  ;;  %775 = vmatpush1.bf16.msra.mxu1 %v986_v23  ;;  %v266_v35 = vld [vmem:[%s1155_s25 + $0x120] sm:$0xff]  ;;  %v267_v37 = vld [vmem:[%s1155_s25 + $0x128] sm:$0xff]  ;;  %v233_v27 = vld [vmem:[%s1155_s25 + $0x18] sm:$0xff] }
  0x1b   : > { %735 = vmatprep.subr.bf16.mxu0 %v993_v24  ;;  %776 = vmatprep.subr.bf16.mxu1 %v995_v25  ;;  %v1009_v40 = vcombine.high %v262_v34, %v266_v35  ;;  %v1011_v41 = vcombine.high %v263_v36, %v267_v37  ;;  %v270_v42 = vld [vmem:[%s1155_s25 + $0x140] sm:$0xff]  ;;  %v271_v44 = vld [vmem:[%s1155_s25 + $0x148] sm:$0xff]  ;;  %v1008_v46 = vcombine.low %v262_v34, %v266_v35  ;;  %v232_v25 = vld [vmem:[%s1155_s25 + $0x10] sm:$0xff] }
  0x1c   : > { %v274_v43 = vld [vmem:[%s1155_s25 + $0x160] sm:$0xff]  ;;  %v275_v45 = vld [vmem:[%s1155_s25 + $0x168] sm:$0xff]  ;;  %v1010_v47 = vcombine.low %v263_v36, %v267_v37  ;;  %v237_v28 = vld [vmem:[%s1155_s25 + $0x38] sm:$0xff]  ;;  %v1209_v35 = vcombine.low %v1136_v0, %v1136_v0 }
  0x1d   : > { %v1017_v48 = vcombine.high %v270_v42, %v274_v43  ;;  %v1019_v49 = vcombine.high %v271_v44, %v275_v45  ;;  %v278_v50 = vld [vmem:[%s1155_s25 + $0x180] sm:$0xff]  ;;  %v279_v52 = vld [vmem:[%s1155_s25 + $0x188] sm:$0xff]  ;;  %v1016_v54 = vcombine.low %v270_v42, %v274_v43  ;;  %v1018_v55 = vcombine.low %v271_v44, %v275_v45  ;;  %v244_v34 = vld [vmem:[%s1155_s25 + $0x70] sm:$0xff] }
  0x1e   : > { %736 = vmatpush1.bf16.msra.mxu0 %v992_v30  ;;  %777 = vmatpush1.bf16.msra.mxu1 %v994_v31  ;;  %v282_v51 = vld [vmem:[%s1155_s25 + $0x1a0] sm:$0xff]  ;;  %v283_v53 = vld [vmem:[%s1155_s25 + $0x1a8] sm:$0xff]  ;;  %v981_v31 = vcombine.high %v232_v25, %v236_v26  ;;  %v241_v36 = vld [vmem:[%s1155_s25 + $0x58] sm:$0xff] }
  0x1f   : > { %737 = vmatprep.subr.bf16.mxu0 %v1001_v32  ;;  %778 = vmatprep.subr.bf16.mxu1 %v1003_v33  ;;  %v1025_v56 = vcombine.high %v278_v50, %v282_v51  ;;  %v1027_v57 = vcombine.high %v279_v52, %v283_v53  ;;  %v286_v58 = vld [vmem:[%s1155_s25 + $0x1c0] sm:$0xff]  ;;  %v287_v60 = vld [vmem:[%s1155_s25 + $0x1c8] sm:$0xff]  ;;  %v1024_v62 = vcombine.low %v278_v50, %v282_v51  ;;  %v240_v33 = vld [vmem:[%s1155_s25 + $0x50] sm:$0xff] }
  0x20   : > { %v290_v59 = vld [vmem:[%s1155_s25 + $0x1e0] sm:$0xff]  ;;  %v291_v61 = vld [vmem:[%s1155_s25 + $0x1e8] sm:$0xff]  ;;  %v1026_v63 = vcombine.low %v279_v52, %v283_v53  ;;  %v983_v32 = vcombine.high %v233_v27, %v237_v28  ;;  %v245_v37 = vld [vmem:[%s1155_s25 + $0x78] sm:$0xff]  ;;  %v988_v45 = vcombine.low %v240_v33, %v244_v34 }
  0x21   : > { %v1033_v2 = vcombine.high %v286_v58, %v290_v59  ;;  %v1035_v3 = vcombine.high %v287_v60, %v291_v61  ;;  %v294_v4 = vld [vmem:[%s1155_s25 + $0x200] sm:$0xff]  ;;  %v295_v7 = vld [vmem:[%s1155_s25 + $0x208] sm:$0xff]  ;;  %v1032_v12 = vcombine.low %v286_v58, %v290_v59  ;;  %v1034_v13 = vcombine.low %v287_v60, %v291_v61  ;;  %v248_v42 = vld [vmem:[%s1155_s25 + $0x90] sm:$0xff] }
  0x22   : > { %738 = vmatpush1.bf16.msra.mxu0 %v1000_v38  ;;  %779 = vmatpush1.bf16.msra.mxu1 %v1002_v39  ;;  %v298_v5 = vld [vmem:[%s1155_s25 + $0x220] sm:$0xff]  ;;  %v299_v8 = vld [vmem:[%s1155_s25 + $0x228] sm:$0xff]  ;;  %v980_v38 = vcombine.low %v232_v25, %v236_v26  ;;  %v982_v39 = vcombine.low %v233_v27, %v237_v28  ;;  %v252_v43 = vld [vmem:[%s1155_s25 + $0xb0] sm:$0xff] }
  0x23   : > { %739 = vmatprep.subr.bf16.mxu0 %v1009_v40  ;;  %780 = vmatprep.subr.bf16.mxu1 %v1011_v41  ;;  %v302_v6 = vld [vmem:[%s1155_s25 + $0x240] sm:$0x33]  ;;  %v303_v11 = vld [vmem:[%s1155_s25 + $0x248] sm:$0x33]  ;;  %v1041_v14 = vcombine.high %v294_v4, %v298_v5  ;;  %v1043_v16 = vcombine.high %v295_v7, %v299_v8  ;;  %v1040_v19 = vcombine.low %v294_v4, %v298_v5  ;;  %v249_v0 = vld [vmem:[%s1155_s25 + $0x98] sm:$0xff] }
  0x24   : > { %v1049_v15 = vcombine.high %v302_v6, %v302_v6  ;;  %v1051_v18 = vcombine.high %v303_v11, %v303_v11  ;;  %v1048_v20 = vcombine.low %v302_v6, %v302_v6  ;;  %v1042_v21 = vcombine.low %v295_v7, %v299_v8  ;;  %v253_v44 = vld [vmem:[%s1155_s25 + $0xb8] sm:$0xff]  ;;  %v260_v50 = vld [vmem:[%s1155_s25 + $0xf0] sm:$0xff] }
  0x25   : > { %v1050_v23 = vcombine.low %v303_v11, %v303_v11  ;;  %v989_v40 = vcombine.high %v240_v33, %v244_v34  ;;  %v991_v41 = vcombine.high %v241_v36, %v245_v37  ;;  %v257_v51 = vld [vmem:[%s1155_s25 + $0xd8] sm:$0xff]  ;;  %v996_v53 = vcombine.low %v248_v42, %v252_v43  ;;  %v268_v58 = vld [vmem:[%s1155_s25 + $0x130] sm:$0xff] }
  0x26   : > { %740 = vmatpush1.bf16.msra.mxu0 %v1008_v46  ;;  %781 = vmatpush1.bf16.msra.mxu1 %v1010_v47  ;;  %v711_v22 = vand.u32 %v1049_v15, %v1195_v17  ;;  %v717_v24 = vand.u32 %v1051_v18, %v1195_v17  ;;  %v708_v29 = vand.u32 %v1048_v20, %v1195_v17  ;;  %v261_v52 = vld [vmem:[%s1155_s25 + $0xf8] sm:$0xff]  ;;  %v284_v11 = vld [vmem:[%s1155_s25 + $0x1b0] sm:$0xff] }
  0x27   : > { %741 = vmatprep.subr.bf16.mxu0 %v1017_v48  ;;  %782 = vmatprep.subr.bf16.mxu1 %v1019_v49  ;;  %v714_v30 = vand.u32 %v1050_v23, %v1195_v17  ;;  %v990_v46 = vcombine.low %v241_v36, %v245_v37  ;;  %v997_v47 = vcombine.high %v248_v42, %v252_v43  ;;  %v256_v49 = vld [vmem:[%s1155_s25 + $0xd0] sm:$0xff]  ;;  %v265_v59 = vld [vmem:[%s1155_s25 + $0x118] sm:$0xff] }
  0x28   : > { %v999_v48 = vcombine.high %v249_v0, %v253_v44  ;;  %v269_v60 = vld [vmem:[%s1155_s25 + $0x138] sm:$0xff]  ;;  %v1004_v61 = vcombine.low %v256_v49, %v260_v50  ;;  %v292_v20 = vld [vmem:[%s1155_s25 + $0x1f0] sm:$0xff]  ;;  %v1028_v23 = vcombine.low %v280_v10, %v284_v11 }
  0x29   : > { %v273_v4 = vld [vmem:[%s1155_s25 + $0x158] sm:$0xff]  ;;  %v1014_v7 = vcombine.low %v265_v59, %v269_v60  ;;  %v296_v27 = vld [vmem:[%s1155_s25 + $0x210] sm:$0xff] }
  0x2a   : > { %742 = vmatpush1.bf16.msra.mxu0 %v1016_v54  ;;  %783 = vmatpush1.bf16.msra.mxu1 %v1018_v55  ;;  %v998_v54 = vcombine.low %v249_v0, %v253_v44  ;;  %v1005_v55 = vcombine.high %v256_v49, %v260_v50  ;;  %v277_v5 = vld [vmem:[%s1155_s25 + $0x178] sm:$0xff]  ;;  %v300_v28 = vld [vmem:[%s1155_s25 + $0x230] sm:$0xff] }
  0x2b   : > { %743 = vmatprep.subr.bf16.mxu0 %v1025_v56  ;;  %784 = vmatprep.subr.bf16.mxu1 %v1027_v57  ;;  %v1007_v56 = vcombine.high %v257_v51, %v261_v52  ;;  %v264_v57 = vld [vmem:[%s1155_s25 + $0x110] sm:$0xff]  ;;  %v1023_v9 = vcombine.high %v273_v4, %v277_v5  ;;  %v1022_v15 = vcombine.low %v273_v4, %v277_v5 }
  0x2c   : > { %v1012_v6 = vcombine.low %v264_v57, %v268_v58  ;;  %v1045_v36 = vcombine.high %v296_v27, %v300_v28 }
  0x2e   : > { %744 = vmatpush1.bf16.msra.mxu0 %v1024_v62  ;;  %785 = vmatpush1.bf16.msra.mxu1 %v1026_v63  ;;  %v1013_v62 = vcombine.high %v264_v57, %v268_v58  ;;  %v1015_v63 = vcombine.high %v265_v59, %v269_v60 }
  0x2f   : > { %745 = vmatprep.subr.bf16.mxu0 %v1033_v2  ;;  %786 = vmatprep.subr.bf16.mxu1 %v1035_v3  ;;  %v272_v2 = vld [vmem:[%s1155_s25 + $0x150] sm:$0xff] }
  0x30   : > { %v276_v3 = vld [vmem:[%s1155_s25 + $0x170] sm:$0xff] }
  0x31   : > { %v1021_v8 = vcombine.high %v272_v2, %v276_v3 }
  0x32   : > { %746 = vmatpush1.bf16.msra.mxu0 %v1032_v12  ;;  %787 = vmatpush1.bf16.msra.mxu1 %v1034_v13  ;;  %v281_v12 = vld [vmem:[%s1155_s25 + $0x198] sm:$0xff] }
  0x33   : > { %747 = vmatprep.subr.bf16.mxu0 %v1041_v14  ;;  %788 = vmatprep.subr.bf16.mxu1 %v1043_v16  ;;  %v285_v13 = vld [vmem:[%s1155_s25 + $0x1b8] sm:$0xff]  ;;  %v1020_v14 = vcombine.low %v272_v2, %v276_v3  ;;  %v1029_v16 = vcombine.high %v280_v10, %v284_v11 }
  0x34   : > { %v1031_v18 = vcombine.high %v281_v12, %v285_v13 }
  0x36   : > { %748 = vmatpush1.bf16.msra.mxu0 %v1040_v19  ;;  %789 = vmatpush1.bf16.msra.mxu1 %v1042_v21  ;;  %v288_v19 = vld [vmem:[%s1155_s25 + $0x1d0] sm:$0xff]  ;;  %v289_v21 = vld [vmem:[%s1155_s25 + $0x1d8] sm:$0xff] }
  0x37   : > { %749 = vmatprep.subr.bf16.mxu0 %v711_v22  ;;  %790 = vmatprep.subr.bf16.mxu1 %v717_v24  ;;  %v293_v22 = vld [vmem:[%s1155_s25 + $0x1f8] sm:$0xff]  ;;  %v1030_v24 = vcombine.low %v281_v12, %v285_v13  ;;  %v1037_v25 = vcombine.high %v288_v19, %v292_v20  ;;  %v1036_v33 = vcombine.low %v288_v19, %v292_v20 }
  0x38   : > { %v1039_v26 = vcombine.high %v289_v21, %v293_v22  ;;  %v1038_v34 = vcombine.low %v289_v21, %v293_v22 }
  0x3a   : > { %750 = vmatpush1.bf16.msra.mxu0 %v708_v29  ;;  %791 = vmatpush1.bf16.msra.mxu1 %v714_v30  ;;  %v304_v29 = vld [vmem:[%s1155_s25 + $0x250] sm:$0x33]  ;;  %v297_v30 = vld [vmem:[%s1155_s25 + $0x218] sm:$0xff] }
  0x3b   : > { %813 = vmatprep.subr.bf16.mxu0 %v981_v31  ;;  %854 = vmatprep.subr.bf16.mxu1 %v983_v32  ;;  %v301_v31 = vld [vmem:[%s1155_s25 + $0x238] sm:$0xff]  ;;  %v1053_v37 = vcombine.high %v304_v29, %v304_v29 }
  0x3c   : > { %v305_v32 = vld [vmem:[%s1155_s25 + $0x258] sm:$0x33]  ;;  %v1046_v42 = vcombine.low %v297_v30, %v301_v31 }
  0x3d   : > { %764 = vmatmul.mubr.bf16.vlgmr.msra.gmra.mrb[0].mxu0 %v1209_v35  ;;  %805 = vmatmul.mubr.bf16.vlgmr.msra.gmra.mrb[0].mxu1 %v1209_v35  ;;  %v723_v43 = vand.u32 %v1053_v37, %v1195_v17  ;;  %v1054_v0 = vcombine.low %v305_v32, %v305_v32 }
  0x3e   : > { %814 = vmatpush1.bf16.msra.mxu0 %v980_v38  ;;  %855 = vmatpush1.bf16.msra.mxu1 %v982_v39  ;;  %v1047_v38 = vcombine.high %v297_v30, %v301_v31  ;;  %v1055_v39 = vcombine.high %v305_v32, %v305_v32 }
  0x3f   : > { %815 = vmatprep.subr.bf16.mxu0 %v989_v40  ;;  %856 = vmatprep.subr.bf16.mxu1 %v991_v41  ;;  %v1044_v40 = vcombine.low %v296_v27, %v300_v28  ;;  %v1052_v41 = vcombine.low %v304_v29, %v304_v29 }
  0x40   : > { %1058 = vmatprep.mubr.msk.bf16.mxu0 %vm699_vm0, %v1140_v1  ;;  %1059 = vmatprep.mubr.msk.bf16.mxu1 %vm699_vm0, %v1140_v1  ;;  %v1006_v1 = vcombine.low %v257_v51, %v261_v52  ;;  %v729_v44 = vand.u32 %v1055_v39, %v1195_v17 }
  0x42   : > { %816 = vmatpush1.bf16.msra.mxu0 %v988_v45  ;;  %857 = vmatpush1.bf16.msra.mxu1 %v990_v46  ;;  %v720_v45 = vand.u32 %v1052_v41, %v1195_v17  ;;  %v726_v46 = vand.u32 %v1054_v0, %v1195_v17 }
  0x43   : > { %817 = vmatprep.subr.bf16.mxu0 %v997_v47  ;;  %858 = vmatprep.subr.bf16.mxu1 %v999_v48 }
  0x46   : > { %818 = vmatpush1.bf16.msra.mxu0 %v996_v53  ;;  %859 = vmatpush1.bf16.msra.mxu1 %v998_v54 }
  0x47   : > { %819 = vmatprep.subr.bf16.mxu0 %v1005_v55  ;;  %860 = vmatprep.subr.bf16.mxu1 %v1007_v56 }
  0x4a   : > { %820 = vmatpush1.bf16.msra.mxu0 %v1004_v61  ;;  %861 = vmatpush1.bf16.msra.mxu1 %v1006_v1 }
  0x4b   : > { %821 = vmatprep.subr.bf16.mxu0 %v1013_v62  ;;  %862 = vmatprep.subr.bf16.mxu1 %v1015_v63 }
  0x4e   : > { %822 = vmatpush1.bf16.msra.mxu0 %v1012_v6  ;;  %863 = vmatpush1.bf16.msra.mxu1 %v1014_v7 }
  0x4f   : > { %823 = vmatprep.subr.bf16.mxu0 %v1021_v8  ;;  %864 = vmatprep.subr.bf16.mxu1 %v1023_v9 }
  0x52   : > { %824 = vmatpush1.bf16.msra.mxu0 %v1020_v14  ;;  %865 = vmatpush1.bf16.msra.mxu1 %v1022_v15 }
  0x53   : > { %825 = vmatprep.subr.bf16.mxu0 %v1029_v16  ;;  %866 = vmatprep.subr.bf16.mxu1 %v1031_v18 }
  0x56   : > { %826 = vmatpush1.bf16.msra.mxu0 %v1028_v23  ;;  %867 = vmatpush1.bf16.msra.mxu1 %v1030_v24 }
  0x57   : > { %827 = vmatprep.subr.bf16.mxu0 %v1037_v25  ;;  %868 = vmatprep.subr.bf16.mxu1 %v1039_v26 }
  0x5a   : > { %828 = vmatpush1.bf16.msra.mxu0 %v1036_v33  ;;  %869 = vmatpush1.bf16.msra.mxu1 %v1038_v34 }
  0x5b   : > { %829 = vmatprep.subr.bf16.mxu0 %v1045_v36  ;;  %870 = vmatprep.subr.bf16.mxu1 %v1047_v38 }
  0x5e   : > { %830 = vmatpush1.bf16.msra.mxu0 %v1044_v40  ;;  %871 = vmatpush1.bf16.msra.mxu1 %v1046_v42 }
  0x5f   : > { %831 = vmatprep.subr.bf16.mxu0 %v723_v43  ;;  %872 = vmatprep.subr.bf16.mxu1 %v729_v44 }
  0x62   : > { %832 = vmatpush1.bf16.msra.mxu0 %v720_v45  ;;  %873 = vmatpush1.bf16.msra.mxu1 %v726_v46 }
  0x65   : > { %846 = vmatmul.mubr.bf16.vlgmr.msra.gmra.mrb[4].mxu0 %v1209_v35  ;;  %887 = vmatmul.mubr.bf16.vlgmr.msra.gmra.mrb[4].mxu1 %v1209_v35 }
  0x86   : > { %v311_v47 = vpop.permute.xlu0 %310 }
 0x110   : > { %v765_v48 = vpop.f32.mrb[0].mxu0  ;;  %v806_v49 = vpop.f32.mrb[0].mxu1 }
 0x111   : > { %v766_v50 = vadd.f32 %v765_v48, %v311_v47  ;;  %v767_v51 = vpop.f32.mrb[1].mxu0  ;;  %v807_v17 = vadd.f32 %v806_v49, %v311_v47  ;;  %v808_v53 = vpop.f32.mrb[1].mxu1 }
 0x112   : > { %v768_v52 = vadd.f32 %v767_v51, %v311_v47  ;;  %v769_v54 = vpop.f32.mrb[2].mxu0  ;;  %v809_v55 = vadd.f32 %v808_v53, %v311_v47  ;;  %v810_v56 = vpop.f32.mrb[2].mxu1 }
 0x113   : > { %v895_v35 = vmax.f32 %v766_v50, 0.0  ;;  %v770_v57 = vpop.f32.mrb[3].mxu0  ;;  %v897_v58 = vmax.f32 %v807_v17, 0.0  ;;  %v811_v60 = vpop.f32.mrb[3].mxu1 }
 0x114   : > { %v896_v59 = vmax.f32 %v768_v52, 0.0  ;;  %v898_v61 = vmax.f32 %v809_v55, 0.0 }
 0x115   : > { %903 = vst [vmem:[%s1259_s29] sm:$0xff] %v895_v35  ;;  %905 = vst [vmem:[%s1259_s29 + $0x10] sm:$0xff] %v897_v58 }
 0x116   : > { %904 = vst [vmem:[%s1259_s29 + $0x8] sm:$0xff] %v896_v59  ;;  %906 = vst [vmem:[%s1259_s29 + $0x18] sm:$0xff] %v898_v61 }
 0x138   : > { %v847_v1 = vpop.f32.mrb[4].mxu0  ;;  %v888_v63 = vpop.f32.mrb[4].mxu1 }
 0x139   : > { %v848_v62 = vadd.f32 %v847_v1, %v311_v47  ;;  %v849_v2 = vpop.f32.mrb[5].mxu0  ;;  %v889_v3 = vadd.f32 %v888_v63, %v311_v47  ;;  %v890_v5 = vpop.f32.mrb[5].mxu1 }
 0x13a   : > { %v850_v4 = vadd.f32 %v849_v2, %v311_v47  ;;  %v851_v6 = vpop.f32.mrb[6].mxu0  ;;  %v891_v8 = vadd.f32 %v890_v5, %v311_v47  ;;  %v892_v9 = vpop.f32.mrb[6].mxu1 }
 0x13b   : > { %v899_v7 = vmax.f32 %v848_v62, 0.0  ;;  %v852_v10 = vpop.f32.mrb[7].mxu0  ;;  %v901_v11 = vmax.f32 %v889_v3, 0.0  ;;  %v893_v13 = vpop.f32.mrb[7].mxu1 }
 0x13c   : > { %v900_v12 = vmax.f32 %v850_v4, 0.0  ;;  %v902_v14 = vmax.f32 %v891_v8, 0.0 }
 0x13d   : > { %907 = vst [vmem:[%s1259_s29 + $0x20] sm:$0xff] %v899_v7  ;;  %909 = vst [vmem:[%s1259_s29 + $0x30] sm:$0xff] %v901_v11 }
 0x13e   : > { %908 = vst [vmem:[%s1259_s29 + $0x28] sm:$0xff] %v900_v12  ;;  %910 = vst [vmem:[%s1259_s29 + $0x38] sm:$0xff] %v902_v14 }
 0x13f PF: > { %s19_s18 = sadd.s32 1, %s1091_s18  }
 0x140   : > { %p16_p4 = scmp.ge.s32.totalorder %s19_s18, 4  }
 0x142   :  { %18 = sbr.rel (!%p16_p4) target bundleno = 1 (0x1), region = 70 }

// kernel: adain_gen_forward.20
= control target key start
LH: loop header
LB: loop body
LE: loop exit
PB: predicated region body
PF: predicated region fallthrough
CT: control target
= control target key end

     0   :  { %s556_s18 = smov 0   ;;  %s604_s0 = inlined_call_operand.vmem [shape: bf16[2,128,256], index: 0, kind: input, shape index: {}]   ;;  %s605_s1 = inlined_call_operand.vmem [shape: bf16[16,128], index: 1, kind: input, shape index: {}]   ;;  %s606_s2 = inlined_call_operand.vmem [shape: f32[16,1], index: 2, kind: input, shape index: {}]   ;;  %s607_s3 = inlined_call_operand.<no memory space> [shape: f32[1,1,1], index: 3, kind: input, shape index: {}, may-alias: {3,4}]   ;;  %s608_s5 = inlined_call_operand.vmem [shape: f32[2,16,256], index: 5, kind: output, shape index: {}]   ;;  %s609_s4 = inlined_call_operand.<no memory space> [shape: f32[1,1,1], index: 4, kind: input, shape index: {}, may-alias: {3,4}]  }
   0x1 LB: > { %s452_s19 = sadd.s32 4294967295, %s523_s18   ;;  %p456_p0 = scmp.ge.s32.totalorder %s523_s18, 1  ;;  %s523_s18 = sphi %s556_s18, %s19_s18  }
   0x2   : > { %p191_p1 = scmp.lt.s32.totalorder %s523_s18, 3 }
   0x4   : > { %p192_p2 = pnand %p456_p0, %p191_p1 }
   0x5   : > { %p219_p3 = scmp.lt.s32.totalorder (!%p192_p2), %s452_s19, 1  ;;  %v525_v0 = vmov (!%p192_p2), 0   ;;  %v248_v1 = vld [vmem:[%s606_s2] sm:$0xff] (!%p192_p2)  ;;  %v249_v2 = vld [vmem:[%s606_s2 + $0x8] sm:$0xff] (!%p192_p2) }
   0x6   : > { %195 = sbr.rel (%p192_p2) target bundleno = 269 (0x10d), region = 40  ;;  %378 = vmatprep.mubr.bf16.mxu0 (!%p192_p2), %v525_v0  ;;  %491 = vset.pattern.permute.xlu0 (!%p192_p2), %v525_v0  ;;  %v516_v19 = vld [vmem:[%s605_s1] sm:$0xff] (!%p192_p2)  }
   0x7   : > { %252 = vperm.xlu0 (!%p192_p2), %491, %v248_v1  }
   0xb   : > { %257 = vperm.xlu0 (!%p192_p2), %491, %v249_v2  }
   0xd   : > { %s611_s19 = smov (!%p219_p3, %s452_s19), 1 }
   0xe   : > { %s480_s22 = sshll.u32 %s611_s19, 7  ;;  %s481_s28 = sshll.u32 %s611_s19, 5 }
   0xf   : > { %s576_s25 = scalar_lea.vmem %s604_s0, %s480_s22  ;;  %s228_s6 = scalar_lea.vmem %s608_s5, %s481_s28 }
  0x10   : > { %v492_v3 = vld [vmem:[%s576_s25 + $0x4] ss:$8 sps:$4 sm:$0xff]   ;;  %v494_v4 = vld [vmem:[%s576_s25] ss:$8 sps:$4 sm:$0xff]   ;;  %v495_v5 = vld [vmem:[%s576_s25 + $0x14] ss:$8 sps:$4 sm:$0xff]  }
  0x11   : > { %346 = vmatprep.subr.bf16.mxu0 %v492_v3  ;;  %v497_v6 = vld [vmem:[%s576_s25 + $0x10] ss:$8 sps:$4 sm:$0xff]   ;;  %v498_v7 = vld [vmem:[%s576_s25 + $0x24] ss:$8 sps:$4 sm:$0xff]   ;;  %v500_v8 = vld [vmem:[%s576_s25 + $0x20] ss:$8 sps:$4 sm:$0xff]  }
  0x12   : > { %347 = vmatpush1.bf16.msra.mxu0 %v494_v4  ;;  %v501_v9 = vld [vmem:[%s576_s25 + $0x34] ss:$8 sps:$4 sm:$0xff]   ;;  %v503_v10 = vld [vmem:[%s576_s25 + $0x30] ss:$8 sps:$4 sm:$0xff]   ;;  %v504_v11 = vld [vmem:[%s576_s25 + $0x44] ss:$8 sps:$4 sm:$0xff]  }
  0x13   : > { %348 = vmatprep.subr.bf16.mxu0 %v495_v5  ;;  %v506_v12 = vld [vmem:[%s576_s25 + $0x40] ss:$8 sps:$4 sm:$0xff]   ;;  %v507_v13 = vld [vmem:[%s576_s25 + $0x54] ss:$8 sps:$4 sm:$0xff]   ;;  %v509_v14 = vld [vmem:[%s576_s25 + $0x50] ss:$8 sps:$4 sm:$0xff]  }
  0x14   : > { %v510_v15 = vld [vmem:[%s576_s25 + $0x64] ss:$8 sps:$4 sm:$0xff]   ;;  %v512_v16 = vld [vmem:[%s576_s25 + $0x60] ss:$8 sps:$4 sm:$0xff]   ;;  %v513_v17 = vld [vmem:[%s576_s25 + $0x74] ss:$8 sps:$4 sm:$0xff]  }
  0x15   : > { %v515_v18 = vld [vmem:[%s576_s25 + $0x70] ss:$8 sps:$4 sm:$0xff]  }
  0x16   : > { %349 = vmatpush1.bf16.msra.mxu0 %v497_v6 }
  0x17   : > { %350 = vmatprep.subr.bf16.mxu0 %v498_v7 }
  0x1a   : > { %351 = vmatpush1.bf16.msra.mxu0 %v500_v8 }
  0x1b   : > { %352 = vmatprep.subr.bf16.mxu0 %v501_v9 }
  0x1e   : > { %353 = vmatpush1.bf16.msra.mxu0 %v503_v10 }
  0x1f   : > { %354 = vmatprep.subr.bf16.mxu0 %v504_v11 }
  0x22   : > { %355 = vmatpush1.bf16.msra.mxu0 %v506_v12 }
  0x23   : > { %356 = vmatprep.subr.bf16.mxu0 %v507_v13 }
  0x26   : > { %357 = vmatpush1.bf16.msra.mxu0 %v509_v14 }
  0x27   : > { %358 = vmatprep.subr.bf16.mxu0 %v510_v15 }
  0x2a   : > { %359 = vmatpush1.bf16.msra.mxu0 %v512_v16 }
  0x2b   : > { %360 = vmatprep.subr.bf16.mxu0 %v513_v17 }
  0x2e   : > { %361 = vmatpush1.bf16.msra.mxu0 %v515_v18 }
  0x31   : > { %379 = vmatmul.mubr.bf16.vlgmr.msra.gmra.mrb[0].mxu0 %v516_v19 }
  0x86   : > { %v253_v20 = vpop.permute.xlu0 %252 }
  0x8a   : > { %v258_v24 = vpop.permute.xlu0 %257 }
 0x104   : > { %v380_v21 = vpop.f32.mrb[0].mxu0 }
 0x105   : > { %v381_v22 = vadd.f32 %v380_v21, %v253_v20  ;;  %v382_v23 = vpop.f32.mrb[1].mxu0 }
 0x106   : > { %v383_v25 = vadd.f32 %v382_v23, %v253_v20  ;;  %v384_v26 = vpop.f32.mrb[2].mxu0 }
 0x107   : > { %v389_v27 = vmax.f32 %v381_v22, 0.0  ;;  %v385_v28 = vadd.f32 %v384_v26, %v258_v24  ;;  %v386_v29 = vpop.f32.mrb[3].mxu0 }
 0x108   : > { %v390_v30 = vmax.f32 %v383_v25, 0.0  ;;  %v387_v31 = vadd.f32 %v386_v29, %v258_v24 }
 0x109   : > { %393 = vst [vmem:[%s228_s6] sm:$0xff] %v389_v27  ;;  %v391_v32 = vmax.f32 %v385_v28, 0.0 }
 0x10a   : > { %394 = vst [vmem:[%s228_s6 + $0x8] sm:$0xff] %v390_v30  ;;  %v392_v33 = vmax.f32 %v387_v31, 0.0 }
 0x10b   : > { %395 = vst [vmem:[%s228_s6 + $0x10] sm:$0xff] %v391_v32 }
 0x10c   : > { %396 = vst [vmem:[%s228_s6 + $0x18] sm:$0xff] %v392_v33 }
 0x10d PF: > { %s19_s18 = sadd.s32 1, %s523_s18  }
 0x10e   : > { %p16_p4 = scmp.ge.s32.totalorder %s19_s18, 4  }
 0x110   :  { %18 = sbr.rel (!%p16_p4) target bundleno = 1 (0x1), region = 70 }

// kernel: adain_gen_forward.21
= control target key start
LH: loop header
LB: loop body
LE: loop exit
PB: predicated region body
PF: predicated region fallthrough
CT: control target
= control target key end

     0   :  { %s668_s18 = smov 0   ;;  %s731_s0 = inlined_call_operand.vmem [shape: bf16[2,256,64], index: 0, kind: input, shape index: {}]   ;;  %s732_s1 = inlined_call_operand.vmem [shape: bf16[32,256], index: 1, kind: input, shape index: {}]   ;;  %s733_s2 = inlined_call_operand.vmem [shape: f32[32,1], index: 2, kind: input, shape index: {}]   ;;  %s734_s3 = inlined_call_operand.<no memory space> [shape: f32[1,1,1], index: 3, kind: input, shape index: {}, may-alias: {3,4}]   ;;  %s735_s5 = inlined_call_operand.vmem [shape: f32[2,32,64], index: 5, kind: output, shape index: {}]   ;;  %s736_s4 = inlined_call_operand.<no memory space> [shape: f32[1,1,1], index: 4, kind: input, shape index: {}, may-alias: {3,4}]  }
   0x1 LB: > { %s519_s19 = sadd.s32 4294967295, %s635_s18   ;;  %p523_p0 = scmp.ge.s32.totalorder %s635_s18, 1  ;;  %s635_s18 = sphi %s668_s18, %s19_s18  }
   0x2   : > { %p191_p1 = scmp.lt.s32.totalorder %s635_s18, 3 }
   0x4   : > { %p192_p2 = pnand %p523_p0, %p191_p1 }
   0x5   : > { %p219_p3 = scmp.lt.s32.totalorder (!%p192_p2), %s519_s19, 1  ;;  %v625_v0 = vld [vmem:[%s732_s1 + $0x4] ss:$8 sps:$4 sm:$0xff] (!%p192_p2)   ;;  %v637_v1 = vmov (!%p192_p2), 0   ;;  %v628_v2 = vld [vmem:[%s732_s1 + $0x14] ss:$8 sps:$4 sm:$0xff] (!%p192_p2)  }
   0x6   : > { %195 = sbr.rel (%p192_p2) target bundleno = 271 (0x10f), region = 40  ;;  %606 = vset.pattern.permute.xlu1 (!%p192_p2), %v637_v1  ;;  %605 = vset.pattern.permute.xlu0 (!%p192_p2), %v637_v1  ;;  %v268_v3 = vld [vmem:[%s733_s2 + $0x10] sm:$0xff] (!%p192_p2)  ;;  %v266_v4 = vld [vmem:[%s733_s2] sm:$0xff] (!%p192_p2)  ;;  %v269_v5 = vld [vmem:[%s733_s2 + $0x18] sm:$0xff] (!%p192_p2)  ;;  %vm459_vm0 = vcmask (!%p192_p2), 523264  }
   0x7   : > { %438 = vmatprep.mubr.bf16.mxu0 (!%p192_p2), %v625_v0  ;;  %282 = vperm.xlu1 (!%p192_p2), %606, %v268_v3   ;;  %v267_v7 = vld [vmem:[%s733_s2 + $0x8] sm:$0xff] (!%p192_p2)  ;;  %v626_v24 = vld [vmem:[%s732_s1 + $0x10] ss:$8 sps:$4 sm:$0xff] (!%p192_p2)  }
   0x8   : > { %446 = vmatprep.mubr.bf16.mxu1 (!%p192_p2), %v628_v2  ;;  %272 = vperm.xlu0 (!%p192_p2), %605, %v266_v4   ;;  %v623_v23 = vld [vmem:[%s732_s1] ss:$8 sps:$4 sm:$0xff] (!%p192_p2)  }
   0xb   : > { %287 = vperm.xlu1 (!%p192_p2), %606, %v269_v5  }
   0xc   : > { %277 = vperm.xlu0 (!%p192_p2), %605, %v267_v7  }
   0xd   : > { %s738_s19 = smov (!%p219_p3, %s519_s19), 1 }
   0xe   : > { %s550_s26 = sshll.u32 %s738_s19, 7  ;;  %s551_s13 = sshll.u32 %s738_s19, 5 }
   0xf   : > { %s697_s6 = scalar_lea.vmem %s731_s0, %s550_s26  ;;  %s228_s16 = scalar_lea.vmem %s735_s5, %s551_s13 }
  0x10   : > { %v607_v6 = vld [vmem:[%s697_s6 + $0x40] sm:$0xff]   ;;  %v609_v9 = vld [vmem:[%s697_s6 + $0x48] sm:$0xff]   ;;  %v611_v11 = vld [vmem:[%s697_s6 + $0x50] sm:$0xff]  }
  0x11   : > { %v608_v8 = vld [vmem:[%s697_s6] sm:$0xff]   ;;  %552 = vmatprep.subr.bf16.mxu0 %v607_v6  ;;  %580 = vmatprep.subr.bf16.mxu1 %v607_v6  ;;  %v610_v10 = vld [vmem:[%s697_s6 + $0x8] sm:$0xff]   ;;  %v612_v12 = vld [vmem:[%s697_s6 + $0x10] sm:$0xff]  }
  0x12   : > { %553 = vmatpush3.bf16.msra.mxu0 %v608_v8  ;;  %588 = vmatpush3.bf16.msra.mxu1 %v608_v8  ;;  %v613_v13 = vld [vmem:[%s697_s6 + $0x58] sm:$0xff]   ;;  %v615_v15 = vld [vmem:[%s697_s6 + $0x60] sm:$0xff]   ;;  %v617_v17 = vld [vmem:[%s697_s6 + $0x68] sm:$0xff]  }
  0x13   : > { %554 = vmatprep.subr.bf16.mxu0 %v609_v9  ;;  %581 = vmatprep.subr.bf16.mxu1 %v609_v9  ;;  %v614_v14 = vld [vmem:[%s697_s6 + $0x18] sm:$0xff]   ;;  %v616_v16 = vld [vmem:[%s697_s6 + $0x20] sm:$0xff]   ;;  %v618_v18 = vld [vmem:[%s697_s6 + $0x28] sm:$0xff]  }
  0x14   : > { %v619_v19 = vld [vmem:[%s697_s6 + $0x70] sm:$0xff]   ;;  %v621_v21 = vld [vmem:[%s697_s6 + $0x78] sm:$0xff]  }
  0x15   : > { %v620_v20 = vld [vmem:[%s697_s6 + $0x30] sm:$0xff]   ;;  %v622_v22 = vld [vmem:[%s697_s6 + $0x38] sm:$0xff]  }
  0x16   : > { %555 = vmatpush3.bf16.msra.mxu0 %v610_v10  ;;  %589 = vmatpush3.bf16.msra.mxu1 %v610_v10 }
  0x17   : > { %556 = vmatprep.subr.bf16.mxu0 %v611_v11  ;;  %582 = vmatprep.subr.bf16.mxu1 %v611_v11 }
  0x1a   : > { %557 = vmatpush3.bf16.msra.mxu0 %v612_v12  ;;  %590 = vmatpush3.bf16.msra.mxu1 %v612_v12 }
  0x1b   : > { %558 = vmatprep.subr.bf16.mxu0 %v613_v13  ;;  %583 = vmatprep.subr.bf16.mxu1 %v613_v13 }
  0x1e   : > { %559 = vmatpush3.bf16.msra.mxu0 %v614_v14  ;;  %591 = vmatpush3.bf16.msra.mxu1 %v614_v14 }
  0x1f   : > { %560 = vmatprep.subr.bf16.mxu0 %v615_v15  ;;  %584 = vmatprep.subr.bf16.mxu1 %v615_v15 }
  0x22   : > { %561 = vmatpush3.bf16.msra.mxu0 %v616_v16  ;;  %592 = vmatpush3.bf16.msra.mxu1 %v616_v16 }
  0x23   : > { %562 = vmatprep.subr.bf16.mxu0 %v617_v17  ;;  %585 = vmatprep.subr.bf16.mxu1 %v617_v17 }
  0x26   : > { %563 = vmatpush3.bf16.msra.mxu0 %v618_v18  ;;  %593 = vmatpush3.bf16.msra.mxu1 %v618_v18 }
  0x27   : > { %564 = vmatprep.subr.bf16.mxu0 %v619_v19  ;;  %586 = vmatprep.subr.bf16.mxu1 %v619_v19 }
  0x2a   : > { %565 = vmatpush3.bf16.msra.mxu0 %v620_v20  ;;  %594 = vmatpush3.bf16.msra.mxu1 %v620_v20 }
  0x2b   : > { %566 = vmatprep.subr.bf16.mxu0 %v621_v21  ;;  %587 = vmatprep.subr.bf16.mxu1 %v621_v21 }
  0x2e   : > { %567 = vmatpush3.bf16.msra.mxu0 %v622_v22  ;;  %595 = vmatpush3.bf16.msra.mxu1 %v622_v22 }
  0x31   : > { %439 = vmatmul.mubr.bf16.vlgmr.msra.gmra.mrb[0].mxu0 %v623_v23  ;;  %447 = vmatmul.mubr.bf16.vlgmr.msra.gmra.mrb[0].mxu1 %v626_v24 }
  0x86   : > { %v283_v25 = vpop.permute.xlu1 %282 }
  0x87   : > { %v273_v26 = vpop.permute.xlu0 %272 }
  0x8a   : > { %v288_v41 = vpop.permute.xlu1 %287 }
  0x8b   : > { %v278_v42 = vpop.permute.xlu0 %277 }
 0x104   : > { %v568_v27 = vpop.f32.mrb[0].mxu0  ;;  %v574_v28 = vpop.f32.mrb[0].mxu1 }
 0x105   : > { %v569_v29 = vpop.f32.mrb[1].mxu0  ;;  %v575_v30 = vpop.f32.mrb[1].mxu1 }
 0x106   : > { %v570_v31 = vadd.f32 %v569_v29, %v568_v27  ;;  %v576_v32 = vadd.f32 %v575_v30, %v574_v28  ;;  %v571_v33 = vpop.f32.mrb[2].mxu0  ;;  %v577_v34 = vpop.f32.mrb[2].mxu1 }
 0x107   : > { %v572_v35 = vpop.f32.mrb[3].mxu0  ;;  %v578_v36 = vpop.f32.mrb[3].mxu1 }
 0x108   : > { %v441_v37 = vadd.f32 %v570_v31, %v273_v26  ;;  %v449_v38 = vadd.f32 %v576_v32, %v283_v25  ;;  %v573_v39 = vadd.f32 %v572_v35, %v571_v33  ;;  %v579_v40 = vadd.f32 %v578_v36, %v577_v34 }
 0x10a   : > { %v455_v43 = vmax.f32 %v441_v37, 0.0  ;;  %v457_v44 = vmax.f32 %v449_v38, 0.0  ;;  %v444_v45 = vadd.f32 %v573_v39, %v278_v42  ;;  %v452_v46 = vadd.f32 %v579_v40, %v288_v41 }
 0x10c   : > { %460 = vst.msk [vmem:[%s228_s16] sm:$0xff] %vm459_vm0, %v455_v43  ;;  %462 = vst.msk [vmem:[%s228_s16 + $0x10] sm:$0xff] %vm459_vm0, %v457_v44  ;;  %v456_v47 = vmax.f32 %v444_v45, 0.0  ;;  %v458_v48 = vmax.f32 %v452_v46, 0.0 }
 0x10e   : > { %461 = vst.msk [vmem:[%s228_s16 + $0x8] sm:$0xff] %vm459_vm0, %v456_v47  ;;  %463 = vst.msk [vmem:[%s228_s16 + $0x18] sm:$0xff] %vm459_vm0, %v458_v48 }
 0x10f PF: > { %s19_s18 = sadd.s32 1, %s635_s18  }
 0x110   : > { %p16_p4 = scmp.ge.s32.totalorder %s19_s18, 4  }
 0x112   :  { %18 = sbr.rel (!%p16_p4) target bundleno = 1 (0x1), region = 70 }

// kernel: adain_gen_forward.22
= control target key start
LH: loop header
LB: loop body
LE: loop exit
PB: predicated region body
PF: predicated region fallthrough
CT: control target
= control target key end

     0   :  { %s923_s18 = smov 0   ;;  %s1018_s0 = inlined_call_operand.vmem [shape: bf16[2,512,16], index: 0, kind: input, shape index: {}]   ;;  %s1019_s1 = inlined_call_operand.vmem [shape: bf16[32,512], index: 1, kind: input, shape index: {}]   ;;  %s1020_s2 = inlined_call_operand.vmem [shape: f32[32,1], index: 2, kind: input, shape index: {}]   ;;  %s1021_s3 = inlined_call_operand.<no memory space> [shape: f32[1,1,1], index: 3, kind: input, shape index: {}, may-alias: {3,4}]   ;;  %s1022_s5 = inlined_call_operand.vmem [shape: f32[2,32,16], index: 5, kind: output, shape index: {}]   ;;  %s1023_s4 = inlined_call_operand.<no memory space> [shape: f32[1,1,1], index: 4, kind: input, shape index: {}, may-alias: {3,4}]  }
   0x1 LB: > { %s720_s19 = sadd.s32 4294967295, %s890_s18   ;;  %p724_p0 = scmp.ge.s32.totalorder %s890_s18, 1  ;;  %s890_s18 = sphi %s923_s18, %s19_s18  }
   0x2   : > { %p191_p1 = scmp.lt.s32.totalorder %s890_s18, 3 }
   0x4   : > { %p192_p2 = pnand %p724_p0, %p191_p1 }
   0x5   : > { %p219_p3 = scmp.lt.s32.totalorder (!%p192_p2), %s720_s19, 1  ;;  %v874_v0 = vld [vmem:[%s1019_s1 + $0x4] ss:$16 sps:$4 sm:$0xff] (!%p192_p2)   ;;  %v892_v1 = vmov (!%p192_p2), 0   ;;  %v877_v2 = vld [vmem:[%s1019_s1 + $0xc] ss:$16 sps:$4 sm:$0xff] (!%p192_p2)  }
   0x6   : > { %195 = sbr.rel (%p192_p2) target bundleno = 282 (0x11a), region = 40  ;;  %838 = vset.pattern.permute.xlu0 (!%p192_p2), %v892_v1  ;;  %839 = vset.pattern.permute.xlu1 (!%p192_p2), %v892_v1  ;;  %v302_v3 = vld [vmem:[%s1020_s2] sm:$0xff] (!%p192_p2)  ;;  %v304_v4 = vld [vmem:[%s1020_s2 + $0x10] sm:$0xff] (!%p192_p2)  ;;  %v875_v37 = vld [vmem:[%s1019_s1 + $0x8] ss:$16 sps:$4 sm:$0xff] (!%p192_p2)   ;;  %vm660_vm0 = vcmask (!%p192_p2), 130048  }
   0x7   : > { %590 = vmatprep.mubr.bf16.mxu0 (!%p192_p2), %v874_v0  ;;  %639 = vmatprep.mubr.bf16.mxu1 (!%p192_p2), %v877_v2  ;;  %v872_v35 = vld [vmem:[%s1019_s1] ss:$16 sps:$4 sm:$0xff] (!%p192_p2)   ;;  %v878_v39 = vld [vmem:[%s1019_s1 + $0x24] ss:$16 sps:$4 sm:$0xff] (!%p192_p2)   ;;  %v303_v40 = vld [vmem:[%s1020_s2 + $0x8] sm:$0xff] (!%p192_p2) }
   0x8   : > { %308 = vperm.xlu0 (!%p192_p2), %838, %v302_v3   ;;  %318 = vperm.xlu1 (!%p192_p2), %839, %v304_v4   ;;  %v305_v41 = vld [vmem:[%s1020_s2 + $0x18] sm:$0xff] (!%p192_p2)  ;;  %v882_v43 = vld [vmem:[%s1019_s1 + $0x20] ss:$16 sps:$4 sm:$0xff] (!%p192_p2)  }
   0x9   : > { %v880_v42 = vld [vmem:[%s1019_s1 + $0x2c] ss:$16 sps:$4 sm:$0xff] (!%p192_p2)   ;;  %v883_v44 = vld [vmem:[%s1019_s1 + $0x28] ss:$16 sps:$4 sm:$0xff] (!%p192_p2)  }
   0xc   : > { %313 = vperm.xlu0 (!%p192_p2), %838, %v303_v40   ;;  %323 = vperm.xlu1 (!%p192_p2), %839, %v305_v41  }
   0xd   : > { %s1025_s19 = smov (!%p219_p3, %s720_s19), 1 }
   0xe   : > { %s771_s22 = sshll.u32 %s1025_s19, 8  ;;  %s772_s21 = sshll.u32 %s1025_s19, 5 }
   0xf   : > { %s943_s25 = scalar_lea.vmem %s1018_s0, %s771_s22  ;;  %s228_s24 = scalar_lea.vmem %s1022_s5, %s772_s21 }
  0x10   : > { %v840_v5 = vld [vmem:[%s943_s25 + $0x40] sm:$0xff]   ;;  %v844_v9 = vld [vmem:[%s943_s25 + $0x48] sm:$0xff]   ;;  %v848_v13 = vld [vmem:[%s943_s25 + $0x50] sm:$0xff]  }
  0x11   : > { %v841_v6 = vld [vmem:[%s943_s25 + $0xc0] sm:$0xff]   ;;  %773 = vmatprep.subr.bf16.mxu0 %v840_v5  ;;  %v845_v10 = vld [vmem:[%s943_s25 + $0xc8] sm:$0xff]   ;;  %v849_v14 = vld [vmem:[%s943_s25 + $0xd0] sm:$0xff]  }
  0x12   : > { %v842_v7 = vld [vmem:[%s943_s25] sm:$0xff]   ;;  %801 = vmatprep.subr.bf16.mxu1 %v841_v6  ;;  %v846_v11 = vld [vmem:[%s943_s25 + $0x8] sm:$0xff]   ;;  %v850_v15 = vld [vmem:[%s943_s25 + $0x10] sm:$0xff]  }
  0x13   : > { %v843_v8 = vld [vmem:[%s943_s25 + $0x80] sm:$0xff]   ;;  %774 = vmatpush3.bf16.msra.mxu0 %v842_v7  ;;  %v847_v12 = vld [vmem:[%s943_s25 + $0x88] sm:$0xff]   ;;  %v851_v16 = vld [vmem:[%s943_s25 + $0x90] sm:$0xff]  }
  0x14   : > { %802 = vmatpush3.bf16.msra.mxu1 %v843_v8  ;;  %775 = vmatprep.subr.bf16.mxu0 %v844_v9  ;;  %v852_v17 = vld [vmem:[%s943_s25 + $0x58] sm:$0xff]   ;;  %v856_v21 = vld [vmem:[%s943_s25 + $0x60] sm:$0xff]   ;;  %v860_v25 = vld [vmem:[%s943_s25 + $0x68] sm:$0xff]  }
  0x15   : > { %803 = vmatprep.subr.bf16.mxu1 %v845_v10  ;;  %v853_v18 = vld [vmem:[%s943_s25 + $0xd8] sm:$0xff]   ;;  %v857_v22 = vld [vmem:[%s943_s25 + $0xe0] sm:$0xff]   ;;  %v861_v26 = vld [vmem:[%s943_s25 + $0xe8] sm:$0xff]  }
  0x16   : > { %v854_v19 = vld [vmem:[%s943_s25 + $0x18] sm:$0xff]   ;;  %v858_v23 = vld [vmem:[%s943_s25 + $0x20] sm:$0xff]   ;;  %v862_v27 = vld [vmem:[%s943_s25 + $0x28] sm:$0xff]  }
  0x17   : > { %776 = vmatpush3.bf16.msra.mxu0 %v846_v11  ;;  %v855_v20 = vld [vmem:[%s943_s25 + $0x98] sm:$0xff]   ;;  %v859_v24 = vld [vmem:[%s943_s25 + $0xa0] sm:$0xff]   ;;  %v863_v28 = vld [vmem:[%s943_s25 + $0xa8] sm:$0xff]  }
  0x18   : > { %804 = vmatpush3.bf16.msra.mxu1 %v847_v12  ;;  %777 = vmatprep.subr.bf16.mxu0 %v848_v13  ;;  %v864_v29 = vld [vmem:[%s943_s25 + $0x70] sm:$0xff]   ;;  %v868_v33 = vld [vmem:[%s943_s25 + $0x78] sm:$0xff]  }
  0x19   : > { %805 = vmatprep.subr.bf16.mxu1 %v849_v14  ;;  %v865_v30 = vld [vmem:[%s943_s25 + $0xf0] sm:$0xff]   ;;  %v869_v34 = vld [vmem:[%s943_s25 + $0xf8] sm:$0xff]  }
  0x1a   : > { %v866_v31 = vld [vmem:[%s943_s25 + $0x30] sm:$0xff]   ;;  %v870_v36 = vld [vmem:[%s943_s25 + $0x38] sm:$0xff]  }
  0x1b   : > { %778 = vmatpush3.bf16.msra.mxu0 %v850_v15  ;;  %v867_v32 = vld [vmem:[%s943_s25 + $0xb0] sm:$0xff]   ;;  %v871_v38 = vld [vmem:[%s943_s25 + $0xb8] sm:$0xff]  }
  0x1c   : > { %806 = vmatpush3.bf16.msra.mxu1 %v851_v16  ;;  %779 = vmatprep.subr.bf16.mxu0 %v852_v17 }
  0x1d   : > { %807 = vmatprep.subr.bf16.mxu1 %v853_v18 }
  0x1f   : > { %780 = vmatpush3.bf16.msra.mxu0 %v854_v19 }
  0x20   : > { %808 = vmatpush3.bf16.msra.mxu1 %v855_v20  ;;  %781 = vmatprep.subr.bf16.mxu0 %v856_v21 }
  0x21   : > { %809 = vmatprep.subr.bf16.mxu1 %v857_v22 }
  0x23   : > { %782 = vmatpush3.bf16.msra.mxu0 %v858_v23 }
  0x24   : > { %810 = vmatpush3.bf16.msra.mxu1 %v859_v24  ;;  %783 = vmatprep.subr.bf16.mxu0 %v860_v25 }
  0x25   : > { %811 = vmatprep.subr.bf16.mxu1 %v861_v26 }
  0x27   : > { %784 = vmatpush3.bf16.msra.mxu0 %v862_v27 }
  0x28   : > { %812 = vmatpush3.bf16.msra.mxu1 %v863_v28  ;;  %785 = vmatprep.subr.bf16.mxu0 %v864_v29 }
  0x29   : > { %813 = vmatprep.subr.bf16.mxu1 %v865_v30 }
  0x2b   : > { %786 = vmatpush3.bf16.msra.mxu0 %v866_v31 }
  0x2c   : > { %814 = vmatpush3.bf16.msra.mxu1 %v867_v32  ;;  %787 = vmatprep.subr.bf16.mxu0 %v868_v33 }
  0x2d   : > { %815 = vmatprep.subr.bf16.mxu1 %v869_v34 }
  0x2f   : > { %788 = vmatpush3.bf16.msra.mxu0 %v870_v36 }
  0x30   : > { %816 = vmatpush3.bf16.msra.mxu1 %v871_v38 }
  0x32   : > { %591 = vmatmul.mubr.bf16.vlgmr.msra.gmra.mrb[0].mxu0 %v872_v35 }
  0x33   : > { %640 = vmatmul.mubr.bf16.vlgmr.msra.gmra.mrb[0].mxu1 %v875_v37  ;;  %598 = vmatprep.mubr.bf16.mxu0 %v878_v39 }
  0x34   : > { %647 = vmatprep.mubr.bf16.mxu1 %v880_v42 }
  0x3a   : > { %599 = vmatmul.mubr.bf16.gmra.mrb[4].mxu0 %v882_v43 }
  0x3b   : > { %648 = vmatmul.mubr.bf16.gmra.mrb[4].mxu1 %v883_v44 }
  0x87   : > { %v309_v45 = vpop.permute.xlu0 %308  ;;  %v319_v62 = vpop.permute.xlu1 %318 }
  0x8b   : > { %v314_v47 = vpop.permute.xlu0 %313  ;;  %v324_v14 = vpop.permute.xlu1 %323 }
 0x105   : > { %v789_v46 = vpop.f32.mrb[0].mxu0 }
 0x106   : > { %v817_v48 = vpop.f32.mrb[0].mxu1  ;;  %v790_v49 = vpop.f32.mrb[1].mxu0 }
 0x107   : > { %v791_v50 = vadd.f32 %v790_v49, %v789_v46  ;;  %v818_v51 = vpop.f32.mrb[1].mxu1  ;;  %v792_v52 = vpop.f32.mrb[2].mxu0 }
 0x108   : > { %v819_v53 = vadd.f32 %v818_v51, %v817_v48  ;;  %v820_v54 = vpop.f32.mrb[2].mxu1  ;;  %v793_v55 = vpop.f32.mrb[3].mxu0 }
 0x109   : > { %v593_v56 = vadd.f32 %v791_v50, %v309_v45  ;;  %v794_v57 = vadd.f32 %v793_v55, %v792_v52  ;;  %v821_v58 = vpop.f32.mrb[3].mxu1 }
 0x10a   : > { %v822_v59 = vadd.f32 %v821_v58, %v820_v54 }
 0x10b   : > { %v642_v60 = vadd.f32 %v819_v53, %v593_v56  ;;  %v596_v61 = vadd.f32 %v794_v57, %v314_v47 }
 0x10d   : > { %v656_v63 = vmax.f32 %v642_v60, 0.0  ;;  %v645_v0 = vadd.f32 %v822_v59, %v596_v61  ;;  %v795_v1 = vpop.f32.mrb[4].mxu0 }
 0x10e   : > { %v823_v2 = vpop.f32.mrb[4].mxu1  ;;  %v796_v3 = vpop.f32.mrb[5].mxu0 }
 0x10f   : > { %661 = vst.msk [vmem:[%s228_s24] sm:$0xff] %vm660_vm0, %v656_v63  ;;  %v657_v4 = vmax.f32 %v645_v0, 0.0  ;;  %v797_v5 = vadd.f32 %v796_v3, %v795_v1  ;;  %v824_v6 = vpop.f32.mrb[5].mxu1  ;;  %v798_v7 = vpop.f32.mrb[6].mxu0 }
 0x110   : > { %v825_v8 = vadd.f32 %v824_v6, %v823_v2  ;;  %v826_v9 = vpop.f32.mrb[6].mxu1  ;;  %v799_v10 = vpop.f32.mrb[7].mxu0 }
 0x111   : > { %662 = vst.msk [vmem:[%s228_s24 + $0x8] sm:$0xff] %vm660_vm0, %v657_v4  ;;  %v601_v11 = vadd.f32 %v797_v5, %v319_v62  ;;  %v800_v12 = vadd.f32 %v799_v10, %v798_v7  ;;  %v827_v13 = vpop.f32.mrb[7].mxu1 }
 0x112   : > { %v828_v15 = vadd.f32 %v827_v13, %v826_v9 }
 0x113   : > { %v650_v16 = vadd.f32 %v825_v8, %v601_v11  ;;  %v604_v17 = vadd.f32 %v800_v12, %v324_v14 }
 0x115   : > { %v658_v18 = vmax.f32 %v650_v16, 0.0  ;;  %v653_v19 = vadd.f32 %v828_v15, %v604_v17 }
 0x117   : > { %663 = vst.msk [vmem:[%s228_s24 + $0x10] sm:$0xff] %vm660_vm0, %v658_v18  ;;  %v659_v20 = vmax.f32 %v653_v19, 0.0 }
 0x119   : > { %664 = vst.msk [vmem:[%s228_s24 + $0x18] sm:$0xff] %vm660_vm0, %v659_v20 }
 0x11a PF: > { %s19_s18 = sadd.s32 1, %s890_s18  }
 0x11b   : > { %p16_p4 = scmp.ge.s32.totalorder %s19_s18, 4  }
 0x11d   :  { %18 = sbr.rel (!%p16_p4) target bundleno = 1 (0x1), region = 70 }

// kernel: adain_gen_forward.23
= control target key start
LH: loop header
LB: loop body
LE: loop exit
PB: predicated region body
PF: predicated region fallthrough
CT: control target
= control target key end

     0   :  { %s923_s18 = smov 0   ;;  %s1018_s0 = inlined_call_operand.vmem [shape: bf16[2,512,4], index: 0, kind: input, shape index: {}]   ;;  %s1019_s1 = inlined_call_operand.vmem [shape: bf16[32,512], index: 1, kind: input, shape index: {}]   ;;  %s1020_s2 = inlined_call_operand.vmem [shape: f32[32,1], index: 2, kind: input, shape index: {}]   ;;  %s1021_s3 = inlined_call_operand.<no memory space> [shape: f32[1,1,1], index: 3, kind: input, shape index: {}, may-alias: {3,4}]   ;;  %s1022_s5 = inlined_call_operand.vmem [shape: f32[2,32,4], index: 5, kind: output, shape index: {}]   ;;  %s1023_s4 = inlined_call_operand.<no memory space> [shape: f32[1,1,1], index: 4, kind: input, shape index: {}, may-alias: {3,4}]  }
   0x1 LB: > { %s720_s19 = sadd.s32 4294967295, %s890_s18   ;;  %p724_p0 = scmp.ge.s32.totalorder %s890_s18, 1  ;;  %s890_s18 = sphi %s923_s18, %s19_s18  }
   0x2   : > { %p191_p1 = scmp.lt.s32.totalorder %s890_s18, 3 }
   0x4   : > { %p192_p2 = pnand %p724_p0, %p191_p1 }
   0x5   : > { %p219_p3 = scmp.lt.s32.totalorder (!%p192_p2), %s720_s19, 1  ;;  %v874_v0 = vld [vmem:[%s1019_s1 + $0x4] ss:$16 sps:$4 sm:$0xff] (!%p192_p2)   ;;  %v892_v1 = vmov (!%p192_p2), 0   ;;  %v877_v2 = vld [vmem:[%s1019_s1 + $0xc] ss:$16 sps:$4 sm:$0xff] (!%p192_p2)  }
   0x6   : > { %195 = sbr.rel (%p192_p2) target bundleno = 282 (0x11a), region = 40  ;;  %838 = vset.pattern.permute.xlu0 (!%p192_p2), %v892_v1  ;;  %839 = vset.pattern.permute.xlu1 (!%p192_p2), %v892_v1  ;;  %v302_v3 = vld [vmem:[%s1020_s2] sm:$0xff] (!%p192_p2)  ;;  %v304_v4 = vld [vmem:[%s1020_s2 + $0x10] sm:$0xff] (!%p192_p2)  ;;  %v875_v37 = vld [vmem:[%s1019_s1 + $0x8] ss:$16 sps:$4 sm:$0xff] (!%p192_p2)   ;;  %vm660_vm0 = vcmask (!%p192_p2), 31744  }
   0x7   : > { %590 = vmatprep.mubr.bf16.mxu0 (!%p192_p2), %v874_v0  ;;  %639 = vmatprep.mubr.bf16.mxu1 (!%p192_p2), %v877_v2  ;;  %v872_v35 = vld [vmem:[%s1019_s1] ss:$16 sps:$4 sm:$0xff] (!%p192_p2)   ;;  %v878_v39 = vld [vmem:[%s1019_s1 + $0x24] ss:$16 sps:$4 sm:$0xff] (!%p192_p2)   ;;  %v303_v40 = vld [vmem:[%s1020_s2 + $0x8] sm:$0xff] (!%p192_p2) }
   0x8   : > { %308 = vperm.xlu0 (!%p192_p2), %838, %v302_v3   ;;  %318 = vperm.xlu1 (!%p192_p2), %839, %v304_v4   ;;  %v305_v41 = vld [vmem:[%s1020_s2 + $0x18] sm:$0xff] (!%p192_p2)  ;;  %v882_v43 = vld [vmem:[%s1019_s1 + $0x20] ss:$16 sps:$4 sm:$0xff] (!%p192_p2)  }
   0x9   : > { %v880_v42 = vld [vmem:[%s1019_s1 + $0x2c] ss:$16 sps:$4 sm:$0xff] (!%p192_p2)   ;;  %v883_v44 = vld [vmem:[%s1019_s1 + $0x28] ss:$16 sps:$4 sm:$0xff] (!%p192_p2)  }
   0xc   : > { %313 = vperm.xlu0 (!%p192_p2), %838, %v303_v40   ;;  %323 = vperm.xlu1 (!%p192_p2), %839, %v305_v41  }
   0xd   : > { %s1025_s19 = smov (!%p219_p3, %s720_s19), 1 }
   0xe   : > { %s771_s22 = sshll.u32 %s1025_s19, 8  ;;  %s772_s21 = sshll.u32 %s1025_s19, 5 }
   0xf   : > { %s943_s25 = scalar_lea.vmem %s1018_s0, %s771_s22  ;;  %s228_s24 = scalar_lea.vmem %s1022_s5, %s772_s21 }
  0x10   : > { %v840_v5 = vld [vmem:[%s943_s25 + $0x40] sm:$0xff]   ;;  %v844_v9 = vld [vmem:[%s943_s25 + $0x48] sm:$0xff]   ;;  %v848_v13 = vld [vmem:[%s943_s25 + $0x50] sm:$0xff]  }
  0x11   : > { %v841_v6 = vld [vmem:[%s943_s25 + $0xc0] sm:$0xff]   ;;  %773 = vmatprep.subr.bf16.mxu0 %v840_v5  ;;  %v845_v10 = vld [vmem:[%s943_s25 + $0xc8] sm:$0xff]   ;;  %v849_v14 = vld [vmem:[%s943_s25 + $0xd0] sm:$0xff]  }
  0x12   : > { %v842_v7 = vld [vmem:[%s943_s25] sm:$0xff]   ;;  %801 = vmatprep.subr.bf16.mxu1 %v841_v6  ;;  %v846_v11 = vld [vmem:[%s943_s25 + $0x8] sm:$0xff]   ;;  %v850_v15 = vld [vmem:[%s943_s25 + $0x10] sm:$0xff]  }
  0x13   : > { %v843_v8 = vld [vmem:[%s943_s25 + $0x80] sm:$0xff]   ;;  %774 = vmatpush3.bf16.msra.mxu0 %v842_v7  ;;  %v847_v12 = vld [vmem:[%s943_s25 + $0x88] sm:$0xff]   ;;  %v851_v16 = vld [vmem:[%s943_s25 + $0x90] sm:$0xff]  }
  0x14   : > { %802 = vmatpush3.bf16.msra.mxu1 %v843_v8  ;;  %775 = vmatprep.subr.bf16.mxu0 %v844_v9  ;;  %v852_v17 = vld [vmem:[%s943_s25 + $0x58] sm:$0xff]   ;;  %v856_v21 = vld [vmem:[%s943_s25 + $0x60] sm:$0xff]   ;;  %v860_v25 = vld [vmem:[%s943_s25 + $0x68] sm:$0xff]  }
  0x15   : > { %803 = vmatprep.subr.bf16.mxu1 %v845_v10  ;;  %v853_v18 = vld [vmem:[%s943_s25 + $0xd8] sm:$0xff]   ;;  %v857_v22 = vld [vmem:[%s943_s25 + $0xe0] sm:$0xff]   ;;  %v861_v26 = vld [vmem:[%s943_s25 + $0xe8] sm:$0xff]  }
  0x16   : > { %v854_v19 = vld [vmem:[%s943_s25 + $0x18] sm:$0xff]   ;;  %v858_v23 = vld [vmem:[%s943_s25 + $0x20] sm:$0xff]   ;;  %v862_v27 = vld [vmem:[%s943_s25 + $0x28] sm:$0xff]  }
  0x17   : > { %776 = vmatpush3.bf16.msra.mxu0 %v846_v11  ;;  %v855_v20 = vld [vmem:[%s943_s25 + $0x98] sm:$0xff]   ;;  %v859_v24 = vld [vmem:[%s943_s25 + $0xa0] sm:$0xff]   ;;  %v863_v28 = vld [vmem:[%s943_s25 + $0xa8] sm:$0xff]  }
  0x18   : > { %804 = vmatpush3.bf16.msra.mxu1 %v847_v12  ;;  %777 = vmatprep.subr.bf16.mxu0 %v848_v13  ;;  %v864_v29 = vld [vmem:[%s943_s25 + $0x70] sm:$0xff]   ;;  %v868_v33 = vld [vmem:[%s943_s25 + $0x78] sm:$0xff]  }
  0x19   : > { %805 = vmatprep.subr.bf16.mxu1 %v849_v14  ;;  %v865_v30 = vld [vmem:[%s943_s25 + $0xf0] sm:$0xff]   ;;  %v869_v34 = vld [vmem:[%s943_s25 + $0xf8] sm:$0xff]  }
  0x1a   : > { %v866_v31 = vld [vmem:[%s943_s25 + $0x30] sm:$0xff]   ;;  %v870_v36 = vld [vmem:[%s943_s25 + $0x38] sm:$0xff]  }
  0x1b   : > { %778 = vmatpush3.bf16.msra.mxu0 %v850_v15  ;;  %v867_v32 = vld [vmem:[%s943_s25 + $0xb0] sm:$0xff]   ;;  %v871_v38 = vld [vmem:[%s943_s25 + $0xb8] sm:$0xff]  }
  0x1c   : > { %806 = vmatpush3.bf16.msra.mxu1 %v851_v16  ;;  %779 = vmatprep.subr.bf16.mxu0 %v852_v17 }
  0x1d   : > { %807 = vmatprep.subr.bf16.mxu1 %v853_v18 }
  0x1f   : > { %780 = vmatpush3.bf16.msra.mxu0 %v854_v19 }
  0x20   : > { %808 = vmatpush3.bf16.msra.mxu1 %v855_v20  ;;  %781 = vmatprep.subr.bf16.mxu0 %v856_v21 }
  0x21   : > { %809 = vmatprep.subr.bf16.mxu1 %v857_v22 }
  0x23   : > { %782 = vmatpush3.bf16.msra.mxu0 %v858_v23 }
  0x24   : > { %810 = vmatpush3.bf16.msra.mxu1 %v859_v24  ;;  %783 = vmatprep.subr.bf16.mxu0 %v860_v25 }
  0x25   : > { %811 = vmatprep.subr.bf16.mxu1 %v861_v26 }
  0x27   : > { %784 = vmatpush3.bf16.msra.mxu0 %v862_v27 }
  0x28   : > { %812 = vmatpush3.bf16.msra.mxu1 %v863_v28  ;;  %785 = vmatprep.subr.bf16.mxu0 %v864_v29 }
  0x29   : > { %813 = vmatprep.subr.bf16.mxu1 %v865_v30 }
  0x2b   : > { %786 = vmatpush3.bf16.msra.mxu0 %v866_v31 }
  0x2c   : > { %814 = vmatpush3.bf16.msra.mxu1 %v867_v32  ;;  %787 = vmatprep.subr.bf16.mxu0 %v868_v33 }
  0x2d   : > { %815 = vmatprep.subr.bf16.mxu1 %v869_v34 }
  0x2f   : > { %788 = vmatpush3.bf16.msra.mxu0 %v870_v36 }
  0x30   : > { %816 = vmatpush3.bf16.msra.mxu1 %v871_v38 }
  0x32   : > { %591 = vmatmul.mubr.bf16.vlgmr.msra.gmra.mrb[0].mxu0 %v872_v35 }
  0x33   : > { %640 = vmatmul.mubr.bf16.vlgmr.msra.gmra.mrb[0].mxu1 %v875_v37  ;;  %598 = vmatprep.mubr.bf16.mxu0 %v878_v39 }
  0x34   : > { %647 = vmatprep.mubr.bf16.mxu1 %v880_v42 }
  0x3a   : > { %599 = vmatmul.mubr.bf16.gmra.mrb[4].mxu0 %v882_v43 }
  0x3b   : > { %648 = vmatmul.mubr.bf16.gmra.mrb[4].mxu1 %v883_v44 }
  0x87   : > { %v309_v45 = vpop.permute.xlu0 %308  ;;  %v319_v62 = vpop.permute.xlu1 %318 }
  0x8b   : > { %v314_v47 = vpop.permute.xlu0 %313  ;;  %v324_v14 = vpop.permute.xlu1 %323 }
 0x105   : > { %v789_v46 = vpop.f32.mrb[0].mxu0 }
 0x106   : > { %v817_v48 = vpop.f32.mrb[0].mxu1  ;;  %v790_v49 = vpop.f32.mrb[1].mxu0 }
 0x107   : > { %v791_v50 = vadd.f32 %v790_v49, %v789_v46  ;;  %v818_v51 = vpop.f32.mrb[1].mxu1  ;;  %v792_v52 = vpop.f32.mrb[2].mxu0 }
 0x108   : > { %v819_v53 = vadd.f32 %v818_v51, %v817_v48  ;;  %v820_v54 = vpop.f32.mrb[2].mxu1  ;;  %v793_v55 = vpop.f32.mrb[3].mxu0 }
 0x109   : > { %v593_v56 = vadd.f32 %v791_v50, %v309_v45  ;;  %v794_v57 = vadd.f32 %v793_v55, %v792_v52  ;;  %v821_v58 = vpop.f32.mrb[3].mxu1 }
 0x10a   : > { %v822_v59 = vadd.f32 %v821_v58, %v820_v54 }
 0x10b   : > { %v642_v60 = vadd.f32 %v819_v53, %v593_v56  ;;  %v596_v61 = vadd.f32 %v794_v57, %v314_v47 }
 0x10d   : > { %v656_v63 = vmax.f32 %v642_v60, 0.0  ;;  %v645_v0 = vadd.f32 %v822_v59, %v596_v61  ;;  %v795_v1 = vpop.f32.mrb[4].mxu0 }
 0x10e   : > { %v823_v2 = vpop.f32.mrb[4].mxu1  ;;  %v796_v3 = vpop.f32.mrb[5].mxu0 }
 0x10f   : > { %661 = vst.msk [vmem:[%s228_s24] sm:$0xff] %vm660_vm0, %v656_v63  ;;  %v657_v4 = vmax.f32 %v645_v0, 0.0  ;;  %v797_v5 = vadd.f32 %v796_v3, %v795_v1  ;;  %v824_v6 = vpop.f32.mrb[5].mxu1  ;;  %v798_v7 = vpop.f32.mrb[6].mxu0 }
 0x110   : > { %v825_v8 = vadd.f32 %v824_v6, %v823_v2  ;;  %v826_v9 = vpop.f32.mrb[6].mxu1  ;;  %v799_v10 = vpop.f32.mrb[7].mxu0 }
 0x111   : > { %662 = vst.msk [vmem:[%s228_s24 + $0x8] sm:$0xff] %vm660_vm0, %v657_v4  ;;  %v601_v11 = vadd.f32 %v797_v5, %v319_v62  ;;  %v800_v12 = vadd.f32 %v799_v10, %v798_v7  ;;  %v827_v13 = vpop.f32.mrb[7].mxu1 }
 0x112   : > { %v828_v15 = vadd.f32 %v827_v13, %v826_v9 }
 0x113   : > { %v650_v16 = vadd.f32 %v825_v8, %v601_v11  ;;  %v604_v17 = vadd.f32 %v800_v12, %v324_v14 }
 0x115   : > { %v658_v18 = vmax.f32 %v650_v16, 0.0  ;;  %v653_v19 = vadd.f32 %v828_v15, %v604_v17 }
 0x117   : > { %663 = vst.msk [vmem:[%s228_s24 + $0x10] sm:$0xff] %vm660_vm0, %v658_v18  ;;  %v659_v20 = vmax.f32 %v653_v19, 0.0 }
 0x119   : > { %664 = vst.msk [vmem:[%s228_s24 + $0x18] sm:$0xff] %vm660_vm0, %v659_v20 }
 0x11a PF: > { %s19_s18 = sadd.s32 1, %s890_s18  }
 0x11b   : > { %p16_p4 = scmp.ge.s32.totalorder %s19_s18, 4  }
 0x11d   :  { %18 = sbr.rel (!%p16_p4) target bundleno = 1 (0x1), region = 70 }

// kernel: adain_gen_forward.24
= control target key start
LH: loop header
LB: loop body
LE: loop exit
PB: predicated region body
PF: predicated region fallthrough
CT: control target
= control target key end

     0   :  { %s1174_s18 = smov 0   ;;  %s1311_s0 = inlined_call_operand.vmem [shape: bf16[2,147,1024], index: 0, kind: input, shape index: {}]   ;;  %s1312_s1 = inlined_call_operand.vmem [shape: bf16[8,147], index: 1, kind: input, shape index: {}]   ;;  %s1313_s2 = inlined_call_operand.vmem [shape: f32[8,1], index: 2, kind: input, shape index: {}]   ;;  %s1314_s3 = inlined_call_operand.<no memory space> [shape: f32[1,1,1], index: 3, kind: input, shape index: {}, may-alias: {3,4}]   ;;  %s1315_s5 = inlined_call_operand.vmem [shape: f32[2,8,1024], index: 5, kind: output, shape index: {}]   ;;  %s1316_s4 = inlined_call_operand.<no memory space> [shape: f32[1,1,1], index: 4, kind: input, shape index: {}, may-alias: {3,4}]  }
   0x1 LB: > { %s1013_s19 = sadd.s32 4294967295, %s1140_s18   ;;  %p1017_p0 = scmp.ge.s32.totalorder %s1140_s18, 1  ;;  %s1140_s18 = sphi %s1174_s18, %s19_s18  }
   0x2   : > { %p191_p1 = scmp.lt.s32.totalorder %s1140_s18, 3 }
   0x4   : > { %p192_p2 = pnand %p1017_p0, %p191_p1 }
   0x5   : > { %p219_p3 = scmp.lt.s32.totalorder (!%p192_p2), %s1013_s19, 1  ;;  %v1185_v0 = vld [vmem:[%s1312_s1] sm:$0xff] (!%p192_p2)  ;;  %vm699_vm0 = vcmask (!%p192_p2), 154624   ;;  %v1142_v3 = vmov (!%p192_p2), 0   ;;  %vm703_vm1 = vcmask (!%p192_p2), 1040384   ;;  %vm704_vm2 = vcmask (!%p192_p2), 1041408  }
   0x6   : > { %195 = sbr.rel (%p192_p2) target bundleno = 650 (0x28a), region = 40  ;;  %v1189_v1 = vcombine.high (!%p192_p2), %v1185_v0, %v1185_v0  ;;  %v307_v2 = vld [vmem:[%s1313_s2] sm:$0xff] (!%p192_p2)  ;;  %1121 = vset.pattern.permute.xlu0 (!%p192_p2), %v1142_v3 }
   0x7   : > { %310 = vperm.xlu0 (!%p192_p2), %1121, %v307_v2  }
   0x8   : > { %1103 = vmatprep.mubr.msk.bf16.mxu0 (!%p192_p2), %vm699_vm0, %v1189_v1  ;;  %1104 = vmatprep.mubr.msk.bf16.mxu1 (!%p192_p2), %vm699_vm0, %v1189_v1 }
   0xd   : > { %s1318_s19 = smov (!%p219_p3, %s1013_s19), 1 }
   0xe   : > { %s1110_s22 = smul.u32 608, %s1318_s19  ;;  %s1109_s26 = sshll.u32 %s1318_s19, 6 }
   0xf   : > { %s228_s29 = scalar_lea.vmem %s1315_s5, %s1109_s26 }
  0x10   : > { %s1204_s25 = scalar_lea.vmem %s1311_s0, %s1110_s22 }
  0x11   : > { %v230_v4 = vld [vmem:[%s1204_s25] sm:$0xff]  ;;  %v231_v6 = vld [vmem:[%s1204_s25 + $0x8] sm:$0xff] }
  0x12   : > { %v234_v5 = vld [vmem:[%s1204_s25 + $0x20] sm:$0xff]  ;;  %v235_v8 = vld [vmem:[%s1204_s25 + $0x28] sm:$0xff] }
  0x13   : > { %v1024_v7 = vcombine.high %v230_v4, %v234_v5  ;;  %v1023_v9 = vcombine.low %v230_v4, %v234_v5  ;;  %v238_v10 = vld [vmem:[%s1204_s25 + $0x40] sm:$0xff]  ;;  %v1026_v12 = vcombine.high %v231_v6, %v235_v8  ;;  %v1025_v13 = vcombine.low %v231_v6, %v235_v8  ;;  %v239_v15 = vld [vmem:[%s1204_s25 + $0x48] sm:$0xff] }
  0x14   : > { %v242_v11 = vld [vmem:[%s1204_s25 + $0x60] sm:$0xff]  ;;  %v243_v16 = vld [vmem:[%s1204_s25 + $0x68] sm:$0xff] }
  0x15   : > { %v1032_v14 = vcombine.high %v238_v10, %v242_v11  ;;  %v246_v17 = vld [vmem:[%s1204_s25 + $0x80] sm:$0xff]  ;;  %731 = vmatprep.subr.bf16.mxu0 %v1024_v7  ;;  %v1034_v18 = vcombine.high %v239_v15, %v243_v16  ;;  %v247_v20 = vld [vmem:[%s1204_s25 + $0x88] sm:$0xff]  ;;  %772 = vmatprep.subr.bf16.mxu1 %v1026_v12  ;;  %v1031_v22 = vcombine.low %v238_v10, %v242_v11 }
  0x16   : > { %v250_v19 = vld [vmem:[%s1204_s25 + $0xa0] sm:$0xff]  ;;  %v251_v21 = vld [vmem:[%s1204_s25 + $0xa8] sm:$0xff]  ;;  %732 = vmatpush1.bf16.msra.mxu0 %v1023_v9  ;;  %773 = vmatpush1.bf16.msra.mxu1 %v1025_v13  ;;  %v1033_v23 = vcombine.low %v239_v15, %v243_v16  ;;  %v1143_v9 = vmov 65535  }
  0x17   : > { %733 = vmatprep.subr.bf16.mxu0 %v1032_v14  ;;  %v1040_v24 = vcombine.high %v246_v17, %v250_v19  ;;  %774 = vmatprep.subr.bf16.mxu1 %v1034_v18  ;;  %v1042_v25 = vcombine.high %v247_v20, %v251_v21  ;;  %v254_v26 = vld [vmem:[%s1204_s25 + $0xc0] sm:$0xff]  ;;  %v255_v28 = vld [vmem:[%s1204_s25 + $0xc8] sm:$0xff]  ;;  %v1039_v30 = vcombine.low %v246_v17, %v250_v19  ;;  %v705_v10 = vsel %vm703_vm1, 4294967295, %v1143_v9 }
  0x18   : > { %v258_v27 = vld [vmem:[%s1204_s25 + $0xe0] sm:$0xff]  ;;  %v259_v29 = vld [vmem:[%s1204_s25 + $0xe8] sm:$0xff]  ;;  %v1041_v31 = vcombine.low %v247_v20, %v251_v21  ;;  %v1244_v17 = vsel %vm704_vm2, %v705_v10, 0  ;;  %v280_v10 = vld [vmem:[%s1204_s25 + $0x190] sm:$0xff] }
  0x19   : > { %v1048_v32 = vcombine.high %v254_v26, %v258_v27  ;;  %v1050_v33 = vcombine.high %v255_v28, %v259_v29  ;;  %v262_v34 = vld [vmem:[%s1204_s25 + $0x100] sm:$0xff]  ;;  %v263_v36 = vld [vmem:[%s1204_s25 + $0x108] sm:$0xff]  ;;  %v1047_v38 = vcombine.low %v254_v26, %v258_v27  ;;  %v1049_v39 = vcombine.low %v255_v28, %v259_v29  ;;  %v236_v26 = vld [vmem:[%s1204_s25 + $0x30] sm:$0xff] }
  0x1a   : > { %734 = vmatpush1.bf16.msra.mxu0 %v1031_v22  ;;  %775 = vmatpush1.bf16.msra.mxu1 %v1033_v23  ;;  %v266_v35 = vld [vmem:[%s1204_s25 + $0x120] sm:$0xff]  ;;  %v267_v37 = vld [vmem:[%s1204_s25 + $0x128] sm:$0xff]  ;;  %v233_v27 = vld [vmem:[%s1204_s25 + $0x18] sm:$0xff] }
  0x1b   : > { %735 = vmatprep.subr.bf16.mxu0 %v1040_v24  ;;  %776 = vmatprep.subr.bf16.mxu1 %v1042_v25  ;;  %v1056_v40 = vcombine.high %v262_v34, %v266_v35  ;;  %v1058_v41 = vcombine.high %v263_v36, %v267_v37  ;;  %v270_v42 = vld [vmem:[%s1204_s25 + $0x140] sm:$0xff]  ;;  %v271_v44 = vld [vmem:[%s1204_s25 + $0x148] sm:$0xff]  ;;  %v1055_v46 = vcombine.low %v262_v34, %v266_v35  ;;  %v232_v25 = vld [vmem:[%s1204_s25 + $0x10] sm:$0xff] }
  0x1c   : > { %v274_v43 = vld [vmem:[%s1204_s25 + $0x160] sm:$0xff]  ;;  %v275_v45 = vld [vmem:[%s1204_s25 + $0x168] sm:$0xff]  ;;  %v1057_v47 = vcombine.low %v263_v36, %v267_v37  ;;  %v237_v28 = vld [vmem:[%s1204_s25 + $0x38] sm:$0xff]  ;;  %v1258_v35 = vcombine.low %v1185_v0, %v1185_v0 }
  0x1d   : > { %v1064_v48 = vcombine.high %v270_v42, %v274_v43  ;;  %v1066_v49 = vcombine.high %v271_v44, %v275_v45  ;;  %v278_v50 = vld [vmem:[%s1204_s25 + $0x180] sm:$0xff]  ;;  %v279_v52 = vld [vmem:[%s1204_s25 + $0x188] sm:$0xff]  ;;  %v1063_v54 = vcombine.low %v270_v42, %v274_v43  ;;  %v1065_v55 = vcombine.low %v271_v44, %v275_v45  ;;  %v244_v34 = vld [vmem:[%s1204_s25 + $0x70] sm:$0xff] }
  0x1e   : > { %736 = vmatpush1.bf16.msra.mxu0 %v1039_v30  ;;  %777 = vmatpush1.bf16.msra.mxu1 %v1041_v31  ;;  %v282_v51 = vld [vmem:[%s1204_s25 + $0x1a0] sm:$0xff]  ;;  %v283_v53 = vld [vmem:[%s1204_s25 + $0x1a8] sm:$0xff]  ;;  %v1028_v31 = vcombine.high %v232_v25, %v236_v26  ;;  %v241_v36 = vld [vmem:[%s1204_s25 + $0x58] sm:$0xff] }
  0x1f   : > { %737 = vmatprep.subr.bf16.mxu0 %v1048_v32  ;;  %778 = vmatprep.subr.bf16.mxu1 %v1050_v33  ;;  %v1072_v56 = vcombine.high %v278_v50, %v282_v51  ;;  %v1074_v57 = vcombine.high %v279_v52, %v283_v53  ;;  %v286_v58 = vld [vmem:[%s1204_s25 + $0x1c0] sm:$0xff]  ;;  %v287_v60 = vld [vmem:[%s1204_s25 + $0x1c8] sm:$0xff]  ;;  %v1071_v62 = vcombine.low %v278_v50, %v282_v51  ;;  %v240_v33 = vld [vmem:[%s1204_s25 + $0x50] sm:$0xff] }
  0x20   : > { %v290_v59 = vld [vmem:[%s1204_s25 + $0x1e0] sm:$0xff]  ;;  %v291_v61 = vld [vmem:[%s1204_s25 + $0x1e8] sm:$0xff]  ;;  %v1073_v63 = vcombine.low %v279_v52, %v283_v53  ;;  %v1030_v32 = vcombine.high %v233_v27, %v237_v28  ;;  %v245_v37 = vld [vmem:[%s1204_s25 + $0x78] sm:$0xff]  ;;  %v1035_v45 = vcombine.low %v240_v33, %v244_v34 }
  0x21   : > { %v1080_v2 = vcombine.high %v286_v58, %v290_v59  ;;  %v1082_v3 = vcombine.high %v287_v60, %v291_v61  ;;  %v294_v4 = vld [vmem:[%s1204_s25 + $0x200] sm:$0xff]  ;;  %v295_v7 = vld [vmem:[%s1204_s25 + $0x208] sm:$0xff]  ;;  %v1079_v12 = vcombine.low %v286_v58, %v290_v59  ;;  %v1081_v13 = vcombine.low %v287_v60, %v291_v61  ;;  %v248_v42 = vld [vmem:[%s1204_s25 + $0x90] sm:$0xff] }
  0x22   : > { %738 = vmatpush1.bf16.msra.mxu0 %v1047_v38  ;;  %779 = vmatpush1.bf16.msra.mxu1 %v1049_v39  ;;  %v298_v5 = vld [vmem:[%s1204_s25 + $0x220] sm:$0xff]  ;;  %v299_v8 = vld [vmem:[%s1204_s25 + $0x228] sm:$0xff]  ;;  %v1027_v38 = vcombine.low %v232_v25, %v236_v26  ;;  %v1029_v39 = vcombine.low %v233_v27, %v237_v28  ;;  %v252_v43 = vld [vmem:[%s1204_s25 + $0xb0] sm:$0xff] }
  0x23   : > { %739 = vmatprep.subr.bf16.mxu0 %v1056_v40  ;;  %780 = vmatprep.subr.bf16.mxu1 %v1058_v41  ;;  %v302_v6 = vld [vmem:[%s1204_s25 + $0x240] sm:$0x33]  ;;  %v303_v11 = vld [vmem:[%s1204_s25 + $0x248] sm:$0x33]  ;;  %v1088_v14 = vcombine.high %v294_v4, %v298_v5  ;;  %v1090_v16 = vcombine.high %v295_v7, %v299_v8  ;;  %v1087_v19 = vcombine.low %v294_v4, %v298_v5  ;;  %v249_v0 = vld [vmem:[%s1204_s25 + $0x98] sm:$0xff] }
  0x24   : > { %v1096_v15 = vcombine.high %v302_v6, %v302_v6  ;;  %v1098_v18 = vcombine.high %v303_v11, %v303_v11  ;;  %v1095_v20 = vcombine.low %v302_v6, %v302_v6  ;;  %v1089_v21 = vcombine.low %v295_v7, %v299_v8  ;;  %v253_v44 = vld [vmem:[%s1204_s25 + $0xb8] sm:$0xff]  ;;  %v260_v50 = vld [vmem:[%s1204_s25 + $0xf0] sm:$0xff] }
  0x25   : > { %v1097_v23 = vcombine.low %v303_v11, %v303_v11  ;;  %v1036_v40 = vcombine.high %v240_v33, %v244_v34  ;;  %v1038_v41 = vcombine.high %v241_v36, %v245_v37  ;;  %v257_v51 = vld [vmem:[%s1204_s25 + $0xd8] sm:$0xff]  ;;  %v1043_v53 = vcombine.low %v248_v42, %v252_v43  ;;  %v268_v58 = vld [vmem:[%s1204_s25 + $0x130] sm:$0xff] }
  0x26   : > { %740 = vmatpush1.bf16.msra.mxu0 %v1055_v46  ;;  %781 = vmatpush1.bf16.msra.mxu1 %v1057_v47  ;;  %v711_v22 = vand.u32 %v1096_v15, %v1244_v17  ;;  %v717_v24 = vand.u32 %v1098_v18, %v1244_v17  ;;  %v708_v29 = vand.u32 %v1095_v20, %v1244_v17  ;;  %v261_v52 = vld [vmem:[%s1204_s25 + $0xf8] sm:$0xff]  ;;  %v284_v11 = vld [vmem:[%s1204_s25 + $0x1b0] sm:$0xff] }
  0x27   : > { %741 = vmatprep.subr.bf16.mxu0 %v1064_v48  ;;  %782 = vmatprep.subr.bf16.mxu1 %v1066_v49  ;;  %v714_v30 = vand.u32 %v1097_v23, %v1244_v17  ;;  %v1037_v46 = vcombine.low %v241_v36, %v245_v37  ;;  %v1044_v47 = vcombine.high %v248_v42, %v252_v43  ;;  %v256_v49 = vld [vmem:[%s1204_s25 + $0xd0] sm:$0xff]  ;;  %v265_v59 = vld [vmem:[%s1204_s25 + $0x118] sm:$0xff] }
  0x28   : > { %v1046_v48 = vcombine.high %v249_v0, %v253_v44  ;;  %v269_v60 = vld [vmem:[%s1204_s25 + $0x138] sm:$0xff]  ;;  %v1051_v61 = vcombine.low %v256_v49, %v260_v50  ;;  %v292_v20 = vld [vmem:[%s1204_s25 + $0x1f0] sm:$0xff]  ;;  %v1075_v23 = vcombine.low %v280_v10, %v284_v11 }
  0x29   : > { %v273_v4 = vld [vmem:[%s1204_s25 + $0x158] sm:$0xff]  ;;  %v1061_v7 = vcombine.low %v265_v59, %v269_v60  ;;  %v296_v27 = vld [vmem:[%s1204_s25 + $0x210] sm:$0xff] }
  0x2a   : > { %742 = vmatpush1.bf16.msra.mxu0 %v1063_v54  ;;  %783 = vmatpush1.bf16.msra.mxu1 %v1065_v55  ;;  %v1045_v54 = vcombine.low %v249_v0, %v253_v44  ;;  %v1052_v55 = vcombine.high %v256_v49, %v260_v50  ;;  %v277_v5 = vld [vmem:[%s1204_s25 + $0x178] sm:$0xff]  ;;  %v300_v28 = vld [vmem:[%s1204_s25 + $0x230] sm:$0xff] }
  0x2b   : > { %743 = vmatprep.subr.bf16.mxu0 %v1072_v56  ;;  %784 = vmatprep.subr.bf16.mxu1 %v1074_v57  ;;  %v1054_v56 = vcombine.high %v257_v51, %v261_v52  ;;  %v264_v57 = vld [vmem:[%s1204_s25 + $0x110] sm:$0xff]  ;;  %v1070_v9 = vcombine.high %v273_v4, %v277_v5  ;;  %v1069_v15 = vcombine.low %v273_v4, %v277_v5 }
  0x2c   : > { %v1059_v6 = vcombine.low %v264_v57, %v268_v58  ;;  %v1092_v36 = vcombine.high %v296_v27, %v300_v28 }
  0x2e   : > { %744 = vmatpush1.bf16.msra.mxu0 %v1071_v62  ;;  %785 = vmatpush1.bf16.msra.mxu1 %v1073_v63  ;;  %v1060_v62 = vcombine.high %v264_v57, %v268_v58  ;;  %v1062_v63 = vcombine.high %v265_v59, %v269_v60 }
  0x2f   : > { %745 = vmatprep.subr.bf16.mxu0 %v1080_v2  ;;  %786 = vmatprep.subr.bf16.mxu1 %v1082_v3  ;;  %v272_v2 = vld [vmem:[%s1204_s25 + $0x150] sm:$0xff] }
  0x30   : > { %v276_v3 = vld [vmem:[%s1204_s25 + $0x170] sm:$0xff] }
  0x31   : > { %v1068_v8 = vcombine.high %v272_v2, %v276_v3 }
  0x32   : > { %746 = vmatpush1.bf16.msra.mxu0 %v1079_v12  ;;  %787 = vmatpush1.bf16.msra.mxu1 %v1081_v13  ;;  %v281_v12 = vld [vmem:[%s1204_s25 + $0x198] sm:$0xff] }
  0x33   : > { %747 = vmatprep.subr.bf16.mxu0 %v1088_v14  ;;  %788 = vmatprep.subr.bf16.mxu1 %v1090_v16  ;;  %v285_v13 = vld [vmem:[%s1204_s25 + $0x1b8] sm:$0xff]  ;;  %v1067_v14 = vcombine.low %v272_v2, %v276_v3  ;;  %v1076_v16 = vcombine.high %v280_v10, %v284_v11 }
  0x34   : > { %v1078_v18 = vcombine.high %v281_v12, %v285_v13 }
  0x36   : > { %748 = vmatpush1.bf16.msra.mxu0 %v1087_v19  ;;  %789 = vmatpush1.bf16.msra.mxu1 %v1089_v21  ;;  %v288_v19 = vld [vmem:[%s1204_s25 + $0x1d0] sm:$0xff]  ;;  %v289_v21 = vld [vmem:[%s1204_s25 + $0x1d8] sm:$0xff] }
  0x37   : > { %749 = vmatprep.subr.bf16.mxu0 %v711_v22  ;;  %790 = vmatprep.subr.bf16.mxu1 %v717_v24  ;;  %v293_v22 = vld [vmem:[%s1204_s25 + $0x1f8] sm:$0xff]  ;;  %v1077_v24 = vcombine.low %v281_v12, %v285_v13  ;;  %v1084_v25 = vcombine.high %v288_v19, %v292_v20  ;;  %v1083_v33 = vcombine.low %v288_v19, %v292_v20 }
  0x38   : > { %v1086_v26 = vcombine.high %v289_v21, %v293_v22  ;;  %v1085_v34 = vcombine.low %v289_v21, %v293_v22 }
  0x3a   : > { %750 = vmatpush1.bf16.msra.mxu0 %v708_v29  ;;  %791 = vmatpush1.bf16.msra.mxu1 %v714_v30  ;;  %v304_v29 = vld [vmem:[%s1204_s25 + $0x250] sm:$0x33]  ;;  %v297_v30 = vld [vmem:[%s1204_s25 + $0x218] sm:$0xff] }
  0x3b   : > { %813 = vmatprep.subr.bf16.mxu0 %v1028_v31  ;;  %854 = vmatprep.subr.bf16.mxu1 %v1030_v32  ;;  %v301_v31 = vld [vmem:[%s1204_s25 + $0x238] sm:$0xff]  ;;  %v1100_v37 = vcombine.high %v304_v29, %v304_v29 }
  0x3c   : > { %v305_v32 = vld [vmem:[%s1204_s25 + $0x258] sm:$0x33]  ;;  %v1093_v42 = vcombine.low %v297_v30, %v301_v31 }
  0x3d   : > { %764 = vmatmul.mubr.bf16.vlgmr.msra.gmra.mrb[0].mxu0 %v1258_v35  ;;  %805 = vmatmul.mubr.bf16.vlgmr.msra.gmra.mrb[0].mxu1 %v1258_v35  ;;  %v723_v43 = vand.u32 %v1100_v37, %v1244_v17  ;;  %v1101_v0 = vcombine.low %v305_v32, %v305_v32 }
  0x3e   : > { %814 = vmatpush1.bf16.msra.mxu0 %v1027_v38  ;;  %855 = vmatpush1.bf16.msra.mxu1 %v1029_v39  ;;  %v1094_v38 = vcombine.high %v297_v30, %v301_v31  ;;  %v1102_v39 = vcombine.high %v305_v32, %v305_v32 }
  0x3f   : > { %815 = vmatprep.subr.bf16.mxu0 %v1036_v40  ;;  %856 = vmatprep.subr.bf16.mxu1 %v1038_v41  ;;  %v1091_v40 = vcombine.low %v296_v27, %v300_v28  ;;  %v1099_v41 = vcombine.low %v304_v29, %v304_v29 }
  0x40   : > { %1105 = vmatprep.mubr.msk.bf16.mxu0 %vm699_vm0, %v1189_v1  ;;  %1106 = vmatprep.mubr.msk.bf16.mxu1 %vm699_vm0, %v1189_v1  ;;  %v1053_v1 = vcombine.low %v257_v51, %v261_v52  ;;  %v729_v44 = vand.u32 %v1102_v39, %v1244_v17 }
  0x42   : > { %816 = vmatpush1.bf16.msra.mxu0 %v1035_v45  ;;  %857 = vmatpush1.bf16.msra.mxu1 %v1037_v46  ;;  %v720_v45 = vand.u32 %v1099_v41, %v1244_v17  ;;  %v726_v46 = vand.u32 %v1101_v0, %v1244_v17 }
  0x43   : > { %817 = vmatprep.subr.bf16.mxu0 %v1044_v47  ;;  %858 = vmatprep.subr.bf16.mxu1 %v1046_v48 }
  0x46   : > { %818 = vmatpush1.bf16.msra.mxu0 %v1043_v53  ;;  %859 = vmatpush1.bf16.msra.mxu1 %v1045_v54 }
  0x47   : > { %819 = vmatprep.subr.bf16.mxu0 %v1052_v55  ;;  %860 = vmatprep.subr.bf16.mxu1 %v1054_v56 }
  0x4a   : > { %820 = vmatpush1.bf16.msra.mxu0 %v1051_v61  ;;  %861 = vmatpush1.bf16.msra.mxu1 %v1053_v1 }
  0x4b   : > { %821 = vmatprep.subr.bf16.mxu0 %v1060_v62  ;;  %862 = vmatprep.subr.bf16.mxu1 %v1062_v63 }
  0x4e   : > { %822 = vmatpush1.bf16.msra.mxu0 %v1059_v6  ;;  %863 = vmatpush1.bf16.msra.mxu1 %v1061_v7 }
  0x4f   : > { %823 = vmatprep.subr.bf16.mxu0 %v1068_v8  ;;  %864 = vmatprep.subr.bf16.mxu1 %v1070_v9 }
  0x52   : > { %824 = vmatpush1.bf16.msra.mxu0 %v1067_v14  ;;  %865 = vmatpush1.bf16.msra.mxu1 %v1069_v15 }
  0x53   : > { %825 = vmatprep.subr.bf16.mxu0 %v1076_v16  ;;  %866 = vmatprep.subr.bf16.mxu1 %v1078_v18 }
  0x56   : > { %826 = vmatpush1.bf16.msra.mxu0 %v1075_v23  ;;  %867 = vmatpush1.bf16.msra.mxu1 %v1077_v24 }
  0x57   : > { %827 = vmatprep.subr.bf16.mxu0 %v1084_v25  ;;  %868 = vmatprep.subr.bf16.mxu1 %v1086_v26 }
  0x5a   : > { %828 = vmatpush1.bf16.msra.mxu0 %v1083_v33  ;;  %869 = vmatpush1.bf16.msra.mxu1 %v1085_v34 }
  0x5b   : > { %829 = vmatprep.subr.bf16.mxu0 %v1092_v36  ;;  %870 = vmatprep.subr.bf16.mxu1 %v1094_v38 }
  0x5e   : > { %830 = vmatpush1.bf16.msra.mxu0 %v1091_v40  ;;  %871 = vmatpush1.bf16.msra.mxu1 %v1093_v42 }
  0x5f   : > { %831 = vmatprep.subr.bf16.mxu0 %v723_v43  ;;  %872 = vmatprep.subr.bf16.mxu1 %v729_v44 }
  0x62   : > { %832 = vmatpush1.bf16.msra.mxu0 %v720_v45  ;;  %873 = vmatpush1.bf16.msra.mxu1 %v726_v46 }
  0x65   : > { %846 = vmatmul.mubr.bf16.vlgmr.msra.gmra.mrb[4].mxu0 %v1258_v35  ;;  %887 = vmatmul.mubr.bf16.vlgmr.msra.gmra.mrb[4].mxu1 %v1258_v35 }
  0x86   : > { %v311_v55 = vpop.permute.xlu0 %310 }
 0x110   : > { %v765_v47 = vpop.f32.mrb[0].mxu0  ;;  %v806_v49 = vpop.f32.mrb[0].mxu1 }
 0x111   : > { %v767_v48 = vpop.f32.mrb[1].mxu0  ;;  %v808_v51 = vpop.f32.mrb[1].mxu1  ;;  %v766_v56 = vadd.f32 %v765_v47, %v311_v55  ;;  %v807_v17 = vadd.f32 %v806_v49, %v311_v55 }
 0x112   : > { %v769_v50 = vpop.f32.mrb[2].mxu0  ;;  %v810_v53 = vpop.f32.mrb[2].mxu1  ;;  %v768_v57 = vadd.f32 %v767_v48, %v311_v55  ;;  %v809_v60 = vadd.f32 %v808_v51, %v311_v55 }
 0x113   : > { %v770_v52 = vpop.f32.mrb[3].mxu0  ;;  %v811_v54 = vpop.f32.mrb[3].mxu1 }
 0x114   : > { %v895_v58 = vadd.f32 %v768_v57, %v766_v56 }
 0x116   : > { %v896_v59 = vadd.f32 %v895_v58, %v807_v17 }
 0x118   : > { %v897_v1 = vadd.f32 %v896_v59, %v809_v60 }
 0x138   : > { %v847_v61 = vpop.f32.mrb[4].mxu0  ;;  %v888_v63 = vpop.f32.mrb[4].mxu1 }
 0x139   : > { %v848_v62 = vadd.f32 %v847_v61, %v311_v55  ;;  %v849_v35 = vpop.f32.mrb[5].mxu0  ;;  %v890_v3 = vpop.f32.mrb[5].mxu1  ;;  %v889_v9 = vadd.f32 %v888_v63, %v311_v55 }
 0x13a   : > { %v850_v2 = vadd.f32 %v849_v35, %v311_v55  ;;  %v851_v4 = vpop.f32.mrb[6].mxu0  ;;  %v892_v7 = vpop.f32.mrb[6].mxu1  ;;  %v891_v11 = vadd.f32 %v890_v3, %v311_v55 }
 0x13b   : > { %v898_v5 = vadd.f32 %v897_v1, %v848_v62  ;;  %v852_v6 = vpop.f32.mrb[7].mxu0  ;;  %v893_v8 = vpop.f32.mrb[7].mxu1 }
 0x13d   : > { %v899_v10 = vadd.f32 %v898_v5, %v850_v2 }
 0x13f   : > { %v900_v12 = vadd.f32 %v899_v10, %v889_v9 }
 0x141   : > { %v901_v13 = vadd.f32 %v900_v12, %v891_v11 }
 0x143   : > { %902 = vadd.xlane.f32.xlu0 %v901_v13 }
 0x1d0   : > { %v903_v14 = vpop.xlane.xlu0 %902 }
 0x1d1   : > { %v905_v15 = vmul.f32 0.0009765625, %v903_v14 }
 0x1d3   : > { %v906_v16 = vsub.f32 %v766_v56, %v905_v15  ;;  %v907_v18 = vsub.f32 %v768_v57, %v905_v15  ;;  %v908_v19 = vsub.f32 %v807_v17, %v905_v15  ;;  %v909_v20 = vsub.f32 %v809_v60, %v905_v15 }
 0x1d4   : > { %v910_v23 = vsub.f32 %v848_v62, %v905_v15  ;;  %v911_v26 = vsub.f32 %v850_v2, %v905_v15  ;;  %v912_v29 = vsub.f32 %v889_v9, %v905_v15  ;;  %v913_v32 = vsub.f32 %v891_v11, %v905_v15 }
 0x1d5   : > { %v914_v21 = vmul.f32 %v906_v16, %v906_v16  ;;  %v915_v22 = vmul.f32 %v907_v18, %v907_v18  ;;  %v916_v24 = vmul.f32 %v908_v19, %v908_v19  ;;  %v917_v27 = vmul.f32 %v909_v20, %v909_v20 }
 0x1d6   : > { %v918_v30 = vmul.f32 %v910_v23, %v910_v23  ;;  %v919_v33 = vmul.f32 %v911_v26, %v911_v26  ;;  %v920_v36 = vmul.f32 %v912_v29, %v912_v29  ;;  %v921_v38 = vmul.f32 %v913_v32, %v913_v32 }
 0x1d7   : > { %v922_v25 = vadd.f32 %v915_v22, %v914_v21 }
 0x1d9   : > { %v923_v28 = vadd.f32 %v922_v25, %v916_v24 }
 0x1db   : > { %v924_v31 = vadd.f32 %v923_v28, %v917_v27 }
 0x1dd   : > { %v925_v34 = vadd.f32 %v924_v31, %v918_v30 }
 0x1df   : > { %v926_v37 = vadd.f32 %v925_v34, %v919_v33 }
 0x1e1   : > { %v927_v39 = vadd.f32 %v926_v37, %v920_v36 }
 0x1e3   : > { %v928_v40 = vadd.f32 %v927_v39, %v921_v38 }
 0x1e5   : > { %929 = vadd.xlane.f32.xlu1 %v928_v40 }
 0x272   : > { %v930_v41 = vpop.xlane.xlu1 %929 }
 0x273   : > { %v931_v42 = vmul.f32 0.0009765625, %v930_v41 }
 0x275   : > { %v932_v43 = vadd.f32 1e-05, %v931_v42 }
 0x277   : > { %1132 = vrsqrt.f32 %v932_v43 }
 0x281   : > { %v1133_v0 = vpop.eup %1132 }
 0x282   : > { %v934_v44 = vmul.f32 %v1133_v0, %v906_v16  ;;  %v935_v45 = vmul.f32 %v1133_v0, %v907_v18  ;;  %v936_v46 = vmul.f32 %v1133_v0, %v908_v19  ;;  %v937_v47 = vmul.f32 %v1133_v0, %v909_v20 }
 0x283   : > { %v938_v48 = vmul.f32 %v1133_v0, %v910_v23  ;;  %v939_v49 = vmul.f32 %v1133_v0, %v911_v26  ;;  %v940_v50 = vmul.f32 %v1133_v0, %v912_v29  ;;  %v941_v51 = vmul.f32 %v1133_v0, %v913_v32 }
 0x284   : > { %v942_v52 = vmax.f32 %v934_v44, 0.0  ;;  %v943_v53 = vmax.f32 %v935_v45, 0.0  ;;  %v944_v54 = vmax.f32 %v936_v46, 0.0  ;;  %v945_v55 = vmax.f32 %v937_v47, 0.0 }
 0x285   : > { %v946_v56 = vmax.f32 %v938_v48, 0.0  ;;  %v947_v57 = vmax.f32 %v939_v49, 0.0  ;;  %v948_v58 = vmax.f32 %v940_v50, 0.0  ;;  %v949_v17 = vmax.f32 %v941_v51, 0.0 }
 0x286   : > { %950 = vst [vmem:[%s228_s29] sm:$0xff] %v942_v52  ;;  %951 = vst [vmem:[%s228_s29 + $0x8] sm:$0xff] %v943_v53 }
 0x287   : > { %952 = vst [vmem:[%s228_s29 + $0x10] sm:$0xff] %v944_v54  ;;  %953 = vst [vmem:[%s228_s29 + $0x18] sm:$0xff] %v945_v55 }
 0x288   : > { %954 = vst [vmem:[%s228_s29 + $0x20] sm:$0xff] %v946_v56  ;;  %955 = vst [vmem:[%s228_s29 + $0x28] sm:$0xff] %v947_v57 }
 0x289   : > { %956 = vst [vmem:[%s228_s29 + $0x30] sm:$0xff] %v948_v58  ;;  %957 = vst [vmem:[%s228_s29 + $0x38] sm:$0xff] %v949_v17 }
 0x28a PF: > { %s19_s18 = sadd.s32 1, %s1140_s18  }
 0x28b   : > { %p16_p4 = scmp.ge.s32.totalorder %s19_s18, 4  }
 0x28d   :  { %18 = sbr.rel (!%p16_p4) target bundleno = 1 (0x1), region = 70 }

// kernel: adain_gen_forward.25
= control target key start
LH: loop header
LB: loop body
LE: loop exit
PB: predicated region body
PF: predicated region fallthrough
CT: control target
= control target key end

     0   :  { %s593_s18 = smov 0   ;;  %s641_s0 = inlined_call_operand.vmem [shape: bf16[2,128,256], index: 0, kind: input, shape index: {}]   ;;  %s642_s1 = inlined_call_operand.vmem [shape: bf16[16,128], index: 1, kind: input, shape index: {}]   ;;  %s643_s2 = inlined_call_operand.vmem [shape: f32[16,1], index: 2, kind: input, shape index: {}]   ;;  %s644_s3 = inlined_call_operand.<no memory space> [shape: f32[1,1,1], index: 3, kind: input, shape index: {}, may-alias: {3,4}]   ;;  %s645_s5 = inlined_call_operand.vmem [shape: f32[2,16,256], index: 5, kind: output, shape index: {}]   ;;  %s646_s4 = inlined_call_operand.<no memory space> [shape: f32[1,1,1], index: 4, kind: input, shape index: {}, may-alias: {3,4}]  }
   0x1 LB: > { %s485_s19 = sadd.s32 4294967295, %s560_s18   ;;  %p489_p0 = scmp.ge.s32.totalorder %s560_s18, 1  ;;  %s560_s18 = sphi %s593_s18, %s19_s18  }
   0x2   : > { %p191_p1 = scmp.lt.s32.totalorder %s560_s18, 3 }
   0x4   : > { %p192_p2 = pnand %p489_p0, %p191_p1 }
   0x5   : > { %p219_p3 = scmp.lt.s32.totalorder (!%p192_p2), %s485_s19, 1  ;;  %v562_v0 = vmov (!%p192_p2), 0   ;;  %v248_v1 = vld [vmem:[%s643_s2] sm:$0xff] (!%p192_p2)  ;;  %v249_v2 = vld [vmem:[%s643_s2 + $0x8] sm:$0xff] (!%p192_p2) }
   0x6   : > { %195 = sbr.rel (%p192_p2) target bundleno = 582 (0x246), region = 40  ;;  %378 = vmatprep.mubr.bf16.mxu0 (!%p192_p2), %v562_v0  ;;  %524 = vset.pattern.permute.xlu0 (!%p192_p2), %v562_v0  ;;  %v549_v19 = vld [vmem:[%s642_s1] sm:$0xff] (!%p192_p2)  }
   0x7   : > { %252 = vperm.xlu0 (!%p192_p2), %524, %v248_v1  }
   0xb   : > { %257 = vperm.xlu0 (!%p192_p2), %524, %v249_v2  }
   0xd   : > { %s648_s19 = smov (!%p219_p3, %s485_s19), 1 }
   0xe   : > { %s513_s22 = sshll.u32 %s648_s19, 7  ;;  %s514_s28 = sshll.u32 %s648_s19, 5 }
   0xf   : > { %s613_s25 = scalar_lea.vmem %s641_s0, %s513_s22  ;;  %s228_s6 = scalar_lea.vmem %s645_s5, %s514_s28 }
  0x10   : > { %v525_v3 = vld [vmem:[%s613_s25 + $0x4] ss:$8 sps:$4 sm:$0xff]   ;;  %v527_v4 = vld [vmem:[%s613_s25] ss:$8 sps:$4 sm:$0xff]   ;;  %v528_v5 = vld [vmem:[%s613_s25 + $0x14] ss:$8 sps:$4 sm:$0xff]  }
  0x11   : > { %346 = vmatprep.subr.bf16.mxu0 %v525_v3  ;;  %v530_v6 = vld [vmem:[%s613_s25 + $0x10] ss:$8 sps:$4 sm:$0xff]   ;;  %v531_v7 = vld [vmem:[%s613_s25 + $0x24] ss:$8 sps:$4 sm:$0xff]   ;;  %v533_v8 = vld [vmem:[%s613_s25 + $0x20] ss:$8 sps:$4 sm:$0xff]  }
  0x12   : > { %347 = vmatpush1.bf16.msra.mxu0 %v527_v4  ;;  %v534_v9 = vld [vmem:[%s613_s25 + $0x34] ss:$8 sps:$4 sm:$0xff]   ;;  %v536_v10 = vld [vmem:[%s613_s25 + $0x30] ss:$8 sps:$4 sm:$0xff]   ;;  %v537_v11 = vld [vmem:[%s613_s25 + $0x44] ss:$8 sps:$4 sm:$0xff]  }
  0x13   : > { %348 = vmatprep.subr.bf16.mxu0 %v528_v5  ;;  %v539_v12 = vld [vmem:[%s613_s25 + $0x40] ss:$8 sps:$4 sm:$0xff]   ;;  %v540_v13 = vld [vmem:[%s613_s25 + $0x54] ss:$8 sps:$4 sm:$0xff]   ;;  %v542_v14 = vld [vmem:[%s613_s25 + $0x50] ss:$8 sps:$4 sm:$0xff]  }
  0x14   : > { %v543_v15 = vld [vmem:[%s613_s25 + $0x64] ss:$8 sps:$4 sm:$0xff]   ;;  %v545_v16 = vld [vmem:[%s613_s25 + $0x60] ss:$8 sps:$4 sm:$0xff]   ;;  %v546_v17 = vld [vmem:[%s613_s25 + $0x74] ss:$8 sps:$4 sm:$0xff]  }
  0x15   : > { %v548_v18 = vld [vmem:[%s613_s25 + $0x70] ss:$8 sps:$4 sm:$0xff]  }
  0x16   : > { %349 = vmatpush1.bf16.msra.mxu0 %v530_v6 }
  0x17   : > { %350 = vmatprep.subr.bf16.mxu0 %v531_v7 }
  0x1a   : > { %351 = vmatpush1.bf16.msra.mxu0 %v533_v8 }
  0x1b   : > { %352 = vmatprep.subr.bf16.mxu0 %v534_v9 }
  0x1e   : > { %353 = vmatpush1.bf16.msra.mxu0 %v536_v10 }
  0x1f   : > { %354 = vmatprep.subr.bf16.mxu0 %v537_v11 }
  0x22   : > { %355 = vmatpush1.bf16.msra.mxu0 %v539_v12 }
  0x23   : > { %356 = vmatprep.subr.bf16.mxu0 %v540_v13 }
  0x26   : > { %357 = vmatpush1.bf16.msra.mxu0 %v542_v14 }
  0x27   : > { %358 = vmatprep.subr.bf16.mxu0 %v543_v15 }
  0x2a   : > { %359 = vmatpush1.bf16.msra.mxu0 %v545_v16 }
  0x2b   : > { %360 = vmatprep.subr.bf16.mxu0 %v546_v17 }
  0x2e   : > { %361 = vmatpush1.bf16.msra.mxu0 %v548_v18 }
  0x31   : > { %379 = vmatmul.mubr.bf16.vlgmr.msra.gmra.mrb[0].mxu0 %v549_v19 }
  0x86   : > { %v253_v20 = vpop.permute.xlu0 %252 }
  0x8a   : > { %v258_v23 = vpop.permute.xlu0 %257 }
 0x104   : > { %v380_v21 = vpop.f32.mrb[0].mxu0 }
 0x105   : > { %v381_v22 = vadd.f32 %v380_v21, %v253_v20  ;;  %v382_v24 = vpop.f32.mrb[1].mxu0 }
 0x106   : > { %v383_v25 = vadd.f32 %v382_v24, %v253_v20  ;;  %v384_v26 = vpop.f32.mrb[2].mxu0 }
 0x107   : > { %v386_v27 = vpop.f32.mrb[3].mxu0  ;;  %v385_v28 = vadd.f32 %v384_v26, %v258_v23 }
 0x108   : > { %v387_v29 = vadd.f32 %v386_v27, %v258_v23  ;;  %v389_v30 = vadd.f32 %v383_v25, %v381_v22 }
 0x10a   : > { %390 = vadd.xlane.f32.xlu1 %v389_v30  ;;  %v392_v31 = vadd.f32 %v387_v29, %v385_v28 }
 0x10e   : > { %393 = vadd.xlane.f32.xlu1 %v392_v31 }
 0x197   : > { %v391_v32 = vpop.xlane.xlu1 %390 }
 0x198   : > { %v396_v33 = vmul.f32 0.00390625, %v391_v32 }
 0x19a   : > { %v398_v34 = vsub.f32 %v381_v22, %v396_v33  ;;  %v399_v35 = vsub.f32 %v383_v25, %v396_v33 }
 0x19b   : > { %v394_v36 = vpop.xlane.xlu1 %393 }
 0x19c   : > { %v397_v37 = vmul.f32 0.00390625, %v394_v36  ;;  %v402_v38 = vmul.f32 %v398_v34, %v398_v34  ;;  %v403_v39 = vmul.f32 %v399_v35, %v399_v35 }
 0x19e   : > { %v400_v40 = vsub.f32 %v385_v28, %v397_v37  ;;  %v401_v41 = vsub.f32 %v387_v29, %v397_v37  ;;  %v406_v42 = vadd.f32 %v403_v39, %v402_v38 }
 0x1a0   : > { %407 = vadd.xlane.f32.xlu0 %v406_v42  ;;  %v404_v43 = vmul.f32 %v400_v40, %v400_v40  ;;  %v405_v44 = vmul.f32 %v401_v41, %v401_v41 }
 0x1a2   : > { %v409_v45 = vadd.f32 %v405_v44, %v404_v43 }
 0x1a4   : > { %410 = vadd.xlane.f32.xlu1 %v409_v45 }
 0x22d   : > { %v408_v46 = vpop.xlane.xlu0 %407 }
 0x22e   : > { %v412_v47 = vmul.f32 0.00390625, %v408_v46 }
 0x230   : > { %v414_v48 = vadd.f32 1e-05, %v412_v47 }
 0x231   : > { %v411_v49 = vpop.xlane.xlu1 %410 }
 0x232   : > { %550 = vrsqrt.f32 %v414_v48  ;;  %v413_v50 = vmul.f32 0.00390625, %v411_v49 }
 0x234   : > { %v415_v51 = vadd.f32 1e-05, %v413_v50 }
 0x236   : > { %552 = vrsqrt.f32 %v415_v51 }
 0x23c   : > { %v551_v52 = vpop.eup %550 }
 0x23d   : > { %v418_v53 = vmul.f32 %v551_v52, %v398_v34  ;;  %v419_v54 = vmul.f32 %v551_v52, %v399_v35 }
 0x23f   : > { %v422_v55 = vmax.f32 %v418_v53, 0.0  ;;  %v423_v56 = vmax.f32 %v419_v54, 0.0 }
 0x240   : > { %v553_v57 = vpop.eup %552 }
 0x241   : > { %426 = vst [vmem:[%s228_s6] sm:$0xff] %v422_v55  ;;  %427 = vst [vmem:[%s228_s6 + $0x8] sm:$0xff] %v423_v56  ;;  %v420_v58 = vmul.f32 %v553_v57, %v400_v40  ;;  %v421_v59 = vmul.f32 %v553_v57, %v401_v41 }
 0x243   : > { %v424_v60 = vmax.f32 %v420_v58, 0.0  ;;  %v425_v61 = vmax.f32 %v421_v59, 0.0 }
 0x245   : > { %428 = vst [vmem:[%s228_s6 + $0x10] sm:$0xff] %v424_v60  ;;  %429 = vst [vmem:[%s228_s6 + $0x18] sm:$0xff] %v425_v61 }
 0x246 PF: > { %s19_s18 = sadd.s32 1, %s560_s18  }
 0x247   : > { %p16_p4 = scmp.ge.s32.totalorder %s19_s18, 4  }
 0x249   :  { %18 = sbr.rel (!%p16_p4) target bundleno = 1 (0x1), region = 70 }

// kernel: adain_gen_forward.26
= control target key start
LH: loop header
LB: loop body
LE: loop exit
PB: predicated region body
PF: predicated region fallthrough
CT: control target
= control target key end

     0   :  { %s729_s18 = smov 0   ;;  %s804_s0 = inlined_call_operand.vmem [shape: bf16[2,256,64], index: 0, kind: input, shape index: {}]   ;;  %s805_s1 = inlined_call_operand.vmem [shape: bf16[32,256], index: 1, kind: input, shape index: {}]   ;;  %s806_s2 = inlined_call_operand.vmem [shape: f32[32,1], index: 2, kind: input, shape index: {}]   ;;  %s807_s3 = inlined_call_operand.<no memory space> [shape: f32[1,1,1], index: 3, kind: input, shape index: {}, may-alias: {3,4}]   ;;  %s808_s5 = inlined_call_operand.vmem [shape: f32[2,32,64], index: 5, kind: output, shape index: {}]   ;;  %s809_s4 = inlined_call_operand.<no memory space> [shape: f32[1,1,1], index: 4, kind: input, shape index: {}, may-alias: {3,4}]  }
   0x1 LB: > { %s572_s19 = sadd.s32 4294967295, %s696_s18   ;;  %p576_p0 = scmp.ge.s32.totalorder %s696_s18, 1  ;;  %s696_s18 = sphi %s729_s18, %s19_s18  }
   0x2   : > { %p191_p1 = scmp.lt.s32.totalorder %s696_s18, 3 }
   0x4   : > { %p192_p2 = pnand %p576_p0, %p191_p1 }
   0x5   : > { %p219_p3 = scmp.lt.s32.totalorder (!%p192_p2), %s572_s19, 1  ;;  %v678_v0 = vld [vmem:[%s805_s1 + $0x4] ss:$8 sps:$4 sm:$0xff] (!%p192_p2)   ;;  %v698_v1 = vmov (!%p192_p2), 0   ;;  %v681_v2 = vld [vmem:[%s805_s1 + $0x14] ss:$8 sps:$4 sm:$0xff] (!%p192_p2)  }
   0x6   : > { %195 = sbr.rel (%p192_p2) target bundleno = 586 (0x24a), region = 40  ;;  %658 = vset.pattern.permute.xlu0 (!%p192_p2), %v698_v1  ;;  %659 = vset.pattern.permute.xlu1 (!%p192_p2), %v698_v1  ;;  %v266_v3 = vld [vmem:[%s806_s2] sm:$0xff] (!%p192_p2)  ;;  %v268_v4 = vld [vmem:[%s806_s2 + $0x10] sm:$0xff] (!%p192_p2)  ;;  %v267_v5 = vld [vmem:[%s806_s2 + $0x8] sm:$0xff] (!%p192_p2)  ;;  %vm455_vm0 = vcmask (!%p192_p2), 523264  }
   0x7   : > { %438 = vmatprep.mubr.bf16.mxu0 (!%p192_p2), %v678_v0  ;;  %272 = vperm.xlu0 (!%p192_p2), %658, %v266_v3   ;;  %v269_v7 = vld [vmem:[%s806_s2 + $0x18] sm:$0xff] (!%p192_p2)  ;;  %v676_v23 = vld [vmem:[%s805_s1] ss:$8 sps:$4 sm:$0xff] (!%p192_p2)  }
   0x8   : > { %446 = vmatprep.mubr.bf16.mxu1 (!%p192_p2), %v681_v2  ;;  %282 = vperm.xlu1 (!%p192_p2), %659, %v268_v4   ;;  %v679_v24 = vld [vmem:[%s805_s1 + $0x10] ss:$8 sps:$4 sm:$0xff] (!%p192_p2)  }
   0xb   : > { %277 = vperm.xlu0 (!%p192_p2), %658, %v267_v5  }
   0xc   : > { %287 = vperm.xlu1 (!%p192_p2), %659, %v269_v7  }
   0xd   : > { %s811_s19 = smov (!%p219_p3, %s572_s19), 1 }
   0xe   : > { %s603_s26 = sshll.u32 %s811_s19, 7  ;;  %s604_s13 = sshll.u32 %s811_s19, 5 }
   0xf   : > { %s758_s6 = scalar_lea.vmem %s804_s0, %s603_s26  ;;  %s228_s16 = scalar_lea.vmem %s808_s5, %s604_s13 }
  0x10   : > { %v660_v6 = vld [vmem:[%s758_s6 + $0x40] sm:$0xff]   ;;  %v662_v9 = vld [vmem:[%s758_s6 + $0x48] sm:$0xff]   ;;  %v664_v11 = vld [vmem:[%s758_s6 + $0x50] sm:$0xff]  }
  0x11   : > { %v661_v8 = vld [vmem:[%s758_s6] sm:$0xff]   ;;  %605 = vmatprep.subr.bf16.mxu0 %v660_v6  ;;  %633 = vmatprep.subr.bf16.mxu1 %v660_v6  ;;  %v663_v10 = vld [vmem:[%s758_s6 + $0x8] sm:$0xff]   ;;  %v665_v12 = vld [vmem:[%s758_s6 + $0x10] sm:$0xff]  }
  0x12   : > { %606 = vmatpush3.bf16.msra.mxu0 %v661_v8  ;;  %641 = vmatpush3.bf16.msra.mxu1 %v661_v8  ;;  %v666_v13 = vld [vmem:[%s758_s6 + $0x58] sm:$0xff]   ;;  %v668_v15 = vld [vmem:[%s758_s6 + $0x60] sm:$0xff]   ;;  %v670_v17 = vld [vmem:[%s758_s6 + $0x68] sm:$0xff]  }
  0x13   : > { %607 = vmatprep.subr.bf16.mxu0 %v662_v9  ;;  %634 = vmatprep.subr.bf16.mxu1 %v662_v9  ;;  %v667_v14 = vld [vmem:[%s758_s6 + $0x18] sm:$0xff]   ;;  %v669_v16 = vld [vmem:[%s758_s6 + $0x20] sm:$0xff]   ;;  %v671_v18 = vld [vmem:[%s758_s6 + $0x28] sm:$0xff]  }
  0x14   : > { %v672_v19 = vld [vmem:[%s758_s6 + $0x70] sm:$0xff]   ;;  %v674_v21 = vld [vmem:[%s758_s6 + $0x78] sm:$0xff]  }
  0x15   : > { %v673_v20 = vld [vmem:[%s758_s6 + $0x30] sm:$0xff]   ;;  %v675_v22 = vld [vmem:[%s758_s6 + $0x38] sm:$0xff]  }
  0x16   : > { %608 = vmatpush3.bf16.msra.mxu0 %v663_v10  ;;  %642 = vmatpush3.bf16.msra.mxu1 %v663_v10 }
  0x17   : > { %609 = vmatprep.subr.bf16.mxu0 %v664_v11  ;;  %635 = vmatprep.subr.bf16.mxu1 %v664_v11 }
  0x1a   : > { %610 = vmatpush3.bf16.msra.mxu0 %v665_v12  ;;  %643 = vmatpush3.bf16.msra.mxu1 %v665_v12 }
  0x1b   : > { %611 = vmatprep.subr.bf16.mxu0 %v666_v13  ;;  %636 = vmatprep.subr.bf16.mxu1 %v666_v13 }
  0x1e   : > { %612 = vmatpush3.bf16.msra.mxu0 %v667_v14  ;;  %644 = vmatpush3.bf16.msra.mxu1 %v667_v14 }
  0x1f   : > { %613 = vmatprep.subr.bf16.mxu0 %v668_v15  ;;  %637 = vmatprep.subr.bf16.mxu1 %v668_v15 }
  0x22   : > { %614 = vmatpush3.bf16.msra.mxu0 %v669_v16  ;;  %645 = vmatpush3.bf16.msra.mxu1 %v669_v16 }
  0x23   : > { %615 = vmatprep.subr.bf16.mxu0 %v670_v17  ;;  %638 = vmatprep.subr.bf16.mxu1 %v670_v17 }
  0x26   : > { %616 = vmatpush3.bf16.msra.mxu0 %v671_v18  ;;  %646 = vmatpush3.bf16.msra.mxu1 %v671_v18 }
  0x27   : > { %617 = vmatprep.subr.bf16.mxu0 %v672_v19  ;;  %639 = vmatprep.subr.bf16.mxu1 %v672_v19 }
  0x2a   : > { %618 = vmatpush3.bf16.msra.mxu0 %v673_v20  ;;  %647 = vmatpush3.bf16.msra.mxu1 %v673_v20 }
  0x2b   : > { %619 = vmatprep.subr.bf16.mxu0 %v674_v21  ;;  %640 = vmatprep.subr.bf16.mxu1 %v674_v21 }
  0x2e   : > { %620 = vmatpush3.bf16.msra.mxu0 %v675_v22  ;;  %648 = vmatpush3.bf16.msra.mxu1 %v675_v22 }
  0x31   : > { %439 = vmatmul.mubr.bf16.vlgmr.msra.gmra.mrb[0].mxu0 %v676_v23  ;;  %447 = vmatmul.mubr.bf16.vlgmr.msra.gmra.mrb[0].mxu1 %v679_v24 }
  0x86   : > { %v273_v25 = vpop.permute.xlu0 %272 }
  0x87   : > { %v283_v26 = vpop.permute.xlu1 %282 }
  0x8a   : > { %v278_v41 = vpop.permute.xlu0 %277 }
  0x8b   : > { %v288_v44 = vpop.permute.xlu1 %287 }
 0x104   : > { %v621_v27 = vpop.f32.mrb[0].mxu0  ;;  %v627_v28 = vpop.f32.mrb[0].mxu1 }
 0x105   : > { %v622_v29 = vpop.f32.mrb[1].mxu0  ;;  %v628_v30 = vpop.f32.mrb[1].mxu1 }
 0x106   : > { %v623_v31 = vadd.f32 %v622_v29, %v621_v27  ;;  %v624_v32 = vpop.f32.mrb[2].mxu0  ;;  %v629_v33 = vadd.f32 %v628_v30, %v627_v28  ;;  %v630_v34 = vpop.f32.mrb[2].mxu1 }
 0x107   : > { %v625_v35 = vpop.f32.mrb[3].mxu0  ;;  %v631_v36 = vpop.f32.mrb[3].mxu1 }
 0x108   : > { %v626_v37 = vadd.f32 %v625_v35, %v624_v32  ;;  %v632_v38 = vadd.f32 %v631_v36, %v630_v34  ;;  %v441_v39 = vadd.f32 %v623_v31, %v273_v25  ;;  %v449_v40 = vadd.f32 %v629_v33, %v283_v26 }
 0x10a   : > { %v456_v42 = vsel %vm455_vm0, %v441_v39, 0.0  ;;  %v444_v43 = vadd.f32 %v626_v37, %v278_v41  ;;  %v462_v46 = vsel %vm455_vm0, %v449_v40, 0.0  ;;  %v452_v47 = vadd.f32 %v632_v38, %v288_v44 }
 0x10b   : > { %457 = vadd.xlane.f32.xlu0 %v456_v42 }
 0x10c   : > { %v459_v45 = vsel %vm455_vm0, %v444_v43, 0.0  ;;  %v465_v48 = vsel %vm455_vm0, %v452_v47, 0.0 }
 0x10d   : > { %460 = vadd.xlane.f32.xlu1 %v459_v45 }
 0x10f   : > { %463 = vadd.xlane.f32.xlu0 %v462_v46 }
 0x113   : > { %466 = vadd.xlane.f32.xlu0 %v465_v48 }
 0x198   : > { %v458_v49 = vpop.xlane.xlu0 %457 }
 0x199   : > { %v469_v50 = vmul.f32 0.015625, %v458_v49 }
 0x19a   : > { %v461_v51 = vpop.xlane.xlu1 %460 }
 0x19b   : > { %v473_v52 = vsub.f32 %v441_v39, %v469_v50  ;;  %v470_v53 = vmul.f32 0.015625, %v461_v51 }
 0x19c   : > { %v464_v54 = vpop.xlane.xlu0 %463 }
 0x19d   : > { %v474_v55 = vsub.f32 %v444_v43, %v470_v53  ;;  %v471_v56 = vmul.f32 0.015625, %v464_v54  ;;  %v477_v57 = vmul.f32 %v473_v52, %v473_v52 }
 0x19f   : > { %v475_v58 = vsub.f32 %v449_v40, %v471_v56  ;;  %v481_v59 = vsel %vm455_vm0, %v477_v57, 0.0  ;;  %v478_v60 = vmul.f32 %v474_v55, %v474_v55 }
 0x1a0   : > { %482 = vadd.xlane.f32.xlu1 %v481_v59  ;;  %v467_v61 = vpop.xlane.xlu0 %466 }
 0x1a1   : > { %v472_v62 = vmul.f32 0.015625, %v467_v61  ;;  %v484_v63 = vsel %vm455_vm0, %v478_v60, 0.0  ;;  %v479_v0 = vmul.f32 %v475_v58, %v475_v58 }
 0x1a2   : > { %485 = vadd.xlane.f32.xlu0 %v484_v63 }
 0x1a3   : > { %v476_v1 = vsub.f32 %v452_v47, %v472_v62  ;;  %v487_v2 = vsel %vm455_vm0, %v479_v0, 0.0 }
 0x1a4   : > { %488 = vadd.xlane.f32.xlu1 %v487_v2 }
 0x1a5   : > { %v480_v3 = vmul.f32 %v476_v1, %v476_v1 }
 0x1a7   : > { %v490_v4 = vsel %vm455_vm0, %v480_v3, 0.0 }
 0x1a8   : > { %491 = vadd.xlane.f32.xlu0 %v490_v4 }
 0x22d   : > { %v483_v5 = vpop.xlane.xlu1 %482 }
 0x22e   : > { %v493_v6 = vmul.f32 0.015625, %v483_v5 }
 0x22f   : > { %v486_v7 = vpop.xlane.xlu0 %485 }
 0x230   : > { %v497_v8 = vadd.f32 1e-05, %v493_v6  ;;  %v494_v9 = vmul.f32 0.015625, %v486_v7 }
 0x231   : > { %v489_v10 = vpop.xlane.xlu1 %488 }
 0x232   : > { %682 = vrsqrt.f32 %v497_v8  ;;  %v498_v11 = vadd.f32 1e-05, %v494_v9  ;;  %v495_v12 = vmul.f32 0.015625, %v489_v10 }
 0x234   : > { %684 = vrsqrt.f32 %v498_v11  ;;  %v499_v13 = vadd.f32 1e-05, %v495_v12 }
 0x235   : > { %v492_v14 = vpop.xlane.xlu0 %491 }
 0x236   : > { %686 = vrsqrt.f32 %v499_v13  ;;  %v496_v15 = vmul.f32 0.015625, %v492_v14 }
 0x238   : > { %v500_v16 = vadd.f32 1e-05, %v496_v15 }
 0x23a   : > { %688 = vrsqrt.f32 %v500_v16 }
 0x23c   : > { %v683_v17 = vpop.eup %682 }
 0x23d   : > { %v505_v18 = vmul.f32 %v683_v17, %v473_v52 }
 0x23e   : > { %v685_v19 = vpop.eup %684 }
 0x23f   : > { %v509_v20 = vmax.f32 %v505_v18, 0.0  ;;  %v506_v21 = vmul.f32 %v685_v19, %v474_v55 }
 0x240   : > { %v687_v22 = vpop.eup %686 }
 0x241   : > { %513 = vst.msk [vmem:[%s228_s16] sm:$0xff] %vm455_vm0, %v509_v20  ;;  %v510_v23 = vmax.f32 %v506_v21, 0.0  ;;  %v507_v24 = vmul.f32 %v687_v22, %v475_v58 }
 0x243   : > { %514 = vst.msk [vmem:[%s228_s16 + $0x8] sm:$0xff] %vm455_vm0, %v510_v23  ;;  %v511_v25 = vmax.f32 %v507_v24, 0.0 }
 0x244   : > { %v689_v26 = vpop.eup %688 }
 0x245   : > { %515 = vst.msk [vmem:[%s228_s16 + $0x10] sm:$0xff] %vm455_vm0, %v511_v25  ;;  %v508_v27 = vmul.f32 %v689_v26, %v476_v1 }
 0x247   : > { %v512_v28 = vmax.f32 %v508_v27, 0.0 }
 0x249   : > { %516 = vst.msk [vmem:[%s228_s16 + $0x18] sm:$0xff] %vm455_vm0, %v512_v28 }
 0x24a PF: > { %s19_s18 = sadd.s32 1, %s696_s18  }
 0x24b   : > { %p16_p4 = scmp.ge.s32.totalorder %s19_s18, 4  }
 0x24d   :  { %18 = sbr.rel (!%p16_p4) target bundleno = 1 (0x1), region = 70 }

// kernel: adain_gen_forward.27
= control target key start
LH: loop header
LB: loop body
LE: loop exit
PB: predicated region body
PF: predicated region fallthrough
CT: control target
= control target key end

     0   :  { %s820_s18 = smov 0   ;;  %s905_s0 = inlined_call_operand.vmem [shape: bf16[2,288,64], index: 0, kind: input, shape index: {}]   ;;  %s906_s1 = inlined_call_operand.vmem [shape: bf16[32,288], index: 1, kind: input, shape index: {}]   ;;  %s907_s2 = inlined_call_operand.vmem [shape: f32[32,1], index: 2, kind: input, shape index: {}]   ;;  %s908_s3 = inlined_call_operand.<no memory space> [shape: f32[1,1,1], index: 3, kind: input, shape index: {}, may-alias: {3,4}]   ;;  %s909_s5 = inlined_call_operand.vmem [shape: f32[2,32,64], index: 5, kind: output, shape index: {}]   ;;  %s910_s4 = inlined_call_operand.<no memory space> [shape: f32[1,1,1], index: 4, kind: input, shape index: {}, may-alias: {3,4}]  }
   0x1 LB: > { %s658_s19 = sadd.s32 4294967295, %s787_s18   ;;  %p662_p0 = scmp.ge.s32.totalorder %s787_s18, 1  ;;  %s787_s18 = sphi %s820_s18, %s19_s18  }
   0x2   : > { %p191_p1 = scmp.lt.s32.totalorder %s787_s18, 3 }
   0x4   : > { %p192_p2 = pnand %p662_p0, %p191_p1 }
   0x5   : > { %p219_p3 = scmp.lt.s32.totalorder (!%p192_p2), %s658_s19, 1  ;;  %vm436_vm0 = vcmask (!%p192_p2), 261120   ;;  %v766_v0 = vld [vmem:[%s906_s1 + $0x4] ss:$12 sps:$4 sm:$0xff] (!%p192_p2)   ;;  %v768_v1 = vld [vmem:[%s906_s1 + $0x8] ss:$12 sps:$4 sm:$0xff] (!%p192_p2)  }
   0x6   : > { %195 = sbr.rel (%p192_p2) target bundleno = 593 (0x251), region = 40  ;;  %475 = vmatprep.mubr.bf16.mxu0 (!%p192_p2), %v766_v0  ;;  %731 = vmatprep.mubr.msk.bf16.mxu1 (!%p192_p2), %vm436_vm0, %v768_v1  ;;  %v789_v2 = vmov (!%p192_p2), 0   ;;  %v274_v3 = vld [vmem:[%s907_s2] sm:$0xff] (!%p192_p2)  ;;  %v276_v4 = vld [vmem:[%s907_s2 + $0x10] sm:$0xff] (!%p192_p2)  ;;  %v275_v5 = vld [vmem:[%s907_s2 + $0x8] sm:$0xff] (!%p192_p2)  ;;  %vm541_vm1 = vcmask (!%p192_p2), 523264  }
   0x7   : > { %745 = vset.pattern.permute.xlu0 (!%p192_p2), %v789_v2  ;;  %746 = vset.pattern.permute.xlu1 (!%p192_p2), %v789_v2  ;;  %v277_v6 = vld [vmem:[%s907_s2 + $0x18] sm:$0xff] (!%p192_p2)  ;;  %v769_v22 = vld [vmem:[%s906_s1 + $0x20] ss:$12 sps:$4 sm:$0xff] (!%p192_p2)  }
   0x8   : > { %280 = vperm.xlu0 (!%p192_p2), %745, %v274_v3   ;;  %290 = vperm.xlu1 (!%p192_p2), %746, %v276_v4   ;;  %v764_v26 = vld [vmem:[%s906_s1] ss:$12 sps:$4 sm:$0xff] (!%p192_p2)   ;;  %v770_v27 = vld [vmem:[%s906_s1 + $0x1c] ss:$12 sps:$4 sm:$0xff] (!%p192_p2)   ;;  %v772_v28 = vld [vmem:[%s906_s1 + $0x18] ss:$12 sps:$4 sm:$0xff] (!%p192_p2)  }
   0xc   : > { %285 = vperm.xlu0 (!%p192_p2), %745, %v275_v5   ;;  %295 = vperm.xlu1 (!%p192_p2), %746, %v277_v6  }
   0xd   : > { %s912_s19 = smov (!%p219_p3, %s658_s19), 1 }
   0xe   : > { %s735_s22 = smul.u32 144, %s912_s19  ;;  %s694_s17 = sshll.u32 %s912_s19, 5 }
   0xf   : > { %s228_s4 = scalar_lea.vmem %s909_s5, %s694_s17 }
  0x10   : > { %s847_s29 = scalar_lea.vmem %s905_s0, %s735_s22 }
  0x11   : > { %v747_v7 = vld [vmem:[%s847_s29 + $0x40] sm:$0xff]   ;;  %v749_v9 = vld [vmem:[%s847_s29 + $0x48] sm:$0xff]   ;;  %v751_v11 = vld [vmem:[%s847_s29 + $0x50] sm:$0xff]  }
  0x12   : > { %v748_v8 = vld [vmem:[%s847_s29] sm:$0xff]   ;;  %695 = vmatprep.subr.bf16.mxu0 %v747_v7  ;;  %v750_v10 = vld [vmem:[%s847_s29 + $0x8] sm:$0xff]   ;;  %v752_v12 = vld [vmem:[%s847_s29 + $0x10] sm:$0xff]  }
  0x13   : > { %696 = vmatpush3.bf16.msra.mxu0 %v748_v8  ;;  %v753_v13 = vld [vmem:[%s847_s29 + $0x58] sm:$0xff]   ;;  %v755_v15 = vld [vmem:[%s847_s29 + $0x60] sm:$0xff]   ;;  %v757_v18 = vld [vmem:[%s847_s29 + $0x68] sm:$0xff]  }
  0x14   : > { %697 = vmatprep.subr.bf16.mxu0 %v749_v9  ;;  %v754_v14 = vld [vmem:[%s847_s29 + $0x18] sm:$0xff]   ;;  %v756_v16 = vld [vmem:[%s847_s29 + $0x20] sm:$0xff]   ;;  %v767_v19 = vld [vmem:[%s847_s29 + $0x88] sm:$0xff]  }
  0x15   : > { %v762_v17 = vld [vmem:[%s847_s29 + $0x80] sm:$0xff]   ;;  %v758_v20 = vld [vmem:[%s847_s29 + $0x28] sm:$0xff]   ;;  %v759_v21 = vld [vmem:[%s847_s29 + $0x70] sm:$0xff]  }
  0x16   : > { %727 = vmatprep.subr.bf16.mxu1 %v762_v17  ;;  %v760_v23 = vld [vmem:[%s847_s29 + $0x30] sm:$0xff]   ;;  %v761_v24 = vld [vmem:[%s847_s29 + $0x78] sm:$0xff]  }
  0x17   : > { %698 = vmatpush3.bf16.msra.mxu0 %v750_v10  ;;  %728 = vmatpush3.bf16.msra.mxu1 %v762_v17  ;;  %v763_v25 = vld [vmem:[%s847_s29 + $0x38] sm:$0xff]  }
  0x18   : > { %699 = vmatprep.subr.bf16.mxu0 %v751_v11  ;;  %729 = vmatprep.subr.bf16.mxu1 %v767_v19 }
  0x1b   : > { %700 = vmatpush3.bf16.msra.mxu0 %v752_v12  ;;  %730 = vmatpush3.bf16.msra.mxu1 %v767_v19 }
  0x1c   : > { %701 = vmatprep.subr.bf16.mxu0 %v753_v13 }
  0x1e   : > { %732 = vmatmul.mubr.msk.bf16.vlgmr.msra.gmra.mrb[0].mxu1 %vm436_vm0, %v769_v22 }
  0x1f   : > { %702 = vmatpush3.bf16.msra.mxu0 %v754_v14 }
  0x20   : > { %703 = vmatprep.subr.bf16.mxu0 %v755_v15 }
  0x23   : > { %704 = vmatpush3.bf16.msra.mxu0 %v756_v16 }
  0x24   : > { %705 = vmatprep.subr.bf16.mxu0 %v757_v18 }
  0x27   : > { %706 = vmatpush3.bf16.msra.mxu0 %v758_v20 }
  0x28   : > { %707 = vmatprep.subr.bf16.mxu0 %v759_v21 }
  0x2b   : > { %708 = vmatpush3.bf16.msra.mxu0 %v760_v23 }
  0x2c   : > { %709 = vmatprep.subr.bf16.mxu0 %v761_v24 }
  0x2f   : > { %710 = vmatpush3.bf16.msra.mxu0 %v763_v25 }
  0x32   : > { %476 = vmatmul.mubr.bf16.vlgmr.msra.gmra.mrb[0].mxu0 %v764_v26 }
  0x33   : > { %483 = vmatprep.mubr.bf16.mxu0 %v770_v27 }
  0x3a   : > { %484 = vmatmul.mubr.bf16.gmra.mrb[4].mxu0 %v772_v28 }
  0x87   : > { %v281_v33 = vpop.permute.xlu0 %280  ;;  %v291_v44 = vpop.permute.xlu1 %290 }
  0x8b   : > { %v286_v39 = vpop.permute.xlu0 %285  ;;  %v296_v55 = vpop.permute.xlu1 %295 }
  0xf1   : > { %v733_v29 = vpop.f32.mrb[0].mxu1 }
  0xf2   : > { %v526_v30 = vpop.f32.mrb[1].mxu1 }
  0xf3   : > { %v734_v31 = vpop.f32.mrb[2].mxu1 }
  0xf4   : > { %v529_v32 = vpop.f32.mrb[3].mxu1 }
 0x105   : > { %v711_v34 = vpop.f32.mrb[0].mxu0 }
 0x106   : > { %v712_v35 = vpop.f32.mrb[1].mxu0 }
 0x107   : > { %v713_v36 = vadd.f32 %v712_v35, %v711_v34  ;;  %v714_v37 = vpop.f32.mrb[2].mxu0 }
 0x108   : > { %v715_v38 = vpop.f32.mrb[3].mxu0 }
 0x109   : > { %v716_v40 = vadd.f32 %v715_v38, %v714_v37  ;;  %v478_v41 = vadd.f32 %v713_v36, %v281_v33 }
 0x10b   : > { %v481_v42 = vadd.f32 %v716_v40, %v286_v39  ;;  %v527_v43 = vadd.f32 %v526_v30, %v478_v41 }
 0x10d   : > { %v530_v45 = vadd.f32 %v529_v32, %v481_v42  ;;  %v717_v46 = vpop.f32.mrb[4].mxu0  ;;  %v542_v47 = vsel %vm541_vm1, %v527_v43, 0.0 }
 0x10e   : > { %v718_v48 = vpop.f32.mrb[5].mxu0  ;;  %543 = vadd.xlane.f32.xlu0 %v542_v47 }
 0x10f   : > { %v719_v49 = vadd.f32 %v718_v48, %v717_v46  ;;  %v720_v50 = vpop.f32.mrb[6].mxu0  ;;  %v545_v51 = vsel %vm541_vm1, %v530_v45, 0.0 }
 0x110   : > { %v721_v52 = vpop.f32.mrb[7].mxu0  ;;  %546 = vadd.xlane.f32.xlu1 %v545_v51 }
 0x111   : > { %v486_v53 = vadd.f32 %v719_v49, %v291_v44  ;;  %v722_v54 = vadd.f32 %v721_v52, %v720_v50 }
 0x113   : > { %v489_v56 = vadd.f32 %v722_v54, %v296_v55  ;;  %v535_v57 = vadd.f32 %v733_v29, %v486_v53 }
 0x115   : > { %v548_v58 = vsel %vm541_vm1, %v535_v57, 0.0  ;;  %v538_v59 = vadd.f32 %v734_v31, %v489_v56 }
 0x116   : > { %549 = vadd.xlane.f32.xlu0 %v548_v58 }
 0x117   : > { %v551_v60 = vsel %vm541_vm1, %v538_v59, 0.0 }
 0x11a   : > { %552 = vadd.xlane.f32.xlu0 %v551_v60 }
 0x19b   : > { %v544_v61 = vpop.xlane.xlu0 %543 }
 0x19c   : > { %v555_v62 = vmul.f32 0.015625, %v544_v61 }
 0x19d   : > { %v547_v63 = vpop.xlane.xlu1 %546 }
 0x19e   : > { %v559_v0 = vsub.f32 %v527_v43, %v555_v62  ;;  %v556_v1 = vmul.f32 0.015625, %v547_v63 }
 0x1a0   : > { %v560_v2 = vsub.f32 %v530_v45, %v556_v1  ;;  %v563_v3 = vmul.f32 %v559_v0, %v559_v0 }
 0x1a2   : > { %v567_v4 = vsel %vm541_vm1, %v563_v3, 0.0  ;;  %v564_v5 = vmul.f32 %v560_v2, %v560_v2 }
 0x1a3   : > { %568 = vadd.xlane.f32.xlu1 %v567_v4  ;;  %v550_v6 = vpop.xlane.xlu0 %549 }
 0x1a4   : > { %v557_v7 = vmul.f32 0.015625, %v550_v6  ;;  %v570_v8 = vsel %vm541_vm1, %v564_v5, 0.0 }
 0x1a5   : > { %571 = vadd.xlane.f32.xlu0 %v570_v8 }
 0x1a6   : > { %v561_v9 = vsub.f32 %v535_v57, %v557_v7 }
 0x1a7   : > { %v553_v10 = vpop.xlane.xlu0 %552 }
 0x1a8   : > { %v558_v11 = vmul.f32 0.015625, %v553_v10  ;;  %v565_v12 = vmul.f32 %v561_v9, %v561_v9 }
 0x1aa   : > { %v562_v13 = vsub.f32 %v538_v59, %v558_v11  ;;  %v573_v14 = vsel %vm541_vm1, %v565_v12, 0.0 }
 0x1ab   : > { %574 = vadd.xlane.f32.xlu1 %v573_v14 }
 0x1ac   : > { %v566_v15 = vmul.f32 %v562_v13, %v562_v13 }
 0x1ae   : > { %v576_v16 = vsel %vm541_vm1, %v566_v15, 0.0 }
 0x1af   : > { %577 = vadd.xlane.f32.xlu0 %v576_v16 }
 0x230   : > { %v569_v17 = vpop.xlane.xlu1 %568 }
 0x231   : > { %v579_v18 = vmul.f32 0.015625, %v569_v17 }
 0x232   : > { %v572_v19 = vpop.xlane.xlu0 %571 }
 0x233   : > { %v583_v20 = vadd.f32 1e-05, %v579_v18  ;;  %v580_v21 = vmul.f32 0.015625, %v572_v19 }
 0x235   : > { %773 = vrsqrt.f32 %v583_v20  ;;  %v584_v22 = vadd.f32 1e-05, %v580_v21 }
 0x237   : > { %775 = vrsqrt.f32 %v584_v22 }
 0x238   : > { %v575_v23 = vpop.xlane.xlu1 %574 }
 0x239   : > { %v581_v24 = vmul.f32 0.015625, %v575_v23 }
 0x23b   : > { %v585_v25 = vadd.f32 1e-05, %v581_v24 }
 0x23c   : > { %v578_v26 = vpop.xlane.xlu0 %577 }
 0x23d   : > { %777 = vrsqrt.f32 %v585_v25  ;;  %v582_v27 = vmul.f32 0.015625, %v578_v26 }
 0x23f   : > { %v774_v28 = vpop.eup %773  ;;  %v586_v29 = vadd.f32 1e-05, %v582_v27 }
 0x240   : > { %v591_v30 = vmul.f32 %v774_v28, %v559_v0 }
 0x241   : > { %v776_v31 = vpop.eup %775  ;;  %779 = vrsqrt.f32 %v586_v29 }
 0x242   : > { %v595_v32 = vmax.f32 %v591_v30, 0.0  ;;  %v592_v33 = vmul.f32 %v776_v31, %v560_v2 }
 0x244   : > { %599 = vst.msk [vmem:[%s228_s4] sm:$0xff] %vm541_vm1, %v595_v32  ;;  %v596_v34 = vmax.f32 %v592_v33, 0.0 }
 0x246   : > { %600 = vst.msk [vmem:[%s228_s4 + $0x8] sm:$0xff] %vm541_vm1, %v596_v34 }
 0x247   : > { %v778_v35 = vpop.eup %777 }
 0x248   : > { %v593_v36 = vmul.f32 %v778_v35, %v561_v9 }
 0x24a   : > { %v597_v37 = vmax.f32 %v593_v36, 0.0 }
 0x24b   : > { %v780_v38 = vpop.eup %779 }
 0x24c   : > { %601 = vst.msk [vmem:[%s228_s4 + $0x10] sm:$0xff] %vm541_vm1, %v597_v37  ;;  %v594_v39 = vmul.f32 %v780_v38, %v562_v13 }
 0x24e   : > { %v598_v40 = vmax.f32 %v594_v39, 0.0 }
 0x250   : > { %602 = vst.msk [vmem:[%s228_s4 + $0x18] sm:$0xff] %vm541_vm1, %v598_v40 }
 0x251 PF: > { %s19_s18 = sadd.s32 1, %s787_s18  }
 0x252   : > { %p16_p4 = scmp.ge.s32.totalorder %s19_s18, 4  }
 0x254   :  { %18 = sbr.rel (!%p16_p4) target bundleno = 1 (0x1), region = 70 }

// kernel: adain_gen_forward.28
= control target key start
LH: loop header
LB: loop body
LE: loop exit
PB: predicated region body
PF: predicated region fallthrough
CT: control target
= control target key end

     0   :  { %s816_s18 = smov 0   ;;  %s901_s0 = inlined_call_operand.vmem [shape: bf16[2,288,64], index: 0, kind: input, shape index: {}]   ;;  %s902_s1 = inlined_call_operand.vmem [shape: bf16[32,288], index: 1, kind: input, shape index: {}]   ;;  %s903_s2 = inlined_call_operand.vmem [shape: f32[32,1], index: 2, kind: input, shape index: {}]   ;;  %s904_s3 = inlined_call_operand.<no memory space> [shape: f32[1,1,1], index: 3, kind: input, shape index: {}, may-alias: {3,4}]   ;;  %s905_s5 = inlined_call_operand.vmem [shape: f32[2,32,64], index: 5, kind: output, shape index: {}]   ;;  %s906_s4 = inlined_call_operand.<no memory space> [shape: f32[1,1,1], index: 4, kind: input, shape index: {}, may-alias: {3,4}]  }
   0x1 LB: > { %s654_s19 = sadd.s32 4294967295, %s783_s18   ;;  %p658_p0 = scmp.ge.s32.totalorder %s783_s18, 1  ;;  %s783_s18 = sphi %s816_s18, %s19_s18  }
   0x2   : > { %p191_p1 = scmp.lt.s32.totalorder %s783_s18, 3 }
   0x4   : > { %p192_p2 = pnand %p658_p0, %p191_p1 }
   0x5   : > { %p219_p3 = scmp.lt.s32.totalorder (!%p192_p2), %s654_s19, 1  ;;  %vm436_vm0 = vcmask (!%p192_p2), 261120   ;;  %v762_v0 = vld [vmem:[%s902_s1 + $0x4] ss:$12 sps:$4 sm:$0xff] (!%p192_p2)   ;;  %v764_v1 = vld [vmem:[%s902_s1 + $0x8] ss:$12 sps:$4 sm:$0xff] (!%p192_p2)  }
   0x6   : > { %195 = sbr.rel (%p192_p2) target bundleno = 591 (0x24f), region = 40  ;;  %475 = vmatprep.mubr.bf16.mxu0 (!%p192_p2), %v762_v0  ;;  %727 = vmatprep.mubr.msk.bf16.mxu1 (!%p192_p2), %vm436_vm0, %v764_v1  ;;  %v785_v2 = vmov (!%p192_p2), 0   ;;  %v274_v3 = vld [vmem:[%s903_s2] sm:$0xff] (!%p192_p2)  ;;  %v276_v4 = vld [vmem:[%s903_s2 + $0x10] sm:$0xff] (!%p192_p2)  ;;  %v275_v5 = vld [vmem:[%s903_s2 + $0x8] sm:$0xff] (!%p192_p2)  ;;  %vm541_vm1 = vcmask (!%p192_p2), 523264  }
   0x7   : > { %741 = vset.pattern.permute.xlu0 (!%p192_p2), %v785_v2  ;;  %742 = vset.pattern.permute.xlu1 (!%p192_p2), %v785_v2  ;;  %v277_v6 = vld [vmem:[%s903_s2 + $0x18] sm:$0xff] (!%p192_p2)  ;;  %v765_v22 = vld [vmem:[%s902_s1 + $0x20] ss:$12 sps:$4 sm:$0xff] (!%p192_p2)  }
   0x8   : > { %280 = vperm.xlu0 (!%p192_p2), %741, %v274_v3   ;;  %290 = vperm.xlu1 (!%p192_p2), %742, %v276_v4   ;;  %v760_v26 = vld [vmem:[%s902_s1] ss:$12 sps:$4 sm:$0xff] (!%p192_p2)   ;;  %v766_v27 = vld [vmem:[%s902_s1 + $0x1c] ss:$12 sps:$4 sm:$0xff] (!%p192_p2)   ;;  %v768_v28 = vld [vmem:[%s902_s1 + $0x18] ss:$12 sps:$4 sm:$0xff] (!%p192_p2)  }
   0xc   : > { %285 = vperm.xlu0 (!%p192_p2), %741, %v275_v5   ;;  %295 = vperm.xlu1 (!%p192_p2), %742, %v277_v6  }
   0xd   : > { %s908_s19 = smov (!%p219_p3, %s654_s19), 1 }
   0xe   : > { %s731_s22 = smul.u32 144, %s908_s19  ;;  %s690_s17 = sshll.u32 %s908_s19, 5 }
   0xf   : > { %s228_s4 = scalar_lea.vmem %s905_s5, %s690_s17 }
  0x10   : > { %s843_s29 = scalar_lea.vmem %s901_s0, %s731_s22 }
  0x11   : > { %v743_v7 = vld [vmem:[%s843_s29 + $0x40] sm:$0xff]   ;;  %v745_v9 = vld [vmem:[%s843_s29 + $0x48] sm:$0xff]   ;;  %v747_v11 = vld [vmem:[%s843_s29 + $0x50] sm:$0xff]  }
  0x12   : > { %v744_v8 = vld [vmem:[%s843_s29] sm:$0xff]   ;;  %691 = vmatprep.subr.bf16.mxu0 %v743_v7  ;;  %v746_v10 = vld [vmem:[%s843_s29 + $0x8] sm:$0xff]   ;;  %v748_v12 = vld [vmem:[%s843_s29 + $0x10] sm:$0xff]  }
  0x13   : > { %692 = vmatpush3.bf16.msra.mxu0 %v744_v8  ;;  %v749_v13 = vld [vmem:[%s843_s29 + $0x58] sm:$0xff]   ;;  %v751_v15 = vld [vmem:[%s843_s29 + $0x60] sm:$0xff]   ;;  %v753_v18 = vld [vmem:[%s843_s29 + $0x68] sm:$0xff]  }
  0x14   : > { %693 = vmatprep.subr.bf16.mxu0 %v745_v9  ;;  %v750_v14 = vld [vmem:[%s843_s29 + $0x18] sm:$0xff]   ;;  %v752_v16 = vld [vmem:[%s843_s29 + $0x20] sm:$0xff]   ;;  %v763_v19 = vld [vmem:[%s843_s29 + $0x88] sm:$0xff]  }
  0x15   : > { %v758_v17 = vld [vmem:[%s843_s29 + $0x80] sm:$0xff]   ;;  %v754_v20 = vld [vmem:[%s843_s29 + $0x28] sm:$0xff]   ;;  %v755_v21 = vld [vmem:[%s843_s29 + $0x70] sm:$0xff]  }
  0x16   : > { %723 = vmatprep.subr.bf16.mxu1 %v758_v17  ;;  %v756_v23 = vld [vmem:[%s843_s29 + $0x30] sm:$0xff]   ;;  %v757_v24 = vld [vmem:[%s843_s29 + $0x78] sm:$0xff]  }
  0x17   : > { %694 = vmatpush3.bf16.msra.mxu0 %v746_v10  ;;  %724 = vmatpush3.bf16.msra.mxu1 %v758_v17  ;;  %v759_v25 = vld [vmem:[%s843_s29 + $0x38] sm:$0xff]  }
  0x18   : > { %695 = vmatprep.subr.bf16.mxu0 %v747_v11  ;;  %725 = vmatprep.subr.bf16.mxu1 %v763_v19 }
  0x1b   : > { %696 = vmatpush3.bf16.msra.mxu0 %v748_v12  ;;  %726 = vmatpush3.bf16.msra.mxu1 %v763_v19 }
  0x1c   : > { %697 = vmatprep.subr.bf16.mxu0 %v749_v13 }
  0x1e   : > { %728 = vmatmul.mubr.msk.bf16.vlgmr.msra.gmra.mrb[0].mxu1 %vm436_vm0, %v765_v22 }
  0x1f   : > { %698 = vmatpush3.bf16.msra.mxu0 %v750_v14 }
  0x20   : > { %699 = vmatprep.subr.bf16.mxu0 %v751_v15 }
  0x23   : > { %700 = vmatpush3.bf16.msra.mxu0 %v752_v16 }
  0x24   : > { %701 = vmatprep.subr.bf16.mxu0 %v753_v18 }
  0x27   : > { %702 = vmatpush3.bf16.msra.mxu0 %v754_v20 }
  0x28   : > { %703 = vmatprep.subr.bf16.mxu0 %v755_v21 }
  0x2b   : > { %704 = vmatpush3.bf16.msra.mxu0 %v756_v23 }
  0x2c   : > { %705 = vmatprep.subr.bf16.mxu0 %v757_v24 }
  0x2f   : > { %706 = vmatpush3.bf16.msra.mxu0 %v759_v25 }
  0x32   : > { %476 = vmatmul.mubr.bf16.vlgmr.msra.gmra.mrb[0].mxu0 %v760_v26 }
  0x33   : > { %483 = vmatprep.mubr.bf16.mxu0 %v766_v27 }
  0x3a   : > { %484 = vmatmul.mubr.bf16.gmra.mrb[4].mxu0 %v768_v28 }
  0x87   : > { %v281_v33 = vpop.permute.xlu0 %280  ;;  %v291_v44 = vpop.permute.xlu1 %290 }
  0x8b   : > { %v286_v39 = vpop.permute.xlu0 %285  ;;  %v296_v55 = vpop.permute.xlu1 %295 }
  0xf1   : > { %v729_v29 = vpop.f32.mrb[0].mxu1 }
  0xf2   : > { %v526_v30 = vpop.f32.mrb[1].mxu1 }
  0xf3   : > { %v730_v31 = vpop.f32.mrb[2].mxu1 }
  0xf4   : > { %v529_v32 = vpop.f32.mrb[3].mxu1 }
 0x105   : > { %v707_v34 = vpop.f32.mrb[0].mxu0 }
 0x106   : > { %v708_v35 = vpop.f32.mrb[1].mxu0 }
 0x107   : > { %v709_v36 = vadd.f32 %v708_v35, %v707_v34  ;;  %v710_v37 = vpop.f32.mrb[2].mxu0 }
 0x108   : > { %v711_v38 = vpop.f32.mrb[3].mxu0 }
 0x109   : > { %v712_v40 = vadd.f32 %v711_v38, %v710_v37  ;;  %v478_v41 = vadd.f32 %v709_v36, %v281_v33 }
 0x10b   : > { %v481_v42 = vadd.f32 %v712_v40, %v286_v39  ;;  %v527_v43 = vadd.f32 %v526_v30, %v478_v41 }
 0x10d   : > { %v530_v45 = vadd.f32 %v529_v32, %v481_v42  ;;  %v713_v46 = vpop.f32.mrb[4].mxu0  ;;  %v542_v47 = vsel %vm541_vm1, %v527_v43, 0.0 }
 0x10e   : > { %v714_v48 = vpop.f32.mrb[5].mxu0  ;;  %543 = vadd.xlane.f32.xlu0 %v542_v47 }
 0x10f   : > { %v715_v49 = vadd.f32 %v714_v48, %v713_v46  ;;  %v716_v50 = vpop.f32.mrb[6].mxu0  ;;  %v545_v51 = vsel %vm541_vm1, %v530_v45, 0.0 }
 0x110   : > { %v717_v52 = vpop.f32.mrb[7].mxu0  ;;  %546 = vadd.xlane.f32.xlu1 %v545_v51 }
 0x111   : > { %v486_v53 = vadd.f32 %v715_v49, %v291_v44  ;;  %v718_v54 = vadd.f32 %v717_v52, %v716_v50 }
 0x113   : > { %v489_v56 = vadd.f32 %v718_v54, %v296_v55  ;;  %v535_v57 = vadd.f32 %v729_v29, %v486_v53 }
 0x115   : > { %v548_v58 = vsel %vm541_vm1, %v535_v57, 0.0  ;;  %v538_v59 = vadd.f32 %v730_v31, %v489_v56 }
 0x116   : > { %549 = vadd.xlane.f32.xlu0 %v548_v58 }
 0x117   : > { %v551_v60 = vsel %vm541_vm1, %v538_v59, 0.0 }
 0x11a   : > { %552 = vadd.xlane.f32.xlu0 %v551_v60 }
 0x19b   : > { %v544_v61 = vpop.xlane.xlu0 %543 }
 0x19c   : > { %v555_v62 = vmul.f32 0.015625, %v544_v61 }
 0x19d   : > { %v547_v63 = vpop.xlane.xlu1 %546 }
 0x19e   : > { %v559_v0 = vsub.f32 %v527_v43, %v555_v62  ;;  %v556_v1 = vmul.f32 0.015625, %v547_v63 }
 0x1a0   : > { %v560_v2 = vsub.f32 %v530_v45, %v556_v1  ;;  %v563_v3 = vmul.f32 %v559_v0, %v559_v0 }
 0x1a2   : > { %v567_v4 = vsel %vm541_vm1, %v563_v3, 0.0  ;;  %v564_v5 = vmul.f32 %v560_v2, %v560_v2 }
 0x1a3   : > { %568 = vadd.xlane.f32.xlu1 %v567_v4  ;;  %v550_v6 = vpop.xlane.xlu0 %549 }
 0x1a4   : > { %v557_v7 = vmul.f32 0.015625, %v550_v6  ;;  %v570_v8 = vsel %vm541_vm1, %v564_v5, 0.0 }
 0x1a5   : > { %571 = vadd.xlane.f32.xlu0 %v570_v8 }
 0x1a6   : > { %v561_v9 = vsub.f32 %v535_v57, %v557_v7 }
 0x1a7   : > { %v553_v10 = vpop.xlane.xlu0 %552 }
 0x1a8   : > { %v558_v11 = vmul.f32 0.015625, %v553_v10  ;;  %v565_v12 = vmul.f32 %v561_v9, %v561_v9 }
 0x1aa   : > { %v562_v13 = vsub.f32 %v538_v59, %v558_v11  ;;  %v573_v14 = vsel %vm541_vm1, %v565_v12, 0.0 }
 0x1ab   : > { %574 = vadd.xlane.f32.xlu1 %v573_v14 }
 0x1ac   : > { %v566_v15 = vmul.f32 %v562_v13, %v562_v13 }
 0x1ae   : > { %v576_v16 = vsel %vm541_vm1, %v566_v15, 0.0 }
 0x1af   : > { %577 = vadd.xlane.f32.xlu0 %v576_v16 }
 0x230   : > { %v569_v17 = vpop.xlane.xlu1 %568 }
 0x231   : > { %v579_v18 = vmul.f32 0.015625, %v569_v17 }
 0x232   : > { %v572_v19 = vpop.xlane.xlu0 %571 }
 0x233   : > { %v583_v20 = vadd.f32 1e-05, %v579_v18  ;;  %v580_v21 = vmul.f32 0.015625, %v572_v19 }
 0x235   : > { %769 = vrsqrt.f32 %v583_v20  ;;  %v584_v22 = vadd.f32 1e-05, %v580_v21 }
 0x237   : > { %771 = vrsqrt.f32 %v584_v22 }
 0x238   : > { %v575_v23 = vpop.xlane.xlu1 %574 }
 0x239   : > { %v581_v24 = vmul.f32 0.015625, %v575_v23 }
 0x23b   : > { %v585_v25 = vadd.f32 1e-05, %v581_v24 }
 0x23c   : > { %v578_v26 = vpop.xlane.xlu0 %577 }
 0x23d   : > { %773 = vrsqrt.f32 %v585_v25  ;;  %v582_v27 = vmul.f32 0.015625, %v578_v26 }
 0x23f   : > { %v770_v28 = vpop.eup %769  ;;  %v586_v29 = vadd.f32 1e-05, %v582_v27 }
 0x240   : > { %v591_v30 = vmul.f32 %v770_v28, %v559_v0 }
 0x241   : > { %v772_v31 = vpop.eup %771  ;;  %775 = vrsqrt.f32 %v586_v29 }
 0x242   : > { %595 = vst.msk [vmem:[%s228_s4] sm:$0xff] %vm541_vm1, %v591_v30  ;;  %v592_v32 = vmul.f32 %v772_v31, %v560_v2 }
 0x244   : > { %596 = vst.msk [vmem:[%s228_s4 + $0x8] sm:$0xff] %vm541_vm1, %v592_v32 }
 0x247   : > { %v774_v33 = vpop.eup %773 }
 0x248   : > { %v593_v34 = vmul.f32 %v774_v33, %v561_v9 }
 0x24a   : > { %597 = vst.msk [vmem:[%s228_s4 + $0x10] sm:$0xff] %vm541_vm1, %v593_v34 }
 0x24b   : > { %v776_v35 = vpop.eup %775 }
 0x24c   : > { %v594_v36 = vmul.f32 %v776_v35, %v562_v13 }
 0x24e   : > { %598 = vst.msk [vmem:[%s228_s4 + $0x18] sm:$0xff] %vm541_vm1, %v594_v36 }
 0x24f PF: > { %s19_s18 = sadd.s32 1, %s783_s18  }
 0x250   : > { %p16_p4 = scmp.ge.s32.totalorder %s19_s18, 4  }
 0x252   :  { %18 = sbr.rel (!%p16_p4) target bundleno = 1 (0x1), region = 70 }

// kernel: adain_gen_forward.31
= control target key start
LH: loop header
LB: loop body
LE: loop exit
PB: predicated region body
PF: predicated region fallthrough
CT: control target
= control target key end

     0   :  { %s936_s18 = smov 0   ;;  %s1032_s0 = inlined_call_operand.vmem [shape: bf16[2,288,64], index: 0, kind: input, shape index: {}]   ;;  %s1033_s1 = inlined_call_operand.vmem [shape: bf16[32,288], index: 1, kind: input, shape index: {}]   ;;  %s1034_s2 = inlined_call_operand.vmem [shape: f32[32,1], index: 2, kind: input, shape index: {}]   ;;  %s1035_s3 = inlined_call_operand.vmem [shape: f32[2,32,1], index: 3, kind: input, shape index: {}]   ;;  %s1036_s4 = inlined_call_operand.vmem [shape: f32[2,32,1], index: 4, kind: input, shape index: {}]   ;;  %s1037_s5 = inlined_call_operand.vmem [shape: f32[2,32,64], index: 5, kind: output, shape index: {}]  }
   0x1 LB: > { %s772_s19 = sadd.s32 4294967295, %s903_s18   ;;  %p776_p0 = scmp.ge.s32.totalorder %s903_s18, 1  ;;  %s903_s18 = sphi %s936_s18, %s15_s18  }
   0x2   : > { %p207_p1 = scmp.lt.s32.totalorder %s903_s18, 3 }
   0x4   : > { %p208_p2 = pnand %p776_p0, %p207_p1 }
   0x5   : > { %p245_p3 = scmp.lt.s32.totalorder (!%p208_p2), %s772_s19, 1  ;;  %vm472_vm0 = vcmask (!%p208_p2), 261120   ;;  %v886_v0 = vld [vmem:[%s1033_s1 + $0x4] ss:$12 sps:$4 sm:$0xff] (!%p208_p2)   ;;  %v888_v1 = vld [vmem:[%s1033_s1 + $0x8] ss:$12 sps:$4 sm:$0xff] (!%p208_p2)  }
   0x6   : > { %211 = sbr.rel (%p208_p2) target bundleno = 359 (0x167), region = 40  ;;  %511 = vmatprep.mubr.bf16.mxu0 (!%p208_p2), %v886_v0  ;;  %851 = vmatprep.mubr.msk.bf16.mxu1 (!%p208_p2), %vm472_vm0, %v888_v1  ;;  %v905_v2 = vmov (!%p208_p2), 0   ;;  %v310_v3 = vld [vmem:[%s1034_s2] sm:$0xff] (!%p208_p2)  ;;  %v312_v4 = vld [vmem:[%s1034_s2 + $0x10] sm:$0xff] (!%p208_p2)  ;;  %v311_v5 = vld [vmem:[%s1034_s2 + $0x8] sm:$0xff] (!%p208_p2)  ;;  %vm577_vm1 = vcmask (!%p208_p2), 523264  }
   0x7   : > { %865 = vset.pattern.permute.xlu0 (!%p208_p2), %v905_v2  ;;  %866 = vset.pattern.permute.xlu1 (!%p208_p2), %v905_v2  ;;  %v313_v6 = vld [vmem:[%s1034_s2 + $0x18] sm:$0xff] (!%p208_p2)  ;;  %v889_v24 = vld [vmem:[%s1033_s1 + $0x20] ss:$12 sps:$4 sm:$0xff] (!%p208_p2)  }
   0x8   : > { %316 = vperm.xlu0 (!%p208_p2), %865, %v310_v3   ;;  %326 = vperm.xlu1 (!%p208_p2), %866, %v312_v4   ;;  %v884_v33 = vld [vmem:[%s1033_s1] ss:$12 sps:$4 sm:$0xff] (!%p208_p2)   ;;  %v890_v35 = vld [vmem:[%s1033_s1 + $0x1c] ss:$12 sps:$4 sm:$0xff] (!%p208_p2)   ;;  %v892_v36 = vld [vmem:[%s1033_s1 + $0x18] ss:$12 sps:$4 sm:$0xff] (!%p208_p2)  }
   0xc   : > { %321 = vperm.xlu0 (!%p208_p2), %865, %v311_v5   ;;  %331 = vperm.xlu1 (!%p208_p2), %866, %v313_v6  }
   0xd   : > { %s1039_s19 = smov (!%p245_p3, %s772_s19), 1 }
   0xe   : > { %s855_s24 = smul.u32 144, %s1039_s19  ;;  %s981_s11 = sshll.u32 %s1039_s19, 5 }
   0xf   : > { %s254_s14 = scalar_lea.vmem %s1035_s3, %s981_s11  ;;  %s259_s20 = scalar_lea.vmem %s1036_s4, %s981_s11 }
  0x10   : > { %s963_s6 = scalar_lea.vmem %s1032_s0, %s855_s24  ;;  %v629_v20 = vld [vmem:[%s254_s14] sm:$0xff]  ;;  %v630_v21 = vld [vmem:[%s254_s14 + $0x8] sm:$0xff]  ;;  %v631_v25 = vld [vmem:[%s254_s14 + $0x10] sm:$0xff]  ;;  %s264_s29 = scalar_lea.vmem %s1037_s5, %s981_s11 }
  0x11   : > { %v867_v7 = vld [vmem:[%s963_s6 + $0x40] sm:$0xff]   ;;  %v869_v9 = vld [vmem:[%s963_s6 + $0x48] sm:$0xff]   ;;  %v871_v11 = vld [vmem:[%s963_s6 + $0x50] sm:$0xff]   ;;  %635 = vperm.xlu0 %865, %v629_v20   ;;  %640 = vperm.xlu1 %866, %v630_v21  }
  0x12   : > { %v868_v8 = vld [vmem:[%s963_s6] sm:$0xff]   ;;  %815 = vmatprep.subr.bf16.mxu0 %v867_v7  ;;  %v870_v10 = vld [vmem:[%s963_s6 + $0x8] sm:$0xff]   ;;  %v872_v12 = vld [vmem:[%s963_s6 + $0x10] sm:$0xff]  }
  0x13   : > { %816 = vmatpush3.bf16.msra.mxu0 %v868_v8  ;;  %v873_v13 = vld [vmem:[%s963_s6 + $0x58] sm:$0xff]   ;;  %v875_v15 = vld [vmem:[%s963_s6 + $0x60] sm:$0xff]   ;;  %v877_v18 = vld [vmem:[%s963_s6 + $0x68] sm:$0xff]  }
  0x14   : > { %817 = vmatprep.subr.bf16.mxu0 %v869_v9  ;;  %v874_v14 = vld [vmem:[%s963_s6 + $0x18] sm:$0xff]   ;;  %v876_v16 = vld [vmem:[%s963_s6 + $0x20] sm:$0xff]   ;;  %v887_v19 = vld [vmem:[%s963_s6 + $0x88] sm:$0xff]  }
  0x15   : > { %v882_v17 = vld [vmem:[%s963_s6 + $0x80] sm:$0xff]   ;;  %v878_v22 = vld [vmem:[%s963_s6 + $0x28] sm:$0xff]   ;;  %v879_v23 = vld [vmem:[%s963_s6 + $0x70] sm:$0xff]   ;;  %645 = vperm.xlu0 %865, %v631_v25  }
  0x16   : > { %847 = vmatprep.subr.bf16.mxu1 %v882_v17  ;;  %v632_v26 = vld [vmem:[%s254_s14 + $0x18] sm:$0xff]  ;;  %v880_v27 = vld [vmem:[%s963_s6 + $0x30] sm:$0xff]   ;;  %v657_v29 = vld [vmem:[%s259_s20] sm:$0xff] }
  0x17   : > { %818 = vmatpush3.bf16.msra.mxu0 %v870_v10  ;;  %848 = vmatpush3.bf16.msra.mxu1 %v882_v17  ;;  %v881_v28 = vld [vmem:[%s963_s6 + $0x78] sm:$0xff]   ;;  %v658_v30 = vld [vmem:[%s259_s20 + $0x8] sm:$0xff]  ;;  %v659_v32 = vld [vmem:[%s259_s20 + $0x10] sm:$0xff] }
  0x18   : > { %819 = vmatprep.subr.bf16.mxu0 %v871_v11  ;;  %849 = vmatprep.subr.bf16.mxu1 %v887_v19  ;;  %v883_v31 = vld [vmem:[%s963_s6 + $0x38] sm:$0xff]  }
  0x19   : > { %650 = vperm.xlu1 %866, %v632_v26   ;;  %663 = vperm.xlu0 %865, %v657_v29   ;;  %v660_v34 = vld [vmem:[%s259_s20 + $0x18] sm:$0xff] }
  0x1b   : > { %820 = vmatpush3.bf16.msra.mxu0 %v872_v12  ;;  %850 = vmatpush3.bf16.msra.mxu1 %v887_v19 }
  0x1c   : > { %821 = vmatprep.subr.bf16.mxu0 %v873_v13 }
  0x1d   : > { %668 = vperm.xlu1 %866, %v658_v30   ;;  %673 = vperm.xlu0 %865, %v659_v32  }
  0x1e   : > { %852 = vmatmul.mubr.msk.bf16.vlgmr.msra.gmra.mrb[0].mxu1 %vm472_vm0, %v889_v24 }
  0x1f   : > { %822 = vmatpush3.bf16.msra.mxu0 %v874_v14 }
  0x20   : > { %823 = vmatprep.subr.bf16.mxu0 %v875_v15 }
  0x21   : > { %678 = vperm.xlu1 %866, %v660_v34  }
  0x23   : > { %824 = vmatpush3.bf16.msra.mxu0 %v876_v16 }
  0x24   : > { %825 = vmatprep.subr.bf16.mxu0 %v877_v18 }
  0x27   : > { %826 = vmatpush3.bf16.msra.mxu0 %v878_v22 }
  0x28   : > { %827 = vmatprep.subr.bf16.mxu0 %v879_v23 }
  0x2b   : > { %828 = vmatpush3.bf16.msra.mxu0 %v880_v27 }
  0x2c   : > { %829 = vmatprep.subr.bf16.mxu0 %v881_v28 }
  0x2f   : > { %830 = vmatpush3.bf16.msra.mxu0 %v883_v31 }
  0x32   : > { %512 = vmatmul.mubr.bf16.vlgmr.msra.gmra.mrb[0].mxu0 %v884_v33 }
  0x33   : > { %519 = vmatprep.mubr.bf16.mxu0 %v890_v35 }
  0x3a   : > { %520 = vmatmul.mubr.bf16.gmra.mrb[4].mxu0 %v892_v36 }
  0x87   : > { %v317_v41 = vpop.permute.xlu0 %316  ;;  %v327_v52 = vpop.permute.xlu1 %326 }
  0x8b   : > { %v322_v49 = vpop.permute.xlu0 %321  ;;  %v332_v0 = vpop.permute.xlu1 %331 }
  0xf1   : > { %v853_v37 = vpop.f32.mrb[0].mxu1 }
  0xf2   : > { %v562_v38 = vpop.f32.mrb[1].mxu1 }
  0xf3   : > { %v854_v39 = vpop.f32.mrb[2].mxu1 }
  0xf4   : > { %v565_v40 = vpop.f32.mrb[3].mxu1 }
 0x105   : > { %v831_v42 = vpop.f32.mrb[0].mxu0 }
 0x106   : > { %v832_v43 = vpop.f32.mrb[1].mxu0 }
 0x107   : > { %v833_v44 = vadd.f32 %v832_v43, %v831_v42  ;;  %v834_v45 = vpop.f32.mrb[2].mxu0 }
 0x108   : > { %v835_v46 = vpop.f32.mrb[3].mxu0 }
 0x109   : > { %v836_v47 = vadd.f32 %v835_v46, %v834_v45  ;;  %v514_v48 = vadd.f32 %v833_v44, %v317_v41  ;;  %v641_v41 = vpop.permute.xlu1 %640 }
 0x10b   : > { %v563_v50 = vadd.f32 %v562_v38, %v514_v48  ;;  %v517_v51 = vadd.f32 %v836_v47, %v322_v49 }
 0x10d   : > { %v566_v53 = vadd.f32 %v565_v40, %v517_v51  ;;  %v837_v54 = vpop.f32.mrb[4].mxu0  ;;  %v578_v56 = vsel %vm577_vm1, %v563_v50, 0.0  ;;  %v636_v40 = vpop.permute.xlu0 %635 }
 0x10e   : > { %v838_v55 = vpop.f32.mrb[5].mxu0  ;;  %v651_v46 = vpop.permute.xlu1 %650 }
 0x10f   : > { %v579_v57 = vsel %vm577_vm1, %v566_v53, 0.0  ;;  %v839_v58 = vadd.f32 %v838_v55, %v837_v54  ;;  %v840_v59 = vpop.f32.mrb[6].mxu0 }
 0x110   : > { %v580_v60 = vadd.f32 %v579_v57, %v578_v56  ;;  %v841_v61 = vpop.f32.mrb[7].mxu0 }
 0x111   : > { %v522_v62 = vadd.f32 %v839_v58, %v327_v52  ;;  %v842_v63 = vadd.f32 %v841_v61, %v840_v59  ;;  %v646_v45 = vpop.permute.xlu0 %645 }
 0x112   : > { %v669_v48 = vpop.permute.xlu1 %668 }
 0x113   : > { %v571_v1 = vadd.f32 %v853_v37, %v522_v62  ;;  %v525_v2 = vadd.f32 %v842_v63, %v332_v0 }
 0x115   : > { %v581_v3 = vsel %vm577_vm1, %v571_v1, 0.0  ;;  %v574_v4 = vadd.f32 %v854_v39, %v525_v2  ;;  %v664_v47 = vpop.permute.xlu0 %663 }
 0x116   : > { %v582_v5 = vadd.f32 %v581_v3, %v580_v60  ;;  %v679_v59 = vpop.permute.xlu1 %678 }
 0x117   : > { %v583_v6 = vsel %vm577_vm1, %v574_v4, 0.0 }
 0x118   : > { %v584_v7 = vadd.f32 %v583_v6, %v582_v5 }
 0x119   : > { %v674_v58 = vpop.permute.xlu0 %673 }
 0x11a   : > { %v585_v8 = vrot.slane %v584_v7, 4 }
 0x11c   : > { %v586_v9 = vadd.f32 %v585_v8, %v584_v7 }
 0x11e   : > { %v587_v10 = vrot.slane %v586_v9, 2 }
 0x120   : > { %v588_v11 = vadd.f32 %v587_v10, %v586_v9 }
 0x122   : > { %v589_v12 = vrot.slane %v588_v11, 1 }
 0x124   : > { %v590_v13 = vadd.f32 %v589_v12, %v588_v11 }
 0x126   : > { %v592_v14 = vmul.f32 0.03125, %v590_v13 }
 0x128   : > { %v593_v15 = vsub.f32 %v563_v50, %v592_v14  ;;  %v594_v16 = vsub.f32 %v566_v53, %v592_v14  ;;  %v595_v17 = vsub.f32 %v571_v1, %v592_v14  ;;  %v596_v18 = vsub.f32 %v574_v4, %v592_v14 }
 0x12a   : > { %v597_v19 = vmul.f32 %v593_v15, %v593_v15  ;;  %v598_v20 = vmul.f32 %v594_v16, %v594_v16  ;;  %v599_v21 = vmul.f32 %v595_v17, %v595_v17  ;;  %v600_v22 = vmul.f32 %v596_v18, %v596_v18 }
 0x12c   : > { %v601_v23 = vsel %vm577_vm1, %v597_v19, 0.0  ;;  %v602_v24 = vsel %vm577_vm1, %v598_v20, 0.0  ;;  %v604_v26 = vsel %vm577_vm1, %v599_v21, 0.0  ;;  %v606_v28 = vsel %vm577_vm1, %v600_v22, 0.0 }
 0x12d   : > { %v603_v25 = vadd.f32 %v602_v24, %v601_v23 }
 0x12f   : > { %v605_v27 = vadd.f32 %v604_v26, %v603_v25 }
 0x131   : > { %v607_v29 = vadd.f32 %v606_v28, %v605_v27 }
 0x133   : > { %v608_v30 = vrot.slane %v607_v29, 4 }
 0x135   : > { %v609_v31 = vadd.f32 %v608_v30, %v607_v29 }
 0x137   : > { %v610_v32 = vrot.slane %v609_v31, 2 }
 0x139   : > { %v611_v33 = vadd.f32 %v610_v32, %v609_v31 }
 0x13b   : > { %v612_v34 = vrot.slane %v611_v33, 1 }
 0x13d   : > { %v613_v35 = vadd.f32 %v612_v34, %v611_v33 }
 0x13f   : > { %v615_v36 = vmul.f32 0.032258064, %v613_v35 }
 0x141   : > { %893 = vrsqrt.f32 %v615_v36  ;;  %vm618_vm2 = vcmp.eq.f32.partialorder %v615_v36, inf  ;;  %v621_v39 = vand.u32 2147483648, %v615_v36  ;;  %vm620_vm3 = vcmp.eq.f32.partialorder %v615_v36, 0.0 }
 0x14b   : > { %v894_v37 = vpop.eup %893 }
 0x14c   : > { %v617_v38 = vmul.f32 %v894_v37, %v615_v36 }
 0x14e   : > { %v619_v42 = vsel %vm618_vm2, %v615_v36, %v617_v38 }
 0x14f   : > { %v622_v43 = vsel %vm620_vm3, %v621_v39, %v619_v42 }
 0x150   : > { %v623_v44 = vadd.f32 1e-05, %v622_v43 }
 0x152   : > { %895 = vrcp.f32 %v623_v44 }
 0x15c   : > { %v896_v49 = vpop.eup %895 }
 0x15d   : > { %v625_v50 = vmul.f32 %v896_v49, %v593_v15  ;;  %v626_v51 = vmul.f32 %v896_v49, %v594_v16  ;;  %v627_v52 = vmul.f32 %v896_v49, %v595_v17  ;;  %v628_v53 = vmul.f32 %v896_v49, %v596_v18 }
 0x15f   : > { %v653_v54 = vmul.f32 %v636_v40, %v625_v50  ;;  %v654_v55 = vmul.f32 %v641_v41, %v626_v51  ;;  %v655_v56 = vmul.f32 %v646_v45, %v627_v52  ;;  %v656_v57 = vmul.f32 %v651_v46, %v628_v53 }
 0x161   : > { %v681_v60 = vadd.f32 %v664_v47, %v653_v54  ;;  %v682_v61 = vadd.f32 %v669_v48, %v654_v55  ;;  %v683_v62 = vadd.f32 %v674_v58, %v655_v56  ;;  %v684_v63 = vadd.f32 %v679_v59, %v656_v57 }
 0x163   : > { %v685_v0 = vmax.f32 %v681_v60, 0.0  ;;  %v686_v1 = vmax.f32 %v682_v61, 0.0  ;;  %v687_v2 = vmax.f32 %v683_v62, 0.0  ;;  %v688_v3 = vmax.f32 %v684_v63, 0.0 }
 0x165   : > { %689 = vst.msk [vmem:[%s264_s29] sm:$0xff] %vm577_vm1, %v685_v0  ;;  %690 = vst.msk [vmem:[%s264_s29 + $0x8] sm:$0xff] %vm577_vm1, %v686_v1 }
 0x166   : > { %691 = vst.msk [vmem:[%s264_s29 + $0x10] sm:$0xff] %vm577_vm1, %v687_v2  ;;  %692 = vst.msk [vmem:[%s264_s29 + $0x18] sm:$0xff] %vm577_vm1, %v688_v3 }
 0x167 PF: > { %s15_s18 = sadd.s32 1, %s903_s18  }
 0x168   : > { %p12_p4 = scmp.ge.s32.totalorder %s15_s18, 4  }
 0x16a   :  { %14 = sbr.rel (!%p12_p4) target bundleno = 1 (0x1), region = 76 }

// kernel: adain_gen_forward.32
= control target key start
LH: loop header
LB: loop body
LE: loop exit
PB: predicated region body
PF: predicated region fallthrough
CT: control target
= control target key end

     0   :  { %s932_s18 = smov 0   ;;  %s1028_s0 = inlined_call_operand.vmem [shape: bf16[2,288,64], index: 0, kind: input, shape index: {}]   ;;  %s1029_s1 = inlined_call_operand.vmem [shape: bf16[32,288], index: 1, kind: input, shape index: {}]   ;;  %s1030_s2 = inlined_call_operand.vmem [shape: f32[32,1], index: 2, kind: input, shape index: {}]   ;;  %s1031_s3 = inlined_call_operand.vmem [shape: f32[2,32,1], index: 3, kind: input, shape index: {}]   ;;  %s1032_s4 = inlined_call_operand.vmem [shape: f32[2,32,1], index: 4, kind: input, shape index: {}]   ;;  %s1033_s5 = inlined_call_operand.vmem [shape: f32[2,32,64], index: 5, kind: output, shape index: {}]  }
   0x1 LB: > { %s768_s19 = sadd.s32 4294967295, %s899_s18   ;;  %p772_p0 = scmp.ge.s32.totalorder %s899_s18, 1  ;;  %s899_s18 = sphi %s932_s18, %s15_s18  }
   0x2   : > { %p207_p1 = scmp.lt.s32.totalorder %s899_s18, 3 }
   0x4   : > { %p208_p2 = pnand %p772_p0, %p207_p1 }
   0x5   : > { %p245_p3 = scmp.lt.s32.totalorder (!%p208_p2), %s768_s19, 1  ;;  %vm472_vm0 = vcmask (!%p208_p2), 261120   ;;  %v882_v0 = vld [vmem:[%s1029_s1 + $0x4] ss:$12 sps:$4 sm:$0xff] (!%p208_p2)   ;;  %v884_v1 = vld [vmem:[%s1029_s1 + $0x8] ss:$12 sps:$4 sm:$0xff] (!%p208_p2)  }
   0x6   : > { %211 = sbr.rel (%p208_p2) target bundleno = 357 (0x165), region = 40  ;;  %511 = vmatprep.mubr.bf16.mxu0 (!%p208_p2), %v882_v0  ;;  %847 = vmatprep.mubr.msk.bf16.mxu1 (!%p208_p2), %vm472_vm0, %v884_v1  ;;  %v901_v2 = vmov (!%p208_p2), 0   ;;  %v310_v3 = vld [vmem:[%s1030_s2] sm:$0xff] (!%p208_p2)  ;;  %v312_v4 = vld [vmem:[%s1030_s2 + $0x10] sm:$0xff] (!%p208_p2)  ;;  %v311_v5 = vld [vmem:[%s1030_s2 + $0x8] sm:$0xff] (!%p208_p2)  ;;  %vm577_vm1 = vcmask (!%p208_p2), 523264  }
   0x7   : > { %861 = vset.pattern.permute.xlu0 (!%p208_p2), %v901_v2  ;;  %862 = vset.pattern.permute.xlu1 (!%p208_p2), %v901_v2  ;;  %v313_v6 = vld [vmem:[%s1030_s2 + $0x18] sm:$0xff] (!%p208_p2)  ;;  %v885_v24 = vld [vmem:[%s1029_s1 + $0x20] ss:$12 sps:$4 sm:$0xff] (!%p208_p2)  }
   0x8   : > { %316 = vperm.xlu0 (!%p208_p2), %861, %v310_v3   ;;  %326 = vperm.xlu1 (!%p208_p2), %862, %v312_v4   ;;  %v880_v33 = vld [vmem:[%s1029_s1] ss:$12 sps:$4 sm:$0xff] (!%p208_p2)   ;;  %v886_v35 = vld [vmem:[%s1029_s1 + $0x1c] ss:$12 sps:$4 sm:$0xff] (!%p208_p2)   ;;  %v888_v36 = vld [vmem:[%s1029_s1 + $0x18] ss:$12 sps:$4 sm:$0xff] (!%p208_p2)  }
   0xc   : > { %321 = vperm.xlu0 (!%p208_p2), %861, %v311_v5   ;;  %331 = vperm.xlu1 (!%p208_p2), %862, %v313_v6  }
   0xd   : > { %s1035_s19 = smov (!%p245_p3, %s768_s19), 1 }
   0xe   : > { %s851_s24 = smul.u32 144, %s1035_s19  ;;  %s977_s11 = sshll.u32 %s1035_s19, 5 }
   0xf   : > { %s254_s14 = scalar_lea.vmem %s1031_s3, %s977_s11  ;;  %s259_s20 = scalar_lea.vmem %s1032_s4, %s977_s11 }
  0x10   : > { %s959_s6 = scalar_lea.vmem %s1028_s0, %s851_s24  ;;  %v629_v20 = vld [vmem:[%s254_s14] sm:$0xff]  ;;  %v630_v21 = vld [vmem:[%s254_s14 + $0x8] sm:$0xff]  ;;  %v631_v25 = vld [vmem:[%s254_s14 + $0x10] sm:$0xff]  ;;  %s264_s29 = scalar_lea.vmem %s1033_s5, %s977_s11 }
  0x11   : > { %v863_v7 = vld [vmem:[%s959_s6 + $0x40] sm:$0xff]   ;;  %v865_v9 = vld [vmem:[%s959_s6 + $0x48] sm:$0xff]   ;;  %v867_v11 = vld [vmem:[%s959_s6 + $0x50] sm:$0xff]   ;;  %635 = vperm.xlu0 %861, %v629_v20   ;;  %640 = vperm.xlu1 %862, %v630_v21  }
  0x12   : > { %v864_v8 = vld [vmem:[%s959_s6] sm:$0xff]   ;;  %811 = vmatprep.subr.bf16.mxu0 %v863_v7  ;;  %v866_v10 = vld [vmem:[%s959_s6 + $0x8] sm:$0xff]   ;;  %v868_v12 = vld [vmem:[%s959_s6 + $0x10] sm:$0xff]  }
  0x13   : > { %812 = vmatpush3.bf16.msra.mxu0 %v864_v8  ;;  %v869_v13 = vld [vmem:[%s959_s6 + $0x58] sm:$0xff]   ;;  %v871_v15 = vld [vmem:[%s959_s6 + $0x60] sm:$0xff]   ;;  %v873_v18 = vld [vmem:[%s959_s6 + $0x68] sm:$0xff]  }
  0x14   : > { %813 = vmatprep.subr.bf16.mxu0 %v865_v9  ;;  %v870_v14 = vld [vmem:[%s959_s6 + $0x18] sm:$0xff]   ;;  %v872_v16 = vld [vmem:[%s959_s6 + $0x20] sm:$0xff]   ;;  %v883_v19 = vld [vmem:[%s959_s6 + $0x88] sm:$0xff]  }
  0x15   : > { %v878_v17 = vld [vmem:[%s959_s6 + $0x80] sm:$0xff]   ;;  %v874_v22 = vld [vmem:[%s959_s6 + $0x28] sm:$0xff]   ;;  %v875_v23 = vld [vmem:[%s959_s6 + $0x70] sm:$0xff]   ;;  %645 = vperm.xlu0 %861, %v631_v25  }
  0x16   : > { %843 = vmatprep.subr.bf16.mxu1 %v878_v17  ;;  %v632_v26 = vld [vmem:[%s254_s14 + $0x18] sm:$0xff]  ;;  %v876_v27 = vld [vmem:[%s959_s6 + $0x30] sm:$0xff]   ;;  %v657_v29 = vld [vmem:[%s259_s20] sm:$0xff] }
  0x17   : > { %814 = vmatpush3.bf16.msra.mxu0 %v866_v10  ;;  %844 = vmatpush3.bf16.msra.mxu1 %v878_v17  ;;  %v877_v28 = vld [vmem:[%s959_s6 + $0x78] sm:$0xff]   ;;  %v658_v30 = vld [vmem:[%s259_s20 + $0x8] sm:$0xff]  ;;  %v659_v32 = vld [vmem:[%s259_s20 + $0x10] sm:$0xff] }
  0x18   : > { %815 = vmatprep.subr.bf16.mxu0 %v867_v11  ;;  %845 = vmatprep.subr.bf16.mxu1 %v883_v19  ;;  %v879_v31 = vld [vmem:[%s959_s6 + $0x38] sm:$0xff]  }
  0x19   : > { %650 = vperm.xlu1 %862, %v632_v26   ;;  %663 = vperm.xlu0 %861, %v657_v29   ;;  %v660_v34 = vld [vmem:[%s259_s20 + $0x18] sm:$0xff] }
  0x1b   : > { %816 = vmatpush3.bf16.msra.mxu0 %v868_v12  ;;  %846 = vmatpush3.bf16.msra.mxu1 %v883_v19 }
  0x1c   : > { %817 = vmatprep.subr.bf16.mxu0 %v869_v13 }
  0x1d   : > { %668 = vperm.xlu1 %862, %v658_v30   ;;  %673 = vperm.xlu0 %861, %v659_v32  }
  0x1e   : > { %848 = vmatmul.mubr.msk.bf16.vlgmr.msra.gmra.mrb[0].mxu1 %vm472_vm0, %v885_v24 }
  0x1f   : > { %818 = vmatpush3.bf16.msra.mxu0 %v870_v14 }
  0x20   : > { %819 = vmatprep.subr.bf16.mxu0 %v871_v15 }
  0x21   : > { %678 = vperm.xlu1 %862, %v660_v34  }
  0x23   : > { %820 = vmatpush3.bf16.msra.mxu0 %v872_v16 }
  0x24   : > { %821 = vmatprep.subr.bf16.mxu0 %v873_v18 }
  0x27   : > { %822 = vmatpush3.bf16.msra.mxu0 %v874_v22 }
  0x28   : > { %823 = vmatprep.subr.bf16.mxu0 %v875_v23 }
  0x2b   : > { %824 = vmatpush3.bf16.msra.mxu0 %v876_v27 }
  0x2c   : > { %825 = vmatprep.subr.bf16.mxu0 %v877_v28 }
  0x2f   : > { %826 = vmatpush3.bf16.msra.mxu0 %v879_v31 }
  0x32   : > { %512 = vmatmul.mubr.bf16.vlgmr.msra.gmra.mrb[0].mxu0 %v880_v33 }
  0x33   : > { %519 = vmatprep.mubr.bf16.mxu0 %v886_v35 }
  0x3a   : > { %520 = vmatmul.mubr.bf16.gmra.mrb[4].mxu0 %v888_v36 }
  0x87   : > { %v317_v41 = vpop.permute.xlu0 %316  ;;  %v327_v52 = vpop.permute.xlu1 %326 }
  0x8b   : > { %v322_v49 = vpop.permute.xlu0 %321  ;;  %v332_v0 = vpop.permute.xlu1 %331 }
  0xf1   : > { %v849_v37 = vpop.f32.mrb[0].mxu1 }
  0xf2   : > { %v562_v38 = vpop.f32.mrb[1].mxu1 }
  0xf3   : > { %v850_v39 = vpop.f32.mrb[2].mxu1 }
  0xf4   : > { %v565_v40 = vpop.f32.mrb[3].mxu1 }
 0x105   : > { %v827_v42 = vpop.f32.mrb[0].mxu0 }
 0x106   : > { %v828_v43 = vpop.f32.mrb[1].mxu0 }
 0x107   : > { %v829_v44 = vadd.f32 %v828_v43, %v827_v42  ;;  %v830_v45 = vpop.f32.mrb[2].mxu0 }
 0x108   : > { %v831_v46 = vpop.f32.mrb[3].mxu0 }
 0x109   : > { %v832_v47 = vadd.f32 %v831_v46, %v830_v45  ;;  %v514_v48 = vadd.f32 %v829_v44, %v317_v41  ;;  %v641_v41 = vpop.permute.xlu1 %640 }
 0x10b   : > { %v563_v50 = vadd.f32 %v562_v38, %v514_v48  ;;  %v517_v51 = vadd.f32 %v832_v47, %v322_v49 }
 0x10d   : > { %v566_v53 = vadd.f32 %v565_v40, %v517_v51  ;;  %v833_v54 = vpop.f32.mrb[4].mxu0  ;;  %v578_v56 = vsel %vm577_vm1, %v563_v50, 0.0  ;;  %v636_v40 = vpop.permute.xlu0 %635 }
 0x10e   : > { %v834_v55 = vpop.f32.mrb[5].mxu0  ;;  %v651_v46 = vpop.permute.xlu1 %650 }
 0x10f   : > { %v579_v57 = vsel %vm577_vm1, %v566_v53, 0.0  ;;  %v835_v58 = vadd.f32 %v834_v55, %v833_v54  ;;  %v836_v59 = vpop.f32.mrb[6].mxu0 }
 0x110   : > { %v580_v60 = vadd.f32 %v579_v57, %v578_v56  ;;  %v837_v61 = vpop.f32.mrb[7].mxu0 }
 0x111   : > { %v522_v62 = vadd.f32 %v835_v58, %v327_v52  ;;  %v838_v63 = vadd.f32 %v837_v61, %v836_v59  ;;  %v646_v45 = vpop.permute.xlu0 %645 }
 0x112   : > { %v669_v48 = vpop.permute.xlu1 %668 }
 0x113   : > { %v571_v1 = vadd.f32 %v849_v37, %v522_v62  ;;  %v525_v2 = vadd.f32 %v838_v63, %v332_v0 }
 0x115   : > { %v581_v3 = vsel %vm577_vm1, %v571_v1, 0.0  ;;  %v574_v4 = vadd.f32 %v850_v39, %v525_v2  ;;  %v664_v47 = vpop.permute.xlu0 %663 }
 0x116   : > { %v582_v5 = vadd.f32 %v581_v3, %v580_v60  ;;  %v679_v59 = vpop.permute.xlu1 %678 }
 0x117   : > { %v583_v6 = vsel %vm577_vm1, %v574_v4, 0.0 }
 0x118   : > { %v584_v7 = vadd.f32 %v583_v6, %v582_v5 }
 0x119   : > { %v674_v58 = vpop.permute.xlu0 %673 }
 0x11a   : > { %v585_v8 = vrot.slane %v584_v7, 4 }
 0x11c   : > { %v586_v9 = vadd.f32 %v585_v8, %v584_v7 }
 0x11e   : > { %v587_v10 = vrot.slane %v586_v9, 2 }
 0x120   : > { %v588_v11 = vadd.f32 %v587_v10, %v586_v9 }
 0x122   : > { %v589_v12 = vrot.slane %v588_v11, 1 }
 0x124   : > { %v590_v13 = vadd.f32 %v589_v12, %v588_v11 }
 0x126   : > { %v592_v14 = vmul.f32 0.03125, %v590_v13 }
 0x128   : > { %v593_v15 = vsub.f32 %v563_v50, %v592_v14  ;;  %v594_v16 = vsub.f32 %v566_v53, %v592_v14  ;;  %v595_v17 = vsub.f32 %v571_v1, %v592_v14  ;;  %v596_v18 = vsub.f32 %v574_v4, %v592_v14 }
 0x12a   : > { %v597_v19 = vmul.f32 %v593_v15, %v593_v15  ;;  %v598_v20 = vmul.f32 %v594_v16, %v594_v16  ;;  %v599_v21 = vmul.f32 %v595_v17, %v595_v17  ;;  %v600_v22 = vmul.f32 %v596_v18, %v596_v18 }
 0x12c   : > { %v601_v23 = vsel %vm577_vm1, %v597_v19, 0.0  ;;  %v602_v24 = vsel %vm577_vm1, %v598_v20, 0.0  ;;  %v604_v26 = vsel %vm577_vm1, %v599_v21, 0.0  ;;  %v606_v28 = vsel %vm577_vm1, %v600_v22, 0.0 }
 0x12d   : > { %v603_v25 = vadd.f32 %v602_v24, %v601_v23 }
 0x12f   : > { %v605_v27 = vadd.f32 %v604_v26, %v603_v25 }
 0x131   : > { %v607_v29 = vadd.f32 %v606_v28, %v605_v27 }
 0x133   : > { %v608_v30 = vrot.slane %v607_v29, 4 }
 0x135   : > { %v609_v31 = vadd.f32 %v608_v30, %v607_v29 }
 0x137   : > { %v610_v32 = vrot.slane %v609_v31, 2 }
 0x139   : > { %v611_v33 = vadd.f32 %v610_v32, %v609_v31 }
 0x13b   : > { %v612_v34 = vrot.slane %v611_v33, 1 }
 0x13d   : > { %v613_v35 = vadd.f32 %v612_v34, %v611_v33 }
 0x13f   : > { %v615_v36 = vmul.f32 0.032258064, %v613_v35 }
 0x141   : > { %889 = vrsqrt.f32 %v615_v36  ;;  %vm618_vm2 = vcmp.eq.f32.partialorder %v615_v36, inf  ;;  %v621_v39 = vand.u32 2147483648, %v615_v36  ;;  %vm620_vm3 = vcmp.eq.f32.partialorder %v615_v36, 0.0 }
 0x14b   : > { %v890_v37 = vpop.eup %889 }
 0x14c   : > { %v617_v38 = vmul.f32 %v890_v37, %v615_v36 }
 0x14e   : > { %v619_v42 = vsel %vm618_vm2, %v615_v36, %v617_v38 }
 0x14f   : > { %v622_v43 = vsel %vm620_vm3, %v621_v39, %v619_v42 }
 0x150   : > { %v623_v44 = vadd.f32 1e-05, %v622_v43 }
 0x152   : > { %891 = vrcp.f32 %v623_v44 }
 0x15c   : > { %v892_v49 = vpop.eup %891 }
 0x15d   : > { %v625_v50 = vmul.f32 %v892_v49, %v593_v15  ;;  %v626_v51 = vmul.f32 %v892_v49, %v594_v16  ;;  %v627_v52 = vmul.f32 %v892_v49, %v595_v17  ;;  %v628_v53 = vmul.f32 %v892_v49, %v596_v18 }
 0x15f   : > { %v653_v54 = vmul.f32 %v636_v40, %v625_v50  ;;  %v654_v55 = vmul.f32 %v641_v41, %v626_v51  ;;  %v655_v56 = vmul.f32 %v646_v45, %v627_v52  ;;  %v656_v57 = vmul.f32 %v651_v46, %v628_v53 }
 0x161   : > { %v681_v60 = vadd.f32 %v664_v47, %v653_v54  ;;  %v682_v61 = vadd.f32 %v669_v48, %v654_v55  ;;  %v683_v62 = vadd.f32 %v674_v58, %v655_v56  ;;  %v684_v63 = vadd.f32 %v679_v59, %v656_v57 }
 0x163   : > { %685 = vst.msk [vmem:[%s264_s29] sm:$0xff] %vm577_vm1, %v681_v60  ;;  %686 = vst.msk [vmem:[%s264_s29 + $0x8] sm:$0xff] %vm577_vm1, %v682_v61 }
 0x164   : > { %687 = vst.msk [vmem:[%s264_s29 + $0x10] sm:$0xff] %vm577_vm1, %v683_v62  ;;  %688 = vst.msk [vmem:[%s264_s29 + $0x18] sm:$0xff] %vm577_vm1, %v684_v63 }
 0x165 PF: > { %s15_s18 = sadd.s32 1, %s899_s18  }
 0x166   : > { %p12_p4 = scmp.ge.s32.totalorder %s15_s18, 4  }
 0x168   :  { %14 = sbr.rel (!%p12_p4) target bundleno = 1 (0x1), region = 76 }

// kernel: adain_gen_forward.35
= control target key start
LH: loop header
LB: loop body
LE: loop exit
PB: predicated region body
PF: predicated region fallthrough
CT: control target
= control target key end

     0   :  { %s1556_s18 = smov 0   ;;  %s1721_s0 = inlined_call_operand.vmem [shape: bf16[2,800,256], index: 0, kind: input, shape index: {}]   ;;  %s1722_s1 = inlined_call_operand.vmem [shape: bf16[16,800], index: 1, kind: input, shape index: {}]   ;;  %s1723_s2 = inlined_call_operand.vmem [shape: f32[16,1], index: 2, kind: input, shape index: {}]   ;;  %s1724_s3 = inlined_call_operand.vmem [shape: f32[1,16,1], index: 3, kind: input, shape index: {}]   ;;  %s1725_s4 = inlined_call_operand.vmem [shape: f32[1,16,1], index: 4, kind: input, shape index: {}]   ;;  %s1726_s5 = inlined_call_operand.vmem [shape: f32[2,16,256], index: 5, kind: output, shape index: {}]  }
   0x1 LB: > { %s1206_s19 = sadd.s32 4294967295, %s1523_s18   ;;  %p1210_p0 = scmp.ge.s32.totalorder %s1523_s18, 1  ;;  %s1523_s18 = sphi %s1556_s18, %s15_s18  }
   0x2   : > { %p187_p1 = scmp.lt.s32.totalorder %s1523_s18, 3 }
   0x4   : > { %p188_p2 = pnand %p1210_p0, %p187_p1 }
   0x5   : > { %p215_p3 = scmp.lt.s32.totalorder (!%p188_p2), %s1206_s19, 1  ;;  %v1423_v0 = vld [vmem:[%s1722_s1 + $0x4] ss:$28 sps:$4 sm:$0xff] (!%p188_p2)   ;;  %v1525_v1 = vmov (!%p188_p2), 0   ;;  %v1484_v2 = vld [vmem:[%s1722_s1 + $0x14] ss:$28 sps:$4 sm:$0xff] (!%p188_p2)  }
   0x6   : > { %191 = sbr.rel (%p188_p2) target bundleno = 731 (0x2db), region = 40  ;;  %1351 = vset.pattern.permute.xlu0 (!%p188_p2), %v1525_v1  ;;  %1352 = vset.pattern.permute.xlu1 (!%p188_p2), %v1525_v1  ;;  %v1421_v62 = vld [vmem:[%s1722_s1] ss:$28 sps:$4 sm:$0xff] (!%p188_p2)   ;;  %vm881_vm0 = vcmask (!%p188_p2), 261120  }
   0x7   : > { %917 = vmatprep.mubr.bf16.mxu1 (!%p188_p2), %v1423_v0  ;;  %1003 = vmatprep.mubr.bf16.mxu0 (!%p188_p2), %v1484_v2  ;;  %v1512_v2 = vld [vmem:[%s1722_s1 + $0xc] ss:$28 sps:$4 sm:$0xff] (!%p188_p2)  }
   0xd   : > { %s1728_s19 = smov (!%p215_p3, %s1206_s19), 1 }
   0xe   : > { %s1341_s24 = smul.u32 800, %s1728_s19 }
  0x10   : > { %s1578_s27 = scalar_lea.vmem %s1721_s0, %s1341_s24 }
  0x11   : > { %v1353_v3 = vld [vmem:[%s1578_s27 + $0x4] ss:$8 sps:$4 sm:$0xff]   ;;  %v1355_v4 = vld [vmem:[%s1578_s27] ss:$8 sps:$4 sm:$0xff]   ;;  %v1356_v5 = vld [vmem:[%s1578_s27 + $0x14] ss:$8 sps:$4 sm:$0xff]  }
  0x12   : > { %885 = vmatprep.subr.bf16.mxu1 %v1353_v3  ;;  %v1358_v6 = vld [vmem:[%s1578_s27 + $0x10] ss:$8 sps:$4 sm:$0xff]   ;;  %v1359_v7 = vld [vmem:[%s1578_s27 + $0x24] ss:$8 sps:$4 sm:$0xff]   ;;  %v1361_v8 = vld [vmem:[%s1578_s27 + $0x20] ss:$8 sps:$4 sm:$0xff]  }
  0x13   : > { %886 = vmatpush1.bf16.msra.mxu1 %v1355_v4  ;;  %v1362_v9 = vld [vmem:[%s1578_s27 + $0x34] ss:$8 sps:$4 sm:$0xff]   ;;  %v1364_v10 = vld [vmem:[%s1578_s27 + $0x30] ss:$8 sps:$4 sm:$0xff]   ;;  %v1365_v11 = vld [vmem:[%s1578_s27 + $0x44] ss:$8 sps:$4 sm:$0xff]  }
  0x14   : > { %887 = vmatprep.subr.bf16.mxu1 %v1356_v5  ;;  %v1383_v12 = vld [vmem:[%s1578_s27 + $0x204] ss:$8 sps:$4 sm:$0xff]   ;;  %v1367_v13 = vld [vmem:[%s1578_s27 + $0x40] ss:$8 sps:$4 sm:$0xff]   ;;  %v1368_v14 = vld [vmem:[%s1578_s27 + $0x54] ss:$8 sps:$4 sm:$0xff]  }
  0x15   : > { %v1387_v15 = vld [vmem:[%s1578_s27 + $0x200] ss:$8 sps:$4 sm:$0xff]   ;;  %971 = vmatprep.subr.bf16.mxu0 %v1383_v12  ;;  %v1389_v16 = vld [vmem:[%s1578_s27 + $0x214] ss:$8 sps:$4 sm:$0xff]   ;;  %v1370_v17 = vld [vmem:[%s1578_s27 + $0x50] ss:$8 sps:$4 sm:$0xff]  }
  0x16   : > { %972 = vmatpush1.bf16.msra.mxu0 %v1387_v15  ;;  %v1393_v18 = vld [vmem:[%s1578_s27 + $0x210] ss:$8 sps:$4 sm:$0xff]   ;;  %v1395_v19 = vld [vmem:[%s1578_s27 + $0x224] ss:$8 sps:$4 sm:$0xff]   ;;  %v1399_v21 = vld [vmem:[%s1578_s27 + $0x220] ss:$8 sps:$4 sm:$0xff]  }
  0x17   : > { %888 = vmatpush1.bf16.msra.mxu1 %v1358_v6  ;;  %973 = vmatprep.subr.bf16.mxu0 %v1389_v16  ;;  %v1371_v20 = vld [vmem:[%s1578_s27 + $0x64] ss:$8 sps:$4 sm:$0xff]   ;;  %v1401_v22 = vld [vmem:[%s1578_s27 + $0x234] ss:$8 sps:$4 sm:$0xff]   ;;  %v1373_v23 = vld [vmem:[%s1578_s27 + $0x60] ss:$8 sps:$4 sm:$0xff]  }
  0x18   : > { %889 = vmatprep.subr.bf16.mxu1 %v1359_v7  ;;  %v1374_v24 = vld [vmem:[%s1578_s27 + $0x74] ss:$8 sps:$4 sm:$0xff]   ;;  %v1405_v25 = vld [vmem:[%s1578_s27 + $0x230] ss:$8 sps:$4 sm:$0xff]   ;;  %v1407_v26 = vld [vmem:[%s1578_s27 + $0x244] ss:$8 sps:$4 sm:$0xff]  }
  0x19   : > { %v1376_v27 = vld [vmem:[%s1578_s27 + $0x70] ss:$8 sps:$4 sm:$0xff]   ;;  %v1377_v28 = vld [vmem:[%s1578_s27 + $0x84] ss:$8 sps:$4 sm:$0xff]   ;;  %v1411_v29 = vld [vmem:[%s1578_s27 + $0x240] ss:$8 sps:$4 sm:$0xff]  }
  0x1a   : > { %974 = vmatpush1.bf16.msra.mxu0 %v1393_v18  ;;  %v1413_v30 = vld [vmem:[%s1578_s27 + $0x254] ss:$8 sps:$4 sm:$0xff]   ;;  %v1379_v31 = vld [vmem:[%s1578_s27 + $0x80] ss:$8 sps:$4 sm:$0xff]   ;;  %v1417_v33 = vld [vmem:[%s1578_s27 + $0x250] ss:$8 sps:$4 sm:$0xff]  }
  0x1b   : > { %890 = vmatpush1.bf16.msra.mxu1 %v1361_v8  ;;  %975 = vmatprep.subr.bf16.mxu0 %v1395_v19  ;;  %v1380_v32 = vld [vmem:[%s1578_s27 + $0x94] ss:$8 sps:$4 sm:$0xff]   ;;  %v1419_v34 = vld [vmem:[%s1578_s27 + $0x264] ss:$8 sps:$4 sm:$0xff]   ;;  %v1382_v35 = vld [vmem:[%s1578_s27 + $0x90] ss:$8 sps:$4 sm:$0xff]  }
  0x1c   : > { %891 = vmatprep.subr.bf16.mxu1 %v1362_v9  ;;  %v1385_v36 = vld [vmem:[%s1578_s27 + $0xa4] ss:$8 sps:$4 sm:$0xff]   ;;  %v1427_v37 = vld [vmem:[%s1578_s27 + $0x260] ss:$8 sps:$4 sm:$0xff]   ;;  %v1428_v38 = vld [vmem:[%s1578_s27 + $0x274] ss:$8 sps:$4 sm:$0xff]  }
  0x1d   : > { %v1388_v39 = vld [vmem:[%s1578_s27 + $0xa0] ss:$8 sps:$4 sm:$0xff]   ;;  %v1391_v40 = vld [vmem:[%s1578_s27 + $0xb4] ss:$8 sps:$4 sm:$0xff]   ;;  %v1433_v41 = vld [vmem:[%s1578_s27 + $0x270] ss:$8 sps:$4 sm:$0xff]  }
  0x1e   : > { %976 = vmatpush1.bf16.msra.mxu0 %v1399_v21  ;;  %v1434_v42 = vld [vmem:[%s1578_s27 + $0x284] ss:$8 sps:$4 sm:$0xff]   ;;  %v1394_v43 = vld [vmem:[%s1578_s27 + $0xb0] ss:$8 sps:$4 sm:$0xff]   ;;  %v1439_v45 = vld [vmem:[%s1578_s27 + $0x280] ss:$8 sps:$4 sm:$0xff]  }
  0x1f   : > { %892 = vmatpush1.bf16.msra.mxu1 %v1364_v10  ;;  %977 = vmatprep.subr.bf16.mxu0 %v1401_v22  ;;  %v1397_v44 = vld [vmem:[%s1578_s27 + $0xc4] ss:$8 sps:$4 sm:$0xff]   ;;  %v1440_v46 = vld [vmem:[%s1578_s27 + $0x294] ss:$8 sps:$4 sm:$0xff]   ;;  %v1400_v47 = vld [vmem:[%s1578_s27 + $0xc0] ss:$8 sps:$4 sm:$0xff]  }
  0x20   : > { %893 = vmatprep.subr.bf16.mxu1 %v1365_v11  ;;  %v1403_v48 = vld [vmem:[%s1578_s27 + $0xd4] ss:$8 sps:$4 sm:$0xff]   ;;  %v1445_v49 = vld [vmem:[%s1578_s27 + $0x290] ss:$8 sps:$4 sm:$0xff]   ;;  %v1446_v50 = vld [vmem:[%s1578_s27 + $0x2a4] ss:$8 sps:$4 sm:$0xff]  }
  0x21   : > { %v1406_v51 = vld [vmem:[%s1578_s27 + $0xd0] ss:$8 sps:$4 sm:$0xff]   ;;  %v1409_v52 = vld [vmem:[%s1578_s27 + $0xe4] ss:$8 sps:$4 sm:$0xff]   ;;  %v1451_v53 = vld [vmem:[%s1578_s27 + $0x2a0] ss:$8 sps:$4 sm:$0xff]  }
  0x22   : > { %978 = vmatpush1.bf16.msra.mxu0 %v1405_v25  ;;  %v1452_v54 = vld [vmem:[%s1578_s27 + $0x2b4] ss:$8 sps:$4 sm:$0xff]   ;;  %v1412_v55 = vld [vmem:[%s1578_s27 + $0xe0] ss:$8 sps:$4 sm:$0xff]   ;;  %v1457_v57 = vld [vmem:[%s1578_s27 + $0x2b0] ss:$8 sps:$4 sm:$0xff]  }
  0x23   : > { %894 = vmatpush1.bf16.msra.mxu1 %v1367_v13  ;;  %979 = vmatprep.subr.bf16.mxu0 %v1407_v26  ;;  %v1415_v56 = vld [vmem:[%s1578_s27 + $0xf4] ss:$8 sps:$4 sm:$0xff]   ;;  %v1458_v58 = vld [vmem:[%s1578_s27 + $0x2c4] ss:$8 sps:$4 sm:$0xff]   ;;  %v1418_v59 = vld [vmem:[%s1578_s27 + $0xf0] ss:$8 sps:$4 sm:$0xff]  }
  0x24   : > { %895 = vmatprep.subr.bf16.mxu1 %v1368_v14  ;;  %v1426_v60 = vld [vmem:[%s1578_s27 + $0x104] ss:$8 sps:$4 sm:$0xff]   ;;  %v1463_v61 = vld [vmem:[%s1578_s27 + $0x2c0] ss:$8 sps:$4 sm:$0xff]   ;;  %v1464_v63 = vld [vmem:[%s1578_s27 + $0x2d4] ss:$8 sps:$4 sm:$0xff]  }
  0x25   : > { %v1424_v0 = vld [vmem:[%s1578_s27 + $0x100] ss:$8 sps:$4 sm:$0xff]   ;;  %v1432_v3 = vld [vmem:[%s1578_s27 + $0x114] ss:$8 sps:$4 sm:$0xff]   ;;  %v1469_v4 = vld [vmem:[%s1578_s27 + $0x2d0] ss:$8 sps:$4 sm:$0xff]  }
  0x26   : > { %980 = vmatpush1.bf16.msra.mxu0 %v1411_v29  ;;  %v1470_v5 = vld [vmem:[%s1578_s27 + $0x2e4] ss:$8 sps:$4 sm:$0xff]   ;;  %v1430_v7 = vld [vmem:[%s1578_s27 + $0x110] ss:$8 sps:$4 sm:$0xff]   ;;  %v1475_v9 = vld [vmem:[%s1578_s27 + $0x2e0] ss:$8 sps:$4 sm:$0xff]  }
  0x27   : > { %896 = vmatpush1.bf16.msra.mxu1 %v1370_v17  ;;  %981 = vmatprep.subr.bf16.mxu0 %v1413_v30  ;;  %v334_v6 = vld [vmem:[%s1723_s2] sm:$0xff]  ;;  %v335_v10 = vld [vmem:[%s1723_s2 + $0x8] sm:$0xff]  ;;  %v1476_v11 = vld [vmem:[%s1578_s27 + $0x2f4] ss:$8 sps:$4 sm:$0xff]  }
  0x28   : > { %897 = vmatprep.subr.bf16.mxu1 %v1371_v20  ;;  %v1438_v8 = vld [vmem:[%s1578_s27 + $0x124] ss:$8 sps:$4 sm:$0xff]   ;;  %338 = vperm.xlu0 %1351, %v334_v6   ;;  %v1436_v12 = vld [vmem:[%s1578_s27 + $0x120] ss:$8 sps:$4 sm:$0xff]   ;;  %v1444_v13 = vld [vmem:[%s1578_s27 + $0x134] ss:$8 sps:$4 sm:$0xff]  }
  0x29   : > { %v1481_v14 = vld [vmem:[%s1578_s27 + $0x2f0] ss:$8 sps:$4 sm:$0xff]   ;;  %v1490_v15 = vld [vmem:[%s1578_s27 + $0x304] ss:$8 sps:$4 sm:$0xff]   ;;  %v1488_v19 = vld [vmem:[%s1578_s27 + $0x300] ss:$8 sps:$4 sm:$0xff]  }
  0x2a   : > { %982 = vmatpush1.bf16.msra.mxu0 %v1417_v33  ;;  %v1442_v16 = vld [vmem:[%s1578_s27 + $0x130] ss:$8 sps:$4 sm:$0xff]   ;;  %v1450_v17 = vld [vmem:[%s1578_s27 + $0x144] ss:$8 sps:$4 sm:$0xff]   ;;  %v1496_v20 = vld [vmem:[%s1578_s27 + $0x314] ss:$8 sps:$4 sm:$0xff]  }
  0x2b   : > { %898 = vmatpush1.bf16.msra.mxu1 %v1373_v23  ;;  %983 = vmatprep.subr.bf16.mxu0 %v1419_v34  ;;  %v1482_v18 = vld [vmem:[%s1722_s1 + $0x10] ss:$28 sps:$4 sm:$0xff]   ;;  %v1448_v21 = vld [vmem:[%s1578_s27 + $0x140] ss:$8 sps:$4 sm:$0xff]   ;;  %v1456_v22 = vld [vmem:[%s1578_s27 + $0x154] ss:$8 sps:$4 sm:$0xff]  }
  0x2c   : > { %899 = vmatprep.subr.bf16.mxu1 %v1374_v24  ;;  %343 = vperm.xlu0 %1351, %v335_v10   ;;  %v1494_v23 = vld [vmem:[%s1578_s27 + $0x310] ss:$8 sps:$4 sm:$0xff]   ;;  %v1462_v25 = vld [vmem:[%s1578_s27 + $0x164] ss:$8 sps:$4 sm:$0xff]   ;;  %v1460_v26 = vld [vmem:[%s1578_s27 + $0x160] ss:$8 sps:$4 sm:$0xff]  }
  0x2d   : > { %v1454_v24 = vld [vmem:[%s1578_s27 + $0x150] ss:$8 sps:$4 sm:$0xff]   ;;  %v1474_v29 = vld [vmem:[%s1578_s27 + $0x184] ss:$8 sps:$4 sm:$0xff]   ;;  %v1472_v30 = vld [vmem:[%s1578_s27 + $0x180] ss:$8 sps:$4 sm:$0xff]  }
  0x2e   : > { %984 = vmatpush1.bf16.msra.mxu0 %v1427_v37  ;;  %v1487_v33 = vld [vmem:[%s1578_s27 + $0x1a4] ss:$8 sps:$4 sm:$0xff]   ;;  %v1485_v34 = vld [vmem:[%s1578_s27 + $0x1a0] ss:$8 sps:$4 sm:$0xff]  }
  0x2f   : > { %900 = vmatpush1.bf16.msra.mxu1 %v1376_v27  ;;  %985 = vmatprep.subr.bf16.mxu0 %v1428_v38  ;;  %v1468_v27 = vld [vmem:[%s1578_s27 + $0x174] ss:$8 sps:$4 sm:$0xff]   ;;  %v1499_v37 = vld [vmem:[%s1578_s27 + $0x1c4] ss:$8 sps:$4 sm:$0xff]   ;;  %v1497_v38 = vld [vmem:[%s1578_s27 + $0x1c0] ss:$8 sps:$4 sm:$0xff]  }
  0x30   : > { %901 = vmatprep.subr.bf16.mxu1 %v1377_v28  ;;  %v1500_v28 = vld [vmem:[%s1722_s1 + $0x18] ss:$28 sps:$4 sm:$0xff]  }
  0x32   : > { %986 = vmatpush1.bf16.msra.mxu0 %v1433_v41  ;;  %v1506_v41 = vld [vmem:[%s1578_s27 + $0x1e4] ss:$8 sps:$4 sm:$0xff]  }
  0x33   : > { %902 = vmatpush1.bf16.msra.mxu1 %v1379_v31  ;;  %987 = vmatprep.subr.bf16.mxu0 %v1434_v42  ;;  %v1480_v31 = vld [vmem:[%s1578_s27 + $0x194] ss:$8 sps:$4 sm:$0xff]   ;;  %v1504_v42 = vld [vmem:[%s1578_s27 + $0x1e0] ss:$8 sps:$4 sm:$0xff]  }
  0x34   : > { %903 = vmatprep.subr.bf16.mxu1 %v1380_v32  ;;  %v1478_v32 = vld [vmem:[%s1578_s27 + $0x190] ss:$8 sps:$4 sm:$0xff]  }
  0x36   : > { %988 = vmatpush1.bf16.msra.mxu0 %v1439_v45  ;;  %v1510_v45 = vld [vmem:[%s1722_s1 + $0x8] ss:$28 sps:$4 sm:$0xff]  }
  0x37   : > { %904 = vmatpush1.bf16.msra.mxu1 %v1382_v35  ;;  %989 = vmatprep.subr.bf16.mxu0 %v1440_v46  ;;  %v1493_v35 = vld [vmem:[%s1578_s27 + $0x1b4] ss:$8 sps:$4 sm:$0xff]  }
  0x38   : > { %905 = vmatprep.subr.bf16.mxu1 %v1385_v36  ;;  %v1491_v36 = vld [vmem:[%s1578_s27 + $0x1b0] ss:$8 sps:$4 sm:$0xff]  }
  0x3a   : > { %990 = vmatpush1.bf16.msra.mxu0 %v1445_v49 }
  0x3b   : > { %906 = vmatpush1.bf16.msra.mxu1 %v1388_v39  ;;  %991 = vmatprep.subr.bf16.mxu0 %v1446_v50  ;;  %v1503_v39 = vld [vmem:[%s1578_s27 + $0x1d4] ss:$8 sps:$4 sm:$0xff]  }
  0x3c   : > { %907 = vmatprep.subr.bf16.mxu1 %v1391_v40  ;;  %v1501_v40 = vld [vmem:[%s1578_s27 + $0x1d0] ss:$8 sps:$4 sm:$0xff]  }
  0x3e   : > { %992 = vmatpush1.bf16.msra.mxu0 %v1451_v53 }
  0x3f   : > { %908 = vmatpush1.bf16.msra.mxu1 %v1394_v43  ;;  %993 = vmatprep.subr.bf16.mxu0 %v1452_v54  ;;  %v1509_v43 = vld [vmem:[%s1578_s27 + $0x1f4] ss:$8 sps:$4 sm:$0xff]  }
  0x40   : > { %909 = vmatprep.subr.bf16.mxu1 %v1397_v44  ;;  %v1507_v44 = vld [vmem:[%s1578_s27 + $0x1f0] ss:$8 sps:$4 sm:$0xff]  }
  0x42   : > { %994 = vmatpush1.bf16.msra.mxu0 %v1457_v57 }
  0x43   : > { %910 = vmatpush1.bf16.msra.mxu1 %v1400_v47  ;;  %995 = vmatprep.subr.bf16.mxu0 %v1458_v58 }
  0x44   : > { %911 = vmatprep.subr.bf16.mxu1 %v1403_v48 }
  0x46   : > { %996 = vmatpush1.bf16.msra.mxu0 %v1463_v61 }
  0x47   : > { %912 = vmatpush1.bf16.msra.mxu1 %v1406_v51  ;;  %997 = vmatprep.subr.bf16.mxu0 %v1464_v63 }
  0x48   : > { %913 = vmatprep.subr.bf16.mxu1 %v1409_v52 }
  0x4a   : > { %998 = vmatpush1.bf16.msra.mxu0 %v1469_v4 }
  0x4b   : > { %914 = vmatpush1.bf16.msra.mxu1 %v1412_v55  ;;  %999 = vmatprep.subr.bf16.mxu0 %v1470_v5 }
  0x4c   : > { %915 = vmatprep.subr.bf16.mxu1 %v1415_v56 }
  0x4e   : > { %1000 = vmatpush1.bf16.msra.mxu0 %v1475_v9 }
  0x4f   : > { %916 = vmatpush1.bf16.msra.mxu1 %v1418_v59  ;;  %1001 = vmatprep.subr.bf16.mxu0 %v1476_v11 }
  0x50   : > { %928 = vmatprep.subr.bf16.mxu1 %v1426_v60 }
  0x52   : > { %918 = vmatmul.mubr.bf16.vlgmr.msra.gmra.mrb[0].mxu1 %v1421_v62  ;;  %1002 = vmatpush1.bf16.msra.mxu0 %v1481_v14 }
  0x53   : > { %929 = vmatpush1.bf16.msra.mxu1 %v1424_v0  ;;  %960 = vmatprep.mubr.bf16.mxu1 %v1512_v2 }
  0x54   : > { %930 = vmatprep.subr.bf16.mxu1 %v1432_v3  ;;  %1014 = vmatprep.subr.bf16.mxu0 %v1490_v15 }
  0x55   : > { %1004 = vmatmul.mubr.bf16.vlgmr.msra.gmra.mrb[0].mxu0 %v1482_v18 }
  0x56   : > { %1015 = vmatpush1.bf16.msra.mxu0 %v1488_v19  ;;  %1046 = vmatprep.mubr.bf16.mxu0 %v1525_v1  ;;  %v1466_v1 = vld [vmem:[%s1578_s27 + $0x170] ss:$8 sps:$4 sm:$0xff]   ;;  %s1324_s27 = sshll.u32 %s1728_s19, 5 }
  0x57   : > { %931 = vmatpush1.bf16.msra.mxu1 %v1430_v7  ;;  %1016 = vmatprep.subr.bf16.mxu0 %v1496_v20  ;;  %s224_s30 = scalar_lea.vmem %s1726_s5, %s1324_s27 }
  0x58   : > { %932 = vmatprep.subr.bf16.mxu1 %v1438_v8 }
  0x5a   : > { %1017 = vmatpush1.bf16.msra.mxu0 %v1494_v23 }
  0x5b   : > { %933 = vmatpush1.bf16.msra.mxu1 %v1436_v12 }
  0x5c   : > { %934 = vmatprep.subr.bf16.mxu1 %v1444_v13 }
  0x5f   : > { %935 = vmatpush1.bf16.msra.mxu1 %v1442_v16 }
  0x60   : > { %936 = vmatprep.subr.bf16.mxu1 %v1450_v17 }
  0x61   : > { %1321 = vmatmul.mubr.msk.bf16.vlgmr.msra.gmra.mrb[0].mxu0 %vm881_vm0, %v1500_v28  ;;  %v1128_v28 = vld [vmem:[%s1725_s4 + $0x8] sm:$0xff] }
  0x63   : > { %937 = vmatpush1.bf16.msra.mxu1 %v1448_v21 }
  0x64   : > { %938 = vmatprep.subr.bf16.mxu1 %v1456_v22 }
  0x67   : > { %939 = vmatpush1.bf16.msra.mxu1 %v1454_v24 }
  0x68   : > { %940 = vmatprep.subr.bf16.mxu1 %v1462_v25  ;;  %v1111_v25 = vld [vmem:[%s1724_s3] sm:$0xff] }
  0x6b   : > { %941 = vmatpush1.bf16.msra.mxu1 %v1460_v26  ;;  %v1112_v26 = vld [vmem:[%s1724_s3 + $0x8] sm:$0xff] }
  0x6c   : > { %942 = vmatprep.subr.bf16.mxu1 %v1468_v27  ;;  %v1127_v27 = vld [vmem:[%s1725_s4] sm:$0xff] }
  0x6f   : > { %943 = vmatpush1.bf16.msra.mxu1 %v1466_v1 }
  0x70   : > { %944 = vmatprep.subr.bf16.mxu1 %v1474_v29 }
  0x73   : > { %945 = vmatpush1.bf16.msra.mxu1 %v1472_v30 }
  0x74   : > { %946 = vmatprep.subr.bf16.mxu1 %v1480_v31 }
  0x77   : > { %947 = vmatpush1.bf16.msra.mxu1 %v1478_v32 }
  0x78   : > { %948 = vmatprep.subr.bf16.mxu1 %v1487_v33 }
  0x7b   : > { %949 = vmatpush1.bf16.msra.mxu1 %v1485_v34 }
  0x7c   : > { %950 = vmatprep.subr.bf16.mxu1 %v1493_v35 }
  0x7f   : > { %951 = vmatpush1.bf16.msra.mxu1 %v1491_v36 }
  0x80   : > { %952 = vmatprep.subr.bf16.mxu1 %v1499_v37 }
  0x83   : > { %953 = vmatpush1.bf16.msra.mxu1 %v1497_v38 }
  0x84   : > { %954 = vmatprep.subr.bf16.mxu1 %v1503_v39 }
  0x87   : > { %955 = vmatpush1.bf16.msra.mxu1 %v1501_v40 }
  0x88   : > { %956 = vmatprep.subr.bf16.mxu1 %v1506_v41 }
  0x8b   : > { %957 = vmatpush1.bf16.msra.mxu1 %v1504_v42 }
  0x8c   : > { %958 = vmatprep.subr.bf16.mxu1 %v1509_v43 }
  0x8f   : > { %959 = vmatpush1.bf16.msra.mxu1 %v1507_v44 }
  0x92   : > { %961 = vmatmul.mubr.bf16.vlgmr.msra.gmra.mrb[0].mxu1 %v1510_v45 }
  0xa7   : > { %v339_v50 = vpop.permute.xlu0 %338 }
  0xab   : > { %v344_v52 = vpop.permute.xlu0 %343 }
 0x134   : > { %v1048_v46 = vpop.f32.mrb[0].mxu0 }
 0x135   : > { %v1050_v47 = vpop.f32.mrb[1].mxu0 }
 0x136   : > { %v1052_v48 = vpop.f32.mrb[2].mxu0 }
 0x137   : > { %v1054_v49 = vpop.f32.mrb[3].mxu0 }
 0x165   : > { %v962_v51 = vpop.f32.mrb[0].mxu1 }
 0x166   : > { %v1325_v53 = vadd.f32 %v962_v51, %v339_v50  ;;  %v964_v54 = vpop.f32.mrb[1].mxu1 }
 0x167   : > { %v1327_v55 = vadd.f32 %v964_v54, %v339_v50  ;;  %v966_v56 = vpop.f32.mrb[2].mxu1 }
 0x168   : > { %v1329_v57 = vadd.f32 %v966_v56, %v344_v52  ;;  %v968_v58 = vpop.f32.mrb[3].mxu1  ;;  %v1326_v59 = vadd.f32 %v1325_v53, %v1048_v46 }
 0x169   : > { %v1331_v60 = vadd.f32 %v968_v58, %v344_v52  ;;  %v1328_v61 = vadd.f32 %v1327_v55, %v1050_v47 }
 0x16a   : > { %v1330_v62 = vadd.f32 %v1329_v57, %v1052_v48 }
 0x16b   : > { %v1332_v63 = vadd.f32 %v1331_v60, %v1054_v49  ;;  %v1057_v0 = vadd.f32 %v1328_v61, %v1326_v59 }
 0x16d   : > { %1058 = vadd.xlane.f32.xlu1 %v1057_v0  ;;  %v1060_v2 = vadd.f32 %v1332_v63, %v1330_v62 }
 0x171   : > { %1061 = vadd.xlane.f32.xlu1 %v1060_v2 }
 0x1fa   : > { %v1059_v3 = vpop.xlane.xlu1 %1058 }
 0x1fb   : > { %v1064_v5 = vmul.f32 0.00390625, %v1059_v3 }
 0x1fe   : > { %v1062_v4 = vpop.xlane.xlu1 %1061 }
 0x1ff   : > { %v1065_v6 = vmul.f32 0.00390625, %v1062_v4 }
 0x201   : > { %v1066_v7 = vadd.f32 %v1065_v6, %v1064_v5 }
 0x203   : > { %v1067_v8 = vrot.slane %v1066_v7, 4 }
 0x205   : > { %v1068_v9 = vadd.f32 %v1067_v8, %v1066_v7 }
 0x207   : > { %v1069_v10 = vrot.slane %v1068_v9, 2 }
 0x209   : > { %v1070_v11 = vadd.f32 %v1069_v10, %v1068_v9 }
 0x20b   : > { %v1071_v12 = vrot.slane %v1070_v11, 1 }
 0x20d   : > { %v1072_v13 = vadd.f32 %v1071_v12, %v1070_v11 }
 0x20f   : > { %v1074_v14 = vmul.f32 0.0625, %v1072_v13 }
 0x211   : > { %v1077_v15 = vsub.f32 %v1330_v62, %v1074_v14  ;;  %v1078_v16 = vsub.f32 %v1332_v63, %v1074_v14  ;;  %v1075_v17 = vsub.f32 %v1326_v59, %v1074_v14  ;;  %v1076_v18 = vsub.f32 %v1328_v61, %v1074_v14 }
 0x213   : > { %v1081_v19 = vmul.f32 %v1077_v15, %v1077_v15  ;;  %v1082_v20 = vmul.f32 %v1078_v16, %v1078_v16  ;;  %v1079_v21 = vmul.f32 %v1075_v17, %v1075_v17  ;;  %v1080_v22 = vmul.f32 %v1076_v18, %v1076_v18 }
 0x215   : > { %v1086_v23 = vadd.f32 %v1082_v20, %v1081_v19  ;;  %v1083_v24 = vadd.f32 %v1080_v22, %v1079_v21 }
 0x217   : > { %1087 = vadd.xlane.f32.xlu1 %v1086_v23  ;;  %1084 = vadd.xlane.f32.xlu0 %v1083_v24 }
 0x228   : > { %1115 = vperm.xlu1 %1352, %v1111_v25  }
 0x22c   : > { %1120 = vperm.xlu1 %1352, %v1112_v26  }
 0x230   : > { %1131 = vperm.xlu1 %1352, %v1127_v27  }
 0x234   : > { %1136 = vperm.xlu1 %1352, %v1128_v28  }
 0x2a4   : > { %v1088_v1 = vpop.xlane.xlu1 %1087  ;;  %v1085_v29 = vpop.xlane.xlu0 %1084 }
 0x2a5   : > { %v1089_v30 = vadd.f32 %v1088_v1, %v1085_v29 }
 0x2a7   : > { %v1090_v31 = vrot.slane %v1089_v30, 4 }
 0x2a8   : > { %v1116_v42 = vpop.permute.xlu1 %1115 }
 0x2a9   : > { %v1091_v32 = vadd.f32 %v1090_v31, %v1089_v30 }
 0x2ab   : > { %v1092_v33 = vrot.slane %v1091_v32, 2 }
 0x2ac   : > { %v1121_v45 = vpop.permute.xlu1 %1120 }
 0x2ad   : > { %v1093_v34 = vadd.f32 %v1092_v33, %v1091_v32 }
 0x2af   : > { %v1094_v35 = vrot.slane %v1093_v34, 1 }
 0x2b0   : > { %v1132_v46 = vpop.permute.xlu1 %1131 }
 0x2b1   : > { %v1095_v36 = vadd.f32 %v1094_v35, %v1093_v34 }
 0x2b3   : > { %v1097_v37 = vmul.f32 0.00024420026, %v1095_v36 }
 0x2b4   : > { %v1137_v56 = vpop.permute.xlu1 %1136 }
 0x2b5   : > { %1513 = vrsqrt.f32 %v1097_v37  ;;  %vm1100_vm1 = vcmp.eq.f32.partialorder %v1097_v37, inf  ;;  %v1103_v40 = vand.u32 2147483648, %v1097_v37  ;;  %vm1102_vm2 = vcmp.eq.f32.partialorder %v1097_v37, 0.0 }
 0x2bf   : > { %v1514_v38 = vpop.eup %1513 }
 0x2c0   : > { %v1099_v39 = vmul.f32 %v1514_v38, %v1097_v37 }
 0x2c2   : > { %v1101_v41 = vsel %vm1100_vm1, %v1097_v37, %v1099_v39 }
 0x2c3   : > { %v1104_v43 = vsel %vm1102_vm2, %v1103_v40, %v1101_v41 }
 0x2c4   : > { %v1105_v44 = vadd.f32 1e-05, %v1104_v43 }
 0x2c6   : > { %1515 = vrcp.f32 %v1105_v44 }
 0x2d0   : > { %v1516_v47 = vpop.eup %1515 }
 0x2d1   : > { %v1107_v48 = vmul.f32 %v1516_v47, %v1075_v17  ;;  %v1108_v49 = vmul.f32 %v1516_v47, %v1076_v18  ;;  %v1109_v50 = vmul.f32 %v1516_v47, %v1077_v15  ;;  %v1110_v51 = vmul.f32 %v1516_v47, %v1078_v16 }
 0x2d3   : > { %v1123_v52 = vmul.f32 %v1116_v42, %v1107_v48  ;;  %v1124_v53 = vmul.f32 %v1116_v42, %v1108_v49  ;;  %v1125_v54 = vmul.f32 %v1121_v45, %v1109_v50  ;;  %v1126_v55 = vmul.f32 %v1121_v45, %v1110_v51 }
 0x2d5   : > { %v1139_v57 = vadd.f32 %v1132_v46, %v1123_v52  ;;  %v1140_v58 = vadd.f32 %v1132_v46, %v1124_v53  ;;  %v1141_v59 = vadd.f32 %v1137_v56, %v1125_v54  ;;  %v1142_v60 = vadd.f32 %v1137_v56, %v1126_v55 }
 0x2d7   : > { %v1143_v61 = vmax.f32 %v1139_v57, 0.0  ;;  %v1144_v62 = vmax.f32 %v1140_v58, 0.0  ;;  %v1145_v63 = vmax.f32 %v1141_v59, 0.0  ;;  %v1146_v0 = vmax.f32 %v1142_v60, 0.0 }
 0x2d9   : > { %1147 = vst [vmem:[%s224_s30] sm:$0xff] %v1143_v61  ;;  %1148 = vst [vmem:[%s224_s30 + $0x8] sm:$0xff] %v1144_v62 }
 0x2da   : > { %1149 = vst [vmem:[%s224_s30 + $0x10] sm:$0xff] %v1145_v63  ;;  %1150 = vst [vmem:[%s224_s30 + $0x18] sm:$0xff] %v1146_v0 }
 0x2db PF: > { %s15_s18 = sadd.s32 1, %s1523_s18  }
 0x2dc   : > { %p12_p4 = scmp.ge.s32.totalorder %s15_s18, 4  }
 0x2de   :  { %14 = sbr.rel (!%p12_p4) target bundleno = 1 (0x1), region = 70 }

// kernel: adain_gen_forward.36
= control target key start
LH: loop header
LB: loop body
LE: loop exit
PB: predicated region body
PF: predicated region fallthrough
CT: control target
= control target key end

     0   :  { %s2249_s18 = smov 0   ;;  %s2527_s0 = inlined_call_operand.vmem [shape: bf16[2,400,1024], index: 0, kind: input, shape index: {}]   ;;  %s2528_s1 = inlined_call_operand.vmem [shape: bf16[8,400], index: 1, kind: input, shape index: {}]   ;;  %s2529_s2 = inlined_call_operand.vmem [shape: f32[8,1], index: 2, kind: input, shape index: {}]   ;;  %s2530_s3 = inlined_call_operand.vmem [shape: f32[1,8,1], index: 3, kind: input, shape index: {}]   ;;  %s2531_s4 = inlined_call_operand.vmem [shape: f32[1,8,1], index: 4, kind: input, shape index: {}]   ;;  %s2532_s5 = inlined_call_operand.vmem [shape: f32[2,8,1024], index: 5, kind: output, shape index: {}]  }
   0x1 LB: > { %s1947_s19 = sadd.s32 4294967295, %s2216_s18   ;;  %p1951_p0 = scmp.ge.s32.totalorder %s2216_s18, 1  ;;  %s2216_s18 = sphi %s2249_s18, %s15_s18  }
   0x2   : > { %p187_p1 = scmp.lt.s32.totalorder %s2216_s18, 3 }
   0x4   : > { %p188_p2 = pnand %p1951_p0, %p187_p1 }
   0x5   : > { %p215_p3 = scmp.lt.s32.totalorder (!%p188_p2), %s1947_s19, 1  ;;  %v2260_v0 = vld [vmem:[%s2528_s1] sm:$0xff] (!%p188_p2)  ;;  %vm1447_vm0 = vcmask (!%p188_p2), 130048  }
   0x6   : > { %191 = sbr.rel (%p188_p2) target bundleno = 815 (0x32f), region = 40  ;;  %v2264_v1 = vcombine.high (!%p188_p2), %v2260_v0, %v2260_v0 }
   0x8   : > { %1483 = vmatprep.mubr.bf16.mxu0 (!%p188_p2), %v2264_v1  ;;  %1565 = vmatprep.mubr.bf16.mxu1 (!%p188_p2), %v2264_v1 }
   0xd   : > { %s2534_s19 = smov (!%p215_p3, %s1947_s19), 1 }
   0xe   : > { %s2190_s22 = smul.u32 1600, %s2534_s19  ;;  %s2165_s9 = sshll.u32 %s2534_s19, 6 }
   0xf   : > { %s224_s12 = scalar_lea.vmem %s2532_s5, %s2165_s9 }
  0x10   : > { %s2274_s25 = scalar_lea.vmem %s2527_s0, %s2190_s22 }
  0x11   : > { %v226_v2 = vld [vmem:[%s2274_s25] sm:$0xff]  ;;  %v227_v4 = vld [vmem:[%s2274_s25 + $0x8] sm:$0xff] }
  0x12   : > { %v230_v3 = vld [vmem:[%s2274_s25 + $0x20] sm:$0xff]  ;;  %v231_v6 = vld [vmem:[%s2274_s25 + $0x28] sm:$0xff] }
  0x13   : > { %v1960_v5 = vcombine.high %v226_v2, %v230_v3  ;;  %v1959_v7 = vcombine.low %v226_v2, %v230_v3  ;;  %v234_v8 = vld [vmem:[%s2274_s25 + $0x40] sm:$0xff]  ;;  %v1962_v10 = vcombine.high %v227_v4, %v231_v6  ;;  %v1961_v11 = vcombine.low %v227_v4, %v231_v6  ;;  %v235_v13 = vld [vmem:[%s2274_s25 + $0x48] sm:$0xff] }
  0x14   : > { %v238_v9 = vld [vmem:[%s2274_s25 + $0x60] sm:$0xff]  ;;  %v239_v14 = vld [vmem:[%s2274_s25 + $0x68] sm:$0xff] }
  0x15   : > { %v1968_v12 = vcombine.high %v234_v8, %v238_v9  ;;  %v242_v15 = vld [vmem:[%s2274_s25 + $0x80] sm:$0xff]  ;;  %1451 = vmatprep.subr.bf16.mxu0 %v1960_v5  ;;  %v1970_v16 = vcombine.high %v235_v13, %v239_v14  ;;  %v243_v18 = vld [vmem:[%s2274_s25 + $0x88] sm:$0xff]  ;;  %1533 = vmatprep.subr.bf16.mxu1 %v1962_v10  ;;  %v1967_v20 = vcombine.low %v234_v8, %v238_v9 }
  0x16   : > { %v246_v17 = vld [vmem:[%s2274_s25 + $0xa0] sm:$0xff]  ;;  %v247_v19 = vld [vmem:[%s2274_s25 + $0xa8] sm:$0xff]  ;;  %1452 = vmatpush1.bf16.msra.mxu0 %v1959_v7  ;;  %1534 = vmatpush1.bf16.msra.mxu1 %v1961_v11  ;;  %v1969_v21 = vcombine.low %v235_v13, %v239_v14 }
  0x17   : > { %1453 = vmatprep.subr.bf16.mxu0 %v1968_v12  ;;  %v1976_v22 = vcombine.high %v242_v15, %v246_v17  ;;  %1535 = vmatprep.subr.bf16.mxu1 %v1970_v16  ;;  %v1978_v23 = vcombine.high %v243_v18, %v247_v19  ;;  %v250_v24 = vld [vmem:[%s2274_s25 + $0xc0] sm:$0xff]  ;;  %v251_v26 = vld [vmem:[%s2274_s25 + $0xc8] sm:$0xff]  ;;  %v1975_v28 = vcombine.low %v242_v15, %v246_v17 }
  0x18   : > { %v254_v25 = vld [vmem:[%s2274_s25 + $0xe0] sm:$0xff]  ;;  %v255_v27 = vld [vmem:[%s2274_s25 + $0xe8] sm:$0xff]  ;;  %v1977_v29 = vcombine.low %v243_v18, %v247_v19 }
  0x19   : > { %v1984_v30 = vcombine.high %v250_v24, %v254_v25  ;;  %v1986_v31 = vcombine.high %v251_v26, %v255_v27  ;;  %v258_v32 = vld [vmem:[%s2274_s25 + $0x100] sm:$0xff]  ;;  %v259_v34 = vld [vmem:[%s2274_s25 + $0x108] sm:$0xff]  ;;  %v1983_v36 = vcombine.low %v250_v24, %v254_v25  ;;  %v1985_v37 = vcombine.low %v251_v26, %v255_v27 }
  0x1a   : > { %1454 = vmatpush1.bf16.msra.mxu0 %v1967_v20  ;;  %1536 = vmatpush1.bf16.msra.mxu1 %v1969_v21  ;;  %v262_v33 = vld [vmem:[%s2274_s25 + $0x120] sm:$0xff]  ;;  %v263_v35 = vld [vmem:[%s2274_s25 + $0x128] sm:$0xff] }
  0x1b   : > { %1455 = vmatprep.subr.bf16.mxu0 %v1976_v22  ;;  %1537 = vmatprep.subr.bf16.mxu1 %v1978_v23  ;;  %v1992_v38 = vcombine.high %v258_v32, %v262_v33  ;;  %v1994_v39 = vcombine.high %v259_v34, %v263_v35  ;;  %v266_v40 = vld [vmem:[%s2274_s25 + $0x140] sm:$0xff]  ;;  %v267_v42 = vld [vmem:[%s2274_s25 + $0x148] sm:$0xff]  ;;  %v1991_v44 = vcombine.low %v258_v32, %v262_v33 }
  0x1c   : > { %v270_v41 = vld [vmem:[%s2274_s25 + $0x160] sm:$0xff]  ;;  %v271_v43 = vld [vmem:[%s2274_s25 + $0x168] sm:$0xff]  ;;  %v1993_v45 = vcombine.low %v259_v34, %v263_v35 }
  0x1d   : > { %v2000_v46 = vcombine.high %v266_v40, %v270_v41  ;;  %v2002_v47 = vcombine.high %v267_v42, %v271_v43  ;;  %v274_v48 = vld [vmem:[%s2274_s25 + $0x180] sm:$0xff]  ;;  %v275_v50 = vld [vmem:[%s2274_s25 + $0x188] sm:$0xff]  ;;  %v1999_v52 = vcombine.low %v266_v40, %v270_v41  ;;  %v2001_v53 = vcombine.low %v267_v42, %v271_v43 }
  0x1e   : > { %1456 = vmatpush1.bf16.msra.mxu0 %v1975_v28  ;;  %1538 = vmatpush1.bf16.msra.mxu1 %v1977_v29  ;;  %v278_v49 = vld [vmem:[%s2274_s25 + $0x1a0] sm:$0xff]  ;;  %v279_v51 = vld [vmem:[%s2274_s25 + $0x1a8] sm:$0xff] }
  0x1f   : > { %1457 = vmatprep.subr.bf16.mxu0 %v1984_v30  ;;  %1539 = vmatprep.subr.bf16.mxu1 %v1986_v31  ;;  %v2008_v54 = vcombine.high %v274_v48, %v278_v49  ;;  %v2010_v55 = vcombine.high %v275_v50, %v279_v51  ;;  %v282_v56 = vld [vmem:[%s2274_s25 + $0x1c0] sm:$0xff]  ;;  %v283_v58 = vld [vmem:[%s2274_s25 + $0x1c8] sm:$0xff]  ;;  %v2007_v60 = vcombine.low %v274_v48, %v278_v49 }
  0x20   : > { %v286_v57 = vld [vmem:[%s2274_s25 + $0x1e0] sm:$0xff]  ;;  %v287_v59 = vld [vmem:[%s2274_s25 + $0x1e8] sm:$0xff]  ;;  %v2009_v61 = vcombine.low %v275_v50, %v279_v51 }
  0x21   : > { %v2016_v62 = vcombine.high %v282_v56, %v286_v57  ;;  %v2018_v63 = vcombine.high %v283_v58, %v287_v59  ;;  %v290_v2 = vld [vmem:[%s2274_s25 + $0x200] sm:$0xff]  ;;  %v291_v4 = vld [vmem:[%s2274_s25 + $0x208] sm:$0xff]  ;;  %v2015_v6 = vcombine.low %v282_v56, %v286_v57  ;;  %v2017_v7 = vcombine.low %v283_v58, %v287_v59 }
  0x22   : > { %1458 = vmatpush1.bf16.msra.mxu0 %v1983_v36  ;;  %1540 = vmatpush1.bf16.msra.mxu1 %v1985_v37  ;;  %v294_v3 = vld [vmem:[%s2274_s25 + $0x220] sm:$0xff]  ;;  %v295_v5 = vld [vmem:[%s2274_s25 + $0x228] sm:$0xff] }
  0x23   : > { %1459 = vmatprep.subr.bf16.mxu0 %v1992_v38  ;;  %1541 = vmatprep.subr.bf16.mxu1 %v1994_v39  ;;  %v2024_v8 = vcombine.high %v290_v2, %v294_v3  ;;  %v2026_v9 = vcombine.high %v291_v4, %v295_v5  ;;  %v298_v10 = vld [vmem:[%s2274_s25 + $0x240] sm:$0xff]  ;;  %v299_v12 = vld [vmem:[%s2274_s25 + $0x248] sm:$0xff]  ;;  %v2023_v14 = vcombine.low %v290_v2, %v294_v3 }
  0x24   : > { %v302_v11 = vld [vmem:[%s2274_s25 + $0x260] sm:$0xff]  ;;  %v303_v13 = vld [vmem:[%s2274_s25 + $0x268] sm:$0xff]  ;;  %v2025_v15 = vcombine.low %v291_v4, %v295_v5 }
  0x25   : > { %v2032_v16 = vcombine.high %v298_v10, %v302_v11  ;;  %v2034_v17 = vcombine.high %v299_v12, %v303_v13  ;;  %v306_v18 = vld [vmem:[%s2274_s25 + $0x280] sm:$0xff]  ;;  %v307_v20 = vld [vmem:[%s2274_s25 + $0x288] sm:$0xff]  ;;  %v2031_v22 = vcombine.low %v298_v10, %v302_v11  ;;  %v2033_v23 = vcombine.low %v299_v12, %v303_v13 }
  0x26   : > { %1460 = vmatpush1.bf16.msra.mxu0 %v1991_v44  ;;  %1542 = vmatpush1.bf16.msra.mxu1 %v1993_v45  ;;  %v310_v19 = vld [vmem:[%s2274_s25 + $0x2a0] sm:$0xff]  ;;  %v311_v21 = vld [vmem:[%s2274_s25 + $0x2a8] sm:$0xff] }
  0x27   : > { %1461 = vmatprep.subr.bf16.mxu0 %v2000_v46  ;;  %1543 = vmatprep.subr.bf16.mxu1 %v2002_v47  ;;  %v2040_v24 = vcombine.high %v306_v18, %v310_v19  ;;  %v2042_v25 = vcombine.high %v307_v20, %v311_v21  ;;  %v314_v26 = vld [vmem:[%s2274_s25 + $0x2c0] sm:$0xff]  ;;  %v315_v28 = vld [vmem:[%s2274_s25 + $0x2c8] sm:$0xff]  ;;  %v2039_v30 = vcombine.low %v306_v18, %v310_v19 }
  0x28   : > { %v318_v27 = vld [vmem:[%s2274_s25 + $0x2e0] sm:$0xff]  ;;  %v319_v29 = vld [vmem:[%s2274_s25 + $0x2e8] sm:$0xff]  ;;  %v2041_v31 = vcombine.low %v307_v20, %v311_v21 }
  0x29   : > { %v2048_v32 = vcombine.high %v314_v26, %v318_v27  ;;  %v2050_v33 = vcombine.high %v315_v28, %v319_v29  ;;  %v322_v34 = vld [vmem:[%s2274_s25 + $0x300] sm:$0xff]  ;;  %v323_v36 = vld [vmem:[%s2274_s25 + $0x308] sm:$0xff]  ;;  %v2047_v38 = vcombine.low %v314_v26, %v318_v27  ;;  %v2049_v39 = vcombine.low %v315_v28, %v319_v29 }
  0x2a   : > { %1462 = vmatpush1.bf16.msra.mxu0 %v1999_v52  ;;  %1544 = vmatpush1.bf16.msra.mxu1 %v2001_v53  ;;  %v326_v35 = vld [vmem:[%s2274_s25 + $0x320] sm:$0xff]  ;;  %v327_v37 = vld [vmem:[%s2274_s25 + $0x328] sm:$0xff] }
  0x2b   : > { %1463 = vmatprep.subr.bf16.mxu0 %v2008_v54  ;;  %1545 = vmatprep.subr.bf16.mxu1 %v2010_v55  ;;  %v2056_v40 = vcombine.high %v322_v34, %v326_v35  ;;  %v2058_v41 = vcombine.high %v323_v36, %v327_v37  ;;  %v330_v42 = vld [vmem:[%s2274_s25 + $0x340] sm:$0xff]  ;;  %v331_v44 = vld [vmem:[%s2274_s25 + $0x348] sm:$0xff]  ;;  %v2055_v46 = vcombine.low %v322_v34, %v326_v35 }
  0x2c   : > { %v334_v43 = vld [vmem:[%s2274_s25 + $0x360] sm:$0xff]  ;;  %v335_v45 = vld [vmem:[%s2274_s25 + $0x368] sm:$0xff]  ;;  %v2057_v47 = vcombine.low %v323_v36, %v327_v37 }
  0x2d   : > { %v2064_v48 = vcombine.high %v330_v42, %v334_v43  ;;  %v2066_v49 = vcombine.high %v331_v44, %v335_v45  ;;  %v338_v50 = vld [vmem:[%s2274_s25 + $0x380] sm:$0xff]  ;;  %v339_v52 = vld [vmem:[%s2274_s25 + $0x388] sm:$0xff]  ;;  %v2063_v54 = vcombine.low %v330_v42, %v334_v43  ;;  %v2065_v55 = vcombine.low %v331_v44, %v335_v45 }
  0x2e   : > { %1464 = vmatpush1.bf16.msra.mxu0 %v2007_v60  ;;  %1546 = vmatpush1.bf16.msra.mxu1 %v2009_v61  ;;  %v342_v51 = vld [vmem:[%s2274_s25 + $0x3a0] sm:$0xff]  ;;  %v343_v53 = vld [vmem:[%s2274_s25 + $0x3a8] sm:$0xff] }
  0x2f   : > { %1465 = vmatprep.subr.bf16.mxu0 %v2016_v62  ;;  %1547 = vmatprep.subr.bf16.mxu1 %v2018_v63  ;;  %v2072_v56 = vcombine.high %v338_v50, %v342_v51  ;;  %v2074_v57 = vcombine.high %v339_v52, %v343_v53  ;;  %v346_v58 = vld [vmem:[%s2274_s25 + $0x3c0] sm:$0xff]  ;;  %v347_v60 = vld [vmem:[%s2274_s25 + $0x3c8] sm:$0xff]  ;;  %v2071_v62 = vcombine.low %v338_v50, %v342_v51 }
  0x30   : > { %v350_v59 = vld [vmem:[%s2274_s25 + $0x3e0] sm:$0xff]  ;;  %v351_v61 = vld [vmem:[%s2274_s25 + $0x3e8] sm:$0xff]  ;;  %v2073_v63 = vcombine.low %v339_v52, %v343_v53 }
  0x31   : > { %v2080_v2 = vcombine.high %v346_v58, %v350_v59  ;;  %v2082_v3 = vcombine.high %v347_v60, %v351_v61  ;;  %v354_v4 = vld [vmem:[%s2274_s25 + $0x400] sm:$0xff]  ;;  %v2081_v10 = vcombine.low %v347_v60, %v351_v61  ;;  %v367_v18 = vld [vmem:[%s2274_s25 + $0x468] sm:$0xff] }
  0x32   : > { %1466 = vmatpush1.bf16.msra.mxu0 %v2015_v6  ;;  %1548 = vmatpush1.bf16.msra.mxu1 %v2017_v7  ;;  %v358_v5 = vld [vmem:[%s2274_s25 + $0x420] sm:$0xff]  ;;  %v355_v6 = vld [vmem:[%s2274_s25 + $0x408] sm:$0xff] }
  0x33   : > { %1467 = vmatprep.subr.bf16.mxu0 %v2024_v8  ;;  %1549 = vmatprep.subr.bf16.mxu1 %v2026_v9  ;;  %v359_v7 = vld [vmem:[%s2274_s25 + $0x428] sm:$0xff]  ;;  %v2218_v8 = vmov 0   ;;  %v2079_v9 = vcombine.low %v346_v58, %v350_v59  ;;  %v2088_v11 = vcombine.high %v354_v4, %v358_v5  ;;  %v428_v12 = vld [vmem:[%s2529_s2] sm:$0xff]  ;;  %v2087_v20 = vcombine.low %v354_v4, %v358_v5 }
  0x34   : > { %2200 = vset.pattern.permute.xlu0 %v2218_v8  ;;  %2201 = vset.pattern.permute.xlu1 %v2218_v8  ;;  %v2090_v13 = vcombine.high %v355_v6, %v359_v7  ;;  %v2358_v19 = vld [vmem:[%s2528_s1 + $0x8] sm:$0xff]  ;;  %v2089_v21 = vcombine.low %v355_v6, %v359_v7 }
  0x35   : > { %431 = vperm.xlu0 %2200, %v428_v12   ;;  %v371_v26 = vld [vmem:[%s2274_s25 + $0x488] sm:$0xff] }
  0x36   : > { %1468 = vmatpush1.bf16.msra.mxu0 %v2023_v14  ;;  %1550 = vmatpush1.bf16.msra.mxu1 %v2025_v15  ;;  %v362_v14 = vld [vmem:[%s2274_s25 + $0x440] sm:$0xff]  ;;  %v375_v27 = vld [vmem:[%s2274_s25 + $0x4a8] sm:$0xff] }
  0x37   : > { %1469 = vmatprep.subr.bf16.mxu0 %v2032_v16  ;;  %1551 = vmatprep.subr.bf16.mxu1 %v2034_v17  ;;  %v366_v15 = vld [vmem:[%s2274_s25 + $0x460] sm:$0xff]  ;;  %v2351_v16 = vcombine.low %v2260_v0, %v2260_v0  ;;  %v363_v17 = vld [vmem:[%s2274_s25 + $0x448] sm:$0xff]  ;;  %v2105_v37 = vcombine.low %v371_v26, %v375_v27 }
  0x38   : > { %v374_v0 = vld [vmem:[%s2274_s25 + $0x4a0] sm:$0xff]  ;;  %v2095_v28 = vcombine.low %v362_v14, %v366_v15  ;;  %v2097_v29 = vcombine.low %v363_v17, %v367_v18  ;;  %v379_v34 = vld [vmem:[%s2274_s25 + $0x4c8] sm:$0xff] }
  0x39   : > { %v383_v35 = vld [vmem:[%s2274_s25 + $0x4e8] sm:$0xff] }
  0x3a   : > { %1470 = vmatpush1.bf16.msra.mxu0 %v2031_v22  ;;  %1552 = vmatpush1.bf16.msra.mxu1 %v2033_v23  ;;  %v2096_v22 = vcombine.high %v362_v14, %v366_v15  ;;  %v2098_v23 = vcombine.high %v363_v17, %v367_v18  ;;  %v387_v42 = vld [vmem:[%s2274_s25 + $0x508] sm:$0xff]  ;;  %v2113_v45 = vcombine.low %v379_v34, %v383_v35 }
  0x3b   : > { %1471 = vmatprep.subr.bf16.mxu0 %v2040_v24  ;;  %1553 = vmatprep.subr.bf16.mxu1 %v2042_v25  ;;  %v370_v24 = vld [vmem:[%s2274_s25 + $0x480] sm:$0xff]  ;;  %v2364_v25 = vcombine.high %v2358_v19, %v2358_v19  ;;  %v391_v43 = vld [vmem:[%s2274_s25 + $0x528] sm:$0xff] }
  0x3c   : > { %v2103_v36 = vcombine.low %v370_v24, %v374_v0  ;;  %v395_v50 = vld [vmem:[%s2274_s25 + $0x548] sm:$0xff]  ;;  %v2121_v53 = vcombine.low %v387_v42, %v391_v43 }
  0x3d   : > { %v399_v51 = vld [vmem:[%s2274_s25 + $0x568] sm:$0xff] }
  0x3e   : > { %1472 = vmatpush1.bf16.msra.mxu0 %v2039_v30  ;;  %1554 = vmatpush1.bf16.msra.mxu1 %v2041_v31  ;;  %v2104_v30 = vcombine.high %v370_v24, %v374_v0  ;;  %v2106_v31 = vcombine.high %v371_v26, %v375_v27  ;;  %v403_v58 = vld [vmem:[%s2274_s25 + $0x588] sm:$0xff]  ;;  %v2129_v61 = vcombine.low %v395_v50, %v399_v51 }
  0x3f   : > { %1473 = vmatprep.subr.bf16.mxu0 %v2048_v32  ;;  %1555 = vmatprep.subr.bf16.mxu1 %v2050_v33  ;;  %v378_v32 = vld [vmem:[%s2274_s25 + $0x4c0] sm:$0xff]  ;;  %v407_v59 = vld [vmem:[%s2274_s25 + $0x5a8] sm:$0xff] }
  0x40   : > { %v382_v33 = vld [vmem:[%s2274_s25 + $0x4e0] sm:$0xff]  ;;  %v411_v4 = vld [vmem:[%s2274_s25 + $0x5c8] sm:$0xff]  ;;  %v2137_v7 = vcombine.low %v403_v58, %v407_v59 }
  0x41   : > { %v2111_v44 = vcombine.low %v378_v32, %v382_v33  ;;  %v415_v5 = vld [vmem:[%s2274_s25 + $0x5e8] sm:$0xff] }
  0x42   : > { %1474 = vmatpush1.bf16.msra.mxu0 %v2047_v38  ;;  %1556 = vmatpush1.bf16.msra.mxu1 %v2049_v39  ;;  %v2112_v38 = vcombine.high %v378_v32, %v382_v33  ;;  %v2114_v39 = vcombine.high %v379_v34, %v383_v35  ;;  %v419_v12 = vld [vmem:[%s2274_s25 + $0x608] sm:$0xff]  ;;  %v2145_v15 = vcombine.low %v411_v4, %v415_v5  ;;  %v241_v32 = vld [vmem:[%s2274_s25 + $0x78] sm:$0xff] }
  0x43   : > { %1475 = vmatprep.subr.bf16.mxu0 %v2056_v40  ;;  %1557 = vmatprep.subr.bf16.mxu1 %v2058_v41  ;;  %v386_v40 = vld [vmem:[%s2274_s25 + $0x500] sm:$0xff] }
  0x44   : > { %v390_v41 = vld [vmem:[%s2274_s25 + $0x520] sm:$0xff] }
  0x45   : > { %v2119_v52 = vcombine.low %v386_v40, %v390_v41 }
  0x46   : > { %1476 = vmatpush1.bf16.msra.mxu0 %v2055_v46  ;;  %1558 = vmatpush1.bf16.msra.mxu1 %v2057_v47  ;;  %v2120_v46 = vcombine.high %v386_v40, %v390_v41  ;;  %v2122_v47 = vcombine.high %v387_v42, %v391_v43 }
  0x47   : > { %1477 = vmatprep.subr.bf16.mxu0 %v2064_v48  ;;  %1559 = vmatprep.subr.bf16.mxu1 %v2066_v49  ;;  %v394_v48 = vld [vmem:[%s2274_s25 + $0x540] sm:$0xff] }
  0x48   : > { %v398_v49 = vld [vmem:[%s2274_s25 + $0x560] sm:$0xff] }
  0x49   : > { %v2127_v60 = vcombine.low %v394_v48, %v398_v49 }
  0x4a   : > { %1478 = vmatpush1.bf16.msra.mxu0 %v2063_v54  ;;  %1560 = vmatpush1.bf16.msra.mxu1 %v2065_v55  ;;  %v2128_v54 = vcombine.high %v394_v48, %v398_v49  ;;  %v2130_v55 = vcombine.high %v395_v50, %v399_v51 }
  0x4b   : > { %1479 = vmatprep.subr.bf16.mxu0 %v2072_v56  ;;  %1561 = vmatprep.subr.bf16.mxu1 %v2074_v57  ;;  %v402_v56 = vld [vmem:[%s2274_s25 + $0x580] sm:$0xff] }
  0x4c   : > { %v406_v57 = vld [vmem:[%s2274_s25 + $0x5a0] sm:$0xff] }
  0x4d   : > { %v2135_v6 = vcombine.low %v402_v56, %v406_v57 }
  0x4e   : > { %1480 = vmatpush1.bf16.msra.mxu0 %v2071_v62  ;;  %1562 = vmatpush1.bf16.msra.mxu1 %v2073_v63  ;;  %v2136_v62 = vcombine.high %v402_v56, %v406_v57  ;;  %v2138_v63 = vcombine.high %v403_v58, %v407_v59  ;;  %v268_v59 = vld [vmem:[%s2274_s25 + $0x150] sm:$0xff] }
  0x4f   : > { %1481 = vmatprep.subr.bf16.mxu0 %v2080_v2  ;;  %1563 = vmatprep.subr.bf16.mxu1 %v2082_v3  ;;  %v410_v2 = vld [vmem:[%s2274_s25 + $0x5c0] sm:$0xff] }
  0x50   : > { %v414_v3 = vld [vmem:[%s2274_s25 + $0x5e0] sm:$0xff] }
  0x51   : > { %v2144_v8 = vcombine.high %v410_v2, %v414_v3  ;;  %v2143_v14 = vcombine.low %v410_v2, %v414_v3 }
  0x52   : > { %1482 = vmatpush1.bf16.msra.mxu0 %v2079_v9  ;;  %1564 = vmatpush1.bf16.msra.mxu1 %v2081_v10  ;;  %v2146_v9 = vcombine.high %v411_v4, %v415_v5  ;;  %v418_v10 = vld [vmem:[%s2274_s25 + $0x600] sm:$0xff]  ;;  %v276_v5 = vld [vmem:[%s2274_s25 + $0x190] sm:$0xff] }
  0x53   : > { %1492 = vmatprep.subr.bf16.mxu0 %v2088_v11  ;;  %1574 = vmatprep.subr.bf16.mxu1 %v2090_v13  ;;  %v422_v11 = vld [vmem:[%s2274_s25 + $0x620] sm:$0xff]  ;;  %v423_v13 = vld [vmem:[%s2274_s25 + $0x628] sm:$0xff] }
  0x54   : > { %v2152_v17 = vcombine.high %v418_v10, %v422_v11  ;;  %v2154_v18 = vcombine.high %v419_v12, %v423_v13  ;;  %v2151_v24 = vcombine.low %v418_v10, %v422_v11  ;;  %v2153_v0 = vcombine.low %v419_v12, %v423_v13  ;;  %v284_v13 = vld [vmem:[%s2274_s25 + $0x1d0] sm:$0xff] }
  0x55   : > { %1484 = vmatmul.mubr.bf16.vlgmr.msra.gmra.mrb[0].mxu0 %v2351_v16  ;;  %1566 = vmatmul.mubr.bf16.vlgmr.msra.gmra.mrb[0].mxu1 %v2351_v16 }
  0x56   : > { %1493 = vmatpush1.bf16.msra.mxu0 %v2087_v20  ;;  %1575 = vmatpush1.bf16.msra.mxu1 %v2089_v21  ;;  %v228_v20 = vld [vmem:[%s2274_s25 + $0x10] sm:$0xff] }
  0x57   : > { %1494 = vmatprep.subr.bf16.mxu0 %v2096_v22  ;;  %1576 = vmatprep.subr.bf16.mxu1 %v2098_v23  ;;  %v232_v21 = vld [vmem:[%s2274_s25 + $0x30] sm:$0xff]  ;;  %v229_v22 = vld [vmem:[%s2274_s25 + $0x18] sm:$0xff] }
  0x58   : > { %2159 = vmatprep.mubr.msk.bf16.mxu0 %vm1447_vm0, %v2364_v25  ;;  %2160 = vmatprep.mubr.msk.bf16.mxu1 %vm1447_vm0, %v2364_v25  ;;  %v233_v23 = vld [vmem:[%s2274_s25 + $0x38] sm:$0xff]  ;;  %v1964_v26 = vcombine.high %v228_v20, %v232_v21  ;;  %v1963_v33 = vcombine.low %v228_v20, %v232_v21 }
  0x59   : > { %v1966_v27 = vcombine.high %v229_v22, %v233_v23  ;;  %v1965_v34 = vcombine.low %v229_v22, %v233_v23  ;;  %v292_v23 = vld [vmem:[%s2274_s25 + $0x210] sm:$0xff] }
  0x5a   : > { %1495 = vmatpush1.bf16.msra.mxu0 %v2095_v28  ;;  %1577 = vmatpush1.bf16.msra.mxu1 %v2097_v29  ;;  %v236_v28 = vld [vmem:[%s2274_s25 + $0x50] sm:$0xff] }
  0x5b   : > { %1496 = vmatprep.subr.bf16.mxu0 %v2104_v30  ;;  %1578 = vmatprep.subr.bf16.mxu1 %v2106_v31  ;;  %v240_v29 = vld [vmem:[%s2274_s25 + $0x70] sm:$0xff]  ;;  %v2406_v30 = vcombine.low %v2358_v19, %v2358_v19  ;;  %v237_v31 = vld [vmem:[%s2274_s25 + $0x58] sm:$0xff] }
  0x5c   : > { %v1972_v35 = vcombine.high %v236_v28, %v240_v29  ;;  %v245_v19 = vld [vmem:[%s2274_s25 + $0x98] sm:$0xff]  ;;  %v1971_v40 = vcombine.low %v236_v28, %v240_v29  ;;  %v1973_v41 = vcombine.low %v237_v31, %v241_v32 }
  0x5e   : > { %1497 = vmatpush1.bf16.msra.mxu0 %v2103_v36  ;;  %1579 = vmatpush1.bf16.msra.mxu1 %v2105_v37  ;;  %v1974_v36 = vcombine.high %v237_v31, %v241_v32  ;;  %v244_v37 = vld [vmem:[%s2274_s25 + $0x90] sm:$0xff] }
  0x5f   : > { %1498 = vmatprep.subr.bf16.mxu0 %v2112_v38  ;;  %1580 = vmatprep.subr.bf16.mxu1 %v2114_v39  ;;  %v248_v38 = vld [vmem:[%s2274_s25 + $0xb0] sm:$0xff]  ;;  %v249_v39 = vld [vmem:[%s2274_s25 + $0xb8] sm:$0xff] }
  0x60   : > { %v1980_v42 = vcombine.high %v244_v37, %v248_v38  ;;  %v1982_v43 = vcombine.high %v245_v19, %v249_v39  ;;  %v1979_v48 = vcombine.low %v244_v37, %v248_v38  ;;  %v1981_v49 = vcombine.low %v245_v19, %v249_v39  ;;  %v300_v32 = vld [vmem:[%s2274_s25 + $0x250] sm:$0xff] }
  0x61   : > { %v308_v39 = vld [vmem:[%s2274_s25 + $0x290] sm:$0xff] }
  0x62   : > { %1499 = vmatpush1.bf16.msra.mxu0 %v2111_v44  ;;  %1581 = vmatpush1.bf16.msra.mxu1 %v2113_v45  ;;  %v252_v44 = vld [vmem:[%s2274_s25 + $0xd0] sm:$0xff] }
  0x63   : > { %1500 = vmatprep.subr.bf16.mxu0 %v2120_v46  ;;  %1582 = vmatprep.subr.bf16.mxu1 %v2122_v47  ;;  %v256_v45 = vld [vmem:[%s2274_s25 + $0xf0] sm:$0xff]  ;;  %v253_v46 = vld [vmem:[%s2274_s25 + $0xd8] sm:$0xff] }
  0x64   : > { %v257_v47 = vld [vmem:[%s2274_s25 + $0xf8] sm:$0xff]  ;;  %v1988_v50 = vcombine.high %v252_v44, %v256_v45  ;;  %v1987_v56 = vcombine.low %v252_v44, %v256_v45 }
  0x65   : > { %v1990_v51 = vcombine.high %v253_v46, %v257_v47 }
  0x66   : > { %1501 = vmatpush1.bf16.msra.mxu0 %v2119_v52  ;;  %1583 = vmatpush1.bf16.msra.mxu1 %v2121_v53  ;;  %v260_v52 = vld [vmem:[%s2274_s25 + $0x110] sm:$0xff] }
  0x67   : > { %1502 = vmatprep.subr.bf16.mxu0 %v2128_v54  ;;  %1584 = vmatprep.subr.bf16.mxu1 %v2130_v55  ;;  %v264_v53 = vld [vmem:[%s2274_s25 + $0x130] sm:$0xff]  ;;  %v261_v54 = vld [vmem:[%s2274_s25 + $0x118] sm:$0xff] }
  0x68   : > { %v265_v55 = vld [vmem:[%s2274_s25 + $0x138] sm:$0xff]  ;;  %v1996_v57 = vcombine.high %v260_v52, %v264_v53 }
  0x69   : > { %v1998_v58 = vcombine.high %v261_v54, %v265_v55  ;;  %v1997_v2 = vcombine.low %v261_v54, %v265_v55  ;;  %v324_v55 = vld [vmem:[%s2274_s25 + $0x310] sm:$0xff] }
  0x6a   : > { %1503 = vmatpush1.bf16.msra.mxu0 %v2127_v60  ;;  %1585 = vmatpush1.bf16.msra.mxu1 %v2129_v61  ;;  %v272_v60 = vld [vmem:[%s2274_s25 + $0x170] sm:$0xff]  ;;  %v269_v61 = vld [vmem:[%s2274_s25 + $0x158] sm:$0xff] }
  0x6b   : > { %1504 = vmatprep.subr.bf16.mxu0 %v2136_v62  ;;  %1586 = vmatprep.subr.bf16.mxu1 %v2138_v63  ;;  %v273_v62 = vld [vmem:[%s2274_s25 + $0x178] sm:$0xff]  ;;  %v1995_v63 = vcombine.low %v260_v52, %v264_v53  ;;  %v2004_v3 = vcombine.high %v268_v59, %v272_v60 }
  0x6c   : > { %v2006_v4 = vcombine.high %v269_v61, %v273_v62  ;;  %v2005_v10 = vcombine.low %v269_v61, %v273_v62  ;;  %v332_v62 = vld [vmem:[%s2274_s25 + $0x350] sm:$0xff] }
  0x6e   : > { %1505 = vmatpush1.bf16.msra.mxu0 %v2135_v6  ;;  %1587 = vmatpush1.bf16.msra.mxu1 %v2137_v7  ;;  %v280_v6 = vld [vmem:[%s2274_s25 + $0x1b0] sm:$0xff]  ;;  %v277_v7 = vld [vmem:[%s2274_s25 + $0x198] sm:$0xff] }
  0x6f   : > { %1506 = vmatprep.subr.bf16.mxu0 %v2144_v8  ;;  %1588 = vmatprep.subr.bf16.mxu1 %v2146_v9  ;;  %v281_v8 = vld [vmem:[%s2274_s25 + $0x1b8] sm:$0xff]  ;;  %v2003_v9 = vcombine.low %v268_v59, %v272_v60  ;;  %v2012_v11 = vcombine.high %v276_v5, %v280_v6 }
  0x70   : > { %v2014_v12 = vcombine.high %v277_v7, %v281_v8  ;;  %v2013_v20 = vcombine.low %v277_v7, %v281_v8  ;;  %v340_v8 = vld [vmem:[%s2274_s25 + $0x390] sm:$0xff] }
  0x72   : > { %1507 = vmatpush1.bf16.msra.mxu0 %v2143_v14  ;;  %1589 = vmatpush1.bf16.msra.mxu1 %v2145_v15  ;;  %v288_v14 = vld [vmem:[%s2274_s25 + $0x1f0] sm:$0xff]  ;;  %v285_v15 = vld [vmem:[%s2274_s25 + $0x1d8] sm:$0xff] }
  0x73   : > { %1508 = vmatprep.subr.bf16.mxu0 %v2152_v17  ;;  %1590 = vmatprep.subr.bf16.mxu1 %v2154_v18  ;;  %v289_v17 = vld [vmem:[%s2274_s25 + $0x1f8] sm:$0xff]  ;;  %v2011_v18 = vcombine.low %v276_v5, %v280_v6  ;;  %v2020_v21 = vcombine.high %v284_v13, %v288_v14 }
  0x74   : > { %v2022_v22 = vcombine.high %v285_v15, %v289_v17  ;;  %v2021_v28 = vcombine.low %v285_v15, %v289_v17  ;;  %v348_v17 = vld [vmem:[%s2274_s25 + $0x3d0] sm:$0xff] }
  0x76   : > { %1509 = vmatpush1.bf16.msra.mxu0 %v2151_v24  ;;  %1591 = vmatpush1.bf16.msra.mxu1 %v2153_v0  ;;  %v296_v24 = vld [vmem:[%s2274_s25 + $0x230] sm:$0xff]  ;;  %v293_v0 = vld [vmem:[%s2274_s25 + $0x218] sm:$0xff] }
  0x77   : > { %1615 = vmatprep.subr.bf16.mxu0 %v1964_v26  ;;  %1697 = vmatprep.subr.bf16.mxu1 %v1966_v27  ;;  %v297_v26 = vld [vmem:[%s2274_s25 + $0x238] sm:$0xff]  ;;  %v2019_v27 = vcombine.low %v284_v13, %v288_v14  ;;  %v2028_v29 = vcombine.high %v292_v23, %v296_v24 }
  0x78   : > { %v2030_v31 = vcombine.high %v293_v0, %v297_v26  ;;  %v2029_v37 = vcombine.low %v293_v0, %v297_v26  ;;  %v356_v26 = vld [vmem:[%s2274_s25 + $0x410] sm:$0xff] }
  0x79   : > { %1525 = vmatmul.mubr.bf16.vlgmr.msra.gmra.mrb[0].mxu0 %v2406_v30  ;;  %1607 = vmatmul.mubr.bf16.vlgmr.msra.gmra.mrb[0].mxu1 %v2406_v30 }
  0x7a   : > { %1616 = vmatpush1.bf16.msra.mxu0 %v1963_v33  ;;  %1698 = vmatpush1.bf16.msra.mxu1 %v1965_v34  ;;  %v304_v33 = vld [vmem:[%s2274_s25 + $0x270] sm:$0xff]  ;;  %v301_v34 = vld [vmem:[%s2274_s25 + $0x258] sm:$0xff] }
  0x7b   : > { %1617 = vmatprep.subr.bf16.mxu0 %v1972_v35  ;;  %1699 = vmatprep.subr.bf16.mxu1 %v1974_v36  ;;  %v305_v35 = vld [vmem:[%s2274_s25 + $0x278] sm:$0xff]  ;;  %v2027_v36 = vcombine.low %v292_v23, %v296_v24  ;;  %v2036_v38 = vcombine.high %v300_v32, %v304_v33 }
  0x7c   : > { %1647 = vmatprep.mubr.bf16.mxu0 %v2264_v1  ;;  %1729 = vmatprep.mubr.bf16.mxu1 %v2264_v1  ;;  %v1989_v1 = vcombine.low %v253_v46, %v257_v47  ;;  %v2038_v19 = vcombine.high %v301_v34, %v305_v35  ;;  %v2037_v44 = vcombine.low %v301_v34, %v305_v35  ;;  %v316_v47 = vld [vmem:[%s2274_s25 + $0x2d0] sm:$0xff] }
  0x7d   : > { %v364_v35 = vld [vmem:[%s2274_s25 + $0x450] sm:$0xff] }
  0x7e   : > { %1618 = vmatpush1.bf16.msra.mxu0 %v1971_v40  ;;  %1700 = vmatpush1.bf16.msra.mxu1 %v1973_v41  ;;  %v312_v40 = vld [vmem:[%s2274_s25 + $0x2b0] sm:$0xff]  ;;  %v309_v41 = vld [vmem:[%s2274_s25 + $0x298] sm:$0xff] }
  0x7f   : > { %1619 = vmatprep.subr.bf16.mxu0 %v1980_v42  ;;  %1701 = vmatprep.subr.bf16.mxu1 %v1982_v43  ;;  %v313_v42 = vld [vmem:[%s2274_s25 + $0x2b8] sm:$0xff]  ;;  %v2035_v43 = vcombine.low %v300_v32, %v304_v33  ;;  %v2044_v45 = vcombine.high %v308_v39, %v312_v40 }
  0x80   : > { %v2046_v46 = vcombine.high %v309_v41, %v313_v42  ;;  %v2045_v52 = vcombine.low %v309_v41, %v313_v42  ;;  %v372_v42 = vld [vmem:[%s2274_s25 + $0x490] sm:$0xff] }
  0x82   : > { %1620 = vmatpush1.bf16.msra.mxu0 %v1979_v48  ;;  %1702 = vmatpush1.bf16.msra.mxu1 %v1981_v49  ;;  %v320_v48 = vld [vmem:[%s2274_s25 + $0x2f0] sm:$0xff]  ;;  %v317_v49 = vld [vmem:[%s2274_s25 + $0x2d8] sm:$0xff] }
  0x83   : > { %1621 = vmatprep.subr.bf16.mxu0 %v1988_v50  ;;  %1703 = vmatprep.subr.bf16.mxu1 %v1990_v51  ;;  %v321_v50 = vld [vmem:[%s2274_s25 + $0x2f8] sm:$0xff]  ;;  %v2043_v51 = vcombine.low %v308_v39, %v312_v40  ;;  %v2052_v53 = vcombine.high %v316_v47, %v320_v48 }
  0x84   : > { %v2054_v54 = vcombine.high %v317_v49, %v321_v50  ;;  %v2053_v59 = vcombine.low %v317_v49, %v321_v50  ;;  %v380_v50 = vld [vmem:[%s2274_s25 + $0x4d0] sm:$0xff] }
  0x86   : > { %1622 = vmatpush1.bf16.msra.mxu0 %v1987_v56  ;;  %1704 = vmatpush1.bf16.msra.mxu1 %v1989_v1  ;;  %v328_v56 = vld [vmem:[%s2274_s25 + $0x330] sm:$0xff]  ;;  %v325_v1 = vld [vmem:[%s2274_s25 + $0x318] sm:$0xff] }
  0x87   : > { %1623 = vmatprep.subr.bf16.mxu0 %v1996_v57  ;;  %1705 = vmatprep.subr.bf16.mxu1 %v1998_v58  ;;  %v329_v57 = vld [vmem:[%s2274_s25 + $0x338] sm:$0xff]  ;;  %v2051_v58 = vcombine.low %v316_v47, %v320_v48  ;;  %v2060_v60 = vcombine.high %v324_v55, %v328_v56 }
  0x88   : > { %v2062_v61 = vcombine.high %v325_v1, %v329_v57  ;;  %v2061_v5 = vcombine.low %v325_v1, %v329_v57  ;;  %v388_v1 = vld [vmem:[%s2274_s25 + $0x510] sm:$0xff] }
  0x89   : > { %v392_v57 = vld [vmem:[%s2274_s25 + $0x530] sm:$0xff] }
  0x8a   : > { %1624 = vmatpush1.bf16.msra.mxu0 %v1995_v63  ;;  %1706 = vmatpush1.bf16.msra.mxu1 %v1997_v2  ;;  %v336_v63 = vld [vmem:[%s2274_s25 + $0x370] sm:$0xff]  ;;  %v333_v2 = vld [vmem:[%s2274_s25 + $0x358] sm:$0xff] }
  0x8b   : > { %1625 = vmatprep.subr.bf16.mxu0 %v2004_v3  ;;  %1707 = vmatprep.subr.bf16.mxu1 %v2006_v4  ;;  %v337_v3 = vld [vmem:[%s2274_s25 + $0x378] sm:$0xff]  ;;  %v2059_v4 = vcombine.low %v324_v55, %v328_v56  ;;  %v2068_v6 = vcombine.high %v332_v62, %v336_v63 }
  0x8c   : > { %v2070_v7 = vcombine.high %v333_v2, %v337_v3  ;;  %v2069_v13 = vcombine.low %v333_v2, %v337_v3  ;;  %v400_v2 = vld [vmem:[%s2274_s25 + $0x570] sm:$0xff]  ;;  %v397_v3 = vld [vmem:[%s2274_s25 + $0x558] sm:$0xff] }
  0x8e   : > { %1626 = vmatpush1.bf16.msra.mxu0 %v2003_v9  ;;  %1708 = vmatpush1.bf16.msra.mxu1 %v2005_v10  ;;  %v344_v9 = vld [vmem:[%s2274_s25 + $0x3b0] sm:$0xff]  ;;  %v341_v10 = vld [vmem:[%s2274_s25 + $0x398] sm:$0xff] }
  0x8f   : > { %1627 = vmatprep.subr.bf16.mxu0 %v2012_v11  ;;  %1709 = vmatprep.subr.bf16.mxu1 %v2014_v12  ;;  %v345_v11 = vld [vmem:[%s2274_s25 + $0x3b8] sm:$0xff]  ;;  %v2067_v12 = vcombine.low %v332_v62, %v336_v63  ;;  %v2076_v14 = vcombine.high %v340_v8, %v344_v9  ;;  %v396_v63 = vld [vmem:[%s2274_s25 + $0x550] sm:$0xff] }
  0x90   : > { %v2078_v15 = vcombine.high %v341_v10, %v345_v11  ;;  %v2077_v23 = vcombine.low %v341_v10, %v345_v11  ;;  %v408_v10 = vld [vmem:[%s2274_s25 + $0x5b0] sm:$0xff]  ;;  %v405_v11 = vld [vmem:[%s2274_s25 + $0x598] sm:$0xff] }
  0x92   : > { %1628 = vmatpush1.bf16.msra.mxu0 %v2011_v18  ;;  %1710 = vmatpush1.bf16.msra.mxu1 %v2013_v20  ;;  %v352_v18 = vld [vmem:[%s2274_s25 + $0x3f0] sm:$0xff]  ;;  %v349_v20 = vld [vmem:[%s2274_s25 + $0x3d8] sm:$0xff] }
  0x93   : > { %1629 = vmatprep.subr.bf16.mxu0 %v2020_v21  ;;  %1711 = vmatprep.subr.bf16.mxu1 %v2022_v22  ;;  %v353_v21 = vld [vmem:[%s2274_s25 + $0x3f8] sm:$0xff]  ;;  %v2075_v22 = vcombine.low %v340_v8, %v344_v9  ;;  %v2084_v24 = vcombine.high %v348_v17, %v352_v18  ;;  %v404_v9 = vld [vmem:[%s2274_s25 + $0x590] sm:$0xff] }
  0x94   : > { %v2086_v0 = vcombine.high %v349_v20, %v353_v21  ;;  %v2085_v32 = vcombine.low %v349_v20, %v353_v21  ;;  %v416_v20 = vld [vmem:[%s2274_s25 + $0x5f0] sm:$0xff]  ;;  %v413_v21 = vld [vmem:[%s2274_s25 + $0x5d8] sm:$0xff] }
  0x96   : > { %1630 = vmatpush1.bf16.msra.mxu0 %v2019_v27  ;;  %1712 = vmatpush1.bf16.msra.mxu1 %v2021_v28  ;;  %v360_v27 = vld [vmem:[%s2274_s25 + $0x430] sm:$0xff]  ;;  %v357_v28 = vld [vmem:[%s2274_s25 + $0x418] sm:$0xff] }
  0x97   : > { %1631 = vmatprep.subr.bf16.mxu0 %v2028_v29  ;;  %1713 = vmatprep.subr.bf16.mxu1 %v2030_v31  ;;  %v361_v29 = vld [vmem:[%s2274_s25 + $0x438] sm:$0xff]  ;;  %v2083_v31 = vcombine.low %v348_v17, %v352_v18  ;;  %v2092_v33 = vcombine.high %v356_v26, %v360_v27  ;;  %v412_v18 = vld [vmem:[%s2274_s25 + $0x5d0] sm:$0xff] }
  0x98   : > { %v2094_v34 = vcombine.high %v357_v28, %v361_v29  ;;  %v2093_v39 = vcombine.low %v357_v28, %v361_v29  ;;  %v424_v28 = vld [vmem:[%s2274_s25 + $0x630] sm:$0xff]  ;;  %v421_v29 = vld [vmem:[%s2274_s25 + $0x618] sm:$0xff] }
  0x9a   : > { %1632 = vmatpush1.bf16.msra.mxu0 %v2027_v36  ;;  %1714 = vmatpush1.bf16.msra.mxu1 %v2029_v37  ;;  %v368_v36 = vld [vmem:[%s2274_s25 + $0x470] sm:$0xff]  ;;  %v365_v37 = vld [vmem:[%s2274_s25 + $0x458] sm:$0xff] }
  0x9b   : > { %1633 = vmatprep.subr.bf16.mxu0 %v2036_v38  ;;  %1715 = vmatprep.subr.bf16.mxu1 %v2038_v19  ;;  %v369_v38 = vld [vmem:[%s2274_s25 + $0x478] sm:$0xff]  ;;  %v2091_v19 = vcombine.low %v356_v26, %v360_v27  ;;  %v2100_v40 = vcombine.high %v364_v35, %v368_v36  ;;  %v420_v27 = vld [vmem:[%s2274_s25 + $0x610] sm:$0xff] }
  0x9c   : > { %v2102_v41 = vcombine.high %v365_v37, %v369_v38  ;;  %v2101_v47 = vcombine.low %v365_v37, %v369_v38 }
  0x9e   : > { %1634 = vmatpush1.bf16.msra.mxu0 %v2035_v43  ;;  %1716 = vmatpush1.bf16.msra.mxu1 %v2037_v44  ;;  %v376_v43 = vld [vmem:[%s2274_s25 + $0x4b0] sm:$0xff]  ;;  %v373_v44 = vld [vmem:[%s2274_s25 + $0x498] sm:$0xff] }
  0x9f   : > { %1635 = vmatprep.subr.bf16.mxu0 %v2044_v45  ;;  %1717 = vmatprep.subr.bf16.mxu1 %v2046_v46  ;;  %v377_v45 = vld [vmem:[%s2274_s25 + $0x4b8] sm:$0xff]  ;;  %v2099_v46 = vcombine.low %v364_v35, %v368_v36  ;;  %v2108_v48 = vcombine.high %v372_v42, %v376_v43  ;;  %v2155_v36 = vcombine.low %v420_v27, %v424_v28 }
  0xa0   : > { %v2110_v49 = vcombine.high %v373_v44, %v377_v45 }
  0xa2   : > { %1636 = vmatpush1.bf16.msra.mxu0 %v2043_v51  ;;  %1718 = vmatpush1.bf16.msra.mxu1 %v2045_v52  ;;  %v384_v51 = vld [vmem:[%s2274_s25 + $0x4f0] sm:$0xff]  ;;  %v381_v52 = vld [vmem:[%s2274_s25 + $0x4d8] sm:$0xff] }
  0xa3   : > { %1637 = vmatprep.subr.bf16.mxu0 %v2052_v53  ;;  %1719 = vmatprep.subr.bf16.mxu1 %v2054_v54  ;;  %v385_v53 = vld [vmem:[%s2274_s25 + $0x4f8] sm:$0xff]  ;;  %v2109_v54 = vcombine.low %v373_v44, %v377_v45  ;;  %v2116_v55 = vcombine.high %v380_v50, %v384_v51 }
  0xa4   : > { %v2118_v56 = vcombine.high %v381_v52, %v385_v53 }
  0xa6   : > { %1638 = vmatpush1.bf16.msra.mxu0 %v2051_v58  ;;  %1720 = vmatpush1.bf16.msra.mxu1 %v2053_v59  ;;  %v389_v58 = vld [vmem:[%s2274_s25 + $0x518] sm:$0xff] }
  0xa7   : > { %1639 = vmatprep.subr.bf16.mxu0 %v2060_v60  ;;  %1721 = vmatprep.subr.bf16.mxu1 %v2062_v61  ;;  %v393_v59 = vld [vmem:[%s2274_s25 + $0x538] sm:$0xff]  ;;  %v2115_v60 = vcombine.low %v380_v50, %v384_v51  ;;  %v2124_v61 = vcombine.high %v388_v1, %v392_v57 }
  0xa8   : > { %v2126_v62 = vcombine.high %v389_v58, %v393_v59 }
  0xaa   : > { %1640 = vmatpush1.bf16.msra.mxu0 %v2059_v4  ;;  %1722 = vmatpush1.bf16.msra.mxu1 %v2061_v5  ;;  %v401_v4 = vld [vmem:[%s2274_s25 + $0x578] sm:$0xff]  ;;  %v2123_v5 = vcombine.low %v388_v1, %v392_v57 }
  0xab   : > { %1641 = vmatprep.subr.bf16.mxu0 %v2068_v6  ;;  %1723 = vmatprep.subr.bf16.mxu1 %v2070_v7  ;;  %v2125_v6 = vcombine.low %v389_v58, %v393_v59  ;;  %v2132_v7 = vcombine.high %v396_v63, %v400_v2  ;;  %v2134_v8 = vcombine.high %v397_v3, %v401_v4 }
  0xae   : > { %1642 = vmatpush1.bf16.msra.mxu0 %v2067_v12  ;;  %1724 = vmatpush1.bf16.msra.mxu1 %v2069_v13  ;;  %v409_v12 = vld [vmem:[%s2274_s25 + $0x5b8] sm:$0xff]  ;;  %v2131_v13 = vcombine.low %v396_v63, %v400_v2 }
  0xaf   : > { %1643 = vmatprep.subr.bf16.mxu0 %v2076_v14  ;;  %1725 = vmatprep.subr.bf16.mxu1 %v2078_v15  ;;  %v2133_v14 = vcombine.low %v397_v3, %v401_v4  ;;  %v2140_v15 = vcombine.high %v404_v9, %v408_v10  ;;  %v2142_v17 = vcombine.high %v405_v11, %v409_v12 }
  0xb2   : > { %1644 = vmatpush1.bf16.msra.mxu0 %v2075_v22  ;;  %1726 = vmatpush1.bf16.msra.mxu1 %v2077_v23  ;;  %v417_v22 = vld [vmem:[%s2274_s25 + $0x5f8] sm:$0xff]  ;;  %v2139_v23 = vcombine.low %v404_v9, %v408_v10 }
  0xb3   : > { %1645 = vmatprep.subr.bf16.mxu0 %v2084_v24  ;;  %1727 = vmatprep.subr.bf16.mxu1 %v2086_v0  ;;  %v2141_v24 = vcombine.low %v405_v11, %v409_v12  ;;  %v2148_v0 = vcombine.high %v412_v18, %v416_v20  ;;  %v2150_v26 = vcombine.high %v413_v21, %v417_v22 }
  0xb4   : > { %v432_v45 = vpop.permute.xlu0 %431 }
  0xb6   : > { %1646 = vmatpush1.bf16.msra.mxu0 %v2083_v31  ;;  %1728 = vmatpush1.bf16.msra.mxu1 %v2085_v32  ;;  %v425_v31 = vld [vmem:[%s2274_s25 + $0x638] sm:$0xff]  ;;  %v2147_v32 = vcombine.low %v412_v18, %v416_v20 }
  0xb7   : > { %1656 = vmatprep.subr.bf16.mxu0 %v2092_v33  ;;  %1738 = vmatprep.subr.bf16.mxu1 %v2094_v34  ;;  %v2149_v33 = vcombine.low %v413_v21, %v417_v22  ;;  %v2156_v34 = vcombine.high %v420_v27, %v424_v28  ;;  %v2158_v35 = vcombine.high %v421_v29, %v425_v31 }
  0xb8   : > { %v2157_v37 = vcombine.low %v421_v29, %v425_v31 }
  0xb9   : > { %1648 = vmatmul.mubr.bf16.vlgmr.msra.gmra.mrb[4].mxu0 %v2351_v16  ;;  %1730 = vmatmul.mubr.bf16.vlgmr.msra.gmra.mrb[4].mxu1 %v2351_v16  ;;  %v2107_v16 = vcombine.low %v372_v42, %v376_v43 }
  0xba   : > { %1657 = vmatpush1.bf16.msra.mxu0 %v2091_v19  ;;  %1739 = vmatpush1.bf16.msra.mxu1 %v2093_v39 }
  0xbb   : > { %1658 = vmatprep.subr.bf16.mxu0 %v2100_v40  ;;  %1740 = vmatprep.subr.bf16.mxu1 %v2102_v41 }
  0xbc   : > { %2161 = vmatprep.mubr.msk.bf16.mxu0 %vm1447_vm0, %v2364_v25  ;;  %2162 = vmatprep.mubr.msk.bf16.mxu1 %vm1447_vm0, %v2364_v25  ;;  %v2117_v25 = vcombine.low %v381_v52, %v385_v53 }
  0xbe   : > { %1659 = vmatpush1.bf16.msra.mxu0 %v2099_v46  ;;  %1741 = vmatpush1.bf16.msra.mxu1 %v2101_v47 }
  0xbf   : > { %1660 = vmatprep.subr.bf16.mxu0 %v2108_v48  ;;  %1742 = vmatprep.subr.bf16.mxu1 %v2110_v49 }
  0xc2   : > { %1661 = vmatpush1.bf16.msra.mxu0 %v2107_v16  ;;  %1743 = vmatpush1.bf16.msra.mxu1 %v2109_v54 }
  0xc3   : > { %1662 = vmatprep.subr.bf16.mxu0 %v2116_v55  ;;  %1744 = vmatprep.subr.bf16.mxu1 %v2118_v56 }
  0xc6   : > { %1663 = vmatpush1.bf16.msra.mxu0 %v2115_v60  ;;  %1745 = vmatpush1.bf16.msra.mxu1 %v2117_v25 }
  0xc7   : > { %1664 = vmatprep.subr.bf16.mxu0 %v2124_v61  ;;  %1746 = vmatprep.subr.bf16.mxu1 %v2126_v62 }
  0xca   : > { %1665 = vmatpush1.bf16.msra.mxu0 %v2123_v5  ;;  %1747 = vmatpush1.bf16.msra.mxu1 %v2125_v6 }
  0xcb   : > { %1666 = vmatprep.subr.bf16.mxu0 %v2132_v7  ;;  %1748 = vmatprep.subr.bf16.mxu1 %v2134_v8 }
  0xce   : > { %1667 = vmatpush1.bf16.msra.mxu0 %v2131_v13  ;;  %1749 = vmatpush1.bf16.msra.mxu1 %v2133_v14 }
  0xcf   : > { %1668 = vmatprep.subr.bf16.mxu0 %v2140_v15  ;;  %1750 = vmatprep.subr.bf16.mxu1 %v2142_v17 }
  0xd2   : > { %1669 = vmatpush1.bf16.msra.mxu0 %v2139_v23  ;;  %1751 = vmatpush1.bf16.msra.mxu1 %v2141_v24 }
  0xd3   : > { %1670 = vmatprep.subr.bf16.mxu0 %v2148_v0  ;;  %1752 = vmatprep.subr.bf16.mxu1 %v2150_v26 }
  0xd6   : > { %1671 = vmatpush1.bf16.msra.mxu0 %v2147_v32  ;;  %1753 = vmatpush1.bf16.msra.mxu1 %v2149_v33 }
  0xd7   : > { %1672 = vmatprep.subr.bf16.mxu0 %v2156_v34  ;;  %1754 = vmatprep.subr.bf16.mxu1 %v2158_v35 }
  0xda   : > { %1673 = vmatpush1.bf16.msra.mxu0 %v2155_v36  ;;  %1755 = vmatpush1.bf16.msra.mxu1 %v2157_v37 }
  0xdd   : > { %1689 = vmatmul.mubr.bf16.vlgmr.msra.gmra.mrb[4].mxu0 %v2406_v30  ;;  %1771 = vmatmul.mubr.bf16.vlgmr.msra.gmra.mrb[4].mxu1 %v2406_v30 }
 0x14c   : > { %v1526_v38 = vpop.f32.mrb[0].mxu0  ;;  %v1608_v19 = vpop.f32.mrb[0].mxu1 }
 0x14d   : > { %v1528_v39 = vpop.f32.mrb[1].mxu0  ;;  %v1610_v40 = vpop.f32.mrb[1].mxu1  ;;  %v2166_v46 = vadd.f32 %v1526_v38, %v432_v45  ;;  %v2168_v49 = vadd.f32 %v1608_v19, %v432_v45  ;;  %v1848_v38 = vld [vmem:[%s2530_s3] sm:$0xff] }
 0x14e   : > { %v1530_v41 = vpop.f32.mrb[2].mxu0  ;;  %v1612_v42 = vpop.f32.mrb[2].mxu1  ;;  %v2167_v47 = vadd.f32 %v1528_v39, %v432_v45  ;;  %v2169_v51 = vadd.f32 %v1610_v40, %v432_v45  ;;  %v1862_v19 = vld [vmem:[%s2531_s4] sm:$0xff] }
 0x14f   : > { %v1531_v43 = vpop.f32.mrb[3].mxu0  ;;  %v1613_v44 = vpop.f32.mrb[3].mxu1 }
 0x150   : > { %v1779_v48 = vadd.f32 %v2167_v47, %v2166_v46 }
 0x152   : > { %v1780_v50 = vadd.f32 %v2168_v49, %v1779_v48 }
 0x154   : > { %v1781_v53 = vadd.f32 %v2169_v51, %v1780_v50 }
 0x1b0   : > { %v1690_v52 = vpop.f32.mrb[4].mxu0  ;;  %v1772_v54 = vpop.f32.mrb[4].mxu1 }
 0x1b1   : > { %v2170_v16 = vadd.f32 %v1690_v52, %v432_v45  ;;  %v1692_v30 = vpop.f32.mrb[5].mxu0  ;;  %v1774_v56 = vpop.f32.mrb[5].mxu1  ;;  %v2172_v25 = vadd.f32 %v1772_v54, %v432_v45 }
 0x1b2   : > { %v2171_v55 = vadd.f32 %v1692_v30, %v432_v45  ;;  %v1694_v1 = vpop.f32.mrb[6].mxu0  ;;  %v1776_v58 = vpop.f32.mrb[6].mxu1  ;;  %v2173_v62 = vadd.f32 %v1774_v56, %v432_v45 }
 0x1b3   : > { %v1782_v57 = vadd.f32 %v2170_v16, %v1781_v53  ;;  %v1695_v59 = vpop.f32.mrb[7].mxu0  ;;  %v1777_v60 = vpop.f32.mrb[7].mxu1 }
 0x1b5   : > { %v1783_v61 = vadd.f32 %v2171_v55, %v1782_v57 }
 0x1b7   : > { %v1784_v63 = vadd.f32 %v2172_v25, %v1783_v61 }
 0x1b9   : > { %v1785_v2 = vadd.f32 %v2173_v62, %v1784_v63 }
 0x1bb   : > { %1786 = vadd.xlane.f32.xlu0 %v1785_v2 }
 0x248   : > { %v1787_v3 = vpop.xlane.xlu0 %1786 }
 0x249   : > { %v1789_v4 = vmul.f32 0.0009765625, %v1787_v3 }
 0x24b   : > { %v1790_v5 = vrot.slane %v1789_v4, 4 }
 0x24d   : > { %v1791_v6 = vadd.f32 %v1790_v5, %v1789_v4 }
 0x24f   : > { %v1792_v7 = vrot.slane %v1791_v6, 2 }
 0x251   : > { %v1793_v8 = vadd.f32 %v1792_v7, %v1791_v6 }
 0x253   : > { %v1794_v9 = vrot.slane %v1793_v8, 1 }
 0x255   : > { %v1795_v10 = vadd.f32 %v1794_v9, %v1793_v8 }
 0x257   : > { %v1797_v11 = vmul.f32 0.125, %v1795_v10 }
 0x259   : > { %v1798_v12 = vsub.f32 %v2166_v46, %v1797_v11  ;;  %v1799_v13 = vsub.f32 %v2167_v47, %v1797_v11  ;;  %v1800_v14 = vsub.f32 %v2168_v49, %v1797_v11  ;;  %v1801_v15 = vsub.f32 %v2169_v51, %v1797_v11 }
 0x25a   : > { %v1802_v20 = vsub.f32 %v2170_v16, %v1797_v11  ;;  %v1803_v23 = vsub.f32 %v2171_v55, %v1797_v11  ;;  %v1804_v26 = vsub.f32 %v2172_v25, %v1797_v11  ;;  %v1805_v29 = vsub.f32 %v2173_v62, %v1797_v11 }
 0x25b   : > { %v1806_v17 = vmul.f32 %v1798_v12, %v1798_v12  ;;  %v1807_v18 = vmul.f32 %v1799_v13, %v1799_v13  ;;  %v1808_v21 = vmul.f32 %v1800_v14, %v1800_v14  ;;  %v1809_v24 = vmul.f32 %v1801_v15, %v1801_v15 }
 0x25c   : > { %v1810_v27 = vmul.f32 %v1802_v20, %v1802_v20  ;;  %v1811_v31 = vmul.f32 %v1803_v23, %v1803_v23  ;;  %v1812_v33 = vmul.f32 %v1804_v26, %v1804_v26  ;;  %v1813_v35 = vmul.f32 %v1805_v29, %v1805_v29 }
 0x25d   : > { %v1814_v22 = vadd.f32 %v1807_v18, %v1806_v17 }
 0x25f   : > { %v1815_v0 = vadd.f32 %v1814_v22, %v1808_v21 }
 0x261   : > { %v1816_v28 = vadd.f32 %v1815_v0, %v1809_v24 }
 0x263   : > { %v1817_v32 = vadd.f32 %v1816_v28, %v1810_v27 }
 0x265   : > { %v1818_v34 = vadd.f32 %v1817_v32, %v1811_v31 }
 0x267   : > { %v1819_v36 = vadd.f32 %v1818_v34, %v1812_v33 }
 0x269   : > { %v1820_v37 = vadd.f32 %v1819_v36, %v1813_v35 }
 0x26b   : > { %1821 = vadd.xlane.f32.xlu1 %v1820_v37 }
 0x27c   : > { %1851 = vperm.xlu1 %2201, %v1848_v38  }
 0x280   : > { %1865 = vperm.xlu1 %2201, %v1862_v19  }
 0x2f8   : > { %v1822_v39 = vpop.xlane.xlu1 %1821 }
 0x2f9   : > { %v1823_v40 = vrot.slane %v1822_v39, 4 }
 0x2fb   : > { %v1824_v41 = vadd.f32 %v1823_v40, %v1822_v39 }
 0x2fc   : > { %v1852_v53 = vpop.permute.xlu1 %1851 }
 0x2fd   : > { %v1825_v42 = vrot.slane %v1824_v41, 2 }
 0x2ff   : > { %v1826_v43 = vadd.f32 %v1825_v42, %v1824_v41 }
 0x300   : > { %v1866_v5 = vpop.permute.xlu1 %1865 }
 0x301   : > { %v1827_v44 = vrot.slane %v1826_v43, 1 }
 0x303   : > { %v1828_v45 = vadd.f32 %v1827_v44, %v1826_v43 }
 0x305   : > { %v1830_v46 = vmul.f32 0.00012208521, %v1828_v45 }
 0x307   : > { %2206 = vrsqrt.f32 %v1830_v46  ;;  %vm1833_vm1 = vcmp.eq.f32.partialorder %v1830_v46, inf  ;;  %v1836_v49 = vand.u32 2147483648, %v1830_v46  ;;  %vm1835_vm2 = vcmp.eq.f32.partialorder %v1830_v46, 0.0 }
 0x311   : > { %v2207_v47 = vpop.eup %2206 }
 0x312   : > { %v1832_v48 = vmul.f32 %v2207_v47, %v1830_v46 }
 0x314   : > { %v1834_v50 = vsel %vm1833_vm1, %v1830_v46, %v1832_v48 }
 0x315   : > { %v1837_v51 = vsel %vm1835_vm2, %v1836_v49, %v1834_v50 }
 0x316   : > { %v1838_v52 = vadd.f32 1e-05, %v1837_v51 }
 0x318   : > { %2208 = vrcp.f32 %v1838_v52 }
 0x322   : > { %v2209_v16 = vpop.eup %2208 }
 0x323   : > { %v1840_v54 = vmul.f32 %v2209_v16, %v1798_v12  ;;  %v1841_v30 = vmul.f32 %v2209_v16, %v1799_v13  ;;  %v1842_v55 = vmul.f32 %v2209_v16, %v1800_v14  ;;  %v1843_v56 = vmul.f32 %v2209_v16, %v1801_v15 }
 0x324   : > { %v1844_v1 = vmul.f32 %v2209_v16, %v1802_v20  ;;  %v1845_v57 = vmul.f32 %v2209_v16, %v1803_v23  ;;  %v1846_v58 = vmul.f32 %v2209_v16, %v1804_v26  ;;  %v1847_v59 = vmul.f32 %v2209_v16, %v1805_v29 }
 0x325   : > { %v1854_v60 = vmul.f32 %v1852_v53, %v1840_v54  ;;  %v1855_v25 = vmul.f32 %v1852_v53, %v1841_v30  ;;  %v1856_v61 = vmul.f32 %v1852_v53, %v1842_v55  ;;  %v1857_v62 = vmul.f32 %v1852_v53, %v1843_v56 }
 0x326   : > { %v1858_v63 = vmul.f32 %v1852_v53, %v1844_v1  ;;  %v1859_v2 = vmul.f32 %v1852_v53, %v1845_v57  ;;  %v1860_v3 = vmul.f32 %v1852_v53, %v1846_v58  ;;  %v1861_v4 = vmul.f32 %v1852_v53, %v1847_v59 }
 0x327   : > { %v1868_v6 = vadd.f32 %v1866_v5, %v1854_v60  ;;  %v1869_v7 = vadd.f32 %v1866_v5, %v1855_v25  ;;  %v1870_v8 = vadd.f32 %v1866_v5, %v1856_v61  ;;  %v1871_v9 = vadd.f32 %v1866_v5, %v1857_v62 }
 0x328   : > { %v1872_v10 = vadd.f32 %v1866_v5, %v1858_v63  ;;  %v1873_v11 = vadd.f32 %v1866_v5, %v1859_v2  ;;  %v1874_v12 = vadd.f32 %v1866_v5, %v1860_v3  ;;  %v1875_v13 = vadd.f32 %v1866_v5, %v1861_v4 }
 0x329   : > { %v1876_v14 = vmax.f32 %v1868_v6, 0.0  ;;  %v1877_v15 = vmax.f32 %v1869_v7, 0.0  ;;  %v1878_v17 = vmax.f32 %v1870_v8, 0.0  ;;  %v1879_v18 = vmax.f32 %v1871_v9, 0.0 }
 0x32a   : > { %v1880_v20 = vmax.f32 %v1872_v10, 0.0  ;;  %v1881_v21 = vmax.f32 %v1873_v11, 0.0  ;;  %v1882_v22 = vmax.f32 %v1874_v12, 0.0  ;;  %v1883_v23 = vmax.f32 %v1875_v13, 0.0 }
 0x32b   : > { %1884 = vst [vmem:[%s224_s12] sm:$0xff] %v1876_v14  ;;  %1885 = vst [vmem:[%s224_s12 + $0x8] sm:$0xff] %v1877_v15 }
 0x32c   : > { %1886 = vst [vmem:[%s224_s12 + $0x10] sm:$0xff] %v1878_v17  ;;  %1887 = vst [vmem:[%s224_s12 + $0x18] sm:$0xff] %v1879_v18 }
 0x32d   : > { %1888 = vst [vmem:[%s224_s12 + $0x20] sm:$0xff] %v1880_v20  ;;  %1889 = vst [vmem:[%s224_s12 + $0x28] sm:$0xff] %v1881_v21 }
 0x32e   : > { %1890 = vst [vmem:[%s224_s12 + $0x30] sm:$0xff] %v1882_v22  ;;  %1891 = vst [vmem:[%s224_s12 + $0x38] sm:$0xff] %v1883_v23 }
 0x32f PF: > { %s15_s18 = sadd.s32 1, %s2216_s18  }
 0x330   : > { %p12_p4 = scmp.ge.s32.totalorder %s15_s18, 4  }
 0x332   :  { %14 = sbr.rel (!%p12_p4) target bundleno = 1 (0x1), region = 70 }

// kernel: adain_gen_forward.37
= control target key start
LH: loop header
LB: loop body
LE: loop exit
PB: predicated region body
PF: predicated region fallthrough
CT: control target
= control target key end

     0   :  { %s2194_s18 = smov 0   ;;  %s2468_s0 = inlined_call_operand.vmem [shape: bf16[2,392,1024], index: 0, kind: input, shape index: {}]   ;;  %s2469_s1 = inlined_call_operand.vmem [shape: bf16[3,392], index: 1, kind: input, shape index: {}]   ;;  %s2470_s2 = inlined_call_operand.vmem [shape: f32[3,1], index: 2, kind: input, shape index: {}]   ;;  %s2471_s3 = inlined_call_operand.<no memory space> [shape: f32[1,1,1], index: 3, kind: input, shape index: {}, may-alias: {3,4}]   ;;  %s2472_s5 = inlined_call_operand.vmem [shape: f32[2,3,1024], index: 5, kind: output, shape index: {}]   ;;  %s2473_s4 = inlined_call_operand.<no memory space> [shape: f32[1,1,1], index: 4, kind: input, shape index: {}, may-alias: {3,4}]  }
   0x1 LB: > { %s1874_s19 = sadd.s32 4294967295, %s2160_s18   ;;  %p1878_p0 = scmp.ge.s32.totalorder %s2160_s18, 1  ;;  %s2160_s18 = sphi %s2194_s18, %s19_s18  }
   0x2   : > { %p191_p1 = scmp.lt.s32.totalorder %s2160_s18, 3 }
   0x4   : > { %p192_p2 = pnand %p1878_p0, %p191_p1 }
   0x5   : > { %p219_p3 = scmp.lt.s32.totalorder (!%p192_p2), %s1874_s19, 1  ;;  %v438_v0 = vlaneseq (!%p192_p2)  ;;  %v2162_v1 = vmov (!%p192_p2), 1983009808   ;;  %v2208_v5 = vld [vmem:[%s2469_s1] sm:$0xff] (!%p192_p2)  ;;  %vm1434_vm0 = vcmask (!%p192_p2), 64512   ;;  %vm1438_vm1 = vcmask (!%p192_p2), 1043456  }
   0x6   : > { %195 = sbr.rel (%p192_p2) target bundleno = 452 (0x1c4), region = 40  ;;  %v436_v2 = vunpack.c.l.s4 (!%p192_p2), %v2162_v1 }
   0x7   : > { %v439_v3 = vshrl.u32 (!%p192_p2), %v438_v0, 7 }
   0x8   : > { %v437_v4 = vunpack.c.0.s8 (!%p192_p2), %v436_v2 }
   0xa   : > { %v2210_v6 = vsub.s32 (!%p192_p2), %v437_v4, %v439_v3 }
   0xc   : > { %v2222_v10 = vrot.slane (!%p192_p2), %v2208_v5, %v2210_v6 }
   0xd   : > { %s2475_s19 = smov (!%p219_p3, %s1874_s19), 1 }
   0xe   : > { %s2117_s3 = smul.u32 1568, %s2475_s19  ;;  %v2235_v26 = vcombine.high %v2222_v10, %v2222_v10  ;;  %s2092_s26 = sshll.u32 %s2475_s19, 5 }
   0xf   : > { %s228_s29 = scalar_lea.vmem %s2472_s5, %s2092_s26 }
  0x10   : > { %s2215_s23 = scalar_lea.vmem %s2468_s0, %s2117_s3  ;;  %1495 = vmatprep.mubr.bf16.mxu0 %v2235_v26  ;;  %1577 = vmatprep.mubr.bf16.mxu1 %v2235_v26 }
  0x11   : > { %v230_v7 = vld [vmem:[%s2215_s23] sm:$0xff]  ;;  %v231_v9 = vld [vmem:[%s2215_s23 + $0x8] sm:$0xff] }
  0x12   : > { %v234_v8 = vld [vmem:[%s2215_s23 + $0x20] sm:$0xff]  ;;  %v235_v12 = vld [vmem:[%s2215_s23 + $0x28] sm:$0xff] }
  0x13   : > { %v1883_v11 = vcombine.high %v230_v7, %v234_v8  ;;  %v1882_v13 = vcombine.low %v230_v7, %v234_v8  ;;  %v238_v14 = vld [vmem:[%s2215_s23 + $0x40] sm:$0xff]  ;;  %v1885_v16 = vcombine.high %v231_v9, %v235_v12  ;;  %v1884_v17 = vcombine.low %v231_v9, %v235_v12  ;;  %v239_v19 = vld [vmem:[%s2215_s23 + $0x48] sm:$0xff] }
  0x14   : > { %v242_v15 = vld [vmem:[%s2215_s23 + $0x60] sm:$0xff]  ;;  %v243_v20 = vld [vmem:[%s2215_s23 + $0x68] sm:$0xff] }
  0x15   : > { %v1891_v18 = vcombine.high %v238_v14, %v242_v15  ;;  %v246_v21 = vld [vmem:[%s2215_s23 + $0x80] sm:$0xff]  ;;  %1463 = vmatprep.subr.bf16.mxu0 %v1883_v11  ;;  %v1893_v22 = vcombine.high %v239_v19, %v243_v20  ;;  %v247_v24 = vld [vmem:[%s2215_s23 + $0x88] sm:$0xff]  ;;  %1545 = vmatprep.subr.bf16.mxu1 %v1885_v16  ;;  %v1890_v27 = vcombine.low %v238_v14, %v242_v15 }
  0x16   : > { %v250_v23 = vld [vmem:[%s2215_s23 + $0xa0] sm:$0xff]  ;;  %v251_v25 = vld [vmem:[%s2215_s23 + $0xa8] sm:$0xff]  ;;  %1464 = vmatpush1.bf16.msra.mxu0 %v1882_v13  ;;  %1546 = vmatpush1.bf16.msra.mxu1 %v1884_v17  ;;  %v1892_v28 = vcombine.low %v239_v19, %v243_v20 }
  0x17   : > { %1465 = vmatprep.subr.bf16.mxu0 %v1891_v18  ;;  %v1899_v29 = vcombine.high %v246_v21, %v250_v23  ;;  %1547 = vmatprep.subr.bf16.mxu1 %v1893_v22  ;;  %v1901_v30 = vcombine.high %v247_v24, %v251_v25  ;;  %v254_v31 = vld [vmem:[%s2215_s23 + $0xc0] sm:$0xff]  ;;  %v255_v33 = vld [vmem:[%s2215_s23 + $0xc8] sm:$0xff]  ;;  %v1898_v35 = vcombine.low %v246_v21, %v250_v23 }
  0x18   : > { %v258_v32 = vld [vmem:[%s2215_s23 + $0xe0] sm:$0xff]  ;;  %v259_v34 = vld [vmem:[%s2215_s23 + $0xe8] sm:$0xff]  ;;  %v1900_v36 = vcombine.low %v247_v24, %v251_v25 }
  0x19   : > { %v1907_v37 = vcombine.high %v254_v31, %v258_v32  ;;  %v1909_v38 = vcombine.high %v255_v33, %v259_v34  ;;  %v262_v39 = vld [vmem:[%s2215_s23 + $0x100] sm:$0xff]  ;;  %v263_v41 = vld [vmem:[%s2215_s23 + $0x108] sm:$0xff]  ;;  %v1906_v43 = vcombine.low %v254_v31, %v258_v32  ;;  %v1908_v44 = vcombine.low %v255_v33, %v259_v34 }
  0x1a   : > { %1466 = vmatpush1.bf16.msra.mxu0 %v1890_v27  ;;  %1548 = vmatpush1.bf16.msra.mxu1 %v1892_v28  ;;  %v266_v40 = vld [vmem:[%s2215_s23 + $0x120] sm:$0xff]  ;;  %v267_v42 = vld [vmem:[%s2215_s23 + $0x128] sm:$0xff] }
  0x1b   : > { %1467 = vmatprep.subr.bf16.mxu0 %v1899_v29  ;;  %1549 = vmatprep.subr.bf16.mxu1 %v1901_v30  ;;  %v1915_v45 = vcombine.high %v262_v39, %v266_v40  ;;  %v1917_v46 = vcombine.high %v263_v41, %v267_v42  ;;  %v270_v47 = vld [vmem:[%s2215_s23 + $0x140] sm:$0xff]  ;;  %v271_v49 = vld [vmem:[%s2215_s23 + $0x148] sm:$0xff]  ;;  %v1914_v51 = vcombine.low %v262_v39, %v266_v40 }
  0x1c   : > { %v274_v48 = vld [vmem:[%s2215_s23 + $0x160] sm:$0xff]  ;;  %v275_v50 = vld [vmem:[%s2215_s23 + $0x168] sm:$0xff]  ;;  %v1916_v52 = vcombine.low %v263_v41, %v267_v42 }
  0x1d   : > { %v1923_v53 = vcombine.high %v270_v47, %v274_v48  ;;  %v1925_v54 = vcombine.high %v271_v49, %v275_v50  ;;  %v278_v55 = vld [vmem:[%s2215_s23 + $0x180] sm:$0xff]  ;;  %v279_v57 = vld [vmem:[%s2215_s23 + $0x188] sm:$0xff]  ;;  %v1922_v59 = vcombine.low %v270_v47, %v274_v48  ;;  %v1924_v60 = vcombine.low %v271_v49, %v275_v50 }
  0x1e   : > { %1468 = vmatpush1.bf16.msra.mxu0 %v1898_v35  ;;  %1550 = vmatpush1.bf16.msra.mxu1 %v1900_v36  ;;  %v282_v56 = vld [vmem:[%s2215_s23 + $0x1a0] sm:$0xff]  ;;  %v283_v58 = vld [vmem:[%s2215_s23 + $0x1a8] sm:$0xff] }
  0x1f   : > { %1469 = vmatprep.subr.bf16.mxu0 %v1907_v37  ;;  %1551 = vmatprep.subr.bf16.mxu1 %v1909_v38  ;;  %v1931_v61 = vcombine.high %v278_v55, %v282_v56  ;;  %v1933_v62 = vcombine.high %v279_v57, %v283_v58  ;;  %v286_v63 = vld [vmem:[%s2215_s23 + $0x1c0] sm:$0xff]  ;;  %v287_v1 = vld [vmem:[%s2215_s23 + $0x1c8] sm:$0xff]  ;;  %v1930_v3 = vcombine.low %v278_v55, %v282_v56 }
  0x20   : > { %v290_v0 = vld [vmem:[%s2215_s23 + $0x1e0] sm:$0xff]  ;;  %v291_v2 = vld [vmem:[%s2215_s23 + $0x1e8] sm:$0xff]  ;;  %v1932_v4 = vcombine.low %v279_v57, %v283_v58 }
  0x21   : > { %v1939_v7 = vcombine.high %v286_v63, %v290_v0  ;;  %v1941_v8 = vcombine.high %v287_v1, %v291_v2  ;;  %v294_v9 = vld [vmem:[%s2215_s23 + $0x200] sm:$0xff]  ;;  %v295_v12 = vld [vmem:[%s2215_s23 + $0x208] sm:$0xff]  ;;  %v1938_v14 = vcombine.low %v286_v63, %v290_v0  ;;  %v1940_v15 = vcombine.low %v287_v1, %v291_v2 }
  0x22   : > { %1470 = vmatpush1.bf16.msra.mxu0 %v1906_v43  ;;  %1552 = vmatpush1.bf16.msra.mxu1 %v1908_v44  ;;  %v298_v11 = vld [vmem:[%s2215_s23 + $0x220] sm:$0xff]  ;;  %v299_v13 = vld [vmem:[%s2215_s23 + $0x228] sm:$0xff] }
  0x23   : > { %1471 = vmatprep.subr.bf16.mxu0 %v1915_v45  ;;  %1553 = vmatprep.subr.bf16.mxu1 %v1917_v46  ;;  %v1947_v16 = vcombine.high %v294_v9, %v298_v11  ;;  %v1949_v17 = vcombine.high %v295_v12, %v299_v13  ;;  %v302_v18 = vld [vmem:[%s2215_s23 + $0x240] sm:$0xff]  ;;  %v303_v20 = vld [vmem:[%s2215_s23 + $0x248] sm:$0xff]  ;;  %v1946_v22 = vcombine.low %v294_v9, %v298_v11 }
  0x24   : > { %v306_v19 = vld [vmem:[%s2215_s23 + $0x260] sm:$0xff]  ;;  %v307_v21 = vld [vmem:[%s2215_s23 + $0x268] sm:$0xff]  ;;  %v1948_v23 = vcombine.low %v295_v12, %v299_v13 }
  0x25   : > { %v1955_v24 = vcombine.high %v302_v18, %v306_v19  ;;  %v1957_v25 = vcombine.high %v303_v20, %v307_v21  ;;  %v310_v27 = vld [vmem:[%s2215_s23 + $0x280] sm:$0xff]  ;;  %v311_v29 = vld [vmem:[%s2215_s23 + $0x288] sm:$0xff]  ;;  %v1954_v31 = vcombine.low %v302_v18, %v306_v19  ;;  %v1956_v32 = vcombine.low %v303_v20, %v307_v21 }
  0x26   : > { %1472 = vmatpush1.bf16.msra.mxu0 %v1914_v51  ;;  %1554 = vmatpush1.bf16.msra.mxu1 %v1916_v52  ;;  %v314_v28 = vld [vmem:[%s2215_s23 + $0x2a0] sm:$0xff]  ;;  %v315_v30 = vld [vmem:[%s2215_s23 + $0x2a8] sm:$0xff]  ;;  %v2163_v19 = vmov 0  }
  0x27   : > { %1473 = vmatprep.subr.bf16.mxu0 %v1923_v53  ;;  %1555 = vmatprep.subr.bf16.mxu1 %v1925_v54  ;;  %v1963_v33 = vcombine.high %v310_v27, %v314_v28  ;;  %v1965_v34 = vcombine.high %v311_v29, %v315_v30  ;;  %v318_v35 = vld [vmem:[%s2215_s23 + $0x2c0] sm:$0xff]  ;;  %v319_v37 = vld [vmem:[%s2215_s23 + $0x2c8] sm:$0xff]  ;;  %v1962_v39 = vcombine.low %v310_v27, %v314_v28 }
  0x28   : > { %v322_v36 = vld [vmem:[%s2215_s23 + $0x2e0] sm:$0xff]  ;;  %v323_v38 = vld [vmem:[%s2215_s23 + $0x2e8] sm:$0xff]  ;;  %v1964_v40 = vcombine.low %v311_v29, %v315_v30  ;;  %2128 = vset.pattern.permute.xlu0 %v2163_v19 }
  0x29   : > { %v1971_v41 = vcombine.high %v318_v35, %v322_v36  ;;  %v1973_v42 = vcombine.high %v319_v37, %v323_v38  ;;  %v326_v43 = vld [vmem:[%s2215_s23 + $0x300] sm:$0xff]  ;;  %v327_v45 = vld [vmem:[%s2215_s23 + $0x308] sm:$0xff]  ;;  %v1970_v47 = vcombine.low %v318_v35, %v322_v36  ;;  %v1972_v48 = vcombine.low %v319_v37, %v323_v38 }
  0x2a   : > { %1474 = vmatpush1.bf16.msra.mxu0 %v1922_v59  ;;  %1556 = vmatpush1.bf16.msra.mxu1 %v1924_v60  ;;  %v330_v44 = vld [vmem:[%s2215_s23 + $0x320] sm:$0xff]  ;;  %v331_v46 = vld [vmem:[%s2215_s23 + $0x328] sm:$0xff] }
  0x2b   : > { %1475 = vmatprep.subr.bf16.mxu0 %v1931_v61  ;;  %1557 = vmatprep.subr.bf16.mxu1 %v1933_v62  ;;  %v1979_v49 = vcombine.high %v326_v43, %v330_v44  ;;  %v1981_v50 = vcombine.high %v327_v45, %v331_v46  ;;  %v334_v51 = vld [vmem:[%s2215_s23 + $0x340] sm:$0xff]  ;;  %v335_v53 = vld [vmem:[%s2215_s23 + $0x348] sm:$0xff]  ;;  %v1978_v55 = vcombine.low %v326_v43, %v330_v44 }
  0x2c   : > { %v338_v52 = vld [vmem:[%s2215_s23 + $0x360] sm:$0xff]  ;;  %v339_v54 = vld [vmem:[%s2215_s23 + $0x368] sm:$0xff]  ;;  %v1980_v56 = vcombine.low %v327_v45, %v331_v46 }
  0x2d   : > { %v1987_v57 = vcombine.high %v334_v51, %v338_v52  ;;  %v1989_v58 = vcombine.high %v335_v53, %v339_v54  ;;  %v342_v59 = vld [vmem:[%s2215_s23 + $0x380] sm:$0xff]  ;;  %v343_v61 = vld [vmem:[%s2215_s23 + $0x388] sm:$0xff]  ;;  %v1986_v63 = vcombine.low %v334_v51, %v338_v52  ;;  %v1988_v0 = vcombine.low %v335_v53, %v339_v54 }
  0x2e   : > { %1476 = vmatpush1.bf16.msra.mxu0 %v1930_v3  ;;  %1558 = vmatpush1.bf16.msra.mxu1 %v1932_v4  ;;  %v346_v60 = vld [vmem:[%s2215_s23 + $0x3a0] sm:$0xff]  ;;  %v347_v62 = vld [vmem:[%s2215_s23 + $0x3a8] sm:$0xff] }
  0x2f   : > { %1477 = vmatprep.subr.bf16.mxu0 %v1939_v7  ;;  %1559 = vmatprep.subr.bf16.mxu1 %v1941_v8  ;;  %v1995_v1 = vcombine.high %v342_v59, %v346_v60  ;;  %v1997_v2 = vcombine.high %v343_v61, %v347_v62  ;;  %v350_v3 = vld [vmem:[%s2215_s23 + $0x3c0] sm:$0xff]  ;;  %v351_v7 = vld [vmem:[%s2215_s23 + $0x3c8] sm:$0xff]  ;;  %v1994_v9 = vcombine.low %v342_v59, %v346_v60 }
  0x30   : > { %v354_v4 = vld [vmem:[%s2215_s23 + $0x3e0] sm:$0xff]  ;;  %v355_v8 = vld [vmem:[%s2215_s23 + $0x3e8] sm:$0xff]  ;;  %v1996_v11 = vcombine.low %v343_v61, %v347_v62 }
  0x31   : > { %v2003_v12 = vcombine.high %v350_v3, %v354_v4  ;;  %v2005_v13 = vcombine.high %v351_v7, %v355_v8  ;;  %v363_v18 = vld [vmem:[%s2215_s23 + $0x428] sm:$0xff]  ;;  %v2002_v20 = vcombine.low %v350_v3, %v354_v4  ;;  %v427_v21 = vld [vmem:[%s2470_s2] sm:$0x7] }
  0x32   : > { %1478 = vmatpush1.bf16.msra.mxu0 %v1938_v14  ;;  %1560 = vmatpush1.bf16.msra.mxu1 %v1940_v15  ;;  %v358_v14 = vld [vmem:[%s2215_s23 + $0x400] sm:$0xff]  ;;  %v367_v28 = vld [vmem:[%s2215_s23 + $0x448] sm:$0xff] }
  0x33   : > { %1479 = vmatprep.subr.bf16.mxu0 %v1947_v16  ;;  %1561 = vmatprep.subr.bf16.mxu1 %v1949_v17  ;;  %v362_v15 = vld [vmem:[%s2215_s23 + $0x420] sm:$0xff]  ;;  %v434_v16 = vcombine.high %v2208_v5, %v2208_v5  ;;  %v359_v17 = vld [vmem:[%s2215_s23 + $0x408] sm:$0xff] }
  0x34   : > { %v366_v5 = vld [vmem:[%s2215_s23 + $0x440] sm:$0xff]  ;;  %430 = vperm.xlu0 %2128, %v427_v21   ;;  %v371_v29 = vld [vmem:[%s2215_s23 + $0x468] sm:$0xff]  ;;  %v2010_v30 = vcombine.low %v358_v14, %v362_v15 }
  0x35   : > { %v2303_v27 = vrot.slane %v434_v16, %v2210_v6  ;;  %v378_v35 = vld [vmem:[%s2215_s23 + $0x4a0] sm:$0xff]  ;;  %v375_v36 = vld [vmem:[%s2215_s23 + $0x488] sm:$0xff] }
  0x36   : > { %1480 = vmatpush1.bf16.msra.mxu0 %v1946_v22  ;;  %1562 = vmatpush1.bf16.msra.mxu1 %v1948_v23  ;;  %v2004_v22 = vcombine.low %v351_v7, %v355_v8  ;;  %v2011_v23 = vcombine.high %v358_v14, %v362_v15  ;;  %v379_v37 = vld [vmem:[%s2215_s23 + $0x4a8] sm:$0xff]  ;;  %v386_v43 = vld [vmem:[%s2215_s23 + $0x4e0] sm:$0xff] }
  0x37   : > { %1481 = vmatprep.subr.bf16.mxu0 %v1955_v24  ;;  %1563 = vmatprep.subr.bf16.mxu1 %v1957_v25  ;;  %v2013_v24 = vcombine.high %v359_v17, %v363_v18  ;;  %v370_v25 = vld [vmem:[%s2215_s23 + $0x460] sm:$0xff]  ;;  %v2311_v6 = vcombine.high %v2303_v27, %v2303_v27  ;;  %v383_v44 = vld [vmem:[%s2215_s23 + $0x4c8] sm:$0xff] }
  0x38   : > { %v2018_v38 = vcombine.low %v366_v5, %v370_v25  ;;  %v387_v45 = vld [vmem:[%s2215_s23 + $0x4e8] sm:$0xff]  ;;  %v394_v51 = vld [vmem:[%s2215_s23 + $0x520] sm:$0xff] }
  0x39   : > { %v391_v52 = vld [vmem:[%s2215_s23 + $0x508] sm:$0xff]  ;;  %v402_v59 = vld [vmem:[%s2215_s23 + $0x560] sm:$0xff] }
  0x3a   : > { %1482 = vmatpush1.bf16.msra.mxu0 %v1954_v31  ;;  %1564 = vmatpush1.bf16.msra.mxu1 %v1956_v32  ;;  %v2012_v31 = vcombine.low %v359_v17, %v363_v18  ;;  %v2019_v32 = vcombine.high %v366_v5, %v370_v25  ;;  %v395_v53 = vld [vmem:[%s2215_s23 + $0x528] sm:$0xff]  ;;  %v410_v3 = vld [vmem:[%s2215_s23 + $0x5a0] sm:$0xff] }
  0x3b   : > { %1483 = vmatprep.subr.bf16.mxu0 %v1963_v33  ;;  %1565 = vmatprep.subr.bf16.mxu1 %v1965_v34  ;;  %v2021_v33 = vcombine.high %v367_v28, %v371_v29  ;;  %v374_v34 = vld [vmem:[%s2215_s23 + $0x480] sm:$0xff]  ;;  %v399_v60 = vld [vmem:[%s2215_s23 + $0x548] sm:$0xff] }
  0x3c   : > { %v2026_v46 = vcombine.low %v374_v34, %v378_v35  ;;  %v403_v61 = vld [vmem:[%s2215_s23 + $0x568] sm:$0xff]  ;;  %v418_v14 = vld [vmem:[%s2215_s23 + $0x5e0] sm:$0xff] }
  0x3d   : > { %v407_v4 = vld [vmem:[%s2215_s23 + $0x588] sm:$0xff]  ;;  %v422_v21 = vld [vmem:[%s2215_s23 + $0x600] sm:$0xff] }
  0x3e   : > { %1484 = vmatpush1.bf16.msra.mxu0 %v1962_v39  ;;  %1566 = vmatpush1.bf16.msra.mxu1 %v1964_v40  ;;  %v2020_v39 = vcombine.low %v367_v28, %v371_v29  ;;  %v2027_v40 = vcombine.high %v374_v34, %v378_v35  ;;  %v411_v7 = vld [vmem:[%s2215_s23 + $0x5a8] sm:$0xff]  ;;  %v2075_v5 = vcombine.high %v422_v21, %v422_v21 }
  0x3f   : > { %1485 = vmatprep.subr.bf16.mxu0 %v1971_v41  ;;  %1567 = vmatprep.subr.bf16.mxu1 %v1973_v42  ;;  %v2029_v41 = vcombine.high %v375_v36, %v379_v37  ;;  %v382_v42 = vld [vmem:[%s2215_s23 + $0x4c0] sm:$0xff]  ;;  %v415_v15 = vld [vmem:[%s2215_s23 + $0x5c8] sm:$0xff]  ;;  %v2060_v18 = vcombine.low %v407_v4, %v411_v7  ;;  %v2074_v25 = vcombine.low %v422_v21, %v422_v21 }
  0x40   : > { %v2034_v54 = vcombine.low %v382_v42, %v386_v43  ;;  %v419_v16 = vld [vmem:[%s2215_s23 + $0x5e8] sm:$0xff] }
  0x41   : > { %v1440_v34 = vsel %vm1438_vm1, %v2074_v25, 0  ;;  %v289_v25 = vld [vmem:[%s2215_s23 + $0x1d8] sm:$0xff] }
  0x42   : > { %1486 = vmatpush1.bf16.msra.mxu0 %v1970_v47  ;;  %1568 = vmatpush1.bf16.msra.mxu1 %v1972_v48  ;;  %v2028_v47 = vcombine.low %v375_v36, %v379_v37  ;;  %v2035_v48 = vcombine.high %v382_v42, %v386_v43 }
  0x43   : > { %1487 = vmatprep.subr.bf16.mxu0 %v1979_v49  ;;  %1569 = vmatprep.subr.bf16.mxu1 %v1981_v50  ;;  %v2037_v49 = vcombine.high %v383_v44, %v387_v45  ;;  %v390_v50 = vld [vmem:[%s2215_s23 + $0x500] sm:$0xff] }
  0x44   : > { %v2042_v62 = vcombine.low %v390_v50, %v394_v51 }
  0x46   : > { %1488 = vmatpush1.bf16.msra.mxu0 %v1978_v55  ;;  %1570 = vmatpush1.bf16.msra.mxu1 %v1980_v56  ;;  %v2036_v55 = vcombine.low %v383_v44, %v387_v45  ;;  %v2043_v56 = vcombine.high %v390_v50, %v394_v51 }
  0x47   : > { %1489 = vmatprep.subr.bf16.mxu0 %v1987_v57  ;;  %1571 = vmatprep.subr.bf16.mxu1 %v1989_v58  ;;  %v2045_v57 = vcombine.high %v391_v52, %v395_v53  ;;  %v398_v58 = vld [vmem:[%s2215_s23 + $0x540] sm:$0xff] }
  0x48   : > { %v2050_v8 = vcombine.low %v398_v58, %v402_v59 }
  0x4a   : > { %1490 = vmatpush1.bf16.msra.mxu0 %v1986_v63  ;;  %1572 = vmatpush1.bf16.msra.mxu1 %v1988_v0  ;;  %v2044_v63 = vcombine.low %v391_v52, %v395_v53  ;;  %v2051_v0 = vcombine.high %v398_v58, %v402_v59 }
  0x4b   : > { %1491 = vmatprep.subr.bf16.mxu0 %v1995_v1  ;;  %1573 = vmatprep.subr.bf16.mxu1 %v1997_v2  ;;  %v2053_v1 = vcombine.high %v399_v60, %v403_v61  ;;  %v406_v2 = vld [vmem:[%s2215_s23 + $0x580] sm:$0xff] }
  0x4c   : > { %v2058_v17 = vcombine.low %v406_v2, %v410_v3 }
  0x4e   : > { %1492 = vmatpush1.bf16.msra.mxu0 %v1994_v9  ;;  %1574 = vmatpush1.bf16.msra.mxu1 %v1996_v11  ;;  %v2052_v9 = vcombine.low %v399_v60, %v403_v61  ;;  %v2059_v11 = vcombine.high %v406_v2, %v410_v3 }
  0x4f   : > { %1493 = vmatprep.subr.bf16.mxu0 %v2003_v12  ;;  %1575 = vmatprep.subr.bf16.mxu1 %v2005_v13  ;;  %v2061_v12 = vcombine.high %v407_v4, %v411_v7  ;;  %v414_v13 = vld [vmem:[%s2215_s23 + $0x5c0] sm:$0xff]  ;;  %v272_v7 = vld [vmem:[%s2215_s23 + $0x150] sm:$0xff] }
  0x50   : > { %v2067_v19 = vcombine.high %v414_v13, %v418_v14 }
  0x52   : > { %1494 = vmatpush1.bf16.msra.mxu0 %v2002_v20  ;;  %1576 = vmatpush1.bf16.msra.mxu1 %v2004_v22  ;;  %v2069_v20 = vcombine.high %v415_v15, %v419_v16  ;;  %v423_v22 = vld [vmem:[%s2215_s23 + $0x608] sm:$0xff] }
  0x53   : > { %1504 = vmatprep.subr.bf16.mxu0 %v2011_v23  ;;  %1586 = vmatprep.subr.bf16.mxu1 %v2013_v24  ;;  %v2066_v23 = vcombine.low %v414_v13, %v418_v14  ;;  %v2068_v24 = vcombine.low %v415_v15, %v419_v16  ;;  %v2077_v28 = vcombine.high %v423_v22, %v423_v22  ;;  %v280_v16 = vld [vmem:[%s2215_s23 + $0x190] sm:$0xff] }
  0x54   : > { %v2076_v29 = vcombine.low %v423_v22, %v423_v22 }
  0x55   : > { %1496 = vmatmul.mubr.bf16.vlgmr.msra.gmra.mrb[0].mxu0 %v2222_v10  ;;  %1578 = vmatmul.mubr.bf16.vlgmr.msra.gmra.mrb[0].mxu1 %v2222_v10 }
  0x56   : > { %1505 = vmatpush1.bf16.msra.mxu0 %v2010_v30  ;;  %1587 = vmatpush1.bf16.msra.mxu1 %v2012_v31  ;;  %v232_v30 = vld [vmem:[%s2215_s23 + $0x10] sm:$0xff]  ;;  %v1446_v36 = vsel %vm1438_vm1, %v2076_v29, 0 }
  0x57   : > { %1506 = vmatprep.subr.bf16.mxu0 %v2019_v32  ;;  %1588 = vmatprep.subr.bf16.mxu1 %v2021_v33  ;;  %v236_v31 = vld [vmem:[%s2215_s23 + $0x30] sm:$0xff]  ;;  %v233_v32 = vld [vmem:[%s2215_s23 + $0x18] sm:$0xff] }
  0x58   : > { %2083 = vmatprep.mubr.msk.bf16.mxu0 %vm1434_vm0, %v2311_v6  ;;  %2085 = vmatprep.mubr.msk.bf16.mxu1 %vm1434_vm0, %v2311_v6  ;;  %v237_v33 = vld [vmem:[%s2215_s23 + $0x38] sm:$0xff]  ;;  %v1887_v35 = vcombine.high %v232_v30, %v236_v31  ;;  %v1886_v42 = vcombine.low %v232_v30, %v236_v31 }
  0x59   : > { %v1889_v37 = vcombine.high %v233_v32, %v237_v33  ;;  %v1888_v43 = vcombine.low %v233_v32, %v237_v33  ;;  %v296_v33 = vld [vmem:[%s2215_s23 + $0x210] sm:$0xff] }
  0x5a   : > { %1507 = vmatpush1.bf16.msra.mxu0 %v2018_v38  ;;  %1589 = vmatpush1.bf16.msra.mxu1 %v2020_v39  ;;  %v240_v38 = vld [vmem:[%s2215_s23 + $0x50] sm:$0xff] }
  0x5b   : > { %1508 = vmatprep.subr.bf16.mxu0 %v2027_v40  ;;  %1590 = vmatprep.subr.bf16.mxu1 %v2029_v41  ;;  %v244_v39 = vld [vmem:[%s2215_s23 + $0x70] sm:$0xff]  ;;  %v241_v40 = vld [vmem:[%s2215_s23 + $0x58] sm:$0xff] }
  0x5c   : > { %v245_v41 = vld [vmem:[%s2215_s23 + $0x78] sm:$0xff]  ;;  %v1895_v44 = vcombine.high %v240_v38, %v244_v39  ;;  %v1894_v50 = vcombine.low %v240_v38, %v244_v39 }
  0x5d   : > { %v1897_v45 = vcombine.high %v241_v40, %v245_v41  ;;  %v1896_v51 = vcombine.low %v241_v40, %v245_v41  ;;  %v304_v41 = vld [vmem:[%s2215_s23 + $0x250] sm:$0xff] }
  0x5e   : > { %1509 = vmatpush1.bf16.msra.mxu0 %v2026_v46  ;;  %1591 = vmatpush1.bf16.msra.mxu1 %v2028_v47  ;;  %v248_v46 = vld [vmem:[%s2215_s23 + $0x90] sm:$0xff] }
  0x5f   : > { %1510 = vmatprep.subr.bf16.mxu0 %v2035_v48  ;;  %1592 = vmatprep.subr.bf16.mxu1 %v2037_v49  ;;  %v252_v47 = vld [vmem:[%s2215_s23 + $0xb0] sm:$0xff]  ;;  %v249_v48 = vld [vmem:[%s2215_s23 + $0x98] sm:$0xff] }
  0x60   : > { %v253_v49 = vld [vmem:[%s2215_s23 + $0xb8] sm:$0xff]  ;;  %v1903_v52 = vcombine.high %v248_v46, %v252_v47  ;;  %v1902_v58 = vcombine.low %v248_v46, %v252_v47 }
  0x61   : > { %v1905_v53 = vcombine.high %v249_v48, %v253_v49  ;;  %v1904_v59 = vcombine.low %v249_v48, %v253_v49  ;;  %v312_v49 = vld [vmem:[%s2215_s23 + $0x290] sm:$0xff] }
  0x62   : > { %1511 = vmatpush1.bf16.msra.mxu0 %v2034_v54  ;;  %1593 = vmatpush1.bf16.msra.mxu1 %v2036_v55  ;;  %v256_v54 = vld [vmem:[%s2215_s23 + $0xd0] sm:$0xff] }
  0x63   : > { %1512 = vmatprep.subr.bf16.mxu0 %v2043_v56  ;;  %1594 = vmatprep.subr.bf16.mxu1 %v2045_v57  ;;  %v260_v55 = vld [vmem:[%s2215_s23 + $0xf0] sm:$0xff]  ;;  %v257_v56 = vld [vmem:[%s2215_s23 + $0xd8] sm:$0xff] }
  0x64   : > { %v261_v57 = vld [vmem:[%s2215_s23 + $0xf8] sm:$0xff]  ;;  %v1911_v60 = vcombine.high %v256_v54, %v260_v55  ;;  %v1910_v2 = vcombine.low %v256_v54, %v260_v55 }
  0x65   : > { %v1913_v61 = vcombine.high %v257_v56, %v261_v57 }
  0x66   : > { %1513 = vmatpush1.bf16.msra.mxu0 %v2042_v62  ;;  %1595 = vmatpush1.bf16.msra.mxu1 %v2044_v63  ;;  %v264_v62 = vld [vmem:[%s2215_s23 + $0x110] sm:$0xff] }
  0x67   : > { %1514 = vmatprep.subr.bf16.mxu0 %v2051_v0  ;;  %1596 = vmatprep.subr.bf16.mxu1 %v2053_v1  ;;  %v268_v63 = vld [vmem:[%s2215_s23 + $0x130] sm:$0xff]  ;;  %v265_v0 = vld [vmem:[%s2215_s23 + $0x118] sm:$0xff] }
  0x68   : > { %v269_v1 = vld [vmem:[%s2215_s23 + $0x138] sm:$0xff]  ;;  %v1919_v3 = vcombine.high %v264_v62, %v268_v63 }
  0x69   : > { %v1921_v4 = vcombine.high %v265_v0, %v269_v1  ;;  %v1920_v13 = vcombine.low %v265_v0, %v269_v1  ;;  %v328_v1 = vld [vmem:[%s2215_s23 + $0x310] sm:$0xff] }
  0x6a   : > { %1515 = vmatpush1.bf16.msra.mxu0 %v2050_v8  ;;  %1597 = vmatpush1.bf16.msra.mxu1 %v2052_v9  ;;  %v276_v8 = vld [vmem:[%s2215_s23 + $0x170] sm:$0xff]  ;;  %v273_v9 = vld [vmem:[%s2215_s23 + $0x158] sm:$0xff] }
  0x6b   : > { %1516 = vmatprep.subr.bf16.mxu0 %v2059_v11  ;;  %1598 = vmatprep.subr.bf16.mxu1 %v2061_v12  ;;  %v277_v11 = vld [vmem:[%s2215_s23 + $0x178] sm:$0xff]  ;;  %v1918_v12 = vcombine.low %v264_v62, %v268_v63  ;;  %v1927_v14 = vcombine.high %v272_v7, %v276_v8 }
  0x6c   : > { %v1929_v15 = vcombine.high %v273_v9, %v277_v11  ;;  %v1928_v21 = vcombine.low %v273_v9, %v277_v11  ;;  %v336_v11 = vld [vmem:[%s2215_s23 + $0x350] sm:$0xff] }
  0x6e   : > { %1517 = vmatpush1.bf16.msra.mxu0 %v2058_v17  ;;  %1599 = vmatpush1.bf16.msra.mxu1 %v2060_v18  ;;  %v284_v17 = vld [vmem:[%s2215_s23 + $0x1b0] sm:$0xff]  ;;  %v281_v18 = vld [vmem:[%s2215_s23 + $0x198] sm:$0xff] }
  0x6f   : > { %1518 = vmatprep.subr.bf16.mxu0 %v2067_v19  ;;  %1600 = vmatprep.subr.bf16.mxu1 %v2069_v20  ;;  %v285_v19 = vld [vmem:[%s2215_s23 + $0x1b8] sm:$0xff]  ;;  %v1926_v20 = vcombine.low %v272_v7, %v276_v8  ;;  %v1935_v22 = vcombine.high %v280_v16, %v284_v17  ;;  %v1934_v29 = vcombine.low %v280_v16, %v284_v17 }
  0x70   : > { %v1936_v30 = vcombine.low %v281_v18, %v285_v19 }
  0x72   : > { %1519 = vmatpush1.bf16.msra.mxu0 %v2066_v23  ;;  %1601 = vmatpush1.bf16.msra.mxu1 %v2068_v24  ;;  %v1937_v23 = vcombine.high %v281_v18, %v285_v19  ;;  %v288_v24 = vld [vmem:[%s2215_s23 + $0x1d0] sm:$0xff] }
  0x73   : > { %2082 = vmatprep.subr.msk.bf16.mxu0 %vm1438_vm1, %v2075_v5  ;;  %2084 = vmatprep.subr.msk.bf16.mxu1 %vm1438_vm1, %v2077_v28  ;;  %v292_v5 = vld [vmem:[%s2215_s23 + $0x1f0] sm:$0xff]  ;;  %v293_v28 = vld [vmem:[%s2215_s23 + $0x1f8] sm:$0xff] }
  0x74   : > { %v1943_v31 = vcombine.high %v288_v24, %v292_v5  ;;  %v1945_v32 = vcombine.high %v289_v25, %v293_v28  ;;  %v1944_v38 = vcombine.low %v289_v25, %v293_v28  ;;  %v344_v19 = vld [vmem:[%s2215_s23 + $0x390] sm:$0xff] }
  0x75   : > { %v352_v28 = vld [vmem:[%s2215_s23 + $0x3d0] sm:$0xff] }
  0x76   : > { %1521 = vmatpush1.bf16.msra.mxu0 %v1440_v34  ;;  %1603 = vmatpush1.bf16.msra.mxu1 %v1446_v36  ;;  %v300_v34 = vld [vmem:[%s2215_s23 + $0x230] sm:$0xff]  ;;  %v301_v36 = vld [vmem:[%s2215_s23 + $0x238] sm:$0xff] }
  0x77   : > { %1627 = vmatprep.subr.bf16.mxu0 %v1887_v35  ;;  %1709 = vmatprep.subr.bf16.mxu1 %v1889_v37  ;;  %v297_v35 = vld [vmem:[%s2215_s23 + $0x218] sm:$0xff]  ;;  %v1942_v37 = vcombine.low %v288_v24, %v292_v5  ;;  %v1951_v39 = vcombine.high %v296_v33, %v300_v34 }
  0x78   : > { %v1953_v40 = vcombine.high %v297_v35, %v301_v36  ;;  %v1952_v46 = vcombine.low %v297_v35, %v301_v36  ;;  %v360_v36 = vld [vmem:[%s2215_s23 + $0x410] sm:$0xff] }
  0x79   : > { %1537 = vmatmul.mubr.bf16.vlgmr.msra.gmra.mrb[0].mxu0 %v2303_v27  ;;  %1619 = vmatmul.mubr.bf16.vlgmr.msra.gmra.mrb[0].mxu1 %v2303_v27 }
  0x7a   : > { %1628 = vmatpush1.bf16.msra.mxu0 %v1886_v42  ;;  %1710 = vmatpush1.bf16.msra.mxu1 %v1888_v43  ;;  %v308_v42 = vld [vmem:[%s2215_s23 + $0x270] sm:$0xff]  ;;  %v305_v43 = vld [vmem:[%s2215_s23 + $0x258] sm:$0xff] }
  0x7b   : > { %1629 = vmatprep.subr.bf16.mxu0 %v1895_v44  ;;  %1711 = vmatprep.subr.bf16.mxu1 %v1897_v45  ;;  %v309_v44 = vld [vmem:[%s2215_s23 + $0x278] sm:$0xff]  ;;  %v1950_v45 = vcombine.low %v296_v33, %v300_v34  ;;  %v1959_v47 = vcombine.high %v304_v41, %v308_v42 }
  0x7c   : > { %1659 = vmatprep.mubr.bf16.mxu0 %v2235_v26  ;;  %1741 = vmatprep.mubr.bf16.mxu1 %v2235_v26  ;;  %v1912_v26 = vcombine.low %v257_v56, %v261_v57  ;;  %v1961_v48 = vcombine.high %v305_v43, %v309_v44  ;;  %v1960_v54 = vcombine.low %v305_v43, %v309_v44  ;;  %v320_v57 = vld [vmem:[%s2215_s23 + $0x2d0] sm:$0xff] }
  0x7d   : > { %v368_v44 = vld [vmem:[%s2215_s23 + $0x450] sm:$0xff] }
  0x7e   : > { %1630 = vmatpush1.bf16.msra.mxu0 %v1894_v50  ;;  %1712 = vmatpush1.bf16.msra.mxu1 %v1896_v51  ;;  %v316_v50 = vld [vmem:[%s2215_s23 + $0x2b0] sm:$0xff]  ;;  %v313_v51 = vld [vmem:[%s2215_s23 + $0x298] sm:$0xff] }
  0x7f   : > { %1631 = vmatprep.subr.bf16.mxu0 %v1903_v52  ;;  %1713 = vmatprep.subr.bf16.mxu1 %v1905_v53  ;;  %v317_v52 = vld [vmem:[%s2215_s23 + $0x2b8] sm:$0xff]  ;;  %v1958_v53 = vcombine.low %v304_v41, %v308_v42  ;;  %v1967_v55 = vcombine.high %v312_v49, %v316_v50 }
  0x80   : > { %v1969_v56 = vcombine.high %v313_v51, %v317_v52  ;;  %v1968_v62 = vcombine.low %v313_v51, %v317_v52  ;;  %v376_v52 = vld [vmem:[%s2215_s23 + $0x490] sm:$0xff] }
  0x82   : > { %1632 = vmatpush1.bf16.msra.mxu0 %v1902_v58  ;;  %1714 = vmatpush1.bf16.msra.mxu1 %v1904_v59  ;;  %v324_v58 = vld [vmem:[%s2215_s23 + $0x2f0] sm:$0xff]  ;;  %v321_v59 = vld [vmem:[%s2215_s23 + $0x2d8] sm:$0xff] }
  0x83   : > { %1633 = vmatprep.subr.bf16.mxu0 %v1911_v60  ;;  %1715 = vmatprep.subr.bf16.mxu1 %v1913_v61  ;;  %v325_v60 = vld [vmem:[%s2215_s23 + $0x2f8] sm:$0xff]  ;;  %v1966_v61 = vcombine.low %v312_v49, %v316_v50  ;;  %v1975_v63 = vcombine.high %v320_v57, %v324_v58 }
  0x84   : > { %v1977_v0 = vcombine.high %v321_v59, %v325_v60  ;;  %v1976_v7 = vcombine.low %v321_v59, %v325_v60  ;;  %v384_v60 = vld [vmem:[%s2215_s23 + $0x4d0] sm:$0xff] }
  0x86   : > { %1634 = vmatpush1.bf16.msra.mxu0 %v1910_v2  ;;  %1716 = vmatpush1.bf16.msra.mxu1 %v1912_v26  ;;  %v332_v2 = vld [vmem:[%s2215_s23 + $0x330] sm:$0xff]  ;;  %v329_v26 = vld [vmem:[%s2215_s23 + $0x318] sm:$0xff] }
  0x87   : > { %1635 = vmatprep.subr.bf16.mxu0 %v1919_v3  ;;  %1717 = vmatprep.subr.bf16.mxu1 %v1921_v4  ;;  %v333_v3 = vld [vmem:[%s2215_s23 + $0x338] sm:$0xff]  ;;  %v1974_v4 = vcombine.low %v320_v57, %v324_v58  ;;  %v1983_v8 = vcombine.high %v328_v1, %v332_v2 }
  0x88   : > { %v1985_v9 = vcombine.high %v329_v26, %v333_v3  ;;  %v1984_v16 = vcombine.low %v329_v26, %v333_v3  ;;  %v392_v26 = vld [vmem:[%s2215_s23 + $0x510] sm:$0xff] }
  0x89   : > { %v396_v3 = vld [vmem:[%s2215_s23 + $0x530] sm:$0xff] }
  0x8a   : > { %1636 = vmatpush1.bf16.msra.mxu0 %v1918_v12  ;;  %1718 = vmatpush1.bf16.msra.mxu1 %v1920_v13  ;;  %v340_v12 = vld [vmem:[%s2215_s23 + $0x370] sm:$0xff]  ;;  %v337_v13 = vld [vmem:[%s2215_s23 + $0x358] sm:$0xff] }
  0x8b   : > { %1637 = vmatprep.subr.bf16.mxu0 %v1927_v14  ;;  %1719 = vmatprep.subr.bf16.mxu1 %v1929_v15  ;;  %v341_v14 = vld [vmem:[%s2215_s23 + $0x378] sm:$0xff]  ;;  %v1982_v15 = vcombine.low %v328_v1, %v332_v2  ;;  %v1991_v17 = vcombine.high %v336_v11, %v340_v12 }
  0x8c   : > { %v1993_v18 = vcombine.high %v337_v13, %v341_v14  ;;  %v1992_v24 = vcombine.low %v337_v13, %v341_v14  ;;  %v404_v13 = vld [vmem:[%s2215_s23 + $0x570] sm:$0xff]  ;;  %v401_v14 = vld [vmem:[%s2215_s23 + $0x558] sm:$0xff] }
  0x8e   : > { %1638 = vmatpush1.bf16.msra.mxu0 %v1926_v20  ;;  %1720 = vmatpush1.bf16.msra.mxu1 %v1928_v21  ;;  %v348_v20 = vld [vmem:[%s2215_s23 + $0x3b0] sm:$0xff]  ;;  %v345_v21 = vld [vmem:[%s2215_s23 + $0x398] sm:$0xff] }
  0x8f   : > { %1639 = vmatprep.subr.bf16.mxu0 %v1935_v22  ;;  %1721 = vmatprep.subr.bf16.mxu1 %v1937_v23  ;;  %v349_v22 = vld [vmem:[%s2215_s23 + $0x3b8] sm:$0xff]  ;;  %v1990_v23 = vcombine.low %v336_v11, %v340_v12  ;;  %v1999_v5 = vcombine.high %v344_v19, %v348_v20  ;;  %v400_v12 = vld [vmem:[%s2215_s23 + $0x550] sm:$0xff] }
  0x90   : > { %v2001_v25 = vcombine.high %v345_v21, %v349_v22  ;;  %v2000_v33 = vcombine.low %v345_v21, %v349_v22  ;;  %v412_v21 = vld [vmem:[%s2215_s23 + $0x5b0] sm:$0xff]  ;;  %v409_v22 = vld [vmem:[%s2215_s23 + $0x598] sm:$0xff] }
  0x92   : > { %1640 = vmatpush1.bf16.msra.mxu0 %v1934_v29  ;;  %1722 = vmatpush1.bf16.msra.mxu1 %v1936_v30  ;;  %v356_v29 = vld [vmem:[%s2215_s23 + $0x3f0] sm:$0xff]  ;;  %v353_v30 = vld [vmem:[%s2215_s23 + $0x3d8] sm:$0xff] }
  0x93   : > { %1641 = vmatprep.subr.bf16.mxu0 %v1943_v31  ;;  %1723 = vmatprep.subr.bf16.mxu1 %v1945_v32  ;;  %v357_v31 = vld [vmem:[%s2215_s23 + $0x3f8] sm:$0xff]  ;;  %v1998_v32 = vcombine.low %v344_v19, %v348_v20  ;;  %v2007_v34 = vcombine.high %v352_v28, %v356_v29  ;;  %v408_v20 = vld [vmem:[%s2215_s23 + $0x590] sm:$0xff] }
  0x94   : > { %v2009_v35 = vcombine.high %v353_v30, %v357_v31  ;;  %v2008_v41 = vcombine.low %v353_v30, %v357_v31  ;;  %v420_v30 = vld [vmem:[%s2215_s23 + $0x5f0] sm:$0xff]  ;;  %v417_v31 = vld [vmem:[%s2215_s23 + $0x5d8] sm:$0xff] }
  0x96   : > { %1642 = vmatpush1.bf16.msra.mxu0 %v1942_v37  ;;  %1724 = vmatpush1.bf16.msra.mxu1 %v1944_v38  ;;  %v364_v37 = vld [vmem:[%s2215_s23 + $0x430] sm:$0xff]  ;;  %v361_v38 = vld [vmem:[%s2215_s23 + $0x418] sm:$0xff] }
  0x97   : > { %1643 = vmatprep.subr.bf16.mxu0 %v1951_v39  ;;  %1725 = vmatprep.subr.bf16.mxu1 %v1953_v40  ;;  %v365_v39 = vld [vmem:[%s2215_s23 + $0x438] sm:$0xff]  ;;  %v2006_v40 = vcombine.low %v352_v28, %v356_v29  ;;  %v2015_v42 = vcombine.high %v360_v36, %v364_v37  ;;  %v416_v29 = vld [vmem:[%s2215_s23 + $0x5d0] sm:$0xff] }
  0x98   : > { %v2017_v43 = vcombine.high %v361_v38, %v365_v39  ;;  %v2016_v49 = vcombine.low %v361_v38, %v365_v39  ;;  %v425_v38 = vld [vmem:[%s2215_s23 + $0x618] sm:$0xff]  ;;  %v2070_v39 = vcombine.low %v416_v29, %v420_v30 }
  0x9a   : > { %1644 = vmatpush1.bf16.msra.mxu0 %v1950_v45  ;;  %1726 = vmatpush1.bf16.msra.mxu1 %v1952_v46  ;;  %v372_v45 = vld [vmem:[%s2215_s23 + $0x470] sm:$0xff]  ;;  %v369_v46 = vld [vmem:[%s2215_s23 + $0x458] sm:$0xff] }
  0x9b   : > { %1645 = vmatprep.subr.bf16.mxu0 %v1959_v47  ;;  %1727 = vmatprep.subr.bf16.mxu1 %v1961_v48  ;;  %v373_v47 = vld [vmem:[%s2215_s23 + $0x478] sm:$0xff]  ;;  %v2014_v48 = vcombine.low %v360_v36, %v364_v37  ;;  %v2023_v50 = vcombine.high %v368_v44, %v372_v45  ;;  %v424_v37 = vld [vmem:[%s2215_s23 + $0x610] sm:$0xff] }
  0x9c   : > { %v2025_v51 = vcombine.high %v369_v46, %v373_v47  ;;  %v2024_v57 = vcombine.low %v369_v46, %v373_v47 }
  0x9e   : > { %1646 = vmatpush1.bf16.msra.mxu0 %v1958_v53  ;;  %1728 = vmatpush1.bf16.msra.mxu1 %v1960_v54  ;;  %v380_v53 = vld [vmem:[%s2215_s23 + $0x4b0] sm:$0xff]  ;;  %v377_v54 = vld [vmem:[%s2215_s23 + $0x498] sm:$0xff] }
  0x9f   : > { %1647 = vmatprep.subr.bf16.mxu0 %v1967_v55  ;;  %1729 = vmatprep.subr.bf16.mxu1 %v1969_v56  ;;  %v381_v55 = vld [vmem:[%s2215_s23 + $0x4b8] sm:$0xff]  ;;  %v2022_v56 = vcombine.low %v368_v44, %v372_v45  ;;  %v2031_v58 = vcombine.high %v376_v52, %v380_v53  ;;  %v2080_v44 = vcombine.low %v425_v38, %v425_v38 }
  0xa0   : > { %v2033_v59 = vcombine.high %v377_v54, %v381_v55 }
  0xa1   : > { %v1458_v46 = vsel %vm1438_vm1, %v2080_v44, 0 }
  0xa2   : > { %1648 = vmatpush1.bf16.msra.mxu0 %v1966_v61  ;;  %1730 = vmatpush1.bf16.msra.mxu1 %v1968_v62  ;;  %v388_v61 = vld [vmem:[%s2215_s23 + $0x4f0] sm:$0xff]  ;;  %v385_v62 = vld [vmem:[%s2215_s23 + $0x4d8] sm:$0xff] }
  0xa3   : > { %1649 = vmatprep.subr.bf16.mxu0 %v1975_v63  ;;  %1731 = vmatprep.subr.bf16.mxu1 %v1977_v0  ;;  %v389_v63 = vld [vmem:[%s2215_s23 + $0x4f8] sm:$0xff]  ;;  %v2032_v0 = vcombine.low %v377_v54, %v381_v55  ;;  %v2039_v1 = vcombine.high %v384_v60, %v388_v61 }
  0xa4   : > { %v2041_v2 = vcombine.high %v385_v62, %v389_v63 }
  0xa6   : > { %1650 = vmatpush1.bf16.msra.mxu0 %v1974_v4  ;;  %1732 = vmatpush1.bf16.msra.mxu1 %v1976_v7  ;;  %v393_v4 = vld [vmem:[%s2215_s23 + $0x518] sm:$0xff] }
  0xa7   : > { %1651 = vmatprep.subr.bf16.mxu0 %v1983_v8  ;;  %1733 = vmatprep.subr.bf16.mxu1 %v1985_v9  ;;  %v397_v7 = vld [vmem:[%s2215_s23 + $0x538] sm:$0xff]  ;;  %v2038_v8 = vcombine.low %v384_v60, %v388_v61  ;;  %v2047_v9 = vcombine.high %v392_v26, %v396_v3 }
  0xa8   : > { %v2049_v11 = vcombine.high %v393_v4, %v397_v7 }
  0xaa   : > { %1652 = vmatpush1.bf16.msra.mxu0 %v1982_v15  ;;  %1734 = vmatpush1.bf16.msra.mxu1 %v1984_v16  ;;  %v405_v15 = vld [vmem:[%s2215_s23 + $0x578] sm:$0xff]  ;;  %v2046_v16 = vcombine.low %v392_v26, %v396_v3 }
  0xab   : > { %1653 = vmatprep.subr.bf16.mxu0 %v1991_v17  ;;  %1735 = vmatprep.subr.bf16.mxu1 %v1993_v18  ;;  %v2048_v17 = vcombine.low %v393_v4, %v397_v7  ;;  %v2055_v18 = vcombine.high %v400_v12, %v404_v13  ;;  %v2057_v19 = vcombine.high %v401_v14, %v405_v15 }
  0xae   : > { %1654 = vmatpush1.bf16.msra.mxu0 %v1990_v23  ;;  %1736 = vmatpush1.bf16.msra.mxu1 %v1992_v24  ;;  %v413_v23 = vld [vmem:[%s2215_s23 + $0x5b8] sm:$0xff]  ;;  %v2054_v24 = vcombine.low %v400_v12, %v404_v13 }
  0xaf   : > { %1655 = vmatprep.subr.bf16.mxu0 %v1999_v5  ;;  %1737 = vmatprep.subr.bf16.mxu1 %v2001_v25  ;;  %v2056_v5 = vcombine.low %v401_v14, %v405_v15  ;;  %v2063_v25 = vcombine.high %v408_v20, %v412_v21  ;;  %v2065_v28 = vcombine.high %v409_v22, %v413_v23 }
  0xb2   : > { %1656 = vmatpush1.bf16.msra.mxu0 %v1998_v32  ;;  %1738 = vmatpush1.bf16.msra.mxu1 %v2000_v33  ;;  %v421_v32 = vld [vmem:[%s2215_s23 + $0x5f8] sm:$0xff]  ;;  %v2062_v33 = vcombine.low %v408_v20, %v412_v21 }
  0xb3   : > { %1657 = vmatprep.subr.bf16.mxu0 %v2007_v34  ;;  %1739 = vmatprep.subr.bf16.mxu1 %v2009_v35  ;;  %v2064_v34 = vcombine.low %v409_v22, %v413_v23  ;;  %v2071_v35 = vcombine.high %v416_v29, %v420_v30  ;;  %v2073_v36 = vcombine.high %v417_v31, %v421_v32  ;;  %v431_v47 = vpop.permute.xlu0 %430 }
  0xb6   : > { %1658 = vmatpush1.bf16.msra.mxu0 %v2006_v40  ;;  %1740 = vmatpush1.bf16.msra.mxu1 %v2008_v41  ;;  %v2072_v40 = vcombine.low %v417_v31, %v421_v32  ;;  %v2079_v41 = vcombine.high %v424_v37, %v424_v37 }
  0xb7   : > { %1668 = vmatprep.subr.bf16.mxu0 %v2015_v42  ;;  %1750 = vmatprep.subr.bf16.mxu1 %v2017_v43  ;;  %v2078_v42 = vcombine.low %v424_v37, %v424_v37  ;;  %v2081_v43 = vcombine.high %v425_v38, %v425_v38 }
  0xb9   : > { %1660 = vmatmul.mubr.bf16.vlgmr.msra.gmra.mrb[4].mxu0 %v2222_v10  ;;  %1742 = vmatmul.mubr.bf16.vlgmr.msra.gmra.mrb[4].mxu1 %v2222_v10  ;;  %v2030_v10 = vcombine.low %v376_v52, %v380_v53  ;;  %v1452_v45 = vsel %vm1438_vm1, %v2078_v42, 0 }
  0xba   : > { %1669 = vmatpush1.bf16.msra.mxu0 %v2014_v48  ;;  %1751 = vmatpush1.bf16.msra.mxu1 %v2016_v49 }
  0xbb   : > { %1670 = vmatprep.subr.bf16.mxu0 %v2023_v50  ;;  %1752 = vmatprep.subr.bf16.mxu1 %v2025_v51 }
  0xbc   : > { %2087 = vmatprep.mubr.msk.bf16.mxu0 %vm1434_vm0, %v2311_v6  ;;  %2089 = vmatprep.mubr.msk.bf16.mxu1 %vm1434_vm0, %v2311_v6  ;;  %v2040_v6 = vcombine.low %v385_v62, %v389_v63 }
  0xbe   : > { %1671 = vmatpush1.bf16.msra.mxu0 %v2022_v56  ;;  %1753 = vmatpush1.bf16.msra.mxu1 %v2024_v57 }
  0xbf   : > { %1672 = vmatprep.subr.bf16.mxu0 %v2031_v58  ;;  %1754 = vmatprep.subr.bf16.mxu1 %v2033_v59 }
  0xc2   : > { %1673 = vmatpush1.bf16.msra.mxu0 %v2030_v10  ;;  %1755 = vmatpush1.bf16.msra.mxu1 %v2032_v0 }
  0xc3   : > { %1674 = vmatprep.subr.bf16.mxu0 %v2039_v1  ;;  %1756 = vmatprep.subr.bf16.mxu1 %v2041_v2 }
  0xc6   : > { %1675 = vmatpush1.bf16.msra.mxu0 %v2038_v8  ;;  %1757 = vmatpush1.bf16.msra.mxu1 %v2040_v6 }
  0xc7   : > { %1676 = vmatprep.subr.bf16.mxu0 %v2047_v9  ;;  %1758 = vmatprep.subr.bf16.mxu1 %v2049_v11 }
  0xca   : > { %1677 = vmatpush1.bf16.msra.mxu0 %v2046_v16  ;;  %1759 = vmatpush1.bf16.msra.mxu1 %v2048_v17 }
  0xcb   : > { %1678 = vmatprep.subr.bf16.mxu0 %v2055_v18  ;;  %1760 = vmatprep.subr.bf16.mxu1 %v2057_v19 }
  0xce   : > { %1679 = vmatpush1.bf16.msra.mxu0 %v2054_v24  ;;  %1761 = vmatpush1.bf16.msra.mxu1 %v2056_v5 }
  0xcf   : > { %1680 = vmatprep.subr.bf16.mxu0 %v2063_v25  ;;  %1762 = vmatprep.subr.bf16.mxu1 %v2065_v28 }
  0xd2   : > { %1681 = vmatpush1.bf16.msra.mxu0 %v2062_v33  ;;  %1763 = vmatpush1.bf16.msra.mxu1 %v2064_v34 }
  0xd3   : > { %1682 = vmatprep.subr.bf16.mxu0 %v2071_v35  ;;  %1764 = vmatprep.subr.bf16.mxu1 %v2073_v36 }
  0xd6   : > { %1683 = vmatpush1.bf16.msra.mxu0 %v2070_v39  ;;  %1765 = vmatpush1.bf16.msra.mxu1 %v2072_v40 }
  0xd7   : > { %2086 = vmatprep.subr.msk.bf16.mxu0 %vm1438_vm1, %v2079_v41  ;;  %2088 = vmatprep.subr.msk.bf16.mxu1 %vm1438_vm1, %v2081_v43 }
  0xda   : > { %1685 = vmatpush1.bf16.msra.mxu0 %v1452_v45  ;;  %1767 = vmatpush1.bf16.msra.mxu1 %v1458_v46 }
  0xdd   : > { %1701 = vmatmul.mubr.bf16.vlgmr.msra.gmra.mrb[4].mxu0 %v2303_v27  ;;  %1783 = vmatmul.mubr.bf16.vlgmr.msra.gmra.mrb[4].mxu1 %v2303_v27 }
 0x14c   : > { %v1538_v48 = vpop.f32.mrb[0].mxu0  ;;  %v1620_v50 = vpop.f32.mrb[0].mxu1 }
 0x14d   : > { %v2093_v49 = vadd.f32 %v1538_v48, %v431_v47  ;;  %v1540_v51 = vpop.f32.mrb[1].mxu0  ;;  %v2095_v52 = vadd.f32 %v1620_v50, %v431_v47  ;;  %v1622_v54 = vpop.f32.mrb[1].mxu1 }
 0x14e   : > { %v2094_v53 = vadd.f32 %v1540_v51, %v431_v47  ;;  %v1542_v55 = vpop.f32.mrb[2].mxu0  ;;  %v2096_v56 = vadd.f32 %v1622_v54, %v431_v47  ;;  %v1624_v57 = vpop.f32.mrb[2].mxu1 }
 0x14f   : > { %2138 = vtanh.f32 %v2093_v49  ;;  %v1543_v58 = vpop.f32.mrb[3].mxu0  ;;  %v1625_v59 = vpop.f32.mrb[3].mxu1 }
 0x150   : > { %2140 = vtanh.f32 %v2095_v52 }
 0x151   : > { %2142 = vtanh.f32 %v2094_v53 }
 0x152   : > { %2144 = vtanh.f32 %v2096_v56 }
 0x159   : > { %v2139_v27 = vpop.eup %2138 }
 0x15a   : > { %v2141_v60 = vpop.eup %2140 }
 0x15b   : > { %v2143_v61 = vpop.eup %2142 }
 0x15c   : > { %v2145_v62 = vpop.eup %2144  ;;  %v1807_v63 = vcombine.low %v2139_v27, %v2143_v61 }
 0x15d   : > { %v1808_v10 = vcombine.low %v2141_v60, %v2145_v62 }
 0x15e   : > { %1815 = vst [vmem:[%s228_s29] sm:$0x77] %v1807_v63 }
 0x15f   : > { %1816 = vst [vmem:[%s228_s29 + $0x8] sm:$0x77] %v1808_v10 }
 0x1b0   : > { %v1702_v0 = vpop.f32.mrb[4].mxu0  ;;  %v1784_v2 = vpop.f32.mrb[4].mxu1 }
 0x1b1   : > { %v2097_v1 = vadd.f32 %v1702_v0, %v431_v47  ;;  %v1704_v26 = vpop.f32.mrb[5].mxu0  ;;  %v2099_v3 = vadd.f32 %v1784_v2, %v431_v47  ;;  %v1786_v7 = vpop.f32.mrb[5].mxu1 }
 0x1b2   : > { %v2098_v4 = vadd.f32 %v1704_v26, %v431_v47  ;;  %v1706_v8 = vpop.f32.mrb[6].mxu0  ;;  %v2100_v6 = vadd.f32 %v1786_v7, %v431_v47  ;;  %v1788_v9 = vpop.f32.mrb[6].mxu1 }
 0x1b3   : > { %2146 = vtanh.f32 %v2097_v1  ;;  %v1707_v11 = vpop.f32.mrb[7].mxu0  ;;  %v1789_v12 = vpop.f32.mrb[7].mxu1 }
 0x1b4   : > { %2148 = vtanh.f32 %v2099_v3 }
 0x1b5   : > { %2150 = vtanh.f32 %v2098_v4 }
 0x1b6   : > { %2152 = vtanh.f32 %v2100_v6 }
 0x1bd   : > { %v2147_v13 = vpop.eup %2146 }
 0x1be   : > { %v2149_v14 = vpop.eup %2148 }
 0x1bf   : > { %v2151_v15 = vpop.eup %2150 }
 0x1c0   : > { %v2153_v16 = vpop.eup %2152  ;;  %v1809_v17 = vcombine.low %v2147_v13, %v2151_v15 }
 0x1c1   : > { %v1810_v18 = vcombine.low %v2149_v14, %v2153_v16 }
 0x1c2   : > { %1817 = vst [vmem:[%s228_s29 + $0x10] sm:$0x77] %v1809_v17 }
 0x1c3   : > { %1818 = vst [vmem:[%s228_s29 + $0x18] sm:$0x77] %v1810_v18 }
 0x1c4 PF: > { %s19_s18 = sadd.s32 1, %s2160_s18  }
 0x1c5   : > { %p16_p4 = scmp.ge.s32.totalorder %s19_s18, 4  }
 0x1c7   :  { %18 = sbr.rel (!%p16_p4) target bundleno = 1 (0x1), region = 70 }

</bundles_post_ra>
